<compile_context>
chip_gen: v7x
topology: tpu7x:2x2x1
jax: 0.10.0
libtpu: 0.0.40
codegen_flags: <defaults>
</compile_context>

<pallas_src>
import jax
import jax.numpy as jnp
from jax.experimental import pallas as pl

IMG = 32 * 32        # one image occupies a 1024-column block of the canvas
PAD = 512            # zero tail so every shifted window is a legal static slice


# ------------------------------- Pallas kernel ------------------------------ #

def _lenet_kernel(x_ref, w1_ref, b1_ref, w2_ref, b2_ref, sel_ref,
                  fc1_ref, fc1b_ref, fc2_ref, fc2b_ref, fc3_ref, fc3b_ref,
                  out_ref):
    f32, bf16 = jnp.float32, jnp.bfloat16
    n_img = out_ref.shape[0]
    base = n_img * IMG                       # real canvas width (valid columns)

    # Stage canvas widths: each stage keeps enough tail slack for the largest
    # forward shift its consumer applies.  Valid outputs only ever read valid
    # columns of the previous stage (verified offsets stay inside each image's
    # 1024-column block); the slack columns hold harmless finite garbage.
    w_m2 = base                              # pool2: only real columns selected
    w_a2 = w_m2 + 66                         # pool2 reads offsets {0, 2, 64, 66}
    w_m1 = w_a2 + 264                        # conv2 reads offsets 64*kh + 2*kw
    w_a1 = w_m1 + 33                         # pool1 reads offsets {0, 1, 32, 33}
    # conv1 reads offsets 32*kh + kw (<=132): x_ref width = base + PAD >= w_a1+132

    def win(v, d, width):
        # win(v, d, width)[:, i] == v[:, i + d]   (static shifted window)
        return v[:, d:d + width]

    def conv5x5_relu(act, w_ref, b_ref, dy, dx, width):
        # act: (8, >= width + 4*dy + 4*dx).  In-register im2col: 25 shifted
        # windows stacked along the contraction axis -> ONE MXU matmul.
        pieces = [win(act, dy * kh + dx * kw, width)
                  for kh in range(5) for kw in range(5)]
        patches = jnp.concatenate(pieces, axis=0).astype(bf16)      # (200, width)
        out = jnp.dot(w_ref[...], patches, preferred_element_type=f32)
        return jnp.maximum(out + b_ref[...], 0.0)                   # f32 epilogue

    def maxpool2x2(act, dy, dx, width):
        # act holds conv output at column stride (dy, dx); max of 4 corners.
        return jnp.maximum(
            jnp.maximum(win(act, 0, width), win(act, dx, width)),
            jnp.maximum(win(act, dy, width), win(act, dy + dx, width)))

    x = x_ref[...]                                               # (8, base+PAD) f32
    a1 = conv5x5_relu(x, w1_ref, b1_ref, 32, 1, w_a1)            # (8,  w_a1)
    m1 = maxpool2x2(a1, 32, 1, w_m1)                             # (8,  w_m1) stride (64,2)
    a2 = conv5x5_relu(m1, w2_ref, b2_ref, 64, 2, w_a2)           # (16, w_a2)
    m2 = maxpool2x2(a2, 64, 2, w_m2)                             # (16, base) stride (128,4)

    sel = sel_ref[...]                                           # (1024, 25) bf16 0/1
    fc2 = fc2_ref[...]                                           # (120, 84)  bf16
    fc3 = fc3_ref[...]                                           # (84, 10)   bf16

    for n in range(n_img):
        # Gather this image's 16x5x5 pooled activations into (16, 25); column
        # order i*5+j matches torch's NCHW flatten (selection folded into a
        # constant 0/1 matmul -> no transpose / reshape needed).
        p = jnp.dot(win(m2, n * IMG, IMG).astype(bf16), sel,
                    preferred_element_type=f32)                  # (16, 25)
        # fc1: sum over channels of (1,25) @ (25,120); feature order folded
        # into the one-time repack of fc1's weight (fc1_w.T).
        acc = fc1b_ref[...]                                      # (1, 120) f32
        for c in range(16):
            acc = acc + jnp.dot(p[c:c + 1, :].astype(bf16),
                                fc1_ref[c * 25:(c + 1) * 25, :],
                                preferred_element_type=f32)
        h = jnp.maximum(acc, 0.0)                                # (1, 120)
        h = jnp.maximum(jnp.dot(h.astype(bf16), fc2,
                                preferred_element_type=f32) + fc2b_ref[...], 0.0)
        o = jnp.dot(h.astype(bf16), fc3,
                    preferred_element_type=f32) + fc3b_ref[...]  # (1, 10)
        out_ref[n:n + 1, :] = o.astype(out_ref.dtype)


# ------------------------------ Host-side wrapper --------------------------- #

def init_params(key):
    """PyTorch-default-style uniform(-1/sqrt(fan_in), +) init, f32, torch layouts."""
    def uniform(k, shape, fan_in):
        bound = 1.0 / jnp.sqrt(float(fan_in))
        return jax.random.uniform(k, shape, jnp.float32, -bound, bound)

    keys = jax.random.split(key, 10)
    return {
        "conv1_w": uniform(keys[0], (6, 3, 5, 5), 3 * 5 * 5),
        "conv1_b": uniform(keys[1], (6,), 3 * 5 * 5),
        "conv2_w": uniform(keys[2], (16, 6, 5, 5), 6 * 5 * 5),
        "conv2_b": uniform(keys[3], (16,), 6 * 5 * 5),
        "fc1_w": uniform(keys[4], (120, 400), 400),
        "fc1_b": uniform(keys[5], (120,), 400),
        "fc2_w": uniform(keys[6], (84, 120), 120),
        "fc2_b": uniform(keys[7], (84,), 120),
        "fc3_w": uniform(keys[8], (10, 84), 84),
        "fc3_b": uniform(keys[9], (10,), 84),
    }


def prepare_params(params):
    """One-time repack of torch-layout weights into kernel layouts (bf16 MXU
    operands, input channels zero-padded to 8, torch flatten folded in)."""
    bf16, f32 = jnp.bfloat16, jnp.float32
    # conv weights -> (Cout, 25*8) with column order (kh, kw, cin_padded)
    w1 = jnp.pad(params["conv1_w"].transpose(0, 2, 3, 1),
                 ((0, 2), (0, 0), (0, 0), (0, 5))).reshape(8, 200)
    w2 = jnp.pad(params["conv2_w"].transpose(0, 2, 3, 1),
                 ((0, 0), (0, 0), (0, 0), (0, 2))).reshape(16, 200)
    b1 = jnp.pad(params["conv1_b"], (0, 2)).reshape(8, 1)
    # constant 0/1 selector: pooled2 value (i, j) sits at canvas column 128i+4j
    rows = jnp.array([128 * i + 4 * j for i in range(5) for j in range(5)], jnp.int32)
    sel = jnp.zeros((IMG, 25), f32).at[rows, jnp.arange(25)].set(1.0)
    return {
        "w1": w1.astype(bf16), "b1": b1.astype(f32),
        "w2": w2.astype(bf16), "b2": params["conv2_b"].reshape(16, 1).astype(f32),
        "sel": sel.astype(bf16),
        "fc1": params["fc1_w"].T.astype(bf16),                 # (400, 120)
        "fc1b": params["fc1_b"].reshape(1, 120).astype(f32),
        "fc2": params["fc2_w"].T.astype(bf16),                 # (120, 84)
        "fc2b": params["fc2_b"].reshape(1, 84).astype(f32),
        "fc3": params["fc3_w"].T.astype(bf16),                 # (84, 10)
        "fc3b": params["fc3_b"].reshape(1, 10).astype(f32),
    }


def net_forward(prepped, x_nchw):
    """Forward pass: one tiny input repack + ONE fused Pallas kernel."""
    n = x_nchw.shape[0]
    assert x_nchw.shape[1:] == (3, 32, 32), x_nchw.shape
    # (N,3,32,32) -> lane-dense canvas (channels, N*1024), channels padded to 8,
    # plus a zero tail so all shifted windows are legal static slices.
    xt = jnp.transpose(x_nchw, (1, 0, 2, 3)).reshape(3, n * IMG)
    xt = jnp.pad(xt, ((0, 5), (0, PAD))).astype(jnp.float32)
    return pl.pallas_call(
        _lenet_kernel,
        out_shape=jax.ShapeDtypeStruct((n, 10), jnp.float32),
    )(xt, prepped["w1"], prepped["b1"], prepped["w2"], prepped["b2"], prepped["sel"],
      prepped["fc1"], prepped["fc1b"], prepped["fc2"], prepped["fc2b"],
      prepped["fc3"], prepped["fc3b"])


# ------------------------------ Pure-JAX reference --------------------------- #

def reference_forward(params, x):
    hp = jax.lax.Precision.HIGHEST
    dn = ("NCHW", "OIHW", "NCHW")
    y = jax.lax.conv_general_dilated(x, params["conv1_w"], (1, 1), "VALID",
                                     dimension_numbers=dn, precision=hp)
    y = jax.nn.relu(y + params["conv1_b"].reshape(1, 6, 1, 1))
    y = y.reshape(y.shape[0], 6, 14, 2, 14, 2).max(axis=(3, 5))
    y = jax.lax.conv_general_dilated(y, params["conv2_w"], (1, 1), "VALID",
                                     dimension_numbers=dn, precision=hp)
    y = jax.nn.relu(y + params["conv2_b"].reshape(1, 16, 1, 1))
    y = y.reshape(y.shape[0], 16, 5, 2, 5, 2).max(axis=(3, 5))
    y = y.reshape(y.shape[0], 400)                             # torch NCHW view
    y = jax.nn.relu(jnp.dot(y, params["fc1_w"].T, precision=hp) + params["fc1_b"])
    y = jax.nn.relu(jnp.dot(y, params["fc2_w"].T, precision=hp) + params["fc2_b"])
    return jnp.dot(y, params["fc3_w"].T, precision=hp) + params["fc3_b"]


if __name__ == "__main__":
    key = jax.random.PRNGKey(0)
    k_param, k_x = jax.random.split(key)
    params = init_params(k_param)
    x = jax.random.normal(k_x, (2, 3, 32, 32), jnp.float32)   # batch=2, NCHW

    prepped = prepare_params(params)                          # one-time repack
    out = jax.block_until_ready(jax.jit(net_forward)(prepped, x))

    assert out.shape == (2, 10), out.shape
    assert out.dtype == jnp.float32
    assert bool(jnp.all(jnp.isfinite(out)))

    # correctness vs. a pure-JAX f32 reference of the original PyTorch forward
    # (bf16 MXU operands in the kernel -> allow ~1% drift).
    ref = jax.block_until_ready(jax.jit(reference_forward)(params, x))
    assert bool(jnp.allclose(out, ref, rtol=2e-2, atol=1e-2)), (
        "max abs err = " + str(float(jnp.max(jnp.abs(out - ref)))))

    print("KERNEL_OK")
</pallas_src>

<mosaic_0001>
module attributes {stable_mosaic.version = 11 : i64} {
  func.func @_lenet_kernel(%arg0: memref<8x2560xf32, #tpu.memory_space<vmem>>, %arg1: memref<8x200xbf16, #tpu.memory_space<vmem>>, %arg2: memref<8x1xf32, #tpu.memory_space<vmem>>, %arg3: memref<16x200xbf16, #tpu.memory_space<vmem>>, %arg4: memref<16x1xf32, #tpu.memory_space<vmem>>, %arg5: memref<1024x25xbf16, #tpu.memory_space<vmem>>, %arg6: memref<400x120xbf16, #tpu.memory_space<vmem>>, %arg7: memref<1x120xf32, #tpu.memory_space<vmem>>, %arg8: memref<120x84xbf16, #tpu.memory_space<vmem>>, %arg9: memref<1x84xf32, #tpu.memory_space<vmem>>, %arg10: memref<84x10xbf16, #tpu.memory_space<vmem>>, %arg11: memref<1x10xf32, #tpu.memory_space<vmem>>, %arg12: memref<2x10xf32, #tpu.memory_space<vmem>>) attributes {dimension_semantics = [], scalar_prefetch = 0 : i64, scratch_operands = 0 : i64, tpu.core_type = #tpu.core_type<tc>} {
    %c0 = arith.constant 0 : index
    %c0_0 = arith.constant 0 : index
    %0 = vector.load %arg0[%c0, %c0_0] : memref<8x2560xf32, #tpu.memory_space<vmem>>, vector<8x2560xf32>
    %1 = vector.extract_strided_slice %0 {offsets = [0, 0], sizes = [8, 2411], strides = [1, 1]} : vector<8x2560xf32> to vector<8x2411xf32>
    %2 = vector.extract_strided_slice %0 {offsets = [0, 1], sizes = [8, 2411], strides = [1, 1]} : vector<8x2560xf32> to vector<8x2411xf32>
    %3 = vector.extract_strided_slice %0 {offsets = [0, 2], sizes = [8, 2411], strides = [1, 1]} : vector<8x2560xf32> to vector<8x2411xf32>
    %4 = vector.extract_strided_slice %0 {offsets = [0, 3], sizes = [8, 2411], strides = [1, 1]} : vector<8x2560xf32> to vector<8x2411xf32>
    %5 = vector.extract_strided_slice %0 {offsets = [0, 4], sizes = [8, 2411], strides = [1, 1]} : vector<8x2560xf32> to vector<8x2411xf32>
    %6 = vector.extract_strided_slice %0 {offsets = [0, 32], sizes = [8, 2411], strides = [1, 1]} : vector<8x2560xf32> to vector<8x2411xf32>
    %7 = vector.extract_strided_slice %0 {offsets = [0, 33], sizes = [8, 2411], strides = [1, 1]} : vector<8x2560xf32> to vector<8x2411xf32>
    %8 = vector.extract_strided_slice %0 {offsets = [0, 34], sizes = [8, 2411], strides = [1, 1]} : vector<8x2560xf32> to vector<8x2411xf32>
    %9 = vector.extract_strided_slice %0 {offsets = [0, 35], sizes = [8, 2411], strides = [1, 1]} : vector<8x2560xf32> to vector<8x2411xf32>
    %10 = vector.extract_strided_slice %0 {offsets = [0, 36], sizes = [8, 2411], strides = [1, 1]} : vector<8x2560xf32> to vector<8x2411xf32>
    %11 = vector.extract_strided_slice %0 {offsets = [0, 64], sizes = [8, 2411], strides = [1, 1]} : vector<8x2560xf32> to vector<8x2411xf32>
    %12 = vector.extract_strided_slice %0 {offsets = [0, 65], sizes = [8, 2411], strides = [1, 1]} : vector<8x2560xf32> to vector<8x2411xf32>
    %13 = vector.extract_strided_slice %0 {offsets = [0, 66], sizes = [8, 2411], strides = [1, 1]} : vector<8x2560xf32> to vector<8x2411xf32>
    %14 = vector.extract_strided_slice %0 {offsets = [0, 67], sizes = [8, 2411], strides = [1, 1]} : vector<8x2560xf32> to vector<8x2411xf32>
    %15 = vector.extract_strided_slice %0 {offsets = [0, 68], sizes = [8, 2411], strides = [1, 1]} : vector<8x2560xf32> to vector<8x2411xf32>
    %16 = vector.extract_strided_slice %0 {offsets = [0, 96], sizes = [8, 2411], strides = [1, 1]} : vector<8x2560xf32> to vector<8x2411xf32>
    %17 = vector.extract_strided_slice %0 {offsets = [0, 97], sizes = [8, 2411], strides = [1, 1]} : vector<8x2560xf32> to vector<8x2411xf32>
    %18 = vector.extract_strided_slice %0 {offsets = [0, 98], sizes = [8, 2411], strides = [1, 1]} : vector<8x2560xf32> to vector<8x2411xf32>
    %19 = vector.extract_strided_slice %0 {offsets = [0, 99], sizes = [8, 2411], strides = [1, 1]} : vector<8x2560xf32> to vector<8x2411xf32>
    %20 = vector.extract_strided_slice %0 {offsets = [0, 100], sizes = [8, 2411], strides = [1, 1]} : vector<8x2560xf32> to vector<8x2411xf32>
    %21 = vector.extract_strided_slice %0 {offsets = [0, 128], sizes = [8, 2411], strides = [1, 1]} : vector<8x2560xf32> to vector<8x2411xf32>
    %22 = vector.extract_strided_slice %0 {offsets = [0, 129], sizes = [8, 2411], strides = [1, 1]} : vector<8x2560xf32> to vector<8x2411xf32>
    %23 = vector.extract_strided_slice %0 {offsets = [0, 130], sizes = [8, 2411], strides = [1, 1]} : vector<8x2560xf32> to vector<8x2411xf32>
    %24 = vector.extract_strided_slice %0 {offsets = [0, 131], sizes = [8, 2411], strides = [1, 1]} : vector<8x2560xf32> to vector<8x2411xf32>
    %25 = vector.extract_strided_slice %0 {offsets = [0, 132], sizes = [8, 2411], strides = [1, 1]} : vector<8x2560xf32> to vector<8x2411xf32>
    %26 = tpu.concatenate %1, %2, %3, %4, %5, %6, %7, %8, %9, %10, %11, %12, %13, %14, %15, %16 in 0 : vector<8x2411xf32>, vector<8x2411xf32>, vector<8x2411xf32>, vector<8x2411xf32>, vector<8x2411xf32>, vector<8x2411xf32>, vector<8x2411xf32>, vector<8x2411xf32>, vector<8x2411xf32>, vector<8x2411xf32>, vector<8x2411xf32>, vector<8x2411xf32>, vector<8x2411xf32>, vector<8x2411xf32>, vector<8x2411xf32>, vector<8x2411xf32> -> vector<128x2411xf32>
    %27 = tpu.concatenate %17, %18, %19, %20, %21, %22, %23, %24, %25 in 0 : vector<8x2411xf32>, vector<8x2411xf32>, vector<8x2411xf32>, vector<8x2411xf32>, vector<8x2411xf32>, vector<8x2411xf32>, vector<8x2411xf32>, vector<8x2411xf32>, vector<8x2411xf32> -> vector<72x2411xf32>
    %28 = tpu.concatenate %26, %27 in 0 : vector<128x2411xf32>, vector<72x2411xf32> -> vector<200x2411xf32>
    %29 = arith.truncf %28 : vector<200x2411xf32> to vector<200x2411xbf16>
    %c0_1 = arith.constant 0 : index
    %c0_2 = arith.constant 0 : index
    %30 = vector.load %arg1[%c0_1, %c0_2] : memref<8x200xbf16, #tpu.memory_space<vmem>>, vector<8x200xbf16>
    %cst = arith.constant dense<0.000000e+00> : vector<8x2411xf32>
    %31 = tpu.matmul %30, %29, %cst {dimension_numbers = #tpu.dot_dimension_numbers<[1], [0], [0], [1], [0, 0, 1, 1], [], []>} : vector<8x200xbf16>, vector<200x2411xbf16>, vector<8x2411xf32> -> vector<8x2411xf32>
    %c0_3 = arith.constant 0 : index
    %c0_4 = arith.constant 0 : index
    %32 = vector.load %arg2[%c0_3, %c0_4] : memref<8x1xf32, #tpu.memory_space<vmem>>, vector<8x1xf32>
    %33 = vector.broadcast %32 : vector<8x1xf32> to vector<8x2411xf32>
    %34 = arith.addf %31, %33 : vector<8x2411xf32>
    %cst_5 = arith.constant 0.000000e+00 : f32
    %35 = vector.broadcast %cst_5 : f32 to vector<8x2411xf32>
    %36 = arith.maximumf %34, %35 : vector<8x2411xf32>
    %37 = vector.extract_strided_slice %36 {offsets = [0, 0], sizes = [8, 2378], strides = [1, 1]} : vector<8x2411xf32> to vector<8x2378xf32>
    %38 = vector.extract_strided_slice %36 {offsets = [0, 1], sizes = [8, 2378], strides = [1, 1]} : vector<8x2411xf32> to vector<8x2378xf32>
    %39 = arith.maximumf %37, %38 : vector<8x2378xf32>
    %40 = vector.extract_strided_slice %36 {offsets = [0, 32], sizes = [8, 2378], strides = [1, 1]} : vector<8x2411xf32> to vector<8x2378xf32>
    %41 = vector.extract_strided_slice %36 {offsets = [0, 33], sizes = [8, 2378], strides = [1, 1]} : vector<8x2411xf32> to vector<8x2378xf32>
    %42 = arith.maximumf %40, %41 : vector<8x2378xf32>
    %43 = arith.maximumf %39, %42 : vector<8x2378xf32>
    %44 = vector.extract_strided_slice %43 {offsets = [0, 0], sizes = [8, 2114], strides = [1, 1]} : vector<8x2378xf32> to vector<8x2114xf32>
    %45 = vector.extract_strided_slice %43 {offsets = [0, 2], sizes = [8, 2114], strides = [1, 1]} : vector<8x2378xf32> to vector<8x2114xf32>
    %46 = vector.extract_strided_slice %43 {offsets = [0, 4], sizes = [8, 2114], strides = [1, 1]} : vector<8x2378xf32> to vector<8x2114xf32>
    %47 = vector.extract_strided_slice %43 {offsets = [0, 6], sizes = [8, 2114], strides = [1, 1]} : vector<8x2378xf32> to vector<8x2114xf32>
    %48 = vector.extract_strided_slice %43 {offsets = [0, 8], sizes = [8, 2114], strides = [1, 1]} : vector<8x2378xf32> to vector<8x2114xf32>
    %49 = vector.extract_strided_slice %43 {offsets = [0, 64], sizes = [8, 2114], strides = [1, 1]} : vector<8x2378xf32> to vector<8x2114xf32>
    %50 = vector.extract_strided_slice %43 {offsets = [0, 66], sizes = [8, 2114], strides = [1, 1]} : vector<8x2378xf32> to vector<8x2114xf32>
    %51 = vector.extract_strided_slice %43 {offsets = [0, 68], sizes = [8, 2114], strides = [1, 1]} : vector<8x2378xf32> to vector<8x2114xf32>
    %52 = vector.extract_strided_slice %43 {offsets = [0, 70], sizes = [8, 2114], strides = [1, 1]} : vector<8x2378xf32> to vector<8x2114xf32>
    %53 = vector.extract_strided_slice %43 {offsets = [0, 72], sizes = [8, 2114], strides = [1, 1]} : vector<8x2378xf32> to vector<8x2114xf32>
    %54 = vector.extract_strided_slice %43 {offsets = [0, 128], sizes = [8, 2114], strides = [1, 1]} : vector<8x2378xf32> to vector<8x2114xf32>
    %55 = vector.extract_strided_slice %43 {offsets = [0, 130], sizes = [8, 2114], strides = [1, 1]} : vector<8x2378xf32> to vector<8x2114xf32>
    %56 = vector.extract_strided_slice %43 {offsets = [0, 132], sizes = [8, 2114], strides = [1, 1]} : vector<8x2378xf32> to vector<8x2114xf32>
    %57 = vector.extract_strided_slice %43 {offsets = [0, 134], sizes = [8, 2114], strides = [1, 1]} : vector<8x2378xf32> to vector<8x2114xf32>
    %58 = vector.extract_strided_slice %43 {offsets = [0, 136], sizes = [8, 2114], strides = [1, 1]} : vector<8x2378xf32> to vector<8x2114xf32>
    %59 = vector.extract_strided_slice %43 {offsets = [0, 192], sizes = [8, 2114], strides = [1, 1]} : vector<8x2378xf32> to vector<8x2114xf32>
    %60 = vector.extract_strided_slice %43 {offsets = [0, 194], sizes = [8, 2114], strides = [1, 1]} : vector<8x2378xf32> to vector<8x2114xf32>
    %61 = vector.extract_strided_slice %43 {offsets = [0, 196], sizes = [8, 2114], strides = [1, 1]} : vector<8x2378xf32> to vector<8x2114xf32>
    %62 = vector.extract_strided_slice %43 {offsets = [0, 198], sizes = [8, 2114], strides = [1, 1]} : vector<8x2378xf32> to vector<8x2114xf32>
    %63 = vector.extract_strided_slice %43 {offsets = [0, 200], sizes = [8, 2114], strides = [1, 1]} : vector<8x2378xf32> to vector<8x2114xf32>
    %64 = vector.extract_strided_slice %43 {offsets = [0, 256], sizes = [8, 2114], strides = [1, 1]} : vector<8x2378xf32> to vector<8x2114xf32>
    %65 = vector.extract_strided_slice %43 {offsets = [0, 258], sizes = [8, 2114], strides = [1, 1]} : vector<8x2378xf32> to vector<8x2114xf32>
    %66 = vector.extract_strided_slice %43 {offsets = [0, 260], sizes = [8, 2114], strides = [1, 1]} : vector<8x2378xf32> to vector<8x2114xf32>
    %67 = vector.extract_strided_slice %43 {offsets = [0, 262], sizes = [8, 2114], strides = [1, 1]} : vector<8x2378xf32> to vector<8x2114xf32>
    %68 = vector.extract_strided_slice %43 {offsets = [0, 264], sizes = [8, 2114], strides = [1, 1]} : vector<8x2378xf32> to vector<8x2114xf32>
    %69 = tpu.concatenate %44, %45, %46, %47, %48, %49, %50, %51, %52, %53, %54, %55, %56, %57, %58, %59 in 0 : vector<8x2114xf32>, vector<8x2114xf32>, vector<8x2114xf32>, vector<8x2114xf32>, vector<8x2114xf32>, vector<8x2114xf32>, vector<8x2114xf32>, vector<8x2114xf32>, vector<8x2114xf32>, vector<8x2114xf32>, vector<8x2114xf32>, vector<8x2114xf32>, vector<8x2114xf32>, vector<8x2114xf32>, vector<8x2114xf32>, vector<8x2114xf32> -> vector<128x2114xf32>
    %70 = tpu.concatenate %60, %61, %62, %63, %64, %65, %66, %67, %68 in 0 : vector<8x2114xf32>, vector<8x2114xf32>, vector<8x2114xf32>, vector<8x2114xf32>, vector<8x2114xf32>, vector<8x2114xf32>, vector<8x2114xf32>, vector<8x2114xf32>, vector<8x2114xf32> -> vector<72x2114xf32>
    %71 = tpu.concatenate %69, %70 in 0 : vector<128x2114xf32>, vector<72x2114xf32> -> vector<200x2114xf32>
    %72 = arith.truncf %71 : vector<200x2114xf32> to vector<200x2114xbf16>
    %c0_6 = arith.constant 0 : index
    %c0_7 = arith.constant 0 : index
    %73 = vector.load %arg3[%c0_6, %c0_7] : memref<16x200xbf16, #tpu.memory_space<vmem>>, vector<16x200xbf16>
    %cst_8 = arith.constant dense<0.000000e+00> : vector<16x2114xf32>
    %74 = tpu.matmul %73, %72, %cst_8 {dimension_numbers = #tpu.dot_dimension_numbers<[1], [0], [0], [1], [0, 0, 1, 1], [], []>} : vector<16x200xbf16>, vector<200x2114xbf16>, vector<16x2114xf32> -> vector<16x2114xf32>
    %c0_9 = arith.constant 0 : index
    %c0_10 = arith.constant 0 : index
    %75 = vector.load %arg4[%c0_9, %c0_10] : memref<16x1xf32, #tpu.memory_space<vmem>>, vector<16x1xf32>
    %76 = vector.broadcast %75 : vector<16x1xf32> to vector<16x2114xf32>
    %77 = arith.addf %74, %76 : vector<16x2114xf32>
    %cst_11 = arith.constant 0.000000e+00 : f32
    %78 = vector.broadcast %cst_11 : f32 to vector<16x2114xf32>
    %79 = arith.maximumf %77, %78 : vector<16x2114xf32>
    %80 = vector.extract_strided_slice %79 {offsets = [0, 0], sizes = [16, 2048], strides = [1, 1]} : vector<16x2114xf32> to vector<16x2048xf32>
    %81 = vector.extract_strided_slice %79 {offsets = [0, 2], sizes = [16, 2048], strides = [1, 1]} : vector<16x2114xf32> to vector<16x2048xf32>
    %82 = arith.maximumf %80, %81 : vector<16x2048xf32>
    %83 = vector.extract_strided_slice %79 {offsets = [0, 64], sizes = [16, 2048], strides = [1, 1]} : vector<16x2114xf32> to vector<16x2048xf32>
    %84 = vector.extract_strided_slice %79 {offsets = [0, 66], sizes = [16, 2048], strides = [1, 1]} : vector<16x2114xf32> to vector<16x2048xf32>
    %85 = arith.maximumf %83, %84 : vector<16x2048xf32>
    %86 = arith.maximumf %82, %85 : vector<16x2048xf32>
    %c0_12 = arith.constant 0 : index
    %c0_13 = arith.constant 0 : index
    %87 = vector.load %arg5[%c0_12, %c0_13] : memref<1024x25xbf16, #tpu.memory_space<vmem>>, vector<1024x25xbf16>
    %c0_14 = arith.constant 0 : index
    %c0_15 = arith.constant 0 : index
    %88 = vector.load %arg8[%c0_14, %c0_15] : memref<120x84xbf16, #tpu.memory_space<vmem>>, vector<120x84xbf16>
    %c0_16 = arith.constant 0 : index
    %c0_17 = arith.constant 0 : index
    %89 = vector.load %arg10[%c0_16, %c0_17] : memref<84x10xbf16, #tpu.memory_space<vmem>>, vector<84x10xbf16>
    %90 = vector.extract_strided_slice %86 {offsets = [0, 0], sizes = [16, 1024], strides = [1, 1]} : vector<16x2048xf32> to vector<16x1024xf32>
    %91 = arith.truncf %90 : vector<16x1024xf32> to vector<16x1024xbf16>
    %cst_18 = arith.constant dense<0.000000e+00> : vector<16x25xf32>
    %92 = tpu.matmul %91, %87, %cst_18 {dimension_numbers = #tpu.dot_dimension_numbers<[1], [0], [0], [1], [0, 0, 1, 1], [], []>} : vector<16x1024xbf16>, vector<1024x25xbf16>, vector<16x25xf32> -> vector<16x25xf32>
    %c0_19 = arith.constant 0 : index
    %c0_20 = arith.constant 0 : index
    %93 = vector.load %arg7[%c0_19, %c0_20] : memref<1x120xf32, #tpu.memory_space<vmem>>, vector<1x120xf32>
    %94 = vector.extract_strided_slice %92 {offsets = [0, 0], sizes = [1, 25], strides = [1, 1]} : vector<16x25xf32> to vector<1x25xf32>
    %95 = arith.truncf %94 : vector<1x25xf32> to vector<1x25xbf16>
    %c0_21 = arith.constant 0 : index
    %c0_22 = arith.constant 0 : index
    %96 = vector.load %arg6[%c0_21, %c0_22] : memref<400x120xbf16, #tpu.memory_space<vmem>>, vector<25x120xbf16>
    %cst_23 = arith.constant dense<0.000000e+00> : vector<1x120xf32>
    %97 = tpu.matmul %95, %96, %cst_23 {dimension_numbers = #tpu.dot_dimension_numbers<[1], [0], [0], [1], [0, 0, 1, 1], [], []>} : vector<1x25xbf16>, vector<25x120xbf16>, vector<1x120xf32> -> vector<1x120xf32>
    %98 = arith.addf %93, %97 : vector<1x120xf32>
    %99 = vector.extract_strided_slice %92 {offsets = [1, 0], sizes = [1, 25], strides = [1, 1]} : vector<16x25xf32> to vector<1x25xf32>
    %100 = arith.truncf %99 : vector<1x25xf32> to vector<1x25xbf16>
    %c25 = arith.constant 25 : index
    %c0_24 = arith.constant 0 : index
    %101 = vector.load %arg6[%c25, %c0_24] : memref<400x120xbf16, #tpu.memory_space<vmem>>, vector<25x120xbf16>
    %cst_25 = arith.constant dense<0.000000e+00> : vector<1x120xf32>
    %102 = tpu.matmul %100, %101, %cst_25 {dimension_numbers = #tpu.dot_dimension_numbers<[1], [0], [0], [1], [0, 0, 1, 1], [], []>} : vector<1x25xbf16>, vector<25x120xbf16>, vector<1x120xf32> -> vector<1x120xf32>
    %103 = arith.addf %98, %102 : vector<1x120xf32>
    %104 = vector.extract_strided_slice %92 {offsets = [2, 0], sizes = [1, 25], strides = [1, 1]} : vector<16x25xf32> to vector<1x25xf32>
    %105 = arith.truncf %104 : vector<1x25xf32> to vector<1x25xbf16>
    %c50 = arith.constant 50 : index
    %c0_26 = arith.constant 0 : index
    %106 = vector.load %arg6[%c50, %c0_26] : memref<400x120xbf16, #tpu.memory_space<vmem>>, vector<25x120xbf16>
    %cst_27 = arith.constant dense<0.000000e+00> : vector<1x120xf32>
    %107 = tpu.matmul %105, %106, %cst_27 {dimension_numbers = #tpu.dot_dimension_numbers<[1], [0], [0], [1], [0, 0, 1, 1], [], []>} : vector<1x25xbf16>, vector<25x120xbf16>, vector<1x120xf32> -> vector<1x120xf32>
    %108 = arith.addf %103, %107 : vector<1x120xf32>
    %109 = vector.extract_strided_slice %92 {offsets = [3, 0], sizes = [1, 25], strides = [1, 1]} : vector<16x25xf32> to vector<1x25xf32>
    %110 = arith.truncf %109 : vector<1x25xf32> to vector<1x25xbf16>
    %c75 = arith.constant 75 : index
    %c0_28 = arith.constant 0 : index
    %111 = vector.load %arg6[%c75, %c0_28] : memref<400x120xbf16, #tpu.memory_space<vmem>>, vector<25x120xbf16>
    %cst_29 = arith.constant dense<0.000000e+00> : vector<1x120xf32>
    %112 = tpu.matmul %110, %111, %cst_29 {dimension_numbers = #tpu.dot_dimension_numbers<[1], [0], [0], [1], [0, 0, 1, 1], [], []>} : vector<1x25xbf16>, vector<25x120xbf16>, vector<1x120xf32> -> vector<1x120xf32>
    %113 = arith.addf %108, %112 : vector<1x120xf32>
    %114 = vector.extract_strided_slice %92 {offsets = [4, 0], sizes = [1, 25], strides = [1, 1]} : vector<16x25xf32> to vector<1x25xf32>
    %115 = arith.truncf %114 : vector<1x25xf32> to vector<1x25xbf16>
    %c100 = arith.constant 100 : index
    %c0_30 = arith.constant 0 : index
    %116 = vector.load %arg6[%c100, %c0_30] : memref<400x120xbf16, #tpu.memory_space<vmem>>, vector<25x120xbf16>
    %cst_31 = arith.constant dense<0.000000e+00> : vector<1x120xf32>
    %117 = tpu.matmul %115, %116, %cst_31 {dimension_numbers = #tpu.dot_dimension_numbers<[1], [0], [0], [1], [0, 0, 1, 1], [], []>} : vector<1x25xbf16>, vector<25x120xbf16>, vector<1x120xf32> -> vector<1x120xf32>
    %118 = arith.addf %113, %117 : vector<1x120xf32>
    %119 = vector.extract_strided_slice %92 {offsets = [5, 0], sizes = [1, 25], strides = [1, 1]} : vector<16x25xf32> to vector<1x25xf32>
    %120 = arith.truncf %119 : vector<1x25xf32> to vector<1x25xbf16>
    %c125 = arith.constant 125 : index
    %c0_32 = arith.constant 0 : index
    %121 = vector.load %arg6[%c125, %c0_32] : memref<400x120xbf16, #tpu.memory_space<vmem>>, vector<25x120xbf16>
    %cst_33 = arith.constant dense<0.000000e+00> : vector<1x120xf32>
    %122 = tpu.matmul %120, %121, %cst_33 {dimension_numbers = #tpu.dot_dimension_numbers<[1], [0], [0], [1], [0, 0, 1, 1], [], []>} : vector<1x25xbf16>, vector<25x120xbf16>, vector<1x120xf32> -> vector<1x120xf32>
    %123 = arith.addf %118, %122 : vector<1x120xf32>
    %124 = vector.extract_strided_slice %92 {offsets = [6, 0], sizes = [1, 25], strides = [1, 1]} : vector<16x25xf32> to vector<1x25xf32>
    %125 = arith.truncf %124 : vector<1x25xf32> to vector<1x25xbf16>
    %c150 = arith.constant 150 : index
    %c0_34 = arith.constant 0 : index
    %126 = vector.load %arg6[%c150, %c0_34] : memref<400x120xbf16, #tpu.memory_space<vmem>>, vector<25x120xbf16>
    %cst_35 = arith.constant dense<0.000000e+00> : vector<1x120xf32>
    %127 = tpu.matmul %125, %126, %cst_35 {dimension_numbers = #tpu.dot_dimension_numbers<[1], [0], [0], [1], [0, 0, 1, 1], [], []>} : vector<1x25xbf16>, vector<25x120xbf16>, vector<1x120xf32> -> vector<1x120xf32>
    %128 = arith.addf %123, %127 : vector<1x120xf32>
    %129 = vector.extract_strided_slice %92 {offsets = [7, 0], sizes = [1, 25], strides = [1, 1]} : vector<16x25xf32> to vector<1x25xf32>
    %130 = arith.truncf %129 : vector<1x25xf32> to vector<1x25xbf16>
    %c175 = arith.constant 175 : index
    %c0_36 = arith.constant 0 : index
    %131 = vector.load %arg6[%c175, %c0_36] : memref<400x120xbf16, #tpu.memory_space<vmem>>, vector<25x120xbf16>
    %cst_37 = arith.constant dense<0.000000e+00> : vector<1x120xf32>
    %132 = tpu.matmul %130, %131, %cst_37 {dimension_numbers = #tpu.dot_dimension_numbers<[1], [0], [0], [1], [0, 0, 1, 1], [], []>} : vector<1x25xbf16>, vector<25x120xbf16>, vector<1x120xf32> -> vector<1x120xf32>
    %133 = arith.addf %128, %132 : vector<1x120xf32>
    %134 = vector.extract_strided_slice %92 {offsets = [8, 0], sizes = [1, 25], strides = [1, 1]} : vector<16x25xf32> to vector<1x25xf32>
    %135 = arith.truncf %134 : vector<1x25xf32> to vector<1x25xbf16>
    %c200 = arith.constant 200 : index
    %c0_38 = arith.constant 0 : index
    %136 = vector.load %arg6[%c200, %c0_38] : memref<400x120xbf16, #tpu.memory_space<vmem>>, vector<25x120xbf16>
    %cst_39 = arith.constant dense<0.000000e+00> : vector<1x120xf32>
    %137 = tpu.matmul %135, %136, %cst_39 {dimension_numbers = #tpu.dot_dimension_numbers<[1], [0], [0], [1], [0, 0, 1, 1], [], []>} : vector<1x25xbf16>, vector<25x120xbf16>, vector<1x120xf32> -> vector<1x120xf32>
    %138 = arith.addf %133, %137 : vector<1x120xf32>
    %139 = vector.extract_strided_slice %92 {offsets = [9, 0], sizes = [1, 25], strides = [1, 1]} : vector<16x25xf32> to vector<1x25xf32>
    %140 = arith.truncf %139 : vector<1x25xf32> to vector<1x25xbf16>
    %c225 = arith.constant 225 : index
    %c0_40 = arith.constant 0 : index
    %141 = vector.load %arg6[%c225, %c0_40] : memref<400x120xbf16, #tpu.memory_space<vmem>>, vector<25x120xbf16>
    %cst_41 = arith.constant dense<0.000000e+00> : vector<1x120xf32>
    %142 = tpu.matmul %140, %141, %cst_41 {dimension_numbers = #tpu.dot_dimension_numbers<[1], [0], [0], [1], [0, 0, 1, 1], [], []>} : vector<1x25xbf16>, vector<25x120xbf16>, vector<1x120xf32> -> vector<1x120xf32>
    %143 = arith.addf %138, %142 : vector<1x120xf32>
    %144 = vector.extract_strided_slice %92 {offsets = [10, 0], sizes = [1, 25], strides = [1, 1]} : vector<16x25xf32> to vector<1x25xf32>
    %145 = arith.truncf %144 : vector<1x25xf32> to vector<1x25xbf16>
    %c250 = arith.constant 250 : index
    %c0_42 = arith.constant 0 : index
    %146 = vector.load %arg6[%c250, %c0_42] : memref<400x120xbf16, #tpu.memory_space<vmem>>, vector<25x120xbf16>
    %cst_43 = arith.constant dense<0.000000e+00> : vector<1x120xf32>
    %147 = tpu.matmul %145, %146, %cst_43 {dimension_numbers = #tpu.dot_dimension_numbers<[1], [0], [0], [1], [0, 0, 1, 1], [], []>} : vector<1x25xbf16>, vector<25x120xbf16>, vector<1x120xf32> -> vector<1x120xf32>
    %148 = arith.addf %143, %147 : vector<1x120xf32>
    %149 = vector.extract_strided_slice %92 {offsets = [11, 0], sizes = [1, 25], strides = [1, 1]} : vector<16x25xf32> to vector<1x25xf32>
    %150 = arith.truncf %149 : vector<1x25xf32> to vector<1x25xbf16>
    %c275 = arith.constant 275 : index
    %c0_44 = arith.constant 0 : index
    %151 = vector.load %arg6[%c275, %c0_44] : memref<400x120xbf16, #tpu.memory_space<vmem>>, vector<25x120xbf16>
    %cst_45 = arith.constant dense<0.000000e+00> : vector<1x120xf32>
    %152 = tpu.matmul %150, %151, %cst_45 {dimension_numbers = #tpu.dot_dimension_numbers<[1], [0], [0], [1], [0, 0, 1, 1], [], []>} : vector<1x25xbf16>, vector<25x120xbf16>, vector<1x120xf32> -> vector<1x120xf32>
    %153 = arith.addf %148, %152 : vector<1x120xf32>
    %154 = vector.extract_strided_slice %92 {offsets = [12, 0], sizes = [1, 25], strides = [1, 1]} : vector<16x25xf32> to vector<1x25xf32>
    %155 = arith.truncf %154 : vector<1x25xf32> to vector<1x25xbf16>
    %c300 = arith.constant 300 : index
    %c0_46 = arith.constant 0 : index
    %156 = vector.load %arg6[%c300, %c0_46] : memref<400x120xbf16, #tpu.memory_space<vmem>>, vector<25x120xbf16>
    %cst_47 = arith.constant dense<0.000000e+00> : vector<1x120xf32>
    %157 = tpu.matmul %155, %156, %cst_47 {dimension_numbers = #tpu.dot_dimension_numbers<[1], [0], [0], [1], [0, 0, 1, 1], [], []>} : vector<1x25xbf16>, vector<25x120xbf16>, vector<1x120xf32> -> vector<1x120xf32>
    %158 = arith.addf %153, %157 : vector<1x120xf32>
    %159 = vector.extract_strided_slice %92 {offsets = [13, 0], sizes = [1, 25], strides = [1, 1]} : vector<16x25xf32> to vector<1x25xf32>
    %160 = arith.truncf %159 : vector<1x25xf32> to vector<1x25xbf16>
    %c325 = arith.constant 325 : index
    %c0_48 = arith.constant 0 : index
    %161 = vector.load %arg6[%c325, %c0_48] : memref<400x120xbf16, #tpu.memory_space<vmem>>, vector<25x120xbf16>
    %cst_49 = arith.constant dense<0.000000e+00> : vector<1x120xf32>
    %162 = tpu.matmul %160, %161, %cst_49 {dimension_numbers = #tpu.dot_dimension_numbers<[1], [0], [0], [1], [0, 0, 1, 1], [], []>} : vector<1x25xbf16>, vector<25x120xbf16>, vector<1x120xf32> -> vector<1x120xf32>
    %163 = arith.addf %158, %162 : vector<1x120xf32>
    %164 = vector.extract_strided_slice %92 {offsets = [14, 0], sizes = [1, 25], strides = [1, 1]} : vector<16x25xf32> to vector<1x25xf32>
    %165 = arith.truncf %164 : vector<1x25xf32> to vector<1x25xbf16>
    %c350 = arith.constant 350 : index
    %c0_50 = arith.constant 0 : index
    %166 = vector.load %arg6[%c350, %c0_50] : memref<400x120xbf16, #tpu.memory_space<vmem>>, vector<25x120xbf16>
    %cst_51 = arith.constant dense<0.000000e+00> : vector<1x120xf32>
    %167 = tpu.matmul %165, %166, %cst_51 {dimension_numbers = #tpu.dot_dimension_numbers<[1], [0], [0], [1], [0, 0, 1, 1], [], []>} : vector<1x25xbf16>, vector<25x120xbf16>, vector<1x120xf32> -> vector<1x120xf32>
    %168 = arith.addf %163, %167 : vector<1x120xf32>
    %169 = vector.extract_strided_slice %92 {offsets = [15, 0], sizes = [1, 25], strides = [1, 1]} : vector<16x25xf32> to vector<1x25xf32>
    %170 = arith.truncf %169 : vector<1x25xf32> to vector<1x25xbf16>
    %c375 = arith.constant 375 : index
    %c0_52 = arith.constant 0 : index
    %171 = vector.load %arg6[%c375, %c0_52] : memref<400x120xbf16, #tpu.memory_space<vmem>>, vector<25x120xbf16>
    %cst_53 = arith.constant dense<0.000000e+00> : vector<1x120xf32>
    %172 = tpu.matmul %170, %171, %cst_53 {dimension_numbers = #tpu.dot_dimension_numbers<[1], [0], [0], [1], [0, 0, 1, 1], [], []>} : vector<1x25xbf16>, vector<25x120xbf16>, vector<1x120xf32> -> vector<1x120xf32>
    %173 = arith.addf %168, %172 : vector<1x120xf32>
    %cst_54 = arith.constant 0.000000e+00 : f32
    %174 = vector.broadcast %cst_54 : f32 to vector<1x120xf32>
    %175 = arith.maximumf %173, %174 : vector<1x120xf32>
    %176 = arith.truncf %175 : vector<1x120xf32> to vector<1x120xbf16>
    %cst_55 = arith.constant dense<0.000000e+00> : vector<1x84xf32>
    %177 = tpu.matmul %176, %88, %cst_55 {dimension_numbers = #tpu.dot_dimension_numbers<[1], [0], [0], [1], [0, 0, 1, 1], [], []>} : vector<1x120xbf16>, vector<120x84xbf16>, vector<1x84xf32> -> vector<1x84xf32>
    %c0_56 = arith.constant 0 : index
    %c0_57 = arith.constant 0 : index
    %178 = vector.load %arg9[%c0_56, %c0_57] : memref<1x84xf32, #tpu.memory_space<vmem>>, vector<1x84xf32>
    %179 = arith.addf %177, %178 : vector<1x84xf32>
    %cst_58 = arith.constant 0.000000e+00 : f32
    %180 = vector.broadcast %cst_58 : f32 to vector<1x84xf32>
    %181 = arith.maximumf %179, %180 : vector<1x84xf32>
    %182 = arith.truncf %181 : vector<1x84xf32> to vector<1x84xbf16>
    %cst_59 = arith.constant dense<0.000000e+00> : vector<1x10xf32>
    %183 = tpu.matmul %182, %89, %cst_59 {dimension_numbers = #tpu.dot_dimension_numbers<[1], [0], [0], [1], [0, 0, 1, 1], [], []>} : vector<1x84xbf16>, vector<84x10xbf16>, vector<1x10xf32> -> vector<1x10xf32>
    %c0_60 = arith.constant 0 : index
    %c0_61 = arith.constant 0 : index
    %184 = vector.load %arg11[%c0_60, %c0_61] : memref<1x10xf32, #tpu.memory_space<vmem>>, vector<1x10xf32>
    %185 = arith.addf %183, %184 : vector<1x10xf32>
    %c0_62 = arith.constant 0 : index
    %c0_63 = arith.constant 0 : index
    %186 = vector.load %arg12[%c0_62, %c0_63] : memref<2x10xf32, #tpu.memory_space<vmem>>, vector<1x10xf32>
    tpu.vector_store %arg12[%c0_62, %c0_63], %185 {strides = array<i32>} : memref<2x10xf32, #tpu.memory_space<vmem>>, vector<1x10xf32>,
    %187 = vector.extract_strided_slice %86 {offsets = [0, 1024], sizes = [16, 1024], strides = [1, 1]} : vector<16x2048xf32> to vector<16x1024xf32>
    %188 = arith.truncf %187 : vector<16x1024xf32> to vector<16x1024xbf16>
    %cst_64 = arith.constant dense<0.000000e+00> : vector<16x25xf32>
    %189 = tpu.matmul %188, %87, %cst_64 {dimension_numbers = #tpu.dot_dimension_numbers<[1], [0], [0], [1], [0, 0, 1, 1], [], []>} : vector<16x1024xbf16>, vector<1024x25xbf16>, vector<16x25xf32> -> vector<16x25xf32>
    %c0_65 = arith.constant 0 : index
    %c0_66 = arith.constant 0 : index
    %190 = vector.load %arg7[%c0_65, %c0_66] : memref<1x120xf32, #tpu.memory_space<vmem>>, vector<1x120xf32>
    %191 = vector.extract_strided_slice %189 {offsets = [0, 0], sizes = [1, 25], strides = [1, 1]} : vector<16x25xf32> to vector<1x25xf32>
    %192 = arith.truncf %191 : vector<1x25xf32> to vector<1x25xbf16>
    %c0_67 = arith.constant 0 : index
    %c0_68 = arith.constant 0 : index
    %193 = vector.load %arg6[%c0_67, %c0_68] : memref<400x120xbf16, #tpu.memory_space<vmem>>, vector<25x120xbf16>
    %cst_69 = arith.constant dense<0.000000e+00> : vector<1x120xf32>
    %194 = tpu.matmul %192, %193, %cst_69 {dimension_numbers = #tpu.dot_dimension_numbers<[1], [0], [0], [1], [0, 0, 1, 1], [], []>} : vector<1x25xbf16>, vector<25x120xbf16>, vector<1x120xf32> -> vector<1x120xf32>
    %195 = arith.addf %190, %194 : vector<1x120xf32>
    %196 = vector.extract_strided_slice %189 {offsets = [1, 0], sizes = [1, 25], strides = [1, 1]} : vector<16x25xf32> to vector<1x25xf32>
    %197 = arith.truncf %196 : vector<1x25xf32> to vector<1x25xbf16>
    %c25_70 = arith.constant 25 : index
    %c0_71 = arith.constant 0 : index
    %198 = vector.load %arg6[%c25_70, %c0_71] : memref<400x120xbf16, #tpu.memory_space<vmem>>, vector<25x120xbf16>
    %cst_72 = arith.constant dense<0.000000e+00> : vector<1x120xf32>
    %199 = tpu.matmul %197, %198, %cst_72 {dimension_numbers = #tpu.dot_dimension_numbers<[1], [0], [0], [1], [0, 0, 1, 1], [], []>} : vector<1x25xbf16>, vector<25x120xbf16>, vector<1x120xf32> -> vector<1x120xf32>
    %200 = arith.addf %195, %199 : vector<1x120xf32>
    %201 = vector.extract_strided_slice %189 {offsets = [2, 0], sizes = [1, 25], strides = [1, 1]} : vector<16x25xf32> to vector<1x25xf32>
    %202 = arith.truncf %201 : vector<1x25xf32> to vector<1x25xbf16>
    %c50_73 = arith.constant 50 : index
    %c0_74 = arith.constant 0 : index
    %203 = vector.load %arg6[%c50_73, %c0_74] : memref<400x120xbf16, #tpu.memory_space<vmem>>, vector<25x120xbf16>
    %cst_75 = arith.constant dense<0.000000e+00> : vector<1x120xf32>
    %204 = tpu.matmul %202, %203, %cst_75 {dimension_numbers = #tpu.dot_dimension_numbers<[1], [0], [0], [1], [0, 0, 1, 1], [], []>} : vector<1x25xbf16>, vector<25x120xbf16>, vector<1x120xf32> -> vector<1x120xf32>
    %205 = arith.addf %200, %204 : vector<1x120xf32>
    %206 = vector.extract_strided_slice %189 {offsets = [3, 0], sizes = [1, 25], strides = [1, 1]} : vector<16x25xf32> to vector<1x25xf32>
    %207 = arith.truncf %206 : vector<1x25xf32> to vector<1x25xbf16>
    %c75_76 = arith.constant 75 : index
    %c0_77 = arith.constant 0 : index
    %208 = vector.load %arg6[%c75_76, %c0_77] : memref<400x120xbf16, #tpu.memory_space<vmem>>, vector<25x120xbf16>
    %cst_78 = arith.constant dense<0.000000e+00> : vector<1x120xf32>
    %209 = tpu.matmul %207, %208, %cst_78 {dimension_numbers = #tpu.dot_dimension_numbers<[1], [0], [0], [1], [0, 0, 1, 1], [], []>} : vector<1x25xbf16>, vector<25x120xbf16>, vector<1x120xf32> -> vector<1x120xf32>
    %210 = arith.addf %205, %209 : vector<1x120xf32>
    %211 = vector.extract_strided_slice %189 {offsets = [4, 0], sizes = [1, 25], strides = [1, 1]} : vector<16x25xf32> to vector<1x25xf32>
    %212 = arith.truncf %211 : vector<1x25xf32> to vector<1x25xbf16>
    %c100_79 = arith.constant 100 : index
    %c0_80 = arith.constant 0 : index
    %213 = vector.load %arg6[%c100_79, %c0_80] : memref<400x120xbf16, #tpu.memory_space<vmem>>, vector<25x120xbf16>
    %cst_81 = arith.constant dense<0.000000e+00> : vector<1x120xf32>
    %214 = tpu.matmul %212, %213, %cst_81 {dimension_numbers = #tpu.dot_dimension_numbers<[1], [0], [0], [1], [0, 0, 1, 1], [], []>} : vector<1x25xbf16>, vector<25x120xbf16>, vector<1x120xf32> -> vector<1x120xf32>
    %215 = arith.addf %210, %214 : vector<1x120xf32>
    %216 = vector.extract_strided_slice %189 {offsets = [5, 0], sizes = [1, 25], strides = [1, 1]} : vector<16x25xf32> to vector<1x25xf32>
    %217 = arith.truncf %216 : vector<1x25xf32> to vector<1x25xbf16>
    %c125_82 = arith.constant 125 : index
    %c0_83 = arith.constant 0 : index
    %218 = vector.load %arg6[%c125_82, %c0_83] : memref<400x120xbf16, #tpu.memory_space<vmem>>, vector<25x120xbf16>
    %cst_84 = arith.constant dense<0.000000e+00> : vector<1x120xf32>
    %219 = tpu.matmul %217, %218, %cst_84 {dimension_numbers = #tpu.dot_dimension_numbers<[1], [0], [0], [1], [0, 0, 1, 1], [], []>} : vector<1x25xbf16>, vector<25x120xbf16>, vector<1x120xf32> -> vector<1x120xf32>
    %220 = arith.addf %215, %219 : vector<1x120xf32>
    %221 = vector.extract_strided_slice %189 {offsets = [6, 0], sizes = [1, 25], strides = [1, 1]} : vector<16x25xf32> to vector<1x25xf32>
    %222 = arith.truncf %221 : vector<1x25xf32> to vector<1x25xbf16>
    %c150_85 = arith.constant 150 : index
    %c0_86 = arith.constant 0 : index
    %223 = vector.load %arg6[%c150_85, %c0_86] : memref<400x120xbf16, #tpu.memory_space<vmem>>, vector<25x120xbf16>
    %cst_87 = arith.constant dense<0.000000e+00> : vector<1x120xf32>
    %224 = tpu.matmul %222, %223, %cst_87 {dimension_numbers = #tpu.dot_dimension_numbers<[1], [0], [0], [1], [0, 0, 1, 1], [], []>} : vector<1x25xbf16>, vector<25x120xbf16>, vector<1x120xf32> -> vector<1x120xf32>
    %225 = arith.addf %220, %224 : vector<1x120xf32>
    %226 = vector.extract_strided_slice %189 {offsets = [7, 0], sizes = [1, 25], strides = [1, 1]} : vector<16x25xf32> to vector<1x25xf32>
    %227 = arith.truncf %226 : vector<1x25xf32> to vector<1x25xbf16>
    %c175_88 = arith.constant 175 : index
    %c0_89 = arith.constant 0 : index
    %228 = vector.load %arg6[%c175_88, %c0_89] : memref<400x120xbf16, #tpu.memory_space<vmem>>, vector<25x120xbf16>
    %cst_90 = arith.constant dense<0.000000e+00> : vector<1x120xf32>
    %229 = tpu.matmul %227, %228, %cst_90 {dimension_numbers = #tpu.dot_dimension_numbers<[1], [0], [0], [1], [0, 0, 1, 1], [], []>} : vector<1x25xbf16>, vector<25x120xbf16>, vector<1x120xf32> -> vector<1x120xf32>
    %230 = arith.addf %225, %229 : vector<1x120xf32>
    %231 = vector.extract_strided_slice %189 {offsets = [8, 0], sizes = [1, 25], strides = [1, 1]} : vector<16x25xf32> to vector<1x25xf32>
    %232 = arith.truncf %231 : vector<1x25xf32> to vector<1x25xbf16>
    %c200_91 = arith.constant 200 : index
    %c0_92 = arith.constant 0 : index
    %233 = vector.load %arg6[%c200_91, %c0_92] : memref<400x120xbf16, #tpu.memory_space<vmem>>, vector<25x120xbf16>
    %cst_93 = arith.constant dense<0.000000e+00> : vector<1x120xf32>
    %234 = tpu.matmul %232, %233, %cst_93 {dimension_numbers = #tpu.dot_dimension_numbers<[1], [0], [0], [1], [0, 0, 1, 1], [], []>} : vector<1x25xbf16>, vector<25x120xbf16>, vector<1x120xf32> -> vector<1x120xf32>
    %235 = arith.addf %230, %234 : vector<1x120xf32>
    %236 = vector.extract_strided_slice %189 {offsets = [9, 0], sizes = [1, 25], strides = [1, 1]} : vector<16x25xf32> to vector<1x25xf32>
    %237 = arith.truncf %236 : vector<1x25xf32> to vector<1x25xbf16>
    %c225_94 = arith.constant 225 : index
    %c0_95 = arith.constant 0 : index
    %238 = vector.load %arg6[%c225_94, %c0_95] : memref<400x120xbf16, #tpu.memory_space<vmem>>, vector<25x120xbf16>
    %cst_96 = arith.constant dense<0.000000e+00> : vector<1x120xf32>
    %239 = tpu.matmul %237, %238, %cst_96 {dimension_numbers = #tpu.dot_dimension_numbers<[1], [0], [0], [1], [0, 0, 1, 1], [], []>} : vector<1x25xbf16>, vector<25x120xbf16>, vector<1x120xf32> -> vector<1x120xf32>
    %240 = arith.addf %235, %239 : vector<1x120xf32>
    %241 = vector.extract_strided_slice %189 {offsets = [10, 0], sizes = [1, 25], strides = [1, 1]} : vector<16x25xf32> to vector<1x25xf32>
    %242 = arith.truncf %241 : vector<1x25xf32> to vector<1x25xbf16>
    %c250_97 = arith.constant 250 : index
    %c0_98 = arith.constant 0 : index
    %243 = vector.load %arg6[%c250_97, %c0_98] : memref<400x120xbf16, #tpu.memory_space<vmem>>, vector<25x120xbf16>
    %cst_99 = arith.constant dense<0.000000e+00> : vector<1x120xf32>
    %244 = tpu.matmul %242, %243, %cst_99 {dimension_numbers = #tpu.dot_dimension_numbers<[1], [0], [0], [1], [0, 0, 1, 1], [], []>} : vector<1x25xbf16>, vector<25x120xbf16>, vector<1x120xf32> -> vector<1x120xf32>
    %245 = arith.addf %240, %244 : vector<1x120xf32>
    %246 = vector.extract_strided_slice %189 {offsets = [11, 0], sizes = [1, 25], strides = [1, 1]} : vector<16x25xf32> to vector<1x25xf32>
    %247 = arith.truncf %246 : vector<1x25xf32> to vector<1x25xbf16>
    %c275_100 = arith.constant 275 : index
    %c0_101 = arith.constant 0 : index
    %248 = vector.load %arg6[%c275_100, %c0_101] : memref<400x120xbf16, #tpu.memory_space<vmem>>, vector<25x120xbf16>
    %cst_102 = arith.constant dense<0.000000e+00> : vector<1x120xf32>
    %249 = tpu.matmul %247, %248, %cst_102 {dimension_numbers = #tpu.dot_dimension_numbers<[1], [0], [0], [1], [0, 0, 1, 1], [], []>} : vector<1x25xbf16>, vector<25x120xbf16>, vector<1x120xf32> -> vector<1x120xf32>
    %250 = arith.addf %245, %249 : vector<1x120xf32>
    %251 = vector.extract_strided_slice %189 {offsets = [12, 0], sizes = [1, 25], strides = [1, 1]} : vector<16x25xf32> to vector<1x25xf32>
    %252 = arith.truncf %251 : vector<1x25xf32> to vector<1x25xbf16>
    %c300_103 = arith.constant 300 : index
    %c0_104 = arith.constant 0 : index
    %253 = vector.load %arg6[%c300_103, %c0_104] : memref<400x120xbf16, #tpu.memory_space<vmem>>, vector<25x120xbf16>
    %cst_105 = arith.constant dense<0.000000e+00> : vector<1x120xf32>
    %254 = tpu.matmul %252, %253, %cst_105 {dimension_numbers = #tpu.dot_dimension_numbers<[1], [0], [0], [1], [0, 0, 1, 1], [], []>} : vector<1x25xbf16>, vector<25x120xbf16>, vector<1x120xf32> -> vector<1x120xf32>
    %255 = arith.addf %250, %254 : vector<1x120xf32>
    %256 = vector.extract_strided_slice %189 {offsets = [13, 0], sizes = [1, 25], strides = [1, 1]} : vector<16x25xf32> to vector<1x25xf32>
    %257 = arith.truncf %256 : vector<1x25xf32> to vector<1x25xbf16>
    %c325_106 = arith.constant 325 : index
    %c0_107 = arith.constant 0 : index
    %258 = vector.load %arg6[%c325_106, %c0_107] : memref<400x120xbf16, #tpu.memory_space<vmem>>, vector<25x120xbf16>
    %cst_108 = arith.constant dense<0.000000e+00> : vector<1x120xf32>
    %259 = tpu.matmul %257, %258, %cst_108 {dimension_numbers = #tpu.dot_dimension_numbers<[1], [0], [0], [1], [0, 0, 1, 1], [], []>} : vector<1x25xbf16>, vector<25x120xbf16>, vector<1x120xf32> -> vector<1x120xf32>
    %260 = arith.addf %255, %259 : vector<1x120xf32>
    %261 = vector.extract_strided_slice %189 {offsets = [14, 0], sizes = [1, 25], strides = [1, 1]} : vector<16x25xf32> to vector<1x25xf32>
    %262 = arith.truncf %261 : vector<1x25xf32> to vector<1x25xbf16>
    %c350_109 = arith.constant 350 : index
    %c0_110 = arith.constant 0 : index
    %263 = vector.load %arg6[%c350_109, %c0_110] : memref<400x120xbf16, #tpu.memory_space<vmem>>, vector<25x120xbf16>
    %cst_111 = arith.constant dense<0.000000e+00> : vector<1x120xf32>
    %264 = tpu.matmul %262, %263, %cst_111 {dimension_numbers = #tpu.dot_dimension_numbers<[1], [0], [0], [1], [0, 0, 1, 1], [], []>} : vector<1x25xbf16>, vector<25x120xbf16>, vector<1x120xf32> -> vector<1x120xf32>
    %265 = arith.addf %260, %264 : vector<1x120xf32>
    %266 = vector.extract_strided_slice %189 {offsets = [15, 0], sizes = [1, 25], strides = [1, 1]} : vector<16x25xf32> to vector<1x25xf32>
    %267 = arith.truncf %266 : vector<1x25xf32> to vector<1x25xbf16>
    %c375_112 = arith.constant 375 : index
    %c0_113 = arith.constant 0 : index
    %268 = vector.load %arg6[%c375_112, %c0_113] : memref<400x120xbf16, #tpu.memory_space<vmem>>, vector<25x120xbf16>
    %cst_114 = arith.constant dense<0.000000e+00> : vector<1x120xf32>
    %269 = tpu.matmul %267, %268, %cst_114 {dimension_numbers = #tpu.dot_dimension_numbers<[1], [0], [0], [1], [0, 0, 1, 1], [], []>} : vector<1x25xbf16>, vector<25x120xbf16>, vector<1x120xf32> -> vector<1x120xf32>
    %270 = arith.addf %265, %269 : vector<1x120xf32>
    %cst_115 = arith.constant 0.000000e+00 : f32
    %271 = vector.broadcast %cst_115 : f32 to vector<1x120xf32>
    %272 = arith.maximumf %270, %271 : vector<1x120xf32>
    %273 = arith.truncf %272 : vector<1x120xf32> to vector<1x120xbf16>
    %cst_116 = arith.constant dense<0.000000e+00> : vector<1x84xf32>
    %274 = tpu.matmul %273, %88, %cst_116 {dimension_numbers = #tpu.dot_dimension_numbers<[1], [0], [0], [1], [0, 0, 1, 1], [], []>} : vector<1x120xbf16>, vector<120x84xbf16>, vector<1x84xf32> -> vector<1x84xf32>
    %c0_117 = arith.constant 0 : index
    %c0_118 = arith.constant 0 : index
    %275 = vector.load %arg9[%c0_117, %c0_118] : memref<1x84xf32, #tpu.memory_space<vmem>>, vector<1x84xf32>
    %276 = arith.addf %274, %275 : vector<1x84xf32>
    %cst_119 = arith.constant 0.000000e+00 : f32
    %277 = vector.broadcast %cst_119 : f32 to vector<1x84xf32>
    %278 = arith.maximumf %276, %277 : vector<1x84xf32>
    %279 = arith.truncf %278 : vector<1x84xf32> to vector<1x84xbf16>
    %cst_120 = arith.constant dense<0.000000e+00> : vector<1x10xf32>
    %280 = tpu.matmul %279, %89, %cst_120 {dimension_numbers = #tpu.dot_dimension_numbers<[1], [0], [0], [1], [0, 0, 1, 1], [], []>} : vector<1x84xbf16>, vector<84x10xbf16>, vector<1x10xf32> -> vector<1x10xf32>
    %c0_121 = arith.constant 0 : index
    %c0_122 = arith.constant 0 : index
    %281 = vector.load %arg11[%c0_121, %c0_122] : memref<1x10xf32, #tpu.memory_space<vmem>>, vector<1x10xf32>
    %282 = arith.addf %280, %281 : vector<1x10xf32>
    %c1 = arith.constant 1 : index
    %c0_123 = arith.constant 0 : index
    %283 = vector.load %arg12[%c1, %c0_123] : memref<2x10xf32, #tpu.memory_space<vmem>>, vector<1x10xf32>
    tpu.vector_store %arg12[%c1, %c0_123], %282 {strides = array<i32>} : memref<2x10xf32, #tpu.memory_space<vmem>>, vector<1x10xf32>,
    return
  }
}

</mosaic_0001>

<bundles_post_ra>
// kernel: net_forward.1
= control target key start
LH: loop header
LB: loop body
LE: loop exit
PB: predicated region body
PF: predicated region fallthrough
CT: control target
= control target key end

     0   :  { %s12419_s29 = smov 126   ;;  %s12420_s30 = smov 127   ;;  %s20788_s0 = inlined_call_operand.vmem [shape: f32[8,2560], index: 0, kind: input, shape index: {}]   ;;  %s20789_s1 = inlined_call_operand.vmem [shape: bf16[8,200], index: 1, kind: input, shape index: {}]   ;;  %s20790_s2 = inlined_call_operand.vmem [shape: f32[8,1], index: 2, kind: input, shape index: {}]   ;;  %s20791_s3 = inlined_call_operand.vmem [shape: bf16[16,200], index: 3, kind: input, shape index: {}]   ;;  %s20792_s4 = inlined_call_operand.vmem [shape: f32[16,1], index: 4, kind: input, shape index: {}]   ;;  %s20793_s5 = inlined_call_operand.vmem [shape: bf16[1024,25], index: 5, kind: input, shape index: {}]   ;;  %s20794_s6 = inlined_call_operand.vmem [shape: bf16[400,120], index: 6, kind: input, shape index: {}]   ;;  %s20795_s7 = inlined_call_operand.vmem [shape: f32[1,120], index: 7, kind: input, shape index: {}]   ;;  %s20796_s8 = inlined_call_operand.vmem [shape: bf16[120,84], index: 8, kind: input, shape index: {}]   ;;  %s20797_s9 = inlined_call_operand.vmem [shape: f32[1,84], index: 9, kind: input, shape index: {}]   ;;  %s20798_s10 = inlined_call_operand.vmem [shape: bf16[84,10], index: 10, kind: input, shape index: {}]   ;;  %s20799_s11 = inlined_call_operand.vmem [shape: f32[1,10], index: 11, kind: input, shape index: {}]   ;;  %s20800_s12 = inlined_call_operand.hbm [shape: f32[2,10], index: 12, kind: output, shape index: {}]  }
   0x1   :  { %v12514_v0 = vld [vmem:[%s20788_s0 + $0x8] sm:$0xff]  ;;  %v45_v1 = vld [vmem:[%s20788_s0 + $0x10] sm:$0xff]  ;;  %v12522_v2 = vld [vmem:[%s20788_s0] sm:$0xff]  ;;  %s20917_s15 = smov 125   ;;  %s20915_s16 = smov 96  }
   0x2   :  { %v12525_v3 = vpack.i.bf16 %v45_v1, %v12514_v0  ;;  %v46_v4 = vld [vmem:[%s20788_s0 + $0x18] sm:$0xff]  ;;  %v47_v6 = vld [vmem:[%s20788_s0 + $0x20] sm:$0xff]  ;;  %s12423_s17 = smov 97   ;;  %s20805_s18 = smov 95   ;;  %v12555_v8 = vld [vmem:[%s20788_s0 + $0x28] sm:$0xff] }
   0x3   :  { %v9888_v5 = vpack.i.bf16 %v12522_v2, %v46_v4  ;;  %v9918_v7 = vpack.i.bf16 %v47_v6, %v46_v4  ;;  %s12425_s21 = smov 94   ;;  %s20803_s22 = smov 93   ;;  %v12564_v9 = vpack.i.bf16 %v12555_v8, %v47_v6  ;;  %v49_v10 = vld [vmem:[%s20788_s0 + $0x30] sm:$0xff]  ;;  %v9973_v11 = vpack.i.bf16 %v46_v4, %v12522_v2  ;;  %v12599_v13 = vld [vmem:[%s20788_s0 + $0x38] sm:$0xff]  ;;  %v12623_v15 = vld [vmem:[%s20788_s0 + $0x40] sm:$0xff] }
   0x4   :  { %9884 = vrot.lane.b32.xlu1 %v12525_v3, %s12419_s29  ;;  %9874 = vrot.lane.b32.xlu0 %v12525_v3, %s12420_s30  ;;  %s12427_s23 = smov 124   ;;  %v9983_v12 = vpack.i.bf16 %v49_v10, %v12555_v8  ;;  %s12428_s26 = smov 92   ;;  %v12608_v14 = vpack.i.bf16 %v12599_v13, %v49_v10  ;;  %v10098_v16 = vpack.i.bf16 %v12623_v15, %v12599_v13 }
   0x5   :  { %s12429_s27 = smov 64   ;;  %s20801_s28 = smov 63  }
   0x6   :  { %s12431_s19 = smov 61   ;;  %s12432_s20 = smov 62  }
   0x7   :  { %s12433_s24 = smov 60   ;;  %s12434_s25 = smov 32  }
   0x8   :  { %9889 = vrot.lane.b32.xlu1 %v9888_v5, %s12419_s29  ;;  %9879 = vrot.lane.b32.xlu0 %v9888_v5, %s12420_s30 }
   0xc   :  { %9899 = vrot.lane.b32.xlu1 %v9888_v5, %s20917_s15  ;;  %9894 = vrot.lane.b32.xlu0 %v12525_v3, %s20917_s15 }
  0x10   :  { %9909 = vrot.lane.b32.xlu1 %v9888_v5, %s20915_s16  ;;  %9904 = vrot.lane.b32.xlu0 %v12525_v3, %s20915_s16 }
  0x14   :  { %9919 = vrot.lane.b32.xlu1 %v9918_v7, %s12423_s17  ;;  %9914 = vrot.lane.b32.xlu0 %v12525_v3, %s12423_s17 }
  0x18   :  { %9929 = vrot.lane.b32.xlu1 %v9888_v5, %s20805_s18  ;;  %9924 = vrot.lane.b32.xlu0 %v12525_v3, %s20805_s18 }
  0x1c   :  { %9939 = vrot.lane.b32.xlu1 %v9888_v5, %s12425_s21  ;;  %9934 = vrot.lane.b32.xlu0 %v12525_v3, %s12425_s21 }
  0x20   :  { %9949 = vrot.lane.b32.xlu1 %v9888_v5, %s20803_s22  ;;  %9944 = vrot.lane.b32.xlu0 %v12525_v3, %s20803_s22 }
  0x24   :  { %9959 = vrot.lane.b32.xlu1 %v12525_v3, %s12427_s23  ;;  %9954 = vrot.lane.b32.xlu0 %v12564_v9, %s12420_s30 }
  0x28   :  { %9969 = vrot.lane.b32.xlu1 %v12564_v9, %s20917_s15  ;;  %9964 = vrot.lane.b32.xlu0 %v12564_v9, %s12419_s29 }
  0x2c   :  { %9979 = vrot.lane.b32.xlu1 %v12564_v9, %s20915_s16  ;;  %9974 = vrot.lane.b32.xlu0 %v9973_v11, %s12427_s23 }
  0x30   :  { %9989 = vrot.lane.b32.xlu1 %v12525_v3, %s12428_s26  ;;  %9984 = vrot.lane.b32.xlu0 %v9983_v12, %s12423_s17 }
  0x34   :  { %9999 = vrot.lane.b32.xlu1 %v12564_v9, %s12425_s21  ;;  %9994 = vrot.lane.b32.xlu0 %v12564_v9, %s20805_s18 }
  0x38   :  { %10009 = vrot.lane.b32.xlu1 %v12525_v3, %s12429_s27  ;;  %10004 = vrot.lane.b32.xlu0 %v9973_v11, %s12428_s26 }
  0x3c   :  { %10019 = vrot.lane.b32.xlu1 %v12564_v9, %s20803_s22  ;;  %10014 = vrot.lane.b32.xlu0 %v12525_v3, %s20801_s28 }
  0x40   :  { %10029 = vrot.lane.b32.xlu1 %v9973_v11, %s20801_s28  ;;  %10024 = vrot.lane.b32.xlu0 %v9973_v11, %s12429_s27  ;;  %s12435_s28 = smov 31  }
  0x44   :  { %10039 = vrot.lane.b32.xlu1 %v12525_v3, %s12431_s19  ;;  %10034 = vrot.lane.b32.xlu0 %v12525_v3, %s12432_s20 }
  0x48   :  { %10049 = vrot.lane.b32.xlu1 %v9973_v11, %s12432_s20  ;;  %10044 = vrot.lane.b32.xlu0 %v12608_v14, %s12420_s30 }
  0x4c   :  { %10059 = vrot.lane.b32.xlu1 %v12525_v3, %s12433_s24  ;;  %10054 = vrot.lane.b32.xlu0 %v9973_v11, %s12431_s19 }
  0x50   :  { %10069 = vrot.lane.b32.xlu1 %v12608_v14, %s12419_s29  ;;  %10064 = vrot.lane.b32.xlu0 %v12525_v3, %s12434_s25 }
  0x54   :  { %10079 = vrot.lane.b32.xlu1 %v9973_v11, %s12433_s24  ;;  %10074 = vrot.lane.b32.xlu0 %v12608_v14, %s20917_s15 }
  0x58   :  { %10089 = vrot.lane.b32.xlu1 %v12525_v3, %s12435_s28  ;;  %10084 = vrot.lane.b32.xlu0 %v9973_v11, %s12434_s25 }
  0x5c   :  { %10094 = vrot.lane.b32.xlu1 %v12608_v14, %s20915_s16  ;;  %10099 = vrot.lane.b32.xlu0 %v10098_v16, %s12423_s17 }
  0x60   :  { %10109 = vrot.lane.b32.xlu1 %v12608_v14, %s12425_s21  ;;  %10104 = vrot.lane.b32.xlu0 %v12608_v14, %s20805_s18 }
  0x64   :  { %10114 = vrot.lane.b32.xlu1 %v12564_v9, %s12427_s23  ;;  %10119 = vrot.lane.b32.xlu0 %v12608_v14, %s20803_s22 }
  0x65   :  { %17 = vsyncpa [#allocation3], 0  ;;  %vm120_vm0 = vcmask 1039360   ;;  %vm196_vm1 = vcmask 1031168   ;;  %vm20845_vm2 = vcmask 1022976   ;;  %vm1303_vm3 = vcmask 793600  }
  0x66   :  { %vm506_vm4 = vcmask 777216   ;;  %vm585_vm5 = vcmask 769024   ;;  %vm427_vm6 = vcmask 785408   ;;  %vm20862_vm7 = vcmask 760832   ;;  %s21280_s22 = smov 63   ;;  %s21301_s13 = smov 93  }
  0x67   :  { %vm20865_vm8 = vcmask 1014784   ;;  %vm20820_vm9 = vcmask 588800   ;;  %vm743_vm10 = vcmask 752640   ;;  %vm822_vm11 = vcmask 523264   ;;  %s21486_s18 = smov 96  }
  0x68   :  { %vm901_vm12 = vcmask 515072   ;;  %vm980_vm13 = vcmask 506880   ;;  %vm1059_vm14 = vcmask 498688   ;;  %vm20901_vm15 = vcmask 490496  }
  0x76   :  { %v9885_v17 = vpop.permute.xlu1 %9884  ;;  %v9875_v18 = vpop.permute.xlu0 %9874 }
  0x77   :  { %v9877_v19 = vunpack.i.h.bf16 %v9875_v18  ;;  %v9876_v20 = vunpack.i.l.bf16 %v9875_v18  ;;  %v9887_v22 = vunpack.i.h.bf16 %v9885_v17  ;;  %v9886_v23 = vunpack.i.l.bf16 %v9885_v17 }
  0x79   :  { %v122_v21 = vsel %vm120_vm0, %v9876_v20, %v9877_v19  ;;  %v198_v37 = vsel %vm196_vm1, %v9886_v23, %v9887_v22 }
  0x7a   :  { %v12645_v24 = vpop.permute.xlu1 %9889  ;;  %v12647_v25 = vpop.permute.xlu0 %9879  ;;  %v2026_v26 = vpack.c.bf16 %v122_v21, %v12514_v0 }
  0x7b   :  { %v9891_v27 = vunpack.i.l.bf16 %v12645_v24  ;;  %v9882_v28 = vunpack.i.h.bf16 %v12647_v25  ;;  %v9881_v29 = vunpack.i.l.bf16 %v12647_v25  ;;  %v9892_v30 = vunpack.i.h.bf16 %v12645_v24  ;;  %v12308_v25 = vld [vmem:[%s20788_s0 + $0x10] sm:$0xff] }
  0x7c   :  { %2347 = vmatprep.subr.bf16.mxu0 %v2026_v26 }
  0x7d   :  { %v12657_v31 = vsel %vm120_vm0, %v9877_v19, %v9881_v29  ;;  %v121_v32 = vsel %vm120_vm0, %v9882_v28, %v9876_v20  ;;  %v12669_v41 = vsel %vm196_vm1, %v9887_v22, %v9891_v27  ;;  %v197_v43 = vsel %vm196_vm1, %v9892_v30, %v9886_v23 }
  0x7e   :  { %v10128_v33 = vpack.i.bf16 %v12657_v31, %v122_v21  ;;  %v12661_v34 = vpop.permute.xlu1 %9899  ;;  %v9895_v35 = vpop.permute.xlu0 %9894  ;;  %v2025_v36 = vpack.c.bf16 %v121_v32, %v12522_v2  ;;  %v10138_v48 = vpack.i.bf16 %v12669_v41, %v198_v37  ;;  %v10133_v4 = vpack.i.bf16 %v121_v32, %v12522_v2 }
  0x7f   :  { %v9902_v38 = vunpack.i.h.bf16 %v12661_v34  ;;  %v9897_v39 = vunpack.i.h.bf16 %v9895_v35  ;;  %v9896_v40 = vunpack.i.l.bf16 %v9895_v35  ;;  %v9901_v60 = vunpack.i.l.bf16 %v12661_v34 }
  0x80   :  { %2348 = vmatpush1.bf16.msra.mxu0 %v2025_v36  ;;  %10129 = vrot.lane.b32.xlu0 %v10128_v33, %s12435_s28 }
  0x81   :  { %v274_v42 = vsel %vm20845_vm2, %v9896_v40, %v9897_v39  ;;  %v273_v44 = vsel %vm20845_vm2, %v9902_v38, %v9896_v40  ;;  %v12716_v2 = vsel %vm20845_vm2, %v9897_v39, %v9901_v60 }
  0x82   :  { %v12675_v45 = vpop.permute.xlu1 %9909  ;;  %v9905_v46 = vpop.permute.xlu0 %9904  ;;  %v2045_v47 = vpack.c.bf16 %v274_v42, %v198_v37  ;;  %v2044_v49 = vpack.c.bf16 %v273_v44, %v197_v43  ;;  %v10148_v52 = vpack.i.bf16 %v273_v44, %v197_v43  ;;  %v10143_v20 = vpack.i.bf16 %v12716_v2, %v274_v42 }
  0x83   :  { %v12681_v53 = vunpack.i.l.bf16 %v9905_v46  ;;  %v20821_v7 = vunpack.i.l.bf16 %v12675_v45  ;;  %v9907_v10 = vunpack.i.h.bf16 %v9905_v46 }
  0x84   :  { %2349 = vmatprep.subr.bf16.mxu0 %v2045_v47  ;;  %10139 = vrot.lane.b32.xlu0 %v10138_v48, %s12435_s28 }
  0x85   :  { %2350 = vmatpush1.bf16.msra.mxu0 %v2044_v49  ;;  %v429_v28 = vsel %vm427_vm6, %v12681_v53, %v9907_v10  ;;  %v12738_v30 = vsel %vm427_vm6, %v9907_v10, %v20821_v7 }
  0x86   :  { %v12679_v50 = vpop.permute.xlu1 %9919  ;;  %v9915_v51 = vpop.permute.xlu0 %9914  ;;  %v10158_v36 = vpack.i.bf16 %v12738_v30, %v429_v28 }
  0x87   :  { %v9921_v54 = vunpack.i.l.bf16 %v12679_v50  ;;  %v9917_v55 = vunpack.i.h.bf16 %v9915_v51  ;;  %v9916_v56 = vunpack.i.l.bf16 %v9915_v51 }
  0x88   :  { %10149 = vrot.lane.b32.xlu0 %v10148_v52, %s12435_s28 }
  0x89   :  { %v10123_v57 = vpack.i.bf16 %v12681_v53, %v9916_v56  ;;  %v1304_v58 = vsel %vm1303_vm3, %v9916_v56, %v9917_v55  ;;  %v1305_v59 = vsel %vm1303_vm3, %v9917_v55, %v9921_v54 }
  0x8a   :  { %v12691_v61 = vpop.permute.xlu1 %9929  ;;  %v9925_v62 = vpop.permute.xlu0 %9924  ;;  %v10153_v63 = vpack.i.bf16 %v1305_v59, %v1304_v58 }
  0x8b   :  { %v9931_v0 = vunpack.i.l.bf16 %v12691_v61  ;;  %v9927_v1 = vunpack.i.h.bf16 %v9925_v62  ;;  %v12694_v3 = vunpack.i.l.bf16 %v9925_v62  ;;  %10124 = vrot.lane.b32.xlu1 %v10123_v57, %s12435_s28  ;;  %v12307_v57 = vld [vmem:[%s20788_s0 + $0x18] sm:$0xff] }
  0x8c   :  { %10154 = vrot.lane.b32.xlu0 %v10153_v63, %s12435_s28 }
  0x8d   :  { %v12701_v5 = vsel %vm506_vm4, %v12694_v3, %v9927_v1  ;;  %v12706_v6 = vsel %vm506_vm4, %v9927_v1, %v9931_v0 }
  0x8e   :  { %v12709_v11 = vpop.permute.xlu1 %9939  ;;  %v9935_v12 = vpop.permute.xlu0 %9934  ;;  %v10163_v16 = vpack.i.bf16 %v12706_v6, %v12701_v5 }
  0x8f   :  { %v20817_v17 = vunpack.i.l.bf16 %v12709_v11  ;;  %v9937_v18 = vunpack.i.h.bf16 %v9935_v12  ;;  %v12719_v19 = vunpack.i.l.bf16 %v9935_v12  ;;  %10134 = vrot.lane.b32.xlu1 %v10133_v4, %s12435_s28  ;;  %v9912_v4 = vunpack.i.h.bf16 %v12675_v45 }
  0x90   :  { %10164 = vrot.lane.b32.xlu0 %v10163_v16, %s12435_s28  ;;  %v2046_v12 = vpack.c.bf16 %v12716_v2, %v12669_v41  ;;  %v12812_v16 = vld [vmem:[%s20788_s0 + $0x48] sm:$0xff]  ;;  %v9942_v24 = vunpack.i.h.bf16 %v12709_v11 }
  0x91   :  { %v10168_v21 = vpack.i.bf16 %v12719_v19, %v12694_v3  ;;  %v12729_v22 = vsel %vm585_vm5, %v9937_v18, %v20817_v17  ;;  %v12764_v46 = vsel %vm585_vm5, %v12719_v19, %v9937_v18  ;;  %v9932_v18 = vunpack.i.h.bf16 %v12691_v61  ;;  %v13032_v17 = vld [vmem:[%s20788_s0 + $0x30] sm:$0xff] }
  0x92   :  { %v12731_v23 = vpop.permute.xlu1 %9949  ;;  %v9945_v26 = vpop.permute.xlu0 %9944  ;;  %v10173_v47 = vpack.i.bf16 %v12729_v22, %v12764_v46 }
  0x93   :  { %v9947_v33 = vunpack.i.h.bf16 %v9945_v26  ;;  %v12742_v35 = vunpack.i.l.bf16 %v9945_v26  ;;  %10144 = vrot.lane.b32.xlu1 %v10143_v20, %s12435_s28  ;;  %v20816_v51 = vunpack.i.l.bf16 %v12731_v23 }
  0x94   :  { %10169 = vrot.lane.b32.xlu0 %v10168_v21, %s12435_s28 }
  0x95   :  { %v12749_v37 = vsel %vm20862_vm7, %v12742_v35, %v9947_v33  ;;  %v12825_v41 = vsel %vm20862_vm7, %v9947_v33, %v20816_v51  ;;  %v12848_v33 = vpack.i.bf16 %v12812_v16, %v12623_v15  ;;  %v428_v15 = vsel %vm427_vm6, %v9912_v4, %v12681_v53 }
  0x96   :  { %v12751_v38 = vpop.permute.xlu1 %9959  ;;  %v12753_v39 = vpop.permute.xlu0 %9954  ;;  %v10183_v40 = vpack.i.bf16 %v12749_v37, %v12742_v35 }
  0x97   :  { %v9962_v42 = vunpack.i.h.bf16 %v12751_v38  ;;  %v9961_v43 = vunpack.i.l.bf16 %v12751_v38  ;;  %v9956_v44 = vunpack.i.l.bf16 %v12753_v39  ;;  %10159 = vrot.lane.b32.xlu1 %v10158_v36, %s12435_s28 }
  0x98   :  { %10184 = vrot.lane.b32.xlu0 %v10183_v40, %s12435_s28  ;;  %v10188_v40 = vpack.i.bf16 %v12307_v57, %v12825_v41 }
  0x99   :  { %v350_v48 = vsel %vm20865_vm8, %v9961_v43, %v9962_v42  ;;  %v12774_v49 = vsel %vm120_vm0, %v9881_v29, %v9956_v44  ;;  %v2027_v29 = vpack.c.bf16 %v12657_v31, %v12308_v25  ;;  %v12867_v25 = vld [vmem:[%s20788_s0 + $0x20] sm:$0xff] }
  0x9a   :  { %v12777_v52 = vpop.permute.xlu1 %9969  ;;  %v12779_v55 = vpop.permute.xlu0 %9964  ;;  %v2064_v56 = vpack.c.bf16 %v429_v28, %v350_v48  ;;  %v2028_v58 = vpack.c.bf16 %v12774_v49, %v12307_v57  ;;  %v507_v57 = vsel %vm506_vm4, %v9932_v18, %v12694_v3 }
  0x9b   :  { %v20811_v59 = vunpack.i.h.bf16 %v12777_v52  ;;  %v9971_v62 = vunpack.i.l.bf16 %v12777_v52  ;;  %v20810_v63 = vunpack.i.h.bf16 %v12779_v55  ;;  %v9966_v1 = vunpack.i.l.bf16 %v12779_v55  ;;  %10174 = vrot.lane.b32.xlu1 %v10173_v47, %s12435_s28 }
  0x9c   :  { %2351 = vmatprep.subr.bf16.mxu0 %v2064_v56  ;;  %2388 = vmatprep.subr.bf16.mxu1 %v2028_v58 }
  0x9d   :  { %10194 = vrot.lane.b32.xlu0 %v12564_v9, %s12429_s27  ;;  %2389 = vmatpush1.bf16.msra.mxu1 %v2027_v29  ;;  %v12800_v31 = vsel %vm196_vm1, %v9891_v27, %v9966_v1  ;;  %v12805_v10 = vsel %vm20845_vm2, %v9901_v60, %v9971_v62  ;;  %v12830_v60 = vld [vmem:[%s20789_s1] sm:$0xff]  ;;  %v12839_v26 = vsel %vm20845_vm2, %v9971_v62, %v20811_v59  ;;  %s21286_s1 = smov 95  }
  0x9e   :  { %v12816_v20 = vpop.permute.xlu1 %9979  ;;  %v12818_v27 = vpop.permute.xlu0 %9974  ;;  %v2047_v34 = vpack.c.bf16 %v12805_v10, %v12800_v31  ;;  %21278 = vst [vmem:[#allocation5_spill] sm:$0xff] %v12839_v26  ;;  %v12844_v28 = vsel %vm196_vm1, %v9966_v1, %v20810_v63  ;;  %v12854_v38 = vcombine.high %v12830_v60, %v12830_v60  ;;  %v2083_v62 = vpack.c.bf16 %v12764_v46, %v12701_v5 }
  0x9f   :  { %v20815_v2 = vunpack.i.h.bf16 %v12818_v27  ;;  %v9976_v21 = vunpack.i.l.bf16 %v12818_v27  ;;  %10179 = vrot.lane.b32.xlu1 %v12564_v9, %s12428_s26  ;;  %21279 = vst [vmem:[#allocation6_spill] sm:$0xff] %v12844_v28 }
  0xa0   :  { %2390 = vmatprep.subr.bf16.mxu1 %v2047_v34  ;;  %8877 = vmatprep.mubr.msk.bf16.mxu0 %vm20820_vm9, %v12854_v38  ;;  %v9952_v34 = vunpack.i.h.bf16 %v12731_v23 }
  0xa1   :  { %10204 = vrot.lane.b32.xlu0 %v12564_v9, %s12432_s20  ;;  %2391 = vmatpush1.bf16.msra.mxu1 %v2046_v12  ;;  %v349_v47 = vsel %vm20865_vm8, %v9976_v21, %v9961_v43  ;;  %v10198_v9 = vpack.i.bf16 %v12555_v8, %v12867_v25  ;;  %v12876_v53 = vsel %vm20865_vm8, %v9962_v42, %v20815_v2 }
  0xa2   :  { %v9990_v48 = vpop.permute.xlu1 %9989  ;;  %v12862_v56 = vpop.permute.xlu0 %9984  ;;  %v2063_v58 = vpack.c.bf16 %v428_v15, %v349_v47  ;;  %v586_v8 = vsel %vm585_vm5, %v9942_v24, %v12719_v19  ;;  %8879 = vmatprep.mubr.msk.bf16.mxu1 %vm20820_vm9, %v12854_v38  ;;  %vm20903_vm9 = vcmask 261120  }
  0xa3   :  { %v9992_v43 = vunpack.i.h.bf16 %v9990_v48  ;;  %v9991_v29 = vunpack.i.l.bf16 %v9990_v48  ;;  %10189 = vrot.lane.b32.xlu1 %v10188_v40, %s12435_s28  ;;  %v2082_v5 = vpack.c.bf16 %v586_v8, %v507_v57  ;;  %v665_v8 = vsel %vm20862_vm7, %v9952_v34, %v12742_v35 }
  0xa4   :  { %2352 = vmatpush1.bf16.msra.mxu0 %v2063_v58 }
  0xa5   :  { %10214 = vrot.lane.b32.xlu0 %v12848_v33, %s12420_s30  ;;  %2353 = vmatprep.subr.bf16.mxu0 %v2083_v62  ;;  %v745_v42 = vsel %vm743_vm10, %v9991_v29, %v9992_v43  ;;  %v12940_v62 = vld [vmem:[%s20788_s0 + $0x28] sm:$0xff] }
  0xa6   :  { %v12892_v1 = vpop.permute.xlu1 %9999  ;;  %v12894_v4 = vpop.permute.xlu0 %9994  ;;  %v2102_v19 = vpack.c.bf16 %v745_v42, %v12749_v37  ;;  %v10228_v36 = vpack.i.bf16 %v12940_v62, %v12867_v25 }
  0xa7   :  { %v20808_v46 = vunpack.i.h.bf16 %v12892_v1  ;;  %v20809_v12 = vunpack.i.h.bf16 %v12894_v4  ;;  %v9996_v18 = vunpack.i.l.bf16 %v12894_v4  ;;  %10199 = vrot.lane.b32.xlu1 %v10198_v9, %s21280_s22  ;;  %v20819_v24 = vunpack.i.l.bf16 %v12892_v1 }
  0xa8   :  { %2354 = vmatpush1.bf16.msra.mxu0 %v2082_v5 }
  0xa9   :  { %10224 = vrot.lane.b32.xlu0 %v10198_v9, %s12433_s24  ;;  %2355 = vmatprep.subr.bf16.mxu0 %v2102_v19  ;;  %v12911_v37 = vsel %vm506_vm4, %v9996_v18, %v20809_v12  ;;  %v12918_v47 = vsel %vm585_vm5, %v20819_v24, %v20808_v46 }
  0xaa   :  { %v10010_v21 = vpop.permute.xlu1 %10009  ;;  %v12904_v40 = vpop.permute.xlu0 %10004  ;;  %21281 = vst [vmem:[#allocation7_spill] sm:$0xff] %v12911_v37  ;;  %21282 = vst [vmem:[#allocation8_spill] sm:$0xff] %v12918_v47 }
  0xab   :  { %v10012_v15 = vunpack.i.h.bf16 %v10010_v21  ;;  %v10011_v48 = vunpack.i.l.bf16 %v10010_v21  ;;  %v20807_v58 = vunpack.i.h.bf16 %v12904_v40  ;;  %v10006_v57 = vunpack.i.l.bf16 %v12904_v40  ;;  %10209 = vrot.lane.b32.xlu1 %v10198_v9, %s12431_s19 }
  0xad   :  { %10234 = vrot.lane.b32.xlu0 %v12848_v33, %s12419_s29  ;;  %v744_v42 = vsel %vm743_vm10, %v10006_v57, %v9991_v29  ;;  %v12933_v5 = vsel %vm743_vm10, %v9992_v43, %v20807_v58  ;;  %v10243_v43 = vpack.i.bf16 %v12774_v49, %v12867_v25  ;;  %v824_v57 = vsel %vm822_vm11, %v10011_v48, %v10012_v15 }
  0xae   :  { %v12935_v19 = vpop.permute.xlu1 %10019  ;;  %v10015_v9 = vpop.permute.xlu0 %10014  ;;  %v2101_v21 = vpack.c.bf16 %v744_v42, %v665_v8  ;;  %v20814_v42 = vunpack.i.h.bf16 %v12753_v39 }
  0xaf   :  { %v10017_v29 = vunpack.i.h.bf16 %v10015_v9  ;;  %v10016_v34 = vunpack.i.l.bf16 %v10015_v9  ;;  %10219 = vrot.lane.b32.xlu1 %v12608_v14, %s12427_s23 }
  0xb0   :  { %2356 = vmatpush1.bf16.msra.mxu0 %v2101_v21 }
  0xb1   :  { %10244 = vrot.lane.b32.xlu0 %v10243_v43, %s12435_s28  ;;  %v903_v8 = vsel %vm901_vm12, %v10016_v34, %v10017_v29 }
  0xb2   :  { %v12954_v58 = vpop.permute.xlu1 %10029  ;;  %v12956_v35 = vpop.permute.xlu0 %10024  ;;  %v2121_v46 = vpack.c.bf16 %v903_v8, %v824_v57 }
  0xb3   :  { %v20813_v49 = vunpack.i.h.bf16 %v12954_v58  ;;  %v10031_v9 = vunpack.i.l.bf16 %v12954_v58  ;;  %v20812_v12 = vunpack.i.h.bf16 %v12956_v35  ;;  %v10026_v63 = vunpack.i.l.bf16 %v12956_v35  ;;  %10229 = vrot.lane.b32.xlu1 %v10228_v36, %s12434_s25 }
  0xb4   :  { %2357 = vmatprep.subr.bf16.mxu0 %v2121_v46  ;;  %v20824_v36 = vunpack.i.h.bf16 %v12679_v50 }
  0xb5   :  { %10254 = vrot.lane.b32.xlu0 %v12848_v33, %s20915_s16  ;;  %v823_v21 = vsel %vm822_vm11, %v10026_v63, %v10011_v48  ;;  %v902_v43 = vsel %vm901_vm12, %v10031_v9, %v10016_v34  ;;  %v12970_v57 = vsel %vm822_vm11, %v10012_v15, %v20812_v12  ;;  %v12975_v8 = vsel %vm901_vm12, %v10017_v29, %v20813_v49  ;;  %v12992_v49 = vld [vmem:[%s20788_s0 + $0x50] sm:$0xff] }
  0xb6   :  { %v10040_v46 = vpop.permute.xlu1 %10039  ;;  %v10035_v59 = vpop.permute.xlu0 %10034  ;;  %v12983_v63 = vsel %vm120_vm0, %v9956_v44, %v20814_v42  ;;  %v2120_v48 = vpack.c.bf16 %v902_v43, %v823_v21  ;;  %v10258_v3 = vpack.i.bf16 %v12992_v49, %v12812_v16  ;;  %v20823_v42 = vunpack.i.h.bf16 %v12816_v20 }
  0xb7   :  { %v10042_v34 = vunpack.i.h.bf16 %v10040_v46  ;;  %v10041_v9 = vunpack.i.l.bf16 %v10040_v46  ;;  %v10037_v12 = vunpack.i.h.bf16 %v10035_v59  ;;  %v10036_v29 = vunpack.i.l.bf16 %v10035_v59  ;;  %10239 = vrot.lane.b32.xlu1 %v12848_v33, %s20917_s15 }
  0xb8   :  { %2358 = vmatpush1.bf16.msra.mxu0 %v2120_v48  ;;  %v10248_v44 = vpack.i.bf16 %v12800_v31, %v12983_v63  ;;  %v1306_v48 = vsel %vm1303_vm3, %v9921_v54, %v20824_v36 }
  0xb9   :  { %10264 = vrot.lane.b32.xlu0 %v12608_v14, %s12428_s26  ;;  %v982_v21 = vsel %vm980_vm13, %v10036_v29, %v10037_v12  ;;  %v1061_v43 = vsel %vm1059_vm14, %v10041_v9, %v10042_v34  ;;  %v10273_v31 = vpack.i.bf16 %v1306_v48, %v12839_v26 }
  0xba   :  { %v13000_v59 = vpop.permute.xlu1 %10049  ;;  %v13002_v46 = vpop.permute.xlu0 %10044  ;;  %v2140_v15 = vpack.c.bf16 %v1061_v43, %v982_v21 }
  0xbb   :  { %v20818_v14 = vunpack.i.h.bf16 %v13000_v59  ;;  %v10051_v32 = vunpack.i.l.bf16 %v13000_v59  ;;  %10249 = vrot.lane.b32.xlu1 %v10248_v44, %s12435_s28 }
  0xbc   :  { %2359 = vmatprep.subr.bf16.mxu0 %v2140_v15 }
  0xbd   :  { %10274 = vrot.lane.b32.xlu0 %v10273_v31, %s12435_s28  ;;  %v981_v54 = vsel %vm980_vm13, %v10051_v32, %v10036_v29  ;;  %v13023_v21 = vsel %vm980_vm13, %v10037_v12, %v20818_v14  ;;  %v9981_v31 = vunpack.i.l.bf16 %v12816_v20  ;;  %v10293_v32 = vpack.i.bf16 %v12599_v13, %v13032_v17 }
  0xbe   :  { %v10060_v2 = vpop.permute.xlu1 %10059  ;;  %v13017_v51 = vpop.permute.xlu0 %10054  ;;  %21283 = vst [vmem:[#allocation9_spill] sm:$0xff] %v13023_v21 }
  0xbf   :  { %v10062_v44 = vunpack.i.h.bf16 %v10060_v2  ;;  %v10061_v43 = vunpack.i.l.bf16 %v10060_v2  ;;  %v20822_v48 = vunpack.i.h.bf16 %v13017_v51  ;;  %v10056_v15 = vunpack.i.l.bf16 %v13017_v51  ;;  %10259 = vrot.lane.b32.xlu1 %v10258_v3, %s12423_s17 }
  0xc0   :  { %v10268_v2 = vpack.i.bf16 %v12805_v10, %v12844_v28  ;;  %v13051_v13 = vsel %vm427_vm6, %v9981_v31, %v20823_v42  ;;  %v21291_v28 = vunpack.i.h.bf16 %v12679_v50  ;;  %v21294_v50 = vunpack.i.l.bf16 %v12675_v45 }
  0xc1   :  { %10284 = vrot.lane.b32.xlu0 %v12848_v33, %s12425_s21  ;;  %v1060_v12 = vsel %vm1059_vm14, %v10056_v15, %v10041_v9  ;;  %v13044_v3 = vsel %vm1059_vm14, %v10042_v34, %v20822_v48  ;;  %v13061_v34 = vsel %vm506_vm4, %v9931_v0, %v9996_v18  ;;  %v1140_v15 = vsel %vm20901_vm15, %v10061_v43, %v10062_v44 }
  0xc2   :  { %21284 = vst [vmem:[#allocation10_spill] sm:$0xff] %v13044_v3  ;;  %v13046_v29 = vpop.permute.xlu1 %10069  ;;  %v10065_v14 = vpop.permute.xlu0 %10064  ;;  %v2139_v24 = vpack.c.bf16 %v1060_v12, %v981_v54  ;;  %v10303_v61 = vpack.i.bf16 %v13061_v34, %v13051_v13 }
  0xc3   :  { %v10067_v7 = vunpack.i.h.bf16 %v10065_v14  ;;  %v10066_v9 = vunpack.i.l.bf16 %v10065_v14  ;;  %10269 = vrot.lane.b32.xlu1 %v10268_v2, %s12435_s28  ;;  %v20826_v54 = vunpack.i.h.bf16 %v13046_v29  ;;  %v20827_v2 = vunpack.i.l.bf16 %v13046_v29 }
  0xc4   :  { %2360 = vmatpush1.bf16.msra.mxu0 %v2139_v24 }
  0xc5   :  { %10294 = vrot.lane.b32.xlu0 %v10293_v32, %s21280_s22  ;;  %v1219_v12 = vsel %vm20903_vm9, %v10066_v9, %v10067_v7  ;;  %v13086_v14 = vsel %vm196_vm1, %v20827_v2, %v20826_v54  ;;  %v21296_v2 = vunpack.i.l.bf16 %v12709_v11  ;;  %v13138_v11 = vld [vmem:[%s20788_s0 + $0x58] sm:$0xff] }
  0xc6   :  { %v13069_v10 = vpop.permute.xlu1 %10079  ;;  %v13071_v48 = vpop.permute.xlu0 %10074  ;;  %v2159_v0 = vpack.c.bf16 %v1219_v12, %v1140_v15  ;;  %21287 = vst [vmem:[#allocation12_spill] sm:$0xff] %v13086_v14 }
  0xc7   :  { %21285 = vst [vmem:[#allocation11_spill] sm:$0xff] %v13069_v10  ;;  %v10081_v24 = vunpack.i.l.bf16 %v13069_v10  ;;  %v20829_v42 = vunpack.i.h.bf16 %v13071_v48  ;;  %v20830_v36 = vunpack.i.l.bf16 %v13071_v48  ;;  %10279 = vrot.lane.b32.xlu1 %v12848_v33, %s21286_s1 }
  0xc8   :  { %2361 = vmatprep.subr.bf16.mxu0 %v2159_v0  ;;  %v21290_v0 = vunpack.i.l.bf16 %v12862_v56 }
  0xc9   :  { %v13093_v15 = vsel %vm20845_vm2, %v20830_v36, %v20829_v42  ;;  %10304 = vrot.lane.b32.xlu0 %v10303_v61, %s12435_s28  ;;  %v1139_v61 = vsel %vm20901_vm15, %v10081_v24, %v10061_v43  ;;  %v21292_v36 = vunpack.i.h.bf16 %v13069_v10 }
  0xca   :  { %21288 = vst [vmem:[#allocation13_spill] sm:$0xff] %v13093_v15  ;;  %v13096_v12 = vpop.permute.xlu1 %10089  ;;  %v13098_v18 = vpop.permute.xlu0 %10084  ;;  %v1307_v54 = vsel %vm1303_vm3, %v21291_v28, %v21290_v0  ;;  %v431_v28 = vsel %vm427_vm6, %v21294_v50, %v9981_v31  ;;  %v21295_v0 = vunpack.i.l.bf16 %v12892_v1 }
  0xcb   :  { %21289 = vst [vmem:[#allocation14_spill] sm:$0xff] %v13098_v18  ;;  %v10086_v42 = vunpack.i.l.bf16 %v13098_v18  ;;  %10289 = vrot.lane.b32.xlu1 %v10293_v32, %s12429_s27  ;;  %v13114_v21 = vsel %vm20901_vm15, %v10062_v44, %v21292_v36  ;;  %v10298_v3 = vpack.i.bf16 %v431_v28, %v1307_v54  ;;  %v21297_v24 = vunpack.i.h.bf16 %v13098_v18 }
  0xcc   :  { %21293 = vst [vmem:[#allocation15_spill] sm:$0xff] %v13114_v21  ;;  %v589_v26 = vsel %vm585_vm5, %v21296_v2, %v21295_v0 }
  0xcd   :  { %10314 = vrot.lane.b32.xlu0 %v10293_v32, %s12432_s20  ;;  %v1218_v43 = vsel %vm20903_vm9, %v10086_v42, %v10066_v9  ;;  %v13129_v36 = vsel %vm20903_vm9, %v10067_v7, %v21297_v24  ;;  %v10323_v42 = vpack.i.bf16 %v589_v26, %v12911_v37  ;;  %v13147_v7 = vpack.i.bf16 %v13138_v11, %v12992_v49 }
  0xce   :  { %21298 = vst [vmem:[#allocation16_spill] sm:$0xff] %v13129_v36  ;;  %v13131_v44 = vpop.permute.xlu1 %10094  ;;  %v13133_v45 = vpop.permute.xlu0 %10099  ;;  %v2158_v31 = vpack.c.bf16 %v1218_v43, %v1139_v61  ;;  %v10021_v9 = vunpack.i.l.bf16 %v12935_v19  ;;  %v13157_v61 = vld [vmem:[%s20788_s0 + $0x38] sm:$0xff]  ;;  %v21305_v32 = vunpack.i.l.bf16 %v12731_v23  ;;  %v10022_v36 = vunpack.i.h.bf16 %v12935_v19 }
  0xcf   :  { %10299 = vrot.lane.b32.xlu1 %v10298_v3, %s12435_s28  ;;  %21300 = vst [vmem:[#allocation18_spill] sm:$0xff] %v13157_v61  ;;  %v10318_v3 = vpack.i.bf16 %v13157_v61, %v13032_v17 }
  0xd0   :  { %2362 = vmatpush1.bf16.msra.mxu0 %v2158_v31  ;;  %v13186_v37 = vsel %vm20862_vm7, %v21305_v32, %v10021_v9  ;;  %v21306_v32 = vunpack.i.h.bf16 %v12818_v27  ;;  %v21308_v27 = vpack.c.bf16 %v12738_v30, %v12876_v53  ;;  %v20850_v53 = vunpack.i.h.bf16 %v13002_v46 }
  0xd1   :  { %10324 = vrot.lane.b32.xlu0 %v10323_v42, %s12435_s28  ;;  %v10328_v23 = vpack.i.bf16 %v13186_v37, %v12918_v47  ;;  %v2085_v47 = vpack.c.bf16 %v589_v26, %v13061_v34  ;;  %v21309_v26 = vpack.c.bf16 %v12729_v22, %v12706_v6  ;;  %v21311_v34 = vunpack.i.h.bf16 %v12777_v52 }
  0xd2   :  { %v13150_v54 = vpop.permute.xlu1 %10109  ;;  %v13152_v2 = vpop.permute.xlu0 %10104  ;;  %v21314_v22 = vunpack.i.h.bf16 %v12779_v55 }
  0xd3   :  { %21299 = vst [vmem:[#allocation17_spill] sm:$0xff] %v13152_v2  ;;  %v20835_v50 = vunpack.i.h.bf16 %v13150_v54  ;;  %v20836_v0 = vunpack.i.l.bf16 %v13150_v54  ;;  %v20837_v49 = vunpack.i.h.bf16 %v13152_v2  ;;  %v10106_v43 = vunpack.i.l.bf16 %v13152_v2  ;;  %10309 = vrot.lane.b32.xlu1 %v12848_v33, %s21301_s13 }
  0xd5   :  { %v13172_v24 = vsel %vm585_vm5, %v20836_v0, %v20835_v50  ;;  %v13177_v31 = vsel %vm506_vm4, %v10106_v43, %v20837_v49  ;;  %10334 = vrot.lane.b32.xlu0 %v13147_v7, %s12420_s30  ;;  %v10046_v49 = vunpack.i.l.bf16 %v13002_v46 }
  0xd6   :  { %21302 = vst [vmem:[#allocation19_spill] sm:$0xff] %v13172_v24  ;;  %21303 = vst [vmem:[#allocation20_spill] sm:$0xff] %v13177_v31  ;;  %v13181_v42 = vpop.permute.xlu1 %10114 }
  0xd7   :  { %21304 = vst [vmem:[#allocation21_spill] sm:$0xff] %v13181_v42  ;;  %v20842_v50 = vunpack.i.h.bf16 %v13181_v42  ;;  %v10116_v0 = vunpack.i.l.bf16 %v13181_v42  ;;  %10319 = vrot.lane.b32.xlu1 %v10318_v3, %s12431_s19  ;;  %v13248_v6 = vsel %vm120_vm0, %v10046_v49, %v20850_v53 }
  0xd8   :  { %21312 = vst [vmem:[#allocation22_spill] sm:$0xff] %v13248_v6 }
  0xd9   :  { %v13197_v2 = vsel %vm20865_vm8, %v10116_v0, %v20842_v50  ;;  %10344 = vrot.lane.b32.xlu0 %v10318_v3, %s12434_s25  ;;  %v352_v21 = vsel %vm20865_vm8, %v21306_v32, %v10116_v0  ;;  %v21307_v50 = vunpack.i.h.bf16 %v12753_v39  ;;  %v20846_v0 = vunpack.i.h.bf16 %v13131_v44 }
  0xda   :  { %v2066_v18 = vpack.c.bf16 %v431_v28, %v352_v21  ;;  %v13223_v21 = vsel %vm20862_vm7, %v10021_v9, %v10022_v36  ;;  %v13264_v9 = vld [vmem:[%s20788_s0 + $0x60] sm:$0xff]  ;;  %v21315_v32 = vunpack.i.l.bf16 %v12862_v56 }
  0xdb   :  { %10329 = vrot.lane.b32.xlu1 %v10328_v23, %s12435_s28  ;;  %v13212_v42 = vsel %vm120_vm0, %v21307_v50, %v10046_v49  ;;  %v10348_v30 = vpack.i.bf16 %v12940_v62, %v13223_v21  ;;  %v10378_v55 = vpack.i.bf16 %v13264_v9, %v13138_v11  ;;  %v9987_v50 = vunpack.i.h.bf16 %v12862_v56  ;;  %v13277_v23 = vpop.permute.xlu0 %10119 }
  0xdc   :  { %2392 = vmatprep.subr.bf16.mxu1 %v2066_v18  ;;  %v10363_v39 = vpack.i.bf16 %v13212_v42, %v13032_v17  ;;  %v21313_v17 = vunpack.i.l.bf16 %v13046_v29  ;;  %v10096_v49 = vunpack.i.l.bf16 %v13131_v44 }
  0xdd   :  { %10354 = vrot.lane.b32.xlu0 %v13147_v7, %s12419_s29  ;;  %2393 = vmatpush1.bf16.msra.mxu1 %v21308_v27  ;;  %v1308_v27 = vsel %vm1303_vm3, %v21315_v32, %v9987_v50 }
  0xde   :  { %2394 = vmatprep.subr.bf16.mxu1 %v2085_v47  ;;  %v21310_v47 = vunpack.i.l.bf16 %v13071_v48  ;;  %v13255_v28 = vsel %vm196_vm1, %v21314_v22, %v21313_v17  ;;  %v13286_v11 = vsel %vm427_vm6, %v10096_v49, %v20846_v0  ;;  %v10388_v56 = vpack.i.bf16 %v1308_v27, %v13093_v15 }
  0xdf   :  { %10339 = vrot.lane.b32.xlu1 %v10318_v3, %s12433_s24  ;;  %v10368_v3 = vpack.i.bf16 %v13255_v28, %v13248_v6  ;;  %21316 = vst [vmem:[#allocation23_spill] sm:$0xff] %v13286_v11  ;;  %v21320_v27 = vunpack.i.h.bf16 %v12816_v20 }
  0xe0   :  { %v13241_v18 = vsel %vm20845_vm2, %v21311_v34, %v21310_v47  ;;  %v10091_v47 = vunpack.i.l.bf16 %v13096_v12  ;;  %v20849_v34 = vunpack.i.l.bf16 %v13133_v45  ;;  %vm1682_vm2 = vcmask 252928  }
  0xe1   :  { %10364 = vrot.lane.b32.xlu0 %v10363_v39, %s12435_s28  ;;  %2395 = vmatpush1.bf16.msra.mxu1 %v21309_v26  ;;  %v10383_v52 = vpack.i.bf16 %v13241_v18, %v13086_v14  ;;  %v21317_v39 = vunpack.i.h.bf16 %v12894_v4 }
  0xe3   :  { %10349 = vrot.lane.b32.xlu1 %v10348_v30, %s12435_s28  ;;  %v13291_v26 = vsel %vm506_vm4, %v21317_v39, %v10106_v43  ;;  %v20847_v30 = vunpack.i.h.bf16 %v13096_v12  ;;  %v13323_v39 = vsel %vm427_vm6, %v21320_v27, %v10096_v49  ;;  %v13339_v49 = vld [vmem:[%s20788_s0 + $0x40] sm:$0xff]  ;;  %v20851_v27 = vunpack.i.h.bf16 %v13277_v23 }
  0xe4   :  { %v10413_v43 = vpack.i.bf16 %v13291_v26, %v13286_v11 }
  0xe5   :  { %10374 = vrot.lane.b32.xlu0 %v13147_v7, %s20915_s16 }
  0xe7   :  { %10359 = vrot.lane.b32.xlu1 %v13147_v7, %s20917_s15 }
  0xe9   :  { %10384 = vrot.lane.b32.xlu0 %v10383_v52, %s12435_s28  ;;  %v21318_v52 = vunpack.i.l.bf16 %v13150_v54 }
  0xeb   :  { %10369 = vrot.lane.b32.xlu1 %v10368_v3, %s12435_s28 }
  0xed   :  { %10394 = vrot.lane.b32.xlu0 %v13147_v7, %s21286_s1 }
  0xef   :  { %10379 = vrot.lane.b32.xlu1 %v10378_v55, %s12423_s17  ;;  %v1684_v55 = vsel %vm1682_vm2, %v10091_v47, %v20847_v30  ;;  %v13373_v30 = vld [vmem:[%s20788_s0 + $0x68] sm:$0xff] }
  0xf1   :  { %10404 = vrot.lane.b32.xlu0 %v12848_v33, %s12427_s23  ;;  %v21319_v33 = vunpack.i.h.bf16 %v12892_v1  ;;  %v1309_v1 = vsel %vm1303_vm3, %v9987_v50, %v20849_v34  ;;  %v13343_v50 = vpack.i.bf16 %v12812_v16, %v13339_v49 }
  0xf2   :  { %v13299_v17 = vpop.permute.xlu0 %10129  ;;  %v10408_v20 = vpack.i.bf16 %v13323_v39, %v1309_v1 }
  0xf3   :  { %v20848_v22 = vunpack.i.h.bf16 %v13299_v17  ;;  %v10131_v4 = vunpack.i.l.bf16 %v13299_v17  ;;  %10389 = vrot.lane.b32.xlu1 %v10388_v56, %s12435_s28  ;;  %v13311_v3 = vsel %vm585_vm5, %v21319_v33, %v21318_v52  ;;  %v10121_v33 = vunpack.i.l.bf16 %v13277_v23 }
  0xf4   :  { %v10423_v52 = vpack.i.bf16 %v13311_v3, %v13177_v31 }
  0xf5   :  { %10414 = vrot.lane.b32.xlu0 %v10413_v43, %s12435_s28  ;;  %v1703_v32 = vsel %vm1682_vm2, %v10131_v4, %v20848_v22  ;;  %v13353_v1 = vsel %vm20862_vm7, %v10022_v36, %v10121_v33  ;;  %v13388_v22 = vpack.i.bf16 %v13373_v30, %v13264_v9 }
  0xf6   :  { %v13328_v56 = vpop.permute.xlu0 %10139  ;;  %v2178_v43 = vpack.c.bf16 %v1703_v32, %v1684_v55 }
  0xf7   :  { %10399 = vrot.lane.b32.xlu1 %v13147_v7, %s12425_s21  ;;  %v10141_v34 = vunpack.i.l.bf16 %v13328_v56 }
  0xf8   :  { %2363 = vmatprep.subr.bf16.mxu0 %v2178_v43 }
  0xf9   :  { %10424 = vrot.lane.b32.xlu0 %v10423_v52, %s12435_s28  ;;  %v10428_v52 = vpack.i.bf16 %v13353_v1, %v13172_v24 }
  0xfa   :  { %v10150_v55 = vpop.permute.xlu0 %10149 }
  0xfb   :  { %10409 = vrot.lane.b32.xlu1 %v10408_v20, %s12435_s28  ;;  %v13366_v20 = vsel %vm20862_vm7, %v10121_v33, %v20851_v27  ;;  %v10151_v10 = vunpack.i.l.bf16 %v10150_v55  ;;  %v10152_v24 = vunpack.i.h.bf16 %v10150_v55  ;;  %vm20863_vm7 = vcmask 1043456  }
  0xfc   :  { %21321 = vst [vmem:[#allocation24_spill] sm:$0xff] %v13366_v20  ;;  %v10438_v27 = vpack.i.bf16 %v13157_v61, %v13366_v20 }
  0xfd   :  { %10434 = vrot.lane.b32.xlu0 %v13343_v50, %s12428_s26  ;;  %v10125_v32 = vpop.permute.xlu1 %10124 }
  0xfe   :  { %v13355_v43 = vpop.permute.xlu0 %10154 }
  0xff   :  { %10419 = vrot.lane.b32.xlu1 %v13147_v7, %s21301_s13  ;;  %v10156_v9 = vunpack.i.l.bf16 %v13355_v43 }
 0x101   :  { %10444 = vrot.lane.b32.xlu0 %v13343_v50, %s12429_s27  ;;  %v10135_v16 = vpop.permute.xlu1 %10134 }
 0x102   :  { %v10137_v19 = vunpack.i.h.bf16 %v10135_v16  ;;  %v10136_v36 = vunpack.i.l.bf16 %v10135_v16  ;;  %v13368_v0 = vpop.permute.xlu0 %10164 }
 0x103   :  { %10429 = vrot.lane.b32.xlu1 %v10428_v52, %s12435_s28  ;;  %v10166_v6 = vunpack.i.l.bf16 %v13368_v0 }
 0x104   :  { %v1683_v53 = vsel %vm1682_vm2, %v10136_v36, %v10091_v47  ;;  %v1702_v33 = vsel %vm1682_vm2, %v10137_v19, %v10131_v4  ;;  %v10126_v4 = vunpack.i.l.bf16 %v10125_v32  ;;  %v21322_v19 = vunpack.i.h.bf16 %v13328_v56 }
 0x105   :  { %10454 = vrot.lane.b32.xlu0 %v13343_v50, %s12432_s20  ;;  %v13382_v16 = vpop.permute.xlu1 %10144  ;;  %v2177_v31 = vpack.c.bf16 %v1702_v33, %v1683_v53  ;;  %v1721_v53 = vsel %vm1682_vm2, %v10151_v10, %v10141_v34 }
 0x106   :  { %v20859_v52 = vunpack.i.h.bf16 %v13382_v16  ;;  %v10146_v47 = vunpack.i.l.bf16 %v13382_v16  ;;  %v10170_v36 = vpop.permute.xlu0 %10169  ;;  %v1722_v11 = vsel %vm1682_vm2, %v10141_v34, %v21322_v19  ;;  %v10127_v19 = vunpack.i.h.bf16 %v10125_v32 }
 0x107   :  { %10439 = vrot.lane.b32.xlu1 %v10438_v27, %s12435_s28  ;;  %2364 = vmatpush1.bf16.msra.mxu0 %v2177_v31 }
 0x108   :  { %v1741_v55 = vsel %vm1682_vm2, %v10146_v47, %v20859_v52  ;;  %v1740_v20 = vsel %vm1682_vm2, %v10152_v24, %v10146_v47  ;;  %v10171_v52 = vunpack.i.l.bf16 %v10170_v36  ;;  %v21323_v24 = vunpack.i.h.bf16 %v13355_v43 }
 0x109   :  { %10464 = vrot.lane.b32.xlu0 %v13388_v22, %s12420_s30  ;;  %v13405_v31 = vpop.permute.xlu1 %10159  ;;  %v2197_v27 = vpack.c.bf16 %v1741_v55, %v1722_v11  ;;  %v2196_v14 = vpack.c.bf16 %v1740_v20, %v1721_v53  ;;  %v1759_v20 = vsel %vm1682_vm2, %v10126_v4, %v10156_v9  ;;  %v21324_v4 = vunpack.i.h.bf16 %v13368_v0 }
 0x10a   :  { %v20861_v10 = vunpack.i.h.bf16 %v13405_v31  ;;  %v10161_v34 = vunpack.i.l.bf16 %v13405_v31  ;;  %v10185_v33 = vpop.permute.xlu0 %10184  ;;  %v1760_v11 = vsel %vm1682_vm2, %v10156_v9, %v21323_v24 }
 0x10b   :  { %10449 = vrot.lane.b32.xlu1 %v13343_v50, %s21280_s22  ;;  %2365 = vmatprep.subr.bf16.mxu0 %v2197_v27  ;;  %v1798_v9 = vsel %vm1682_vm2, %v10166_v6, %v21324_v4 }
 0x10c   :  { %2366 = vmatpush1.bf16.msra.mxu0 %v2196_v14  ;;  %v1779_v32 = vsel %vm1682_vm2, %v10161_v34, %v20861_v10  ;;  %v1778_v47 = vsel %vm1682_vm2, %v10127_v19, %v10161_v34  ;;  %v10172_v14 = vunpack.i.h.bf16 %v10170_v36  ;;  %v1797_v19 = vsel %vm1682_vm2, %v10171_v52, %v10166_v6 }
 0x10d   :  { %10474 = vrot.lane.b32.xlu0 %v13343_v50, %s12433_s24  ;;  %v13423_v53 = vpop.permute.xlu1 %10174  ;;  %v2216_v55 = vpack.c.bf16 %v1779_v32, %v1760_v11  ;;  %v2215_v27 = vpack.c.bf16 %v1778_v47, %v1759_v20  ;;  %v10187_v34 = vunpack.i.h.bf16 %v10185_v33  ;;  %v10186_v11 = vunpack.i.l.bf16 %v10185_v33 }
 0x10e   :  { %v20884_v15 = vunpack.i.h.bf16 %v13423_v53  ;;  %v10176_v24 = vunpack.i.l.bf16 %v13423_v53  ;;  %v21325_v6 = vunpack.i.h.bf16 %v12904_v40 }
 0x10f   :  { %v13427_v61 = vpop.permute.xlu0 %10194  ;;  %10459 = vrot.lane.b32.xlu1 %v13343_v50, %s12431_s19  ;;  %2367 = vmatprep.subr.bf16.mxu0 %v2216_v55  ;;  %v1835_v33 = vsel %vm1682_vm2, %v10186_v11, %v10187_v34  ;;  %v21326_v11 = vpack.c.bf16 %v12933_v5, %v12825_v41 }
 0x110   :  { %2368 = vmatpush1.bf16.msra.mxu0 %v2215_v27  ;;  %v1817_v36 = vsel %vm1682_vm2, %v10176_v24, %v20884_v15  ;;  %v1816_v32 = vsel %vm1682_vm2, %v10172_v14, %v10176_v24 }
 0x111   :  { %10484 = vrot.lane.b32.xlu0 %v13388_v22, %s12419_s29  ;;  %v13441_v20 = vpop.permute.xlu1 %10179  ;;  %v2235_v47 = vpack.c.bf16 %v1817_v36, %v1798_v9  ;;  %v2234_v55 = vpack.c.bf16 %v1816_v32, %v1797_v19  ;;  %v2253_v19 = vpack.c.bf16 %v1835_v33, %v1835_v33  ;;  %v10196_v36 = vunpack.i.l.bf16 %v13427_v61 }
 0x112   :  { %v10181_v4 = vunpack.i.l.bf16 %v13441_v20 }
 0x113   :  { %v13444_v10 = vpop.permute.xlu0 %10204  ;;  %10469 = vrot.lane.b32.xlu1 %v13147_v7, %s12427_s23  ;;  %2369 = vmatprep.subr.bf16.mxu0 %v2235_v47  ;;  %v2291_v5 = vsel %vm20863_vm7, %v2253_v19, 0 }
 0x114   :  { %2370 = vmatpush1.bf16.msra.mxu0 %v2234_v55  ;;  %v747_v52 = vsel %vm743_vm10, %v21325_v6, %v10181_v4  ;;  %v20878_v33 = vunpack.i.l.bf16 %v13444_v10 }
 0x115   :  { %v13454_v27 = vpop.permute.xlu1 %10189  ;;  %v2104_v14 = vpack.c.bf16 %v747_v52, %v13186_v37 }
 0x116   :  { %v20867_v24 = vunpack.i.l.bf16 %v13454_v27 }
 0x117   :  { %v13458_v9 = vpop.permute.xlu0 %10214  ;;  %10479 = vrot.lane.b32.xlu1 %v13343_v50, %s12434_s25  ;;  %2396 = vmatprep.subr.bf16.mxu1 %v2104_v14  ;;  %v21327_v50 = vunpack.i.h.bf16 %v13002_v46  ;;  %v2030_v46 = vpack.c.bf16 %v13212_v42, %v12940_v62  ;;  %v21328_v14 = vunpack.i.h.bf16 %v12956_v35  ;;  %v2029_v42 = vpack.c.bf16 %v12983_v63, %v12867_v25 }
 0x118   :  { %v10216_v40 = vunpack.i.l.bf16 %v13458_v9  ;;  %2397 = vmatpush1.bf16.msra.mxu1 %v21326_v11  ;;  %v1836_v37 = vsel %vm1682_vm2, %v10187_v34, %v20867_v24  ;;  %v13490_v34 = vcombine.low %v12830_v60, %v12830_v60  ;;  %v21331_v25 = vunpack.i.h.bf16 %v13000_v59  ;;  %v21357_v24 = vld [vmem:[#allocation8_spill] sm:$0xff] }
 0x119   :  { %v13470_v32 = vpop.permute.xlu1 %10199  ;;  %v2254_v47 = vpack.c.bf16 %v1836_v37, %v1836_v37  ;;  %v826_v11 = vsel %vm822_vm11, %v21328_v14, %v10196_v36  ;;  %v20876_v37 = vunpack.i.h.bf16 %v13458_v9  ;;  %v21333_v59 = vunpack.i.h.bf16 %v13046_v29  ;;  %v13547_v14 = vld [vmem:[%s20788_s0 + $0x70] sm:$0xff] }
 0x11a   :  { %v13475_v55 = vsel %vm120_vm0, %v21327_v50, %v10216_v40  ;;  %v10201_v6 = vunpack.i.l.bf16 %v13470_v32  ;;  %v984_v63 = vsel %vm980_vm13, %v21331_v25, %v20878_v33  ;;  %v21341_v25 = vld [vmem:[#allocation21_spill] sm:$0xff]  ;;  %v10202_v33 = vunpack.i.h.bf16 %v13470_v32 }
 0x11b   :  { %v13478_v52 = vpop.permute.xlu0 %10224  ;;  %10489 = vrot.lane.b32.xlu1 %v13388_v22, %s20917_s15  ;;  %8876 = vmatprep.subr.msk.bf16.mxu0 %vm20863_vm7, %v2254_v47  ;;  %v10493_v41 = vpack.i.bf16 %v13475_v55, %v13339_v49  ;;  %v21329_v49 = vunpack.i.h.bf16 %v12954_v58  ;;  %v2049_v58 = vpack.c.bf16 %v13241_v18, %v13255_v28  ;;  %vm21334_vm7 = vcmask 588800  }
 0x11c   :  { %2372 = vmatpush1.bf16.msra.mxu0 %v2291_v5  ;;  %v21332_v5 = vunpack.i.h.bf16 %v13017_v51  ;;  %v20866_v29 = vunpack.i.l.bf16 %v13478_v52 }
 0x11d   :  { %v905_v19 = vsel %vm901_vm12, %v21329_v49, %v10201_v6  ;;  %10494 = vrot.lane.b32.xlu0 %v10493_v41, %s12435_s28  ;;  %v13504_v62 = vpop.permute.xlu1 %10209  ;;  %2429 = vmatprep.subr.bf16.mxu0 %v2030_v46  ;;  %v21330_v41 = vpack.c.bf16 %v12975_v8, %v12970_v57  ;;  %v13536_v8 = vsel %vm120_vm0, %v10216_v40, %v20876_v37  ;;  %v21335_v49 = vld [vmem:[#allocation10_spill] sm:$0xff] }
 0x11e   :  { %v2123_v60 = vpack.c.bf16 %v905_v19, %v826_v11  ;;  %v20883_v35 = vunpack.i.l.bf16 %v13504_v62  ;;  %v21336_v19 = vld [vmem:[#allocation9_spill] sm:$0xff] }
 0x11f   :  { %v13510_v47 = vpop.permute.xlu0 %10234  ;;  %2380 = vmatmul.mubr.bf16.vlgmr.msra.gmra.mrb[0].mxu0 %v13490_v34 }
 0x120   :  { %2398 = vmatprep.subr.bf16.mxu1 %v2123_v60  ;;  %v10236_v50 = vunpack.i.l.bf16 %v13510_v47  ;;  %2430 = vmatpush1.bf16.msra.mxu0 %v2029_v42  ;;  %v1063_v46 = vsel %vm1059_vm14, %v21332_v5, %v20883_v35  ;;  %v21337_v60 = vpack.c.bf16 %v21335_v49, %v21336_v19  ;;  %v21338_v42 = vld [vmem:[#allocation5_spill] sm:$0xff]  ;;  %v10102_v19 = vunpack.i.h.bf16 %v13133_v45 }
 0x121   :  { %2399 = vmatpush1.bf16.msra.mxu1 %v21330_v41  ;;  %10504 = vrot.lane.b32.xlu0 %v13388_v22, %s20915_s16  ;;  %v13531_v18 = vpop.permute.xlu1 %10219  ;;  %v2142_v57 = vpack.c.bf16 %v1063_v46, %v984_v63  ;;  %v21342_v63 = vunpack.i.h.bf16 %v21341_v25 }
 0x122   :  { %2431 = vmatprep.subr.bf16.mxu0 %v2049_v58  ;;  %v13541_v28 = vsel %vm196_vm1, %v21333_v59, %v10236_v50  ;;  %v20864_v51 = vunpack.i.l.bf16 %v13531_v18  ;;  %8881 = vmatprep.mubr.msk.bf16.mxu0 %vm21334_vm7, %v12854_v38  ;;  %v21339_v58 = vld [vmem:[#allocation6_spill] sm:$0xff]  ;;  %v10508_v59 = vpack.i.bf16 %v13547_v14, %v13373_v30  ;;  %vm21351_vm7 = vcmask 1022976  }
 0x123   :  { %v13551_v11 = vpop.permute.xlu0 %10244  ;;  %2400 = vmatprep.subr.bf16.mxu1 %v2142_v57  ;;  %v10498_v40 = vpack.i.bf16 %v13541_v28, %v13536_v8  ;;  %v21340_v41 = vpack.c.bf16 %v21338_v42, %v21339_v58  ;;  %v21343_v58 = vpack.c.bf16 %v13051_v13, %v13197_v2 }
 0x124   :  { %v354_v5 = vsel %vm20865_vm8, %v21342_v63, %v20864_v51  ;;  %v21346_v63 = vld [vmem:[#allocation14_spill] sm:$0xff]  ;;  %vm21352_vm8 = vmmov %vm21351_vm7 }
 0x125   :  { %2401 = vmatpush1.bf16.msra.mxu1 %v21337_v60  ;;  %2432 = vmatpush1.bf16.msra.mxu0 %v21340_v41  ;;  %v13570_v46 = vpop.permute.xlu1 %10229  ;;  %v2068_v57 = vpack.c.bf16 %v13323_v39, %v354_v5  ;;  %v20870_v60 = vunpack.i.h.bf16 %v13510_v47  ;;  %v21344_v39 = vld [vmem:[#allocation11_spill] sm:$0xff]  ;;  %v21347_v5 = vunpack.i.h.bf16 %v21346_v63  ;;  %v10247_v63 = vunpack.i.h.bf16 %v13551_v11 }
 0x126   :  { %10499 = vrot.lane.b32.xlu1 %v10498_v40, %s12435_s28  ;;  %10514 = vrot.lane.b32.xlu0 %v13147_v7, %s12428_s26  ;;  %v20868_v49 = vunpack.i.l.bf16 %v13570_v46  ;;  %v2087_v40 = vpack.c.bf16 %v13311_v3, %v13291_v26  ;;  %v21345_v41 = vunpack.i.h.bf16 %v21344_v39 }
 0x127   :  { %v13578_v42 = vpop.permute.xlu0 %10254  ;;  %2433 = vmatprep.subr.bf16.mxu0 %v2068_v57  ;;  %v10182_v57 = vunpack.i.h.bf16 %v13441_v20 }
 0x128   :  { %v1142_v25 = vsel %vm20901_vm15, %v21345_v41, %v20866_v29  ;;  %v1221_v51 = vsel %vm20903_vm9, %v21347_v5, %v20868_v49  ;;  %v13607_v41 = vsel %vm196_vm1, %v10236_v50, %v20870_v60  ;;  %v21354_v5 = vld [vmem:[#allocation16_spill] sm:$0xff] }
 0x129   :  { %2434 = vmatpush1.bf16.msra.mxu0 %v21343_v58  ;;  %v13597_v26 = vpop.permute.xlu1 %10239  ;;  %v2161_v13 = vpack.c.bf16 %v1221_v51, %v1142_v25  ;;  %v21348_v58 = vunpack.i.l.bf16 %v13133_v45  ;;  %21349 = vst [vmem:[#allocation10_spill] sm:$0xff] %v13607_v41  ;;  %v20873_v51 = vunpack.i.l.bf16 %v13551_v11 }
 0x12a   :  { %10509 = vrot.lane.b32.xlu1 %v10508_v59, %s12423_s17  ;;  %2435 = vmatprep.subr.bf16.mxu0 %v2087_v40  ;;  %v20869_v2 = vunpack.i.h.bf16 %v13597_v26  ;;  %v10241_v3 = vunpack.i.l.bf16 %v13597_v26  ;;  %v21350_v40 = vunpack.i.h.bf16 %v13071_v48  ;;  %v748_v48 = vsel %vm743_vm10, %v10181_v4, %v10182_v57 }
 0x12b   :  { %v1310_v39 = vsel %vm1303_vm3, %v21348_v58, %v10102_v19  ;;  %v13610_v59 = vpop.permute.xlu0 %10264  ;;  %2402 = vmatprep.subr.bf16.mxu1 %v2161_v13  ;;  %v21355_v58 = vld [vmem:[#allocation15_spill] sm:$0xff] }
 0x12c   :  { %v13616_v25 = vsel %vm21351_vm7, %v21350_v40, %v10241_v3  ;;  %v13621_v45 = vsel %vm21352_vm8, %v10241_v3, %v20869_v2  ;;  %v20871_v50 = vunpack.i.l.bf16 %v13610_v59  ;;  %v21356_v29 = vpack.c.bf16 %v21354_v5, %v21355_v58  ;;  %v21358_v13 = vld [vmem:[#allocation7_spill] sm:$0xff] }
 0x12d   :  { %21353 = vst [vmem:[#allocation9_spill] sm:$0xff] %v13621_v45  ;;  %v21359_v49 = vpack.c.bf16 %v21357_v24, %v21358_v13  ;;  %v13633_v40 = vpop.permute.xlu1 %10249  ;;  %v10518_v3 = vpack.i.bf16 %v13616_v25, %v13607_v41  ;;  %v10523_v2 = vpack.i.bf16 %v1310_v39, %v13621_v45  ;;  %vm21375_vm8 = vcmask 760832  }
 0x12e   :  { %2403 = vmatpush1.bf16.msra.mxu1 %v21356_v29  ;;  %v10192_v29 = vunpack.i.h.bf16 %v13454_v27  ;;  %v20872_v5 = vunpack.i.l.bf16 %v13633_v40  ;;  %v749_v20 = vsel %vm743_vm10, %v10182_v57, %v20871_v50  ;;  %v21360_v57 = vunpack.i.h.bf16 %v13299_v17  ;;  %vm21376_vm7 = vmmov %vm21375_vm8 }
 0x12f   :  { %2436 = vmatpush1.bf16.msra.mxu0 %v21359_v49  ;;  %v13645_v24 = vpop.permute.xlu0 %10274  ;;  %10519 = vrot.lane.b32.xlu1 %v10518_v3, %s12435_s28  ;;  %v2106_v4 = vpack.c.bf16 %v749_v20, %v13353_v1  ;;  %v2105_v49 = vpack.c.bf16 %v748_v48, %v13223_v21  ;;  %v21361_v21 = vunpack.i.h.bf16 %v13096_v12  ;;  %v21363_v50 = vunpack.i.h.bf16 %v13328_v56 }
 0x130   :  { %10524 = vrot.lane.b32.xlu0 %v10523_v2, %s12435_s28  ;;  %v1686_v39 = vsel %vm1682_vm2, %v10192_v29, %v20873_v51  ;;  %v1705_v58 = vsel %vm1682_vm2, %v10247_v63, %v20872_v5  ;;  %v1704_v13 = vsel %vm1682_vm2, %v21360_v57, %v10247_v63  ;;  %v10256_v63 = vunpack.i.l.bf16 %v13578_v42 }
 0x131   :  { %2437 = vmatprep.subr.bf16.mxu0 %v2106_v4  ;;  %v13660_v3 = vpop.permute.xlu1 %10259  ;;  %v2180_v2 = vpack.c.bf16 %v1705_v58, %v1686_v39  ;;  %v1685_v48 = vsel %vm1682_vm2, %v21361_v21, %v10192_v29  ;;  %v10252_v4 = vunpack.i.h.bf16 %v13633_v40  ;;  %v20877_v29 = vunpack.i.l.bf16 %v13645_v24 }
 0x132   :  { %v20874_v1 = vunpack.i.l.bf16 %v13660_v3  ;;  %v2179_v17 = vpack.c.bf16 %v1704_v13, %v1685_v48  ;;  %v20881_v13 = vunpack.i.h.bf16 %v13578_v42  ;;  %v21362_v48 = vunpack.i.h.bf16 %v13131_v44 }
 0x133   :  { %2438 = vmatpush1.bf16.msra.mxu0 %v2105_v49  ;;  %v13666_v20 = vpop.permute.xlu0 %10284  ;;  %10529 = vrot.lane.b32.xlu1 %v13388_v22, %s21286_s1  ;;  %v1723_v5 = vsel %vm1682_vm2, %v21363_v50, %v10252_v4 }
 0x134   :  { %10534 = vrot.lane.b32.xlu0 %v13388_v22, %s12425_s21  ;;  %2404 = vmatprep.subr.bf16.mxu1 %v2180_v2  ;;  %v20879_v49 = vunpack.i.h.bf16 %v13666_v20  ;;  %v1311_v39 = vsel %vm1303_vm3, %v10102_v19, %v20874_v1  ;;  %v10286_v21 = vunpack.i.l.bf16 %v13666_v20  ;;  %v13694_v19 = vsel %vm427_vm6, %v21362_v48, %v10256_v63 }
 0x135   :  { %2405 = vmatpush1.bf16.msra.mxu1 %v2179_v17  ;;  %v13675_v12 = vpop.permute.xlu1 %10269  ;;  %v10548_v48 = vpack.i.bf16 %v13694_v19, %v1311_v39  ;;  %v21367_v39 = vld [vmem:[#allocation17_spill] sm:$0xff] }
 0x136   :  { %v10272_v58 = vunpack.i.h.bf16 %v13675_v12  ;;  %v20875_v57 = vunpack.i.l.bf16 %v13675_v12  ;;  %v13708_v51 = vsel %vm585_vm5, %v10286_v21, %v20879_v49 }
 0x137   :  { %v13685_v2 = vpop.permute.xlu0 %10294  ;;  %10539 = vrot.lane.b32.xlu1 %v13147_v7, %s12429_s27  ;;  %21364 = vst [vmem:[#allocation5_spill] sm:$0xff] %v13708_v51 }
 0x138   :  { %10544 = vrot.lane.b32.xlu0 %v13147_v7, %s21280_s22  ;;  %v1724_v17 = vsel %vm1682_vm2, %v10252_v4, %v20875_v57  ;;  %v1743_v60 = vsel %vm1682_vm2, %v10272_v58, %v20877_v29  ;;  %v21365_v57 = vunpack.i.h.bf16 %v13382_v16  ;;  %v20880_v29 = vunpack.i.h.bf16 %v13685_v2 }
 0x139   :  { %v13710_v44 = vpop.permute.xlu1 %10279  ;;  %v2199_v1 = vpack.c.bf16 %v1743_v60, %v1724_v17  ;;  %v13726_v16 = vsel %vm427_vm6, %v10256_v63, %v20881_v13  ;;  %v10296_v60 = vunpack.i.l.bf16 %v13685_v2  ;;  %v10197_v17 = vunpack.i.h.bf16 %v13427_v61 }
 0x13a   :  { %v1742_v37 = vsel %vm1682_vm2, %v21365_v57, %v10272_v58  ;;  %v20882_v56 = vunpack.i.h.bf16 %v13710_v44  ;;  %v10281_v50 = vunpack.i.l.bf16 %v13710_v44  ;;  %21366 = vst [vmem:[#allocation6_spill] sm:$0xff] %v13726_v16  ;;  %v21368_v58 = vunpack.i.h.bf16 %v21367_v39 }
 0x13b   :  { %v2198_v4 = vpack.c.bf16 %v1742_v37, %v1723_v5  ;;  %v13720_v49 = vpop.permute.xlu0 %10304  ;;  %10549 = vrot.lane.b32.xlu1 %v10548_v48, %s12435_s28  ;;  %2406 = vmatprep.subr.bf16.mxu1 %v2199_v1  ;;  %v13749_v48 = vsel %vm901_vm12, %v10296_v60, %v20880_v29  ;;  %v907_v13 = vsel %vm901_vm12, %v10202_v33, %v10296_v60 }
 0x13c   :  { %v13732_v57 = vsel %vm506_vm4, %v21368_v58, %v10281_v50  ;;  %v13737_v37 = vsel %vm506_vm4, %v10281_v50, %v20882_v56  ;;  %v906_v58 = vsel %vm901_vm12, %v10201_v6, %v10202_v33  ;;  %v10277_v56 = vunpack.i.h.bf16 %v13645_v24 }
 0x13d   :  { %21369 = vst [vmem:[#allocation21_spill] sm:$0xff] %v13737_v37  ;;  %2407 = vmatpush1.bf16.msra.mxu1 %v2198_v4  ;;  %v13739_v5 = vpop.permute.xlu1 %10289  ;;  %v10553_v1 = vpack.i.bf16 %v13732_v57, %v13726_v16  ;;  %v827_v32 = vsel %vm822_vm11, %v10196_v36, %v10197_v17  ;;  %v20889_v6 = vunpack.i.l.bf16 %v13720_v49  ;;  %v21370_v33 = vunpack.i.h.bf16 %v13150_v54 }
 0x13e   :  { %v20885_v39 = vunpack.i.h.bf16 %v13739_v5  ;;  %v10291_v50 = vunpack.i.l.bf16 %v13739_v5  ;;  %v2124_v61 = vpack.c.bf16 %v906_v58, %v827_v32  ;;  %v10307_v36 = vunpack.i.h.bf16 %v13720_v49 }
 0x13f   :  { %v13753_v4 = vpop.permute.xlu0 %10314  ;;  %10559 = vrot.lane.b32.xlu1 %v13388_v22, %s21301_s13  ;;  %10554 = vrot.lane.b32.xlu0 %v10553_v1, %s12435_s28  ;;  %v13782_v60 = vsel %vm585_vm5, %v21370_v33, %v10286_v21  ;;  %v21371_v32 = vunpack.i.h.bf16 %v13355_v43  ;;  %v21373_v43 = vunpack.i.h.bf16 %v13423_v53 }
 0x140   :  { %v13764_v63 = vsel %vm822_vm11, %v10291_v50, %v20885_v39  ;;  %v828_v29 = vsel %vm822_vm11, %v10197_v17, %v10291_v50  ;;  %v10573_v17 = vpack.i.bf16 %v13782_v60, %v13737_v37 }
 0x141   :  { %v13769_v35 = vpop.permute.xlu1 %10299  ;;  %v2125_v15 = vpack.c.bf16 %v907_v13, %v828_v29  ;;  %v1761_v33 = vsel %vm1682_vm2, %v21371_v32, %v10277_v56 }
 0x142   :  { %v10302_v39 = vunpack.i.h.bf16 %v13769_v35  ;;  %v20887_v50 = vunpack.i.l.bf16 %v13769_v35 }
 0x143   :  { %v13784_v16 = vpop.permute.xlu0 %10324  ;;  %10569 = vrot.lane.b32.xlu1 %v13147_v7, %s12431_s19  ;;  %10564 = vrot.lane.b32.xlu0 %v13147_v7, %s12432_s20 }
 0x144   :  { %v10327_v29 = vunpack.i.h.bf16 %v13784_v16  ;;  %2439 = vmatprep.subr.bf16.mxu0 %v2125_v15  ;;  %v1762_v54 = vsel %vm1682_vm2, %v10277_v56, %v20887_v50  ;;  %v1781_v13 = vsel %vm1682_vm2, %v10302_v39, %v20889_v6  ;;  %v21372_v15 = vunpack.i.h.bf16 %v13405_v31 }
 0x145   :  { %2440 = vmatpush1.bf16.msra.mxu0 %v2124_v61  ;;  %v13798_v21 = vpop.permute.xlu1 %10309  ;;  %v2218_v58 = vpack.c.bf16 %v1781_v13, %v1762_v54  ;;  %v10212_v61 = vunpack.i.h.bf16 %v13504_v62  ;;  %v20894_v31 = vunpack.i.l.bf16 %v13753_v4  ;;  %v21378_v13 = vunpack.i.h.bf16 %v13368_v0  ;;  %v13848_v0 = vld [vmem:[%s20788_s0 + $0x48] sm:$0xff] }
 0x146   :  { %v1780_v1 = vsel %vm1682_vm2, %v21372_v15, %v10302_v39  ;;  %v20891_v50 = vunpack.i.h.bf16 %v13798_v21  ;;  %v10311_v41 = vunpack.i.l.bf16 %v13798_v21  ;;  %v1818_v56 = vsel %vm1682_vm2, %v21373_v43, %v10327_v29 }
 0x147   :  { %v2217_v6 = vpack.c.bf16 %v1780_v1, %v1761_v33  ;;  %v13811_v45 = vpop.permute.xlu0 %10334  ;;  %10574 = vrot.lane.b32.xlu0 %v10573_v17, %s12435_s28  ;;  %2408 = vmatprep.subr.bf16.mxu1 %v2218_v58  ;;  %v21374_v39 = vunpack.i.h.bf16 %v13277_v23  ;;  %v1799_v17 = vsel %vm1682_vm2, %v21378_v13, %v10307_v36  ;;  %v10207_v23 = vunpack.i.h.bf16 %v13444_v10 }
 0x148   :  { %v13826_v1 = vsel %vm21376_vm7, %v10311_v41, %v20891_v50  ;;  %v2236_v32 = vpack.c.bf16 %v1818_v56, %v1799_v17  ;;  %v10336_v33 = vunpack.i.l.bf16 %v13811_v45 }
 0x149   :  { %v13821_v54 = vsel %vm21375_vm8, %v21374_v39, %v10311_v41  ;;  %21377 = vst [vmem:[#allocation11_spill] sm:$0xff] %v13826_v1  ;;  %2409 = vmatpush1.bf16.msra.mxu1 %v2217_v6  ;;  %v13831_v53 = vpop.permute.xlu1 %10319  ;;  %v10593_v56 = vpack.i.bf16 %v13848_v0, %v13826_v1  ;;  %v21379_v39 = vunpack.i.l.bf16 %v13504_v62  ;;  %v986_v17 = vsel %vm980_vm13, %v10207_v23, %v20894_v31 }
 0x14a   :  { %v10578_v58 = vpack.i.bf16 %v13821_v54, %v13708_v51  ;;  %v20896_v15 = vunpack.i.l.bf16 %v13831_v53  ;;  %v21380_v6 = vunpack.i.l.bf16 %v13444_v10  ;;  %v21381_v1 = vunpack.i.h.bf16 %v13458_v9 }
 0x14b   :  { %v13840_v43 = vpop.permute.xlu0 %10344  ;;  %10584 = vrot.lane.b32.xlu0 %v13147_v7, %s12433_s24  ;;  %v1064_v13 = vsel %vm1059_vm14, %v21379_v39, %v10212_v61  ;;  %v10232_v31 = vunpack.i.h.bf16 %v13570_v46  ;;  %v21382_v51 = vunpack.i.h.bf16 %v13811_v45  ;;  %v21384_v9 = vunpack.i.l.bf16 %v13784_v16 }
 0x14c   :  { %10579 = vrot.lane.b32.xlu1 %v10578_v58, %s12435_s28  ;;  %v1065_v58 = vsel %vm1059_vm14, %v10212_v61, %v20896_v15  ;;  %v985_v37 = vsel %vm980_vm13, %v21380_v6, %v10207_v23  ;;  %v13869_v62 = vsel %vm120_vm0, %v21381_v1, %v10336_v33  ;;  %v20902_v23 = vunpack.i.l.bf16 %v13840_v43 }
 0x14d   :  { %v13861_v50 = vpop.permute.xlu1 %10329  ;;  %v2144_v41 = vpack.c.bf16 %v1065_v58, %v986_v17  ;;  %v13876_v61 = vsel %vm120_vm0, %v10336_v33, %v21382_v51  ;;  %v2143_v10 = vpack.c.bf16 %v1064_v13, %v985_v37  ;;  %v1800_v1 = vsel %vm1682_vm2, %v10307_v36, %v21384_v9  ;;  %v13898_v37 = vld [vmem:[%s20788_s0 + $0x50] sm:$0xff] }
 0x14e   :  { %v20897_v39 = vunpack.i.l.bf16 %v13861_v50  ;;  %21383 = vst [vmem:[#allocation14_spill] sm:$0xff] %v13876_v61  ;;  %v10332_v6 = vunpack.i.h.bf16 %v13861_v50  ;;  %21385 = vst [vmem:[#allocation16_spill] sm:$0xff] %v13898_v37  ;;  %v10598_v36 = vpack.i.bf16 %v13869_v62, %v13898_v37  ;;  %v21387_v58 = vunpack.i.l.bf16 %v13570_v46 }
 0x14f   :  { %v13878_v15 = vpop.permute.xlu0 %10354  ;;  %10594 = vrot.lane.b32.xlu0 %v10593_v56, %s12435_s28  ;;  %2441 = vmatprep.subr.bf16.mxu0 %v2144_v41  ;;  %v21386_v41 = vunpack.i.h.bf16 %v13510_v47  ;;  %v21388_v46 = vunpack.i.l.bf16 %v13454_v27  ;;  %vm21391_vm8 = vcmask 1043456  }
 0x150   :  { %10589 = vrot.lane.b32.xlu1 %v13147_v7, %s12434_s25  ;;  %v10356_v17 = vunpack.i.l.bf16 %v13878_v15  ;;  %v1819_v51 = vsel %vm1682_vm2, %v10327_v29, %v20897_v39  ;;  %v10227_v7 = vunpack.i.h.bf16 %v13478_v52  ;;  %2442 = vmatpush1.bf16.msra.mxu0 %v2143_v10  ;;  %v1222_v10 = vsel %vm20903_vm9, %v21387_v58, %v10232_v31  ;;  %vm21392_vm7 = vmmov %vm21391_vm8 }
 0x151   :  { %v13893_v33 = vpop.permute.xlu1 %10339  ;;  %v2237_v56 = vpack.c.bf16 %v1819_v51, %v1800_v1  ;;  %v1223_v1 = vsel %vm20903_vm9, %v10232_v31, %v20902_v23  ;;  %v1837_v51 = vsel %vm1682_vm2, %v21388_v46, %v10332_v6  ;;  %v20904_v58 = vunpack.i.h.bf16 %v13878_v15 }
 0x152   :  { %v13905_v13 = vsel %vm196_vm1, %v21386_v41, %v10356_v17  ;;  %v20898_v29 = vunpack.i.l.bf16 %v13893_v33  ;;  %v21389_v41 = vunpack.i.l.bf16 %v13478_v52  ;;  %v2255_v27 = vpack.c.bf16 %v1837_v51, %v1837_v51 }
 0x153   :  { %v13911_v9 = vpop.permute.xlu0 %10364  ;;  %2410 = vmatprep.subr.bf16.mxu1 %v2237_v56  ;;  %v10603_v39 = vpack.i.bf16 %v13905_v13, %v13876_v61  ;;  %v10262_v31 = vunpack.i.h.bf16 %v13660_v3 }
 0x154   :  { %10599 = vrot.lane.b32.xlu1 %v10598_v36, %s12435_s28  ;;  %2411 = vmatpush1.bf16.msra.mxu1 %v2236_v32  ;;  %v1144_v47 = vsel %vm20901_vm15, %v10227_v7, %v20898_v29  ;;  %v1143_v36 = vsel %vm20901_vm15, %v21389_v41, %v10227_v7  ;;  %v2297_v51 = vsel %vm21392_vm7, %v2255_v27, 0  ;;  %v21393_v41 = vld [vmem:[#allocation18_spill] sm:$0xff]  ;;  %vm21396_vm15 = vcmask 1022976  }
 0x155   :  { %10604 = vrot.lane.b32.xlu0 %v10603_v39, %s12435_s28  ;;  %v13929_v56 = vpop.permute.xlu1 %10349  ;;  %v2163_v32 = vpack.c.bf16 %v1223_v1, %v1144_v47  ;;  %v2162_v61 = vpack.c.bf16 %v1222_v10, %v1143_v36  ;;  %v13944_v47 = vsel %vm196_vm1, %v10356_v17, %v20904_v58  ;;  %v2032_v17 = vpack.c.bf16 %v13475_v55, %v21393_v41  ;;  %vm21397_vm9 = vmmov %vm21396_vm15  ;;  %v12316_v27 = vld [vmem:[%s20788_s0 + $0x30] sm:$0xff] }
 0x156   :  { %v20906_v29 = vunpack.i.l.bf16 %v13929_v56  ;;  %21390 = vst [vmem:[#allocation15_spill] sm:$0xff] %v13944_v47  ;;  %v10352_v46 = vunpack.i.h.bf16 %v13929_v56  ;;  %v21394_v36 = vunpack.i.l.bf16 %v13660_v3  ;;  %v21399_v55 = vld [vmem:[#allocation22_spill] sm:$0xff]  ;;  %vm21429_vm7 = vcmask 760832  }
 0x157   :  { %v13933_v37 = vpop.permute.xlu0 %10374  ;;  %2443 = vmatprep.subr.bf16.mxu0 %v2163_v32 }
 0x158   :  { %2444 = vmatpush1.bf16.msra.mxu0 %v2162_v61  ;;  %v1838_v52 = vsel %vm1682_vm2, %v10332_v6, %v20906_v29  ;;  %v13951_v61 = vld [vmem:[%s20788_s0 + $0x78] sm:$0xff]  ;;  %v1312_v32 = vsel %vm1303_vm3, %v21394_v36, %v10262_v31 }
 0x159   :  { %v13939_v39 = vpop.permute.xlu1 %10359  ;;  %v2256_v7 = vpack.c.bf16 %v1838_v52, %v1838_v52  ;;  %v21395_v52 = vunpack.i.h.bf16 %v13597_v26  ;;  %v13984_v36 = vpack.i.bf16 %v13951_v61, %v13547_v14  ;;  %v2051_v14 = vpack.c.bf16 %v13616_v25, %v13541_v28 }
 0x15a   :  { %v20905_v10 = vunpack.i.h.bf16 %v13939_v39  ;;  %v10361_v1 = vunpack.i.l.bf16 %v13939_v39  ;;  %v21402_v25 = vunpack.i.l.bf16 %v13633_v40 }
 0x15b   :  { %v13954_v6 = vpop.permute.xlu0 %10384  ;;  %8878 = vmatprep.subr.msk.bf16.mxu1 %vm21391_vm8, %v2256_v7  ;;  %v2031_v7 = vpack.c.bf16 %v21399_v55, %v12316_v27  ;;  %v21400_v55 = vunpack.i.l.bf16 %v13551_v11 }
 0x15c   :  { %v13966_v23 = vsel %vm21396_vm15, %v21395_v52, %v10361_v1  ;;  %v13971_v58 = vsel %vm21397_vm9, %v10361_v1, %v20905_v10  ;;  %2413 = vmatpush1.bf16.msra.mxu1 %v2297_v51  ;;  %v10367_v51 = vunpack.i.h.bf16 %v13911_v9  ;;  %v20908_v52 = vunpack.i.l.bf16 %v13911_v9 }
 0x15d   :  { %21398 = vst [vmem:[#allocation8_spill] sm:$0xff] %v13971_v58  ;;  %v13977_v3 = vpop.permute.xlu1 %10369  ;;  %2470 = vmatprep.subr.bf16.mxu1 %v2032_v17  ;;  %v10608_v26 = vpack.i.bf16 %v13966_v23, %v13944_v47  ;;  %v10613_v41 = vpack.i.bf16 %v1312_v32, %v13971_v58  ;;  %v1687_v10 = vsel %vm1682_vm2, %v21400_v55, %v10352_v46  ;;  %v10376_v1 = vunpack.i.l.bf16 %v13933_v37 }
 0x15e   :  { %v20909_v17 = vunpack.i.l.bf16 %v13977_v3  ;;  %v1688_v11 = vsel %vm1682_vm2, %v10352_v46, %v20908_v52  ;;  %vm21401_vm9 = vcmask 588800   ;;  %v1706_v27 = vsel %vm1682_vm2, %v21402_v25, %v10367_v51 }
 0x15f   :  { %v13995_v32 = vpop.permute.xlu0 %10394  ;;  %10609 = vrot.lane.b32.xlu1 %v10608_v26, %s12435_s28  ;;  %10614 = vrot.lane.b32.xlu0 %v10613_v41, %s12435_s28  ;;  %v10222_v26 = vunpack.i.h.bf16 %v13531_v18  ;;  %v21403_v47 = vunpack.i.h.bf16 %v13933_v37  ;;  %v21404_v52 = vunpack.i.h.bf16 %v13710_v44  ;;  %v2181_v40 = vpack.c.bf16 %v1706_v27, %v1687_v10  ;;  %v21409_v10 = vld [vmem:[#allocation12_spill] sm:$0xff] }
 0x160   :  { %v10396_v29 = vunpack.i.l.bf16 %v13995_v32  ;;  %2421 = vmatmul.mubr.bf16.vlgmr.msra.gmra.mrb[0].mxu1 %v13490_v34  ;;  %v1707_v55 = vsel %vm1682_vm2, %v10367_v51, %v20909_v17  ;;  %v10372_v44 = vunpack.i.h.bf16 %v13977_v3  ;;  %vm21407_vm15 = vcmask 1014784  }
 0x161   :  { %2471 = vmatpush1.bf16.msra.mxu1 %v2031_v7  ;;  %v14011_v41 = vpop.permute.xlu1 %10379  ;;  %v2182_v28 = vpack.c.bf16 %v1707_v55, %v1688_v11  ;;  %8883 = vmatprep.mubr.msk.bf16.mxu1 %vm21401_vm9, %v12854_v38  ;;  %v14021_v46 = vsel %vm427_vm6, %v10376_v1, %v21403_v47  ;;  %v21405_v47 = vunpack.i.h.bf16 %v13578_v42  ;;  %v21406_v55 = vunpack.i.l.bf16 %v13531_v18  ;;  %v21408_v42 = vld [vmem:[#allocation13_spill] sm:$0xff]  ;;  %vm21411_vm8 = vmmov %vm21407_vm15 }
 0x162   :  { %v14026_v17 = vsel %vm506_vm4, %v21404_v52, %v10396_v29  ;;  %v20910_v7 = vunpack.i.l.bf16 %v14011_v41  ;;  %2472 = vmatprep.subr.bf16.mxu1 %v2051_v14  ;;  %vm21437_vm9 = vmmov %vm21429_vm7 }
 0x163   :  { %v14029_v11 = vpop.permute.xlu0 %10404  ;;  %10619 = vrot.lane.b32.xlu1 %v13984_v36, %s12420_s30  ;;  %10624 = vrot.lane.b32.xlu0 %v13388_v22, %s12427_s23  ;;  %v14038_v51 = vsel %vm427_vm6, %v21405_v47, %v10376_v1  ;;  %v355_v25 = vsel %vm21407_vm15, %v21406_v55, %v10222_v26  ;;  %v10387_v22 = vunpack.i.h.bf16 %v13954_v6  ;;  %v21410_v1 = vpack.c.bf16 %v21408_v42, %v21409_v10 }
 0x164   :  { %v1313_v52 = vsel %vm1303_vm3, %v10262_v31, %v20910_v7  ;;  %v20911_v14 = vunpack.i.l.bf16 %v14029_v11  ;;  %2445 = vmatprep.subr.bf16.mxu0 %v2182_v28  ;;  %v10633_v31 = vpack.i.bf16 %v14026_v17, %v14021_v46  ;;  %v20913_v28 = vunpack.i.l.bf16 %v13954_v6 }
 0x165   :  { %2446 = vmatpush1.bf16.msra.mxu0 %v2181_v40  ;;  %2473 = vmatpush1.bf16.msra.mxu1 %v21410_v1  ;;  %v14052_v27 = vpop.permute.xlu1 %10389  ;;  %v10628_v47 = vpack.i.bf16 %v14038_v51, %v1313_v52  ;;  %v21412_v42 = vunpack.i.l.bf16 %v13675_v12  ;;  %v21413_v1 = vld [vmem:[#allocation23_spill] sm:$0xff]  ;;  %v21415_v12 = vunpack.i.l.bf16 %v13645_v24  ;;  %vm21438_vm15 = vcmask 1043456  }
 0x166   :  { %v356_v40 = vsel %vm21411_vm8, %v10222_v26, %v20911_v14  ;;  %v2069_v18 = vpack.c.bf16 %v21413_v1, %v355_v25  ;;  %v1726_v55 = vsel %vm1682_vm2, %v10372_v44, %v20913_v28  ;;  %v21414_v26 = vunpack.i.l.bf16 %v14052_v27  ;;  %vm21439_vm8 = vmmov %vm21438_vm15 }
 0x167   :  { %v14063_v7 = vpop.permute.xlu0 %10414  ;;  %10629 = vrot.lane.b32.xlu1 %v10628_v47, %s12435_s28  ;;  %10634 = vrot.lane.b32.xlu0 %v10633_v31, %s12435_s28  ;;  %v2070_v52 = vpack.c.bf16 %v13694_v19, %v356_v40  ;;  %v1725_v10 = vsel %vm1682_vm2, %v21412_v42, %v10372_v44  ;;  %v2089_v19 = vpack.c.bf16 %v13782_v60, %v13732_v57  ;;  %v21416_v25 = vunpack.i.h.bf16 %v13995_v32 }
 0x168   :  { %v1745_v14 = vsel %vm1682_vm2, %v10387_v22, %v21414_v26  ;;  %v1744_v40 = vsel %vm1682_vm2, %v21415_v12, %v10387_v22  ;;  %v10392_v24 = vunpack.i.h.bf16 %v14052_v27  ;;  %v21419_v60 = vunpack.i.h.bf16 %v13666_v20  ;;  %v21421_v26 = vld [vmem:[#allocation19_spill] sm:$0xff] }
 0x169   :  { %2474 = vmatprep.subr.bf16.mxu1 %v2070_v52  ;;  %v14078_v47 = vpop.permute.xlu1 %10399  ;;  %v2201_v31 = vpack.c.bf16 %v1745_v14, %v1726_v55  ;;  %v14088_v42 = vsel %vm506_vm4, %v10396_v29, %v21416_v25  ;;  %v2200_v57 = vpack.c.bf16 %v1744_v40, %v1725_v10  ;;  %v10267_v40 = vunpack.i.h.bf16 %v13610_v59 }
 0x16a   :  { %21417 = vst [vmem:[#allocation7_spill] sm:$0xff] %v14088_v42  ;;  %v20912_v44 = vunpack.i.h.bf16 %v14078_v47  ;;  %v10401_v1 = vunpack.i.l.bf16 %v14078_v47  ;;  %2475 = vmatpush1.bf16.msra.mxu1 %v2069_v18 }
 0x16b   :  { %v14092_v52 = vpop.permute.xlu0 %10424  ;;  %2476 = vmatprep.subr.bf16.mxu1 %v2089_v19  ;;  %10639 = vrot.lane.b32.xlu1 %v13984_v36, %s12419_s29  ;;  %v21422_v19 = vld [vmem:[#allocation20_spill] sm:$0xff] }
 0x16c   :  { %21418 = vst [vmem:[#allocation17_spill] sm:$0xff] %v14092_v52  ;;  %v14100_v14 = vsel %vm585_vm5, %v21419_v60, %v10401_v1  ;;  %v14105_v29 = vsel %vm585_vm5, %v10401_v1, %v20912_v44  ;;  %10644 = vrot.lane.b32.xlu0 %v13984_v36, %s20917_s15  ;;  %2447 = vmatprep.subr.bf16.mxu0 %v2201_v31  ;;  %v20919_v31 = vunpack.i.l.bf16 %v14063_v7  ;;  %v21424_v1 = vunpack.i.l.bf16 %v13769_v35  ;;  %s21476_s15 = smov 125  }
 0x16d   :  { %21420 = vst [vmem:[#allocation18_spill] sm:$0xff] %v14105_v29  ;;  %2448 = vmatpush1.bf16.msra.mxu0 %v2200_v57  ;;  %v14109_v22 = vpop.permute.xlu1 %10409  ;;  %v10648_v18 = vpack.i.bf16 %v14100_v14, %v14088_v42  ;;  %v21423_v12 = vpack.c.bf16 %v21421_v26, %v21422_v19  ;;  %v21425_v60 = vunpack.i.l.bf16 %v13720_v49  ;;  %v21426_v49 = vunpack.i.l.bf16 %v13610_v59 }
 0x16e   :  { %v10412_v55 = vunpack.i.h.bf16 %v14109_v22  ;;  %v20914_v10 = vunpack.i.l.bf16 %v14109_v22  ;;  %v1763_v57 = vsel %vm1682_vm2, %v21424_v1, %v10392_v24  ;;  %v10427_v28 = vunpack.i.h.bf16 %v14092_v52 }
 0x16f   :  { %2477 = vmatpush1.bf16.msra.mxu1 %v21423_v12  ;;  %v14122_v25 = vpop.permute.xlu0 %10434  ;;  %10649 = vrot.lane.b32.xlu1 %v10648_v18, %s12435_s28 }
 0x170   :  { %v1782_v20 = vsel %vm1682_vm2, %v21425_v60, %v10412_v55  ;;  %v1764_v26 = vsel %vm1682_vm2, %v10392_v24, %v20914_v10  ;;  %v1783_v18 = vsel %vm1682_vm2, %v10412_v55, %v20919_v31  ;;  %v750_v60 = vsel %vm743_vm10, %v21426_v49, %v10267_v40 }
 0x171   :  { %v14135_v19 = vpop.permute.xlu1 %10419  ;;  %v2219_v12 = vpack.c.bf16 %v1782_v20, %v1763_v57  ;;  %v2220_v1 = vpack.c.bf16 %v1783_v18, %v1764_v26  ;;  %v21427_v24 = vunpack.i.l.bf16 %v14122_v25  ;;  %v14155_v20 = vld [vmem:[%s20788_s0 + $0x60] sm:$0xff]  ;;  %v21428_v57 = vunpack.i.h.bf16 %v13798_v21 }
 0x172   :  { %v10421_v35 = vunpack.i.l.bf16 %v14135_v19  ;;  %v10668_v59 = vpack.i.bf16 %v13373_v30, %v14155_v20  ;;  %v10417_v18 = vunpack.i.h.bf16 %v14063_v7  ;;  %v21432_v55 = vunpack.i.l.bf16 %v13861_v50 }
 0x173   :  { %v14145_v44 = vpop.permute.xlu0 %10444  ;;  %10659 = vrot.lane.b32.xlu1 %v13984_v36, %s20915_s16  ;;  %v751_v10 = vsel %vm743_vm10, %v10267_v40, %v21427_v24  ;;  %2449 = vmatprep.subr.bf16.mxu0 %v2220_v1  ;;  %v14168_v40 = vld [vmem:[%s20788_s0 + $0x80] sm:$0xff] }
 0x174   :  { %v14163_v26 = vsel %vm21429_vm7, %v21428_v57, %v10421_v35  ;;  %2450 = vmatpush1.bf16.msra.mxu0 %v2219_v12  ;;  %v2108_v49 = vpack.c.bf16 %v751_v10, %v13821_v54  ;;  %v21431_v1 = vld [vmem:[#allocation24_spill] sm:$0xff]  ;;  %v1820_v42 = vsel %vm1682_vm2, %v21432_v55, %v10427_v28  ;;  %v10663_v54 = vpack.i.bf16 %v14168_v40, %v13951_v61 }
 0x175   :  { %v14172_v24 = vpop.permute.xlu1 %10429  ;;  %v10653_v30 = vpack.i.bf16 %v14163_v26, %v14105_v29  ;;  %v2107_v31 = vpack.c.bf16 %v750_v60, %v21431_v1  ;;  %v21433_v10 = vunpack.i.l.bf16 %v14092_v52  ;;  %v21434_v55 = vunpack.i.l.bf16 %v13929_v56 }
 0x176   :  { %21430 = vst [vmem:[#allocation22_spill] sm:$0xff] %v14172_v24  ;;  %v10432_v21 = vunpack.i.h.bf16 %v14172_v24  ;;  %v20926_v57 = vunpack.i.l.bf16 %v14172_v24  ;;  %2478 = vmatprep.subr.bf16.mxu1 %v2108_v49  ;;  %v21435_v1 = vunpack.i.l.bf16 %v13784_v16  ;;  %v10446_v56 = vunpack.i.l.bf16 %v14145_v44 }
 0x177   :  { %v14183_v12 = vpop.permute.xlu0 %10454  ;;  %10669 = vrot.lane.b32.xlu1 %v10668_v59, %s12428_s26  ;;  %2479 = vmatpush1.bf16.msra.mxu1 %v2107_v31  ;;  %v1802_v60 = vsel %vm1682_vm2, %v10417_v18, %v21433_v10  ;;  %v21436_v10 = vunpack.i.h.bf16 %v14135_v19  ;;  %vm21445_vm7 = vcmask 588800  }
 0x178   :  { %10654 = vrot.lane.b32.xlu0 %v10653_v30, %s12435_s28  ;;  %v1821_v50 = vsel %vm1682_vm2, %v10427_v28, %v20926_v57  ;;  %v1839_v49 = vsel %vm1682_vm2, %v21434_v55, %v10432_v21  ;;  %v1801_v58 = vsel %vm1682_vm2, %v21435_v1, %v10417_v18  ;;  %v20935_v1 = vunpack.i.l.bf16 %v14183_v12 }
 0x179   :  { %v14201_v29 = vpop.permute.xlu1 %10439  ;;  %v2239_v31 = vpack.c.bf16 %v1821_v50, %v1802_v60  ;;  %v2238_v52 = vpack.c.bf16 %v1820_v42, %v1801_v58  ;;  %v14207_v24 = vsel %vm21437_vm9, %v10421_v35, %v21436_v10  ;;  %v2257_v16 = vpack.c.bf16 %v1839_v49, %v1839_v49  ;;  %v14224_v60 = vld [vmem:[%s20788_s0 + $0x58] sm:$0xff] }
 0x17a   :  { %v20925_v30 = vunpack.i.l.bf16 %v14201_v29  ;;  %v10673_v50 = vpack.i.bf16 %v14224_v60, %v14207_v24  ;;  %v2034_v49 = vpack.c.bf16 %v13869_v62, %v13848_v0  ;;  %vm21447_vm9 = vcmask 1014784  }
 0x17b   :  { %v14209_v28 = vpop.permute.xlu0 %10464  ;;  %10679 = vrot.lane.b32.xlu1 %v13984_v36, %s21286_s1  ;;  %2451 = vmatprep.subr.bf16.mxu0 %v2239_v31  ;;  %v21440_v31 = vunpack.i.h.bf16 %v13739_v5 }
 0x17c   :  { %10664 = vrot.lane.b32.xlu0 %v10663_v54, %s12423_s17  ;;  %2452 = vmatpush1.bf16.msra.mxu0 %v2238_v52  ;;  %v1840_v58 = vsel %vm1682_vm2, %v10432_v21, %v20925_v30  ;;  %v10317_v54 = vunpack.i.h.bf16 %v13753_v4  ;;  %v10322_v52 = vunpack.i.h.bf16 %v13831_v53  ;;  %v2303_v21 = vsel %vm21439_vm8, %v2257_v16, 0  ;;  %vm21449_vm8 = vmmov %vm21447_vm9  ;;  %v21451_v30 = vld [vmem:[#allocation10_spill] sm:$0xff] }
 0x17d   :  { %v14218_v42 = vpop.permute.xlu1 %10449  ;;  %v2258_v35 = vpack.c.bf16 %v1840_v58, %v1840_v58  ;;  %v830_v10 = vsel %vm822_vm11, %v21440_v31, %v10446_v56  ;;  %v10407_v31 = vunpack.i.h.bf16 %v14029_v11 }
 0x17e   :  { %v20937_v18 = vunpack.i.l.bf16 %v14218_v42 }
 0x17f   :  { %v14230_v55 = vpop.permute.xlu0 %10474  ;;  %10689 = vrot.lane.b32.xlu1 %v10668_v59, %s12429_s27  ;;  %8880 = vmatprep.subr.msk.bf16.mxu0 %vm21438_vm15, %v2258_v35  ;;  %v21441_v59 = vunpack.i.h.bf16 %v13685_v2  ;;  %v14255_v35 = vld [vmem:[%s20788_s0 + $0x68] sm:$0xff]  ;;  %vm21448_vm15 = vmmov %vm21447_vm9 }
 0x180   :  { %10674 = vrot.lane.b32.xlu0 %v10673_v50, %s12435_s28  ;;  %2454 = vmatpush1.bf16.msra.mxu0 %v2303_v21  ;;  %v14259_v5 = vpack.i.bf16 %v14255_v35, %v14155_v20  ;;  %v21442_v50 = vunpack.i.l.bf16 %v13753_v4  ;;  %v21443_v21 = vunpack.i.l.bf16 %v13831_v53  ;;  %v2053_v53 = vpack.c.bf16 %v13966_v23, %v13905_v13 }
 0x181   :  { %v909_v16 = vsel %vm901_vm12, %v21441_v59, %v20937_v18  ;;  %v14249_v58 = vpop.permute.xlu1 %10459  ;;  %2511 = vmatprep.subr.bf16.mxu0 %v2034_v49  ;;  %v12320_v59 = vld [vmem:[%s20788_s0 + $0x40] sm:$0xff] }
 0x182   :  { %v2127_v0 = vpack.c.bf16 %v909_v16, %v830_v10  ;;  %v20928_v62 = vunpack.i.l.bf16 %v14249_v58  ;;  %v987_v2 = vsel %vm980_vm13, %v21442_v50, %v10317_v54  ;;  %v1066_v49 = vsel %vm1059_vm14, %v21443_v21, %v10322_v52 }
 0x183   :  { %v14268_v10 = vpop.permute.xlu0 %10484  ;;  %10699 = vrot.lane.b32.xlu1 %v13984_v36, %s21301_s13  ;;  %v2033_v4 = vpack.c.bf16 %v13536_v8, %v12320_v59  ;;  %2462 = vmatmul.mubr.bf16.vlgmr.msra.gmra.mrb[4].mxu0 %v13490_v34  ;;  %v988_v16 = vsel %vm980_vm13, %v10317_v54, %v20935_v1  ;;  %v21444_v50 = vpack.c.bf16 %v13749_v48, %v13764_v63  ;;  %v20931_v59 = vunpack.i.h.bf16 %v14209_v28 }
 0x184   :  { %2480 = vmatprep.subr.bf16.mxu1 %v2127_v0  ;;  %10684 = vrot.lane.b32.xlu0 %v13984_v36, %s12425_s21  ;;  %v1067_v0 = vsel %vm1059_vm14, %v10322_v52, %v20928_v62  ;;  %v10486_v23 = vunpack.i.l.bf16 %v14268_v10  ;;  %v10347_v52 = vunpack.i.h.bf16 %v13840_v43  ;;  %v10342_v63 = vunpack.i.h.bf16 %v13893_v33 }
 0x185   :  { %2481 = vmatpush1.bf16.msra.mxu1 %v21444_v50  ;;  %2512 = vmatpush1.bf16.msra.mxu0 %v2033_v4  ;;  %v14290_v8 = vpop.permute.xlu1 %10469  ;;  %v2146_v21 = vpack.c.bf16 %v1067_v0, %v988_v16  ;;  %v21446_v48 = vunpack.i.l.bf16 %v14029_v11  ;;  %v2145_v16 = vpack.c.bf16 %v1066_v49, %v987_v2  ;;  %v10466_v0 = vunpack.i.l.bf16 %v14209_v28 }
 0x186   :  { %v20927_v13 = vunpack.i.h.bf16 %v14290_v8  ;;  %v10471_v54 = vunpack.i.l.bf16 %v14290_v8  ;;  %2513 = vmatprep.subr.bf16.mxu0 %v2053_v53  ;;  %8885 = vmatprep.mubr.msk.bf16.mxu0 %vm21445_vm7, %v12854_v38  ;;  %v20933_v53 = vunpack.i.l.bf16 %v14230_v55  ;;  %v20930_v62 = vunpack.i.h.bf16 %v14268_v10 }
 0x187   :  { %v357_v4 = vsel %vm21447_vm9, %v21446_v48, %v10407_v31  ;;  %10709 = vrot.lane.b32.xlu1 %v14259_v5, %s12431_s19  ;;  %2482 = vmatprep.subr.bf16.mxu1 %v2146_v21  ;;  %v21450_v48 = vld [vmem:[#allocation9_spill] sm:$0xff]  ;;  %vm21455_vm7 = vcmask 261120   ;;  %vm21457_vm9 = vcmask 490496  }
 0x188   :  { %v14310_v50 = vsel %vm21448_vm15, %v10471_v54, %v20927_v13  ;;  %10694 = vrot.lane.b32.xlu0 %v14259_v5, %s21280_s22  ;;  %v358_v11 = vsel %vm21449_vm8, %v10407_v31, %v10471_v54  ;;  %v21452_v57 = vpack.c.bf16 %v21450_v48, %v21451_v30  ;;  %v14326_v13 = vsel %vm120_vm0, %v10466_v0, %v20931_v59  ;;  %v21458_v48 = vld [vmem:[#allocation6_spill] sm:$0xff]  ;;  %vm21459_vm15 = vmmov %vm21457_vm9 }
 0x189   :  { %2483 = vmatpush1.bf16.msra.mxu1 %v2145_v16  ;;  %v14318_v2 = vpop.permute.xlu1 %10479  ;;  %v2072_v49 = vpack.c.bf16 %v14038_v51, %v358_v11  ;;  %v21453_v31 = vunpack.i.h.bf16 %v13878_v15  ;;  %v21454_v30 = vunpack.i.l.bf16 %v13840_v43  ;;  %v21456_v16 = vunpack.i.l.bf16 %v13893_v33  ;;  %vm21460_vm8 = vmmov %vm21455_vm7 }
 0x18a   :  { %2514 = vmatpush1.bf16.msra.mxu0 %v21452_v57  ;;  %v20932_v57 = vunpack.i.l.bf16 %v14318_v2  ;;  %v2071_v21 = vpack.c.bf16 %v21458_v48, %v357_v4  ;;  %v2091_v15 = vpack.c.bf16 %v14100_v14, %v14026_v17  ;;  %v1146_v43 = vsel %vm21459_vm15, %v10342_v63, %v20933_v53 }
 0x18b   :  { %v14332_v54 = vsel %vm196_vm1, %v21453_v31, %v10486_v23  ;;  %v1224_v51 = vsel %vm21455_vm7, %v21454_v30, %v10347_v52  ;;  %v1145_v11 = vsel %vm21457_vm9, %v21456_v16, %v10342_v63  ;;  %10719 = vrot.lane.b32.xlu1 %v14259_v5, %s12434_s25  ;;  %2515 = vmatprep.subr.bf16.mxu0 %v2072_v49  ;;  %v21463_v48 = vunpack.i.h.bf16 %v13939_v39 }
 0x18c   :  { %10704 = vrot.lane.b32.xlu0 %v14259_v5, %s12432_s20  ;;  %v1225_v33 = vsel %vm21460_vm8, %v10347_v52, %v20932_v57  ;;  %v10728_v4 = vpack.i.bf16 %v14332_v54, %v14326_v13  ;;  %v14361_v30 = vsel %vm196_vm1, %v10486_v23, %v20930_v62  ;;  %v2164_v63 = vpack.c.bf16 %v1224_v51, %v1145_v11  ;;  %v21469_v51 = vld [vmem:[#allocation21_spill] sm:$0xff] }
 0x18d   :  { %v14354_v31 = vpop.permute.xlu1 %10489  ;;  %v2165_v49 = vpack.c.bf16 %v1225_v33, %v1146_v43  ;;  %21461 = vst [vmem:[#allocation13_spill] sm:$0xff] %v14361_v30  ;;  %v21462_v52 = vunpack.i.h.bf16 %v13811_v45  ;;  %vm21464_vm7 = vcmask 1022976   ;;  %v14388_v45 = vld [vmem:[%s20788_s0 + $0x88] sm:$0xff]  ;;  %v21473_v59 = vunpack.i.l.bf16 %v13977_v3 }
 0x18e   :  { %2516 = vmatpush1.bf16.msra.mxu0 %v2071_v21  ;;  %v20929_v17 = vunpack.i.h.bf16 %v14354_v31  ;;  %v10491_v14 = vunpack.i.l.bf16 %v14354_v31  ;;  %vm21465_vm9 = vmmov %vm21464_vm7  ;;  %21467 = vst [vmem:[#allocation23_spill] sm:$0xff] %v14388_v45  ;;  %v21474_v3 = vunpack.i.l.bf16 %v13911_v9  ;;  %vm21493_vm15 = vcmask 760832  }
 0x18f   :  { %2517 = vmatprep.subr.bf16.mxu0 %v2091_v15  ;;  %v14368_v21 = vsel %vm120_vm0, %v21462_v52, %v10466_v0  ;;  %v14370_v16 = vpop.permute.xlu0 %10494  ;;  %10729 = vrot.lane.b32.xlu1 %v10728_v4, %s12435_s28  ;;  %v21468_v0 = vld [vmem:[#allocation5_spill] sm:$0xff]  ;;  %v14404_v4 = vpack.i.bf16 %v14388_v45, %v14168_v40  ;;  %v21471_v40 = vunpack.i.l.bf16 %v14011_v41  ;;  %vm21501_vm8 = vmmov %vm21493_vm15 }
 0x190   :  { %2484 = vmatprep.subr.bf16.mxu1 %v2165_v49  ;;  %v14376_v23 = vsel %vm21464_vm7, %v21463_v48, %v10491_v14  ;;  %v14381_v15 = vsel %vm21465_vm9, %v10491_v14, %v20929_v17  ;;  %10714 = vrot.lane.b32.xlu0 %v14259_v5, %s12433_s24  ;;  %v21470_v39 = vpack.c.bf16 %v21468_v0, %v21469_v51  ;;  %v10382_v49 = vunpack.i.h.bf16 %v14011_v41 }
 0x191   :  { %21466 = vst [vmem:[#allocation12_spill] sm:$0xff] %v14381_v15  ;;  %2485 = vmatpush1.bf16.msra.mxu1 %v2164_v63  ;;  %v10738_v11 = vpack.i.bf16 %v14376_v23, %v14361_v30  ;;  %v10723_v33 = vpack.i.bf16 %v14368_v21, %v14155_v20  ;;  %v10437_v14 = vunpack.i.h.bf16 %v14122_v25  ;;  %v10497_v63 = vunpack.i.h.bf16 %v14370_v16 }
 0x192   :  { %2518 = vmatpush1.bf16.msra.mxu0 %v21470_v39  ;;  %v20936_v52 = vunpack.i.l.bf16 %v14370_v16  ;;  %v10442_v48 = vunpack.i.h.bf16 %v14201_v29  ;;  %v1314_v39 = vsel %vm1303_vm3, %v21471_v40, %v10382_v49  ;;  %v21472_v17 = vunpack.i.l.bf16 %v14122_v25 }
 0x193   :  { %v14399_v5 = vpop.permute.xlu0 %10504  ;;  %10739 = vrot.lane.b32.xlu1 %v10738_v11, %s12435_s28  ;;  %v1708_v57 = vsel %vm1682_vm2, %v21473_v59, %v10497_v63  ;;  %v10743_v41 = vpack.i.bf16 %v1314_v39, %v14381_v15  ;;  %vm21512_vm7 = vcmask 490496  }
 0x194   :  { %10724 = vrot.lane.b32.xlu0 %v10723_v33, %s12435_s28  ;;  %v752_v62 = vsel %vm743_vm10, %v21472_v17, %v10437_v14  ;;  %v1690_v53 = vsel %vm1682_vm2, %v10442_v48, %v20936_v52  ;;  %v1689_v59 = vsel %vm1682_vm2, %v21474_v3, %v10442_v48  ;;  %v21479_v3 = vunpack.i.l.bf16 %v14052_v27  ;;  %vm21514_vm9 = vmmov %vm21512_vm7 }
 0x195   :  { %v10452_v52 = vunpack.i.h.bf16 %v14218_v42 }
 0x197   :  { %10749 = vrot.lane.b32.xlu1 %v14404_v4, %s12419_s29 }
 0x198   :  { %v14412_v0 = vpop.permute.xlu1 %10499  ;;  %v14414_v51 = vpop.permute.xlu0 %10514  ;;  %10734 = vrot.lane.b32.xlu0 %v14404_v4, %s12420_s30 }
 0x199   :  { %v20944_v11 = vunpack.i.l.bf16 %v14412_v0  ;;  %v20934_v33 = vunpack.i.h.bf16 %v14414_v51  ;;  %v10516_v43 = vunpack.i.l.bf16 %v14414_v51 }
 0x19b   :  { %v14436_v40 = vsel %vm743_vm10, %v10516_v43, %v20934_v33  ;;  %v1709_v25 = vsel %vm1682_vm2, %v10497_v63, %v20944_v11  ;;  %v753_v17 = vsel %vm743_vm10, %v10437_v14, %v10516_v43  ;;  %10759 = vrot.lane.b32.xlu1 %v13984_v36, %s12427_s23  ;;  %v2183_v43 = vpack.c.bf16 %v1708_v57, %v1689_v59  ;;  %v21475_v14 = vld [vmem:[#allocation11_spill] sm:$0xff] }
 0x19c   :  { %v14448_v39 = vpop.permute.xlu1 %10509  ;;  %v2184_v33 = vpack.c.bf16 %v1709_v25, %v1690_v53  ;;  %v2110_v1 = vpack.c.bf16 %v753_v17, %v14163_v26  ;;  %10744 = vrot.lane.b32.xlu0 %v10743_v41, %s12435_s28  ;;  %v2109_v9 = vpack.c.bf16 %v752_v62, %v21475_v14  ;;  %v10506_v63 = vunpack.i.l.bf16 %v14399_v5 }
 0x19d   :  { %v20938_v18 = vunpack.i.l.bf16 %v14448_v39  ;;  %v10502_v26 = vunpack.i.h.bf16 %v14412_v0  ;;  %v21477_v53 = vunpack.i.h.bf16 %v13933_v37  ;;  %v20941_v25 = vunpack.i.h.bf16 %v14399_v5 }
 0x19e   :  { %2486 = vmatprep.subr.bf16.mxu1 %v2184_v33  ;;  %2519 = vmatprep.subr.bf16.mxu0 %v2110_v1  ;;  %v21478_v17 = vunpack.i.l.bf16 %v13954_v6 }
 0x19f   :  { %2487 = vmatpush1.bf16.msra.mxu1 %v2183_v43  ;;  %2520 = vmatpush1.bf16.msra.mxu0 %v2109_v9  ;;  %v1315_v36 = vsel %vm1303_vm3, %v10382_v49, %v20938_v18  ;;  %v14468_v57 = vsel %vm427_vm6, %v21477_v53, %v10506_v63  ;;  %v21484_v18 = vunpack.i.h.bf16 %v14078_v47 }
 0x1a0   :  { %10754 = vrot.lane.b32.xlu0 %v14404_v4, %s21476_s15  ;;  %v10763_v41 = vpack.i.bf16 %v14468_v57, %v1315_v36  ;;  %v1727_v37 = vsel %vm1682_vm2, %v21478_v17, %v10502_v26 }
 0x1a1   :  { %v14470_v62 = vpop.permute.xlu1 %10519 }
 0x1a2   :  { %v14472_v48 = vpop.permute.xlu0 %10524  ;;  %v10522_v1 = vunpack.i.h.bf16 %v14470_v62  ;;  %v20943_v33 = vunpack.i.l.bf16 %v14470_v62 }
 0x1a3   :  { %v20939_v49 = vunpack.i.l.bf16 %v14472_v48 }
 0x1a4   :  { %v1746_v59 = vsel %vm1682_vm2, %v21479_v3, %v10522_v1  ;;  %10764 = vrot.lane.b32.xlu0 %v10763_v41, %s12435_s28  ;;  %v1728_v43 = vsel %vm1682_vm2, %v10502_v26, %v20943_v33  ;;  %v14503_v26 = vld [vmem:[%s20788_s0 + $0x90] sm:$0xff]  ;;  %v21487_v33 = vunpack.i.l.bf16 %v14218_v42 }
 0x1a5   :  { %v1747_v14 = vsel %vm1682_vm2, %v10522_v1, %v20939_v49  ;;  %v14492_v9 = vpop.permute.xlu1 %10529  ;;  %v2202_v53 = vpack.c.bf16 %v1746_v59, %v1727_v37  ;;  %21480 = vst [vmem:[#allocation19_spill] sm:$0xff] %v14503_v26  ;;  %v10447_v1 = vunpack.i.h.bf16 %v14145_v44  ;;  %v14510_v37 = vsel %vm427_vm6, %v10506_v63, %v20941_v25 }
 0x1a6   :  { %v14494_v36 = vpop.permute.xlu0 %10534  ;;  %v2203_v6 = vpack.c.bf16 %v1747_v14, %v1728_v43  ;;  %v20942_v27 = vunpack.i.h.bf16 %v14492_v9  ;;  %v10531_v17 = vunpack.i.l.bf16 %v14492_v9  ;;  %21481 = vst [vmem:[#allocation20_spill] sm:$0xff] %v14510_v37  ;;  %v21482_v59 = vunpack.i.h.bf16 %v13995_v32 }
 0x1a7   :  { %v20940_v41 = vunpack.i.h.bf16 %v14494_v36  ;;  %v10536_v3 = vunpack.i.l.bf16 %v14494_v36  ;;  %v910_v11 = vsel %vm901_vm12, %v21487_v33, %v10452_v52 }
 0x1a8   :  { %2488 = vmatprep.subr.bf16.mxu1 %v2203_v6  ;;  %v14515_v43 = vsel %vm506_vm4, %v21482_v59, %v10531_v17  ;;  %v14520_v14 = vsel %vm506_vm4, %v10531_v17, %v20942_v27  ;;  %10774 = vrot.lane.b32.xlu0 %v14404_v4, %s21486_s18  ;;  %v831_v27 = vsel %vm822_vm11, %v10446_v56, %v10447_v1 }
 0x1a9   :  { %21483 = vst [vmem:[#allocation24_spill] sm:$0xff] %v14520_v14  ;;  %v14525_v49 = vsel %vm585_vm5, %v21484_v18, %v10536_v3  ;;  %v14530_v63 = vsel %vm585_vm5, %v10536_v3, %v20940_v41  ;;  %2489 = vmatpush1.bf16.msra.mxu1 %v2202_v53  ;;  %v14534_v32 = vpop.permute.xlu1 %10539  ;;  %v10768_v17 = vpack.i.bf16 %v14515_v43, %v14510_v37 }
 0x1aa   :  { %21485 = vst [vmem:[#allocation9_spill] sm:$0xff] %v14530_v63  ;;  %v14536_v6 = vpop.permute.xlu0 %10544  ;;  %v10783_v47 = vpack.i.bf16 %v14525_v49, %v14520_v14  ;;  %v10778_v18 = vpack.i.bf16 %v14503_v26, %v14388_v45  ;;  %v20947_v59 = vunpack.i.h.bf16 %v14534_v32  ;;  %v10541_v53 = vunpack.i.l.bf16 %v14534_v32 }
 0x1ab   :  { %v20949_v41 = vunpack.i.h.bf16 %v14536_v6  ;;  %v10546_v25 = vunpack.i.l.bf16 %v14536_v6  ;;  %v10527_v26 = vunpack.i.h.bf16 %v14472_v48  ;;  %10769 = vrot.lane.b32.xlu1 %v10768_v17, %s12435_s28  ;;  %v2128_v37 = vpack.c.bf16 %v910_v11, %v831_v27  ;;  %v14589_v11 = vld [vmem:[%s20788_s0 + $0x70] sm:$0xff] }
 0x1ac   :  { %v14561_v3 = vsel %vm822_vm11, %v10541_v53, %v20947_v59  ;;  %10784 = vrot.lane.b32.xlu0 %v10783_v47, %s12435_s28  ;;  %v832_v44 = vsel %vm822_vm11, %v10447_v1, %v10541_v53  ;;  %v21491_v1 = vunpack.i.l.bf16 %v14063_v7 }
 0x1ad   :  { %21488 = vst [vmem:[#allocation10_spill] sm:$0xff] %v14561_v3  ;;  %v14566_v14 = vsel %vm901_vm12, %v10546_v25, %v20949_v41  ;;  %v911_v56 = vsel %vm901_vm12, %v10452_v52, %v10546_v25  ;;  %v14571_v42 = vpop.permute.xlu1 %10549  ;;  %v21490_v41 = vunpack.i.l.bf16 %v14109_v22  ;;  %v14593_v22 = vpack.i.bf16 %v13951_v61, %v14589_v11 }
 0x1ae   :  { %21489 = vst [vmem:[#allocation6_spill] sm:$0xff] %v14566_v14  ;;  %v2129_v33 = vpack.c.bf16 %v911_v56, %v832_v44  ;;  %v10552_v59 = vunpack.i.h.bf16 %v14571_v42  ;;  %v20952_v25 = vunpack.i.l.bf16 %v14571_v42  ;;  %v10462_v44 = vunpack.i.h.bf16 %v14249_v58 }
 0x1af   :  { %10779 = vrot.lane.b32.xlu1 %v10778_v18, %s12423_s17  ;;  %v1765_v47 = vsel %vm1682_vm2, %v21490_v41, %v10527_v26  ;;  %v21492_v56 = vunpack.i.h.bf16 %v14135_v19 }
 0x1b0   :  { %2521 = vmatprep.subr.bf16.mxu0 %v2129_v33  ;;  %v1784_v52 = vsel %vm1682_vm2, %v21491_v1, %v10552_v59  ;;  %10794 = vrot.lane.b32.xlu0 %v14404_v4, %s21286_s1  ;;  %v1766_v61 = vsel %vm1682_vm2, %v10527_v26, %v20952_v25  ;;  %v21497_v1 = vunpack.i.l.bf16 %v14249_v58 }
 0x1b1   :  { %2522 = vmatpush1.bf16.msra.mxu0 %v2128_v37  ;;  %v14595_v27 = vpop.permute.xlu1 %10559  ;;  %v14597_v7 = vpop.permute.xlu0 %10554  ;;  %v2221_v41 = vpack.c.bf16 %v1784_v52, %v1765_v47  ;;  %v10457_v37 = vunpack.i.h.bf16 %v14183_v12 }
 0x1b2   :  { %v10561_v18 = vunpack.i.l.bf16 %v14595_v27  ;;  %v20953_v53 = vunpack.i.l.bf16 %v14597_v7  ;;  %v1068_v3 = vsel %vm1059_vm14, %v21497_v1, %v10462_v44 }
 0x1b4   :  { %v14606_v33 = vsel %vm21493_vm15, %v21492_v56, %v10561_v18  ;;  %10804 = vrot.lane.b32.xlu0 %v14593_v22, %s12428_s26  ;;  %v1785_v47 = vsel %vm1682_vm2, %v10552_v59, %v20953_v53  ;;  %v21496_v59 = vunpack.i.l.bf16 %v14183_v12  ;;  %vm21516_vm15 = vcmask 261120  }
 0x1b5   :  { %v14617_v52 = vpop.permute.xlu1 %10569  ;;  %v14619_v17 = vpop.permute.xlu0 %10564  ;;  %v10788_v19 = vpack.i.bf16 %v14606_v33, %v14530_v63  ;;  %v2222_v56 = vpack.c.bf16 %v1785_v47, %v1766_v61  ;;  %v10557_v63 = vunpack.i.h.bf16 %v14597_v7 }
 0x1b6   :  { %21494 = vst [vmem:[#allocation5_spill] sm:$0xff] %v14617_v52  ;;  %21495 = vst [vmem:[#allocation21_spill] sm:$0xff] %v14619_v17  ;;  %v20955_v30 = vunpack.i.h.bf16 %v14617_v52  ;;  %v10571_v15 = vunpack.i.l.bf16 %v14617_v52  ;;  %v20956_v26 = vunpack.i.h.bf16 %v14619_v17  ;;  %v10566_v25 = vunpack.i.l.bf16 %v14619_v17 }
 0x1b7   :  { %v989_v53 = vsel %vm980_vm13, %v21496_v59, %v10457_v37  ;;  %10789 = vrot.lane.b32.xlu1 %v10788_v19, %s12435_s28  ;;  %2490 = vmatprep.subr.bf16.mxu1 %v2222_v56  ;;  %v21500_v56 = vunpack.i.h.bf16 %v14595_v27  ;;  %v21505_v19 = vld [vmem:[#allocation17_spill] sm:$0xff] }
 0x1b8   :  { %v14637_v61 = vsel %vm1059_vm14, %v10571_v15, %v20955_v30  ;;  %v14642_v47 = vsel %vm980_vm13, %v10566_v25, %v20956_v26  ;;  %10814 = vrot.lane.b32.xlu0 %v14404_v4, %s21301_s13  ;;  %2491 = vmatpush1.bf16.msra.mxu1 %v2221_v41  ;;  %v990_v12 = vsel %vm980_vm13, %v10457_v37, %v10566_v25  ;;  %v21506_v41 = vunpack.i.l.bf16 %v21505_v19 }
 0x1b9   :  { %21498 = vst [vmem:[#allocation11_spill] sm:$0xff] %v14637_v61  ;;  %21499 = vst [vmem:[#allocation25_spill] sm:$0xff] %v14642_v47  ;;  %v14647_v58 = vpop.permute.xlu0 %10574  ;;  %v1069_v1 = vsel %vm1059_vm14, %v10462_v44, %v10571_v15  ;;  %v14655_v59 = vsel %vm21501_vm8, %v10561_v18, %v21500_v56  ;;  %v2147_v25 = vpack.c.bf16 %v1068_v3, %v989_v53  ;;  %v21503_v44 = vld [vmem:[#allocation22_spill] sm:$0xff]  ;;  %v21509_v61 = vunpack.i.l.bf16 %v14201_v29 }
 0x1ba   :  { %21502 = vst [vmem:[#allocation26_spill] sm:$0xff] %v14655_v59  ;;  %v10577_v30 = vunpack.i.h.bf16 %v14647_v58  ;;  %v2148_v26 = vpack.c.bf16 %v1069_v1, %v990_v12  ;;  %v10808_v37 = vpack.i.bf16 %v14255_v35, %v14655_v59  ;;  %v21504_v12 = vunpack.i.l.bf16 %v21503_v44  ;;  %vm21517_vm8 = vmmov %vm21516_vm15 }
 0x1bb   :  { %10799 = vrot.lane.b32.xlu1 %v14404_v4, %s12425_s21  ;;  %v1803_v47 = vsel %vm1682_vm2, %v21506_v41, %v10557_v63  ;;  %v20965_v29 = vmov 0  }
 0x1bc   :  { %10824 = vrot.lane.b32.xlu0 %v14593_v22, %s21280_s22  ;;  %2523 = vmatprep.subr.bf16.mxu0 %v2148_v26  ;;  %v1822_v1 = vsel %vm1682_vm2, %v21504_v12, %v10577_v30  ;;  %v10477_v26 = vunpack.i.h.bf16 %v14230_v55  ;;  %v21507_v12 = vunpack.i.l.bf16 %v14647_v58 }
 0x1bd   :  { %2524 = vmatpush1.bf16.msra.mxu0 %v2147_v25  ;;  %v14666_v18 = vpop.permute.xlu0 %10584  ;;  %v10482_v25 = vunpack.i.h.bf16 %v14318_v2  ;;  %v2240_v52 = vpack.c.bf16 %v1822_v1, %v1803_v47  ;;  %10998 = vset.pattern.permute.xlu0 %v20965_v29 }
 0x1be   :  { %v14664_v15 = vpop.permute.xlu1 %10579  ;;  %v10586_v44 = vunpack.i.l.bf16 %v14666_v18  ;;  %v1804_v53 = vsel %vm1682_vm2, %v10557_v63, %v21507_v12  ;;  %v21511_v17 = vunpack.i.h.bf16 %v14666_v18  ;;  %11754 = vset.pattern.permute.xlu1 %v20965_v29 }
 0x1bf   :  { %v10582_v3 = vunpack.i.h.bf16 %v14664_v15  ;;  %10809 = vrot.lane.b32.xlu1 %v10808_v37, %s12435_s28  ;;  %v21508_v56 = vunpack.i.l.bf16 %v14664_v15 }
 0x1c0   :  { %10834 = vrot.lane.b32.xlu0 %v14593_v22, %s12431_s19  ;;  %v14701_v45 = vsel %vm21512_vm7, %v10586_v44, %v21511_v17 }
 0x1c1   :  { %v1823_v59 = vsel %vm1682_vm2, %v10577_v30, %v21508_v56  ;;  %v1841_v19 = vsel %vm1682_vm2, %v21509_v61, %v10582_v3  ;;  %v14696_v37 = vpop.permute.xlu0 %10594  ;;  %v21513_v61 = vunpack.i.l.bf16 %v14230_v55 }
 0x1c2   :  { %v14694_v41 = vpop.permute.xlu1 %10589  ;;  %v2241_v14 = vpack.c.bf16 %v1823_v59, %v1804_v53  ;;  %v10596_v30 = vunpack.i.l.bf16 %v14696_v37  ;;  %v2259_v17 = vpack.c.bf16 %v1841_v19, %v1841_v19  ;;  %v21515_v59 = vunpack.i.l.bf16 %v14318_v2 }
 0x1c3   :  { %21510 = vst [vmem:[#allocation22_spill] sm:$0xff] %v14694_v41  ;;  %v20967_v63 = vunpack.i.h.bf16 %v14694_v41  ;;  %v10591_v12 = vunpack.i.l.bf16 %v14694_v41  ;;  %v1147_v47 = vsel %vm21514_vm9, %v21513_v61, %v10477_v26  ;;  %10819 = vrot.lane.b32.xlu1 %v14593_v22, %s12429_s27  ;;  %v1148_v2 = vsel %vm21512_vm7, %v10477_v26, %v10586_v44  ;;  %vm21518_vm9 = vmmov %vm21517_vm8 }
 0x1c4   :  { %2492 = vmatprep.subr.bf16.mxu1 %v2241_v14  ;;  %v1226_v1 = vsel %vm21516_vm15, %v21515_v59, %v10482_v25  ;;  %10844 = vrot.lane.b32.xlu0 %v14593_v22, %s12434_s25  ;;  %v1842_v55 = vsel %vm1682_vm2, %v10582_v3, %v10596_v30  ;;  %v10597_v59 = vunpack.i.h.bf16 %v14696_v37  ;;  %vm21519_vm15 = vcmask 1043456  }
 0x1c5   :  { %v14719_v53 = vsel %vm21517_vm8, %v10591_v12, %v20967_v63  ;;  %2493 = vmatpush1.bf16.msra.mxu1 %v2240_v52  ;;  %v2260_v14 = vpack.c.bf16 %v1842_v55, %v1842_v55  ;;  %v1227_v19 = vsel %vm21518_vm9, %v10482_v25, %v10591_v12  ;;  %vm21520_vm8 = vmmov %vm21519_vm15  ;;  %v2166_v26 = vpack.c.bf16 %v1226_v1, %v1147_v47 }
 0x1c6   :  { %v14726_v56 = vpop.permute.xlu1 %10599  ;;  %v2167_v63 = vpack.c.bf16 %v1227_v19, %v1148_v2  ;;  %v2309_v3 = vsel %vm21520_vm8, %v2259_v17, 0  ;;  %v2036_v25 = vpack.c.bf16 %v14368_v21, %v14224_v60  ;;  %v21521_v55 = vunpack.i.l.bf16 %v14412_v0  ;;  %v21522_v17 = vld [vmem:[#allocation16_spill] sm:$0xff]  ;;  %v21523_v60 = vld [vmem:[#allocation14_spill] sm:$0xff] }
 0x1c7   :  { %v10602_v29 = vunpack.i.h.bf16 %v14726_v56  ;;  %v10601_v52 = vunpack.i.l.bf16 %v14726_v56  ;;  %v14735_v41 = vpop.permute.xlu0 %10604  ;;  %10829 = vrot.lane.b32.xlu1 %v14593_v22, %s12432_s20  ;;  %8882 = vmatprep.subr.msk.bf16.mxu1 %vm21519_vm15, %v2260_v14  ;;  %v2035_v21 = vpack.c.bf16 %v21523_v60, %v21522_v17  ;;  %v2055_v14 = vpack.c.bf16 %v14376_v23, %v14332_v54 }
 0x1c8   :  { %v10606_v44 = vunpack.i.l.bf16 %v14735_v41  ;;  %2525 = vmatprep.subr.bf16.mxu0 %v2167_v63  ;;  %v21524_v63 = vunpack.i.l.bf16 %v14370_v16  ;;  %vm21525_vm7 = vcmask 588800   ;;  %v10607_v16 = vunpack.i.h.bf16 %v14735_v41 }
 0x1c9   :  { %2495 = vmatpush1.bf16.msra.mxu1 %v2309_v3  ;;  %v1692_v12 = vsel %vm1682_vm2, %v10597_v59, %v10601_v52  ;;  %v1710_v2 = vsel %vm1682_vm2, %v21521_v55, %v10602_v29  ;;  %2526 = vmatpush1.bf16.msra.mxu0 %v2166_v26  ;;  %vm21533_vm9 = vcmask 1014784   ;;  %vm21542_vm15 = vcmask 1022976  }
 0x1ca   :  { %2552 = vmatprep.subr.bf16.mxu1 %v2036_v25  ;;  %v1711_v47 = vsel %vm1682_vm2, %v10602_v29, %v10606_v44  ;;  %v1691_v1 = vsel %vm1682_vm2, %v21524_v63, %v10597_v59  ;;  %v21526_v29 = vld [vmem:[#allocation8_spill] sm:$0xff]  ;;  %v21527_v59 = vld [vmem:[#allocation15_spill] sm:$0xff]  ;;  %vm21543_vm8 = vmmov %vm21542_vm15  ;;  %v21581_v56 = vpack.c.bf16 %v14719_v53, %v14701_v45 }
 0x1cb   :  { %10839 = vrot.lane.b32.xlu1 %v14593_v22, %s12433_s24  ;;  %v2186_v0 = vpack.c.bf16 %v1711_v47, %v1692_v12  ;;  %v2185_v19 = vpack.c.bf16 %v1710_v2, %v1691_v1  ;;  %v21528_v3 = vpack.c.bf16 %v21526_v29, %v21527_v59  ;;  %v21529_v12 = vunpack.i.l.bf16 %v14470_v62 }
 0x1cc   :  { %2503 = vmatmul.mubr.bf16.vlgmr.msra.gmra.mrb[4].mxu1 %v13490_v34  ;;  %v21530_v2 = vunpack.i.l.bf16 %v14472_v48  ;;  %v21532_v29 = vunpack.i.h.bf16 %v14290_v8  ;;  %v2093_v8 = vpack.c.bf16 %v14525_v49, %v14515_v43 }
 0x1cd   :  { %2553 = vmatpush1.bf16.msra.mxu1 %v2035_v21  ;;  %8887 = vmatprep.mubr.msk.bf16.mxu1 %vm21525_vm7, %v12854_v38  ;;  %v1729_v55 = vsel %vm1682_vm2, %v21529_v12, %v10607_v16  ;;  %vm21552_vm7 = vcmask 760832  }
 0x1ce   :  { %2527 = vmatprep.subr.bf16.mxu0 %v2186_v0  ;;  %2554 = vmatprep.subr.bf16.mxu1 %v2055_v14 }
 0x1cf   :  { %2528 = vmatpush1.bf16.msra.mxu0 %v2185_v19  ;;  %v21531_v19 = vunpack.i.h.bf16 %v14209_v28 }
 0x1d1   :  { %2555 = vmatpush1.bf16.msra.mxu1 %v21528_v3  ;;  %v14769_v22 = vpop.permute.xlu1 %10609  ;;  %v14771_v26 = vpop.permute.xlu0 %10614 }
 0x1d2   :  { %v10612_v54 = vunpack.i.h.bf16 %v14769_v22  ;;  %v20972_v23 = vunpack.i.l.bf16 %v14769_v22  ;;  %v20973_v25 = vunpack.i.l.bf16 %v14771_v26  ;;  %v10617_v14 = vunpack.i.h.bf16 %v14771_v26 }
 0x1d4   :  { %v1748_v47 = vsel %vm1682_vm2, %v21530_v2, %v10612_v54  ;;  %v1730_v17 = vsel %vm1682_vm2, %v10607_v16, %v20972_v23  ;;  %v1749_v60 = vsel %vm1682_vm2, %v10612_v54, %v20973_v25 }
 0x1d5   :  { %v14788_v21 = vpop.permute.xlu1 %10619  ;;  %v14790_v63 = vpop.permute.xlu0 %10624  ;;  %v2205_v1 = vpack.c.bf16 %v1749_v60, %v1730_v17  ;;  %v2204_v62 = vpack.c.bf16 %v1748_v47, %v1729_v55  ;;  %v21534_v60 = vunpack.i.l.bf16 %v14571_v42 }
 0x1d6   :  { %v10621_v0 = vunpack.i.l.bf16 %v14788_v21  ;;  %v20974_v48 = vunpack.i.l.bf16 %v14790_v63  ;;  %v20975_v28 = vunpack.i.h.bf16 %v14788_v21 }
 0x1d7   :  { %2529 = vmatprep.subr.bf16.mxu0 %v2205_v1  ;;  %v1767_v1 = vsel %vm1682_vm2, %v21534_v60, %v10617_v14 }
 0x1d8   :  { %v14798_v16 = vsel %vm120_vm0, %v21531_v19, %v10621_v0  ;;  %2530 = vmatpush1.bf16.msra.mxu0 %v2204_v62  ;;  %v360_v59 = vsel %vm21533_vm9, %v21532_v29, %v20974_v48  ;;  %v21536_v19 = vpack.c.bf16 %v14021_v46, %v14310_v50  ;;  %vm21553_vm9 = vcmask 1043456  }
 0x1d9   :  { %v14805_v3 = vpop.permute.xlu1 %10629  ;;  %v14807_v54 = vpop.permute.xlu0 %10634  ;;  %v10848_v12 = vpack.i.bf16 %v14798_v16, %v14589_v11  ;;  %v2074_v55 = vpack.c.bf16 %v14468_v57, %v360_v59  ;;  %v21535_v57 = vunpack.i.l.bf16 %v14597_v7  ;;  %v14839_v7 = vsel %vm120_vm0, %v10621_v0, %v20975_v28 }
 0x1da   :  { %v10632_v2 = vunpack.i.h.bf16 %v14805_v3  ;;  %v20970_v47 = vunpack.i.l.bf16 %v14805_v3  ;;  %v20969_v17 = vunpack.i.l.bf16 %v14807_v54  ;;  %v21547_v28 = vunpack.i.l.bf16 %v14647_v58 }
 0x1db   :  { %10849 = vrot.lane.b32.xlu1 %v10848_v12, %s12435_s28  ;;  %2556 = vmatprep.subr.bf16.mxu1 %v2074_v55 }
 0x1dc   :  { %v1786_v62 = vsel %vm1682_vm2, %v21535_v57, %v10632_v2  ;;  %2557 = vmatpush1.bf16.msra.mxu1 %v21536_v19  ;;  %v1768_v29 = vsel %vm1682_vm2, %v10617_v14, %v20970_v47  ;;  %v1787_v49 = vsel %vm1682_vm2, %v10632_v2, %v20969_v17  ;;  %v10512_v2 = vunpack.i.h.bf16 %v14448_v39  ;;  %v21539_v57 = vld [vmem:[#allocation7_spill] sm:$0xff] }
 0x1dd   :  { %v14834_v43 = vpop.permute.xlu1 %10639  ;;  %2558 = vmatprep.subr.bf16.mxu1 %v2093_v8  ;;  %v2224_v42 = vpack.c.bf16 %v1787_v49, %v1768_v29  ;;  %v2223_v59 = vpack.c.bf16 %v1786_v62, %v1767_v1  ;;  %v21537_v8 = vunpack.i.h.bf16 %v14268_v10  ;;  %v21538_v1 = vld [vmem:[#allocation18_spill] sm:$0xff]  ;;  %v21541_v19 = vunpack.i.h.bf16 %v14354_v31 }
 0x1de   :  { %v20977_v46 = vunpack.i.h.bf16 %v14834_v43  ;;  %v10641_v50 = vunpack.i.l.bf16 %v14834_v43  ;;  %v14843_v12 = vpop.permute.xlu0 %10644  ;;  %v21540_v62 = vpack.c.bf16 %v21538_v1, %v21539_v57  ;;  %v21546_v47 = vunpack.i.h.bf16 %v14414_v51 }
 0x1df   :  { %v20971_v14 = vunpack.i.h.bf16 %v14843_v12  ;;  %v10646_v55 = vunpack.i.l.bf16 %v14843_v12  ;;  %2531 = vmatprep.subr.bf16.mxu0 %v2224_v42 }
 0x1e0   :  { %v14851_v60 = vsel %vm196_vm1, %v21537_v8, %v10641_v50  ;;  %v14856_v0 = vsel %vm196_vm1, %v10641_v50, %v20977_v46  ;;  %2532 = vmatpush1.bf16.msra.mxu0 %v2223_v59  ;;  %2559 = vmatpush1.bf16.msra.mxu1 %v21540_v62  ;;  %v21544_v50 = vunpack.i.l.bf16 %v14448_v39  ;;  %v10637_v39 = vunpack.i.h.bf16 %v14807_v54 }
 0x1e1   :  { %v14864_v29 = vsel %vm21542_vm15, %v21541_v19, %v10646_v55  ;;  %v14866_v49 = vpop.permute.xlu1 %10649  ;;  %v10853_v10 = vpack.i.bf16 %v14851_v60, %v14839_v7  ;;  %v14873_v42 = vsel %vm21543_vm8, %v10646_v55, %v20971_v14  ;;  %vm21554_vm15 = vmmov %vm21553_vm9 }
 0x1e2   :  { %v10858_v59 = vpack.i.bf16 %v14864_v29, %v14856_v0  ;;  %v1316_v8 = vsel %vm1303_vm3, %v21544_v50, %v10512_v2  ;;  %v10652_v55 = vunpack.i.h.bf16 %v14866_v49  ;;  %v20978_v62 = vunpack.i.l.bf16 %v14866_v49  ;;  %vm21555_vm8 = vmmov %vm21552_vm7 }
 0x1e3   :  { %10854 = vrot.lane.b32.xlu0 %v10853_v10, %s12435_s28  ;;  %v10863_v57 = vpack.i.bf16 %v1316_v8, %v14873_v42  ;;  %v1805_v51 = vsel %vm1682_vm2, %v21547_v28, %v10637_v39  ;;  %v21549_v28 = vpack.c.bf16 %v14436_v40, %v14207_v24 }
 0x1e4   :  { %10859 = vrot.lane.b32.xlu1 %v10858_v59, %s12435_s28  ;;  %v1806_v48 = vsel %vm1682_vm2, %v10637_v39, %v20978_v62 }
 0x1e5   :  { %v14884_v1 = vpop.permute.xlu1 %10659 }
 0x1e6   :  { %v20985_v10 = vunpack.i.h.bf16 %v14884_v1  ;;  %v10661_v17 = vunpack.i.l.bf16 %v14884_v1 }
 0x1e7   :  { %10864 = vrot.lane.b32.xlu0 %v10863_v57, %s12435_s28  ;;  %v21545_v57 = vunpack.i.l.bf16 %v14664_v15 }
 0x1e8   :  { %10869 = vrot.lane.b32.xlu1 %v14404_v4, %s12427_s23 }
 0x1e9   :  { %v14892_v19 = vpop.permute.xlu1 %10669  ;;  %v1824_v31 = vsel %vm1682_vm2, %v21545_v57, %v10652_v55 }
 0x1ea   :  { %v20976_v59 = vunpack.i.l.bf16 %v14892_v19  ;;  %v14897_v50 = vpop.permute.xlu0 %10654 }
 0x1eb   :  { %v20986_v8 = vunpack.i.l.bf16 %v14897_v50  ;;  %v10657_v23 = vunpack.i.h.bf16 %v14897_v50 }
 0x1ec   :  { %v755_v14 = vsel %vm743_vm10, %v21546_v47, %v20976_v59  ;;  %v14925_v47 = vsel %vm427_vm6, %v10661_v17, %v20985_v10 }
 0x1ed   :  { %v14910_v25 = vpop.permute.xlu1 %10679  ;;  %v1825_v15 = vsel %vm1682_vm2, %v10652_v55, %v20986_v8  ;;  %v2112_v57 = vpack.c.bf16 %v755_v14, %v14606_v33  ;;  %v2242_v55 = vpack.c.bf16 %v1824_v31, %v1805_v51  ;;  %v21548_v33 = vunpack.i.h.bf16 %v14492_v9 }
 0x1ee   :  { %v10681_v59 = vunpack.i.l.bf16 %v14910_v25  ;;  %v14928_v46 = vpop.permute.xlu0 %10664  ;;  %v2243_v62 = vpack.c.bf16 %v1825_v15, %v1806_v48  ;;  %v21550_v14 = vunpack.i.h.bf16 %v14399_v5  ;;  %v1843_v24 = vsel %vm1682_vm2, %v10596_v30, %v10657_v23 }
 0x1ef   :  { %v20987_v61 = vunpack.i.l.bf16 %v14928_v46  ;;  %2560 = vmatprep.subr.bf16.mxu1 %v2112_v57 }
 0x1f0   :  { %v14934_v58 = vsel %vm506_vm4, %v21548_v33, %v10681_v59  ;;  %2533 = vmatprep.subr.bf16.mxu0 %v2243_v62  ;;  %2561 = vmatpush1.bf16.msra.mxu1 %v21549_v28  ;;  %v14942_v39 = vsel %vm427_vm6, %v21550_v14, %v10661_v17  ;;  %v20984_v17 = vunpack.i.h.bf16 %v14910_v25 }
 0x1f1   :  { %v1317_v48 = vsel %vm1303_vm3, %v10512_v2, %v20987_v61  ;;  %2534 = vmatpush1.bf16.msra.mxu0 %v2242_v55  ;;  %v14947_v31 = vpop.permute.xlu1 %10689  ;;  %v10878_v9 = vpack.i.bf16 %v14934_v58, %v14925_v47  ;;  %v2261_v2 = vpack.c.bf16 %v1843_v24, %v1843_v24  ;;  %v2038_v24 = vpack.c.bf16 %v14798_v16, %v14255_v35 }
 0x1f2   :  { %v14954_v40 = vpop.permute.xlu0 %10674  ;;  %v10873_v5 = vpack.i.bf16 %v14942_v39, %v1317_v48  ;;  %v14973_v33 = vsel %vm506_vm4, %v10681_v59, %v20984_v17  ;;  %v21551_v48 = vunpack.i.h.bf16 %v14595_v27  ;;  %v21569_v17 = vld [vmem:[#allocation12_spill] sm:$0xff] }
 0x1f3   :  { %v20979_v62 = vunpack.i.l.bf16 %v14954_v40  ;;  %10879 = vrot.lane.b32.xlu1 %v10878_v9, %s12435_s28  ;;  %v2315_v9 = vsel %vm21554_vm15, %v2261_v2, 0  ;;  %vm21576_vm15 = vcmask 261120  }
 0x1f4   :  { %10874 = vrot.lane.b32.xlu0 %v10873_v5, %s12435_s28  ;;  %v20983_v5 = vunpack.i.l.bf16 %v14947_v31 }
 0x1f5   :  { %v14961_v15 = vpop.permute.xlu1 %10699  ;;  %v1844_v37 = vsel %vm1682_vm2, %v10657_v23, %v20979_v62 }
 0x1f6   :  { %v20981_v30 = vunpack.i.h.bf16 %v14961_v15  ;;  %v10701_v57 = vunpack.i.l.bf16 %v14961_v15  ;;  %v14968_v51 = vpop.permute.xlu0 %10684  ;;  %v2262_v55 = vpack.c.bf16 %v1844_v37, %v1844_v37  ;;  %v21556_v37 = vunpack.i.h.bf16 %v14494_v36 }
 0x1f7   :  { %v20980_v28 = vunpack.i.h.bf16 %v14968_v51  ;;  %v10686_v14 = vunpack.i.l.bf16 %v14968_v51 }
 0x1f8   :  { %v14980_v23 = vsel %vm21552_vm7, %v21551_v48, %v10701_v57  ;;  %8884 = vmatprep.subr.msk.bf16.mxu0 %vm21553_vm9, %v2262_v55  ;;  %v14990_v59 = vsel %vm21555_vm8, %v10701_v57, %v20981_v30  ;;  %vm21559_vm7 = vcmask 588800   ;;  %vm21573_vm9 = vcmask 490496  }
 0x1f9   :  { %v14995_v27 = vsel %vm585_vm5, %v21556_v37, %v10686_v14  ;;  %v15000_v55 = vsel %vm585_vm5, %v10686_v14, %v20980_v28  ;;  %2536 = vmatpush1.bf16.msra.mxu0 %v2315_v9  ;;  %v15002_v2 = vpop.permute.xlu1 %10709  ;;  %v2037_v14 = vpack.c.bf16 %v14326_v13, %v14155_v20  ;;  %v15020_v9 = vld [vmem:[%s20788_s0 + $0x78] sm:$0xff]  ;;  %v21557_v20 = vunpack.i.h.bf16 %v14534_v32  ;;  %v15051_v32 = vld [vmem:[%s20788_s0 + $0x80] sm:$0xff] }
 0x1fa   :  { %v15004_v35 = vpop.permute.xlu0 %10694  ;;  %2593 = vmatprep.subr.bf16.mxu0 %v2038_v24  ;;  %v10888_v16 = vpack.i.bf16 %v14980_v23, %v15000_v55  ;;  %v10883_v36 = vpack.i.bf16 %v14995_v27, %v14973_v33  ;;  %v10898_v24 = vpack.i.bf16 %v15020_v9, %v14990_v59  ;;  %v20989_v37 = vunpack.i.l.bf16 %v15002_v2  ;;  %21560 = vst [vmem:[#allocation17_spill] sm:$0xff] %v15051_v32 }
 0x1fb   :  { %v20982_v57 = vunpack.i.l.bf16 %v15004_v35  ;;  %v834_v13 = vsel %vm822_vm11, %v21557_v20, %v20983_v5  ;;  %v21567_v5 = vld [vmem:[#allocation10_spill] sm:$0xff]  ;;  %vm21586_vm8 = vcmask 1014784  }
 0x1fc   :  { %10889 = vrot.lane.b32.xlu1 %v10888_v16, %s12435_s28  ;;  %10884 = vrot.lane.b32.xlu0 %v10883_v36, %s12435_s28  ;;  %v2057_v16 = vpack.c.bf16 %v14864_v29, %v14851_v60  ;;  %v21558_v36 = vunpack.i.h.bf16 %v14536_v6  ;;  %v21561_v6 = vld [vmem:[#allocation23_spill] sm:$0xff] }
 0x1fd   :  { %2544 = vmatmul.mubr.bf16.vlgmr.msra.gmra.mrb[8].mxu0 %v13490_v34  ;;  %v15026_v48 = vpop.permute.xlu1 %10719  ;;  %v10908_v29 = vpack.i.bf16 %v21561_v6, %v15051_v32 }
 0x1fe   :  { %v913_v62 = vsel %vm901_vm12, %v21558_v36, %v20982_v57  ;;  %2594 = vmatpush1.bf16.msra.mxu0 %v2037_v14  ;;  %v15040_v28 = vpop.permute.xlu0 %10704  ;;  %8889 = vmatprep.mubr.msk.bf16.mxu0 %vm21559_vm7, %v12854_v38  ;;  %v21566_v57 = vld [vmem:[#allocation6_spill] sm:$0xff]  ;;  %vm21588_vm7 = vmmov %vm21586_vm8 }
 0x1ff   :  { %v2131_v30 = vpack.c.bf16 %v913_v62, %v834_v13  ;;  %v20988_v60 = vunpack.i.l.bf16 %v15040_v28  ;;  %2595 = vmatprep.subr.bf16.mxu0 %v2057_v16  ;;  %v20994_v62 = vunpack.i.l.bf16 %v15026_v48  ;;  %v21562_v16 = vld [vmem:[#allocation21_spill] sm:$0xff]  ;;  %v21568_v6 = vpack.c.bf16 %v21566_v57, %v21567_v5 }
 0x200   :  { %10899 = vrot.lane.b32.xlu1 %v10898_v24, %s12435_s28  ;;  %10894 = vrot.lane.b32.xlu0 %v14404_v4, %s12428_s26  ;;  %v21563_v24 = vunpack.i.h.bf16 %v21562_v16  ;;  %v21564_v4 = vld [vmem:[#allocation5_spill] sm:$0xff]  ;;  %v21572_v5 = vunpack.i.h.bf16 %v14666_v18 }
 0x201   :  { %2562 = vmatprep.subr.bf16.mxu1 %v2131_v30  ;;  %v15056_v14 = vpop.permute.xlu1 %10729  ;;  %v21565_v13 = vunpack.i.h.bf16 %v21564_v4  ;;  %v21570_v30 = vld [vmem:[#allocation13_spill] sm:$0xff] }
 0x202   :  { %v992_v20 = vsel %vm980_vm13, %v21563_v24, %v20988_v60  ;;  %2563 = vmatpush1.bf16.msra.mxu1 %v21568_v6  ;;  %v21571_v10 = vpack.c.bf16 %v21569_v17, %v21570_v30  ;;  %v15074_v8 = vpop.permute.xlu0 %10714  ;;  %v10677_v24 = vunpack.i.h.bf16 %v14954_v40  ;;  %v21574_v17 = vld [vmem:[#allocation22_spill] sm:$0xff]  ;;  %v20992_v60 = vunpack.i.l.bf16 %v15056_v14 }
 0x203   :  { %v1071_v36 = vsel %vm1059_vm14, %v21565_v13, %v20989_v37  ;;  %v20993_v16 = vunpack.i.l.bf16 %v15074_v8  ;;  %v21575_v57 = vunpack.i.h.bf16 %v21574_v17  ;;  %v21577_v13 = vld [vmem:[#allocation11_spill] sm:$0xff]  ;;  %v10732_v45 = vunpack.i.h.bf16 %v15056_v14 }
 0x204   :  { %2596 = vmatpush1.bf16.msra.mxu0 %v21571_v10  ;;  %v2150_v61 = vpack.c.bf16 %v1071_v36, %v992_v20  ;;  %10909 = vrot.lane.b32.xlu1 %v10908_v29, %s21280_s22  ;;  %v21578_v36 = vld [vmem:[#allocation25_spill] sm:$0xff] }
 0x205   :  { %10904 = vrot.lane.b32.xlu0 %v10908_v29, %s12429_s27  ;;  %v15080_v4 = vpop.permute.xlu1 %10739  ;;  %v1150_v10 = vsel %vm21573_vm9, %v21572_v5, %v20993_v16  ;;  %v1229_v20 = vsel %vm21576_vm15, %v21575_v57, %v20994_v62  ;;  %v21579_v6 = vpack.c.bf16 %v21577_v13, %v21578_v36  ;;  %v1693_v5 = vsel %vm1682_vm2, %v10601_v52, %v10677_v24  ;;  %vm21589_vm9 = vmmov %vm21588_vm7 }
 0x206   :  { %2564 = vmatprep.subr.bf16.mxu1 %v2150_v61  ;;  %v15095_v30 = vpop.permute.xlu0 %10724  ;;  %v2169_v61 = vpack.c.bf16 %v1229_v20, %v1150_v10  ;;  %v10627_v36 = vunpack.i.h.bf16 %v14790_v63  ;;  %v20997_v53 = vunpack.i.l.bf16 %v15080_v4  ;;  %vm21597_vm15 = vcmask 1022976  }
 0x207   :  { %2565 = vmatpush1.bf16.msra.mxu1 %v21579_v6  ;;  %v10727_v37 = vunpack.i.h.bf16 %v15095_v30  ;;  %v20990_v18 = vunpack.i.l.bf16 %v15095_v30 }
 0x208   :  { %10919 = vrot.lane.b32.xlu1 %v10908_v29, %s12431_s19  ;;  %2566 = vmatprep.subr.bf16.mxu1 %v2169_v61  ;;  %v10742_v61 = vunpack.i.h.bf16 %v15080_v4 }
 0x209   :  { %10914 = vrot.lane.b32.xlu0 %v10908_v29, %s12432_s20  ;;  %v1712_v17 = vsel %vm1682_vm2, %v10606_v44, %v10727_v37  ;;  %v15108_v10 = vpop.permute.xlu1 %10749  ;;  %v1694_v57 = vsel %vm1682_vm2, %v10677_v24, %v20990_v18  ;;  %v1713_v20 = vsel %vm1682_vm2, %v10727_v37, %v20992_v60  ;;  %v21582_v37 = vunpack.i.h.bf16 %v14834_v43 }
 0x20a   :  { %21580 = vst [vmem:[#allocation16_spill] sm:$0xff] %v15108_v10  ;;  %v10751_v52 = vunpack.i.l.bf16 %v15108_v10  ;;  %v15120_v41 = vpop.permute.xlu0 %10734  ;;  %v2188_v44 = vpack.c.bf16 %v1713_v20, %v1694_v57  ;;  %v2187_v13 = vpack.c.bf16 %v1712_v17, %v1693_v5  ;;  %v21583_v5 = vunpack.i.h.bf16 %v14788_v21 }
 0x20b   :  { %2567 = vmatpush1.bf16.msra.mxu1 %v21581_v56  ;;  %v20991_v6 = vunpack.i.h.bf16 %v15120_v41  ;;  %v10736_v24 = vunpack.i.l.bf16 %v15120_v41  ;;  %v21587_v60 = vunpack.i.l.bf16 %v14771_v26 }
 0x20c   :  { %v15129_v18 = vsel %vm196_vm1, %v21582_v37, %v10751_v52  ;;  %10929 = vrot.lane.b32.xlu1 %v10908_v29, %s12434_s25  ;;  %2568 = vmatprep.subr.bf16.mxu1 %v2188_v44  ;;  %v21590_v44 = vunpack.i.l.bf16 %v14769_v22 }
 0x20d   :  { %10924 = vrot.lane.b32.xlu0 %v10908_v29, %s12433_s24  ;;  %v15138_v17 = vsel %vm120_vm0, %v21583_v5, %v10736_v24  ;;  %v15143_v43 = vsel %vm120_vm0, %v10736_v24, %v20991_v6  ;;  %v15145_v57 = vpop.permute.xlu1 %10759  ;;  %v21585_v5 = vunpack.i.l.bf16 %v14790_v63  ;;  %v10667_v6 = vunpack.i.h.bf16 %v14928_v46 }
 0x20e   :  { %21584 = vst [vmem:[#allocation14_spill] sm:$0xff] %v15143_v43  ;;  %v20995_v29 = vunpack.i.h.bf16 %v15145_v57  ;;  %v10761_v20 = vunpack.i.l.bf16 %v15145_v57  ;;  %v15149_v56 = vpop.permute.xlu0 %10744  ;;  %v10938_v21 = vpack.i.bf16 %v15129_v18, %v15143_v43  ;;  %v10933_v37 = vpack.i.bf16 %v15138_v17, %v15051_v32 }
 0x20f   :  { %2569 = vmatpush1.bf16.msra.mxu1 %v2187_v13  ;;  %v361_v24 = vsel %vm21586_vm8, %v21585_v5, %v10627_v36  ;;  %v21004_v13 = vunpack.i.l.bf16 %v15149_v56  ;;  %v1750_v16 = vsel %vm1682_vm2, %v21587_v60, %v10742_v61  ;;  %v1732_v5 = vsel %vm1682_vm2, %v10732_v45, %v20997_v53  ;;  %vm21598_vm8 = vmmov %vm21597_vm15 }
 0x210   :  { %v15167_v62 = vsel %vm21588_vm7, %v10761_v20, %v20995_v29  ;;  %10939 = vrot.lane.b32.xlu1 %v10938_v21, %s12435_s28  ;;  %v362_v63 = vsel %vm21589_vm9, %v10627_v36, %v10761_v20  ;;  %v1731_v21 = vsel %vm1682_vm2, %v21590_v44, %v10732_v45  ;;  %v21592_v20 = vld [vmem:[#allocation20_spill] sm:$0xff]  ;;  %v2095_v53 = vpack.c.bf16 %v14995_v27, %v14934_v58 }
 0x211   :  { %10934 = vrot.lane.b32.xlu0 %v10933_v37, %s12435_s28  ;;  %v1751_v26 = vsel %vm1682_vm2, %v10742_v61, %v21004_v13  ;;  %v2076_v60 = vpack.c.bf16 %v14942_v39, %v362_v63  ;;  %v2075_v43 = vpack.c.bf16 %v21592_v20, %v361_v24  ;;  %v21593_v32 = vunpack.i.h.bf16 %v15108_v10 }
 0x212   :  { %v15184_v37 = vpop.permute.xlu0 %10754  ;;  %v2207_v36 = vpack.c.bf16 %v1751_v26, %v1732_v5  ;;  %v2206_v22 = vpack.c.bf16 %v1750_v16, %v1731_v21  ;;  %v21595_v45 = vunpack.i.l.bf16 %v14928_v46  ;;  %v10747_v44 = vunpack.i.h.bf16 %v15149_v56  ;;  %v21602_v21 = vld [vmem:[#allocation9_spill] sm:$0xff] }
 0x213   :  { %21591 = vst [vmem:[#allocation8_spill] sm:$0xff] %v15184_v37  ;;  %v15192_v61 = vsel %vm196_vm1, %v10751_v52, %v21593_v32  ;;  %v20999_v39 = vunpack.i.h.bf16 %v15184_v37  ;;  %v10756_v63 = vunpack.i.l.bf16 %v15184_v37  ;;  %2597 = vmatprep.subr.bf16.mxu0 %v2076_v60  ;;  %v21596_v58 = vunpack.i.h.bf16 %v14843_v12 }
 0x214   :  { %21594 = vst [vmem:[#allocation15_spill] sm:$0xff] %v15192_v61  ;;  %2570 = vmatprep.subr.bf16.mxu1 %v2207_v36  ;;  %2598 = vmatpush1.bf16.msra.mxu0 %v2075_v43  ;;  %v1318_v24 = vsel %vm1303_vm3, %v21595_v45, %v10667_v6  ;;  %v21600_v5 = vunpack.i.l.bf16 %v14805_v3  ;;  %v21601_v26 = vunpack.i.l.bf16 %v14807_v54  ;;  %v21603_v36 = vld [vmem:[#allocation24_spill] sm:$0xff]  ;;  %vm21620_vm7 = vcmask 760832  }
 0x215   :  { %v15203_v27 = vsel %vm21597_vm15, %v21596_v58, %v10756_v63  ;;  %v15208_v32 = vsel %vm21598_vm8, %v10756_v63, %v20999_v39  ;;  %2571 = vmatpush1.bf16.msra.mxu1 %v2206_v22  ;;  %2599 = vmatprep.subr.bf16.mxu0 %v2095_v53  ;;  %v21604_v20 = vpack.c.bf16 %v21602_v21, %v21603_v36  ;;  %v21607_v36 = vunpack.i.l.bf16 %v14897_v50  ;;  %vm21626_vm9 = vmmov %vm21620_vm7 }
 0x216   :  { %21599 = vst [vmem:[#allocation18_spill] sm:$0xff] %v15208_v32  ;;  %v15210_v16 = vpop.permute.xlu0 %10764  ;;  %v10948_v46 = vpack.i.bf16 %v1318_v24, %v15208_v32  ;;  %v10943_v52 = vpack.i.bf16 %v15203_v27, %v15192_v61  ;;  %v1769_v53 = vsel %vm1682_vm2, %v21600_v5, %v10747_v44  ;;  %v21606_v5 = vunpack.i.l.bf16 %v14866_v49 }
 0x217   :  { %v10767_v43 = vunpack.i.h.bf16 %v15210_v16  ;;  %v21000_v45 = vunpack.i.l.bf16 %v15210_v16  ;;  %vm21631_vm15 = vcmask 1043456   ;;  %v10722_v10 = vunpack.i.h.bf16 %v15026_v48 }
 0x218   :  { %10949 = vrot.lane.b32.xlu1 %v10948_v46, %s12435_s28  ;;  %10944 = vrot.lane.b32.xlu0 %v10943_v52, %s12435_s28  ;;  %vm21632_vm8 = vmmov %vm21631_vm15 }
 0x219   :  { %v1788_v60 = vsel %vm1682_vm2, %v21601_v26, %v10767_v43  ;;  %2600 = vmatpush1.bf16.msra.mxu0 %v21604_v20 }
 0x21a   :  { %v15229_v63 = vpop.permute.xlu0 %10774  ;;  %v2225_v22 = vpack.c.bf16 %v1788_v60, %v1769_v53  ;;  %v1770_v53 = vsel %vm1682_vm2, %v10747_v44, %v21000_v45  ;;  %v10672_v45 = vunpack.i.h.bf16 %v14892_v19 }
 0x21b   :  { %21605 = vst [vmem:[#allocation7_spill] sm:$0xff] %v15229_v63  ;;  %v10776_v52 = vunpack.i.l.bf16 %v15229_v63  ;;  %v21002_v21 = vunpack.i.h.bf16 %v15229_v63  ;;  %v10707_v63 = vunpack.i.h.bf16 %v15040_v28 }
 0x21d   :  { %v15232_v24 = vpop.permute.xlu1 %10769 }
 0x21e   :  { %v10772_v58 = vunpack.i.h.bf16 %v15232_v24  ;;  %v21001_v3 = vunpack.i.l.bf16 %v15232_v24  ;;  %v15236_v46 = vpop.permute.xlu0 %10784 }
 0x21f   :  { %v10787_v54 = vunpack.i.h.bf16 %v15236_v46 }
 0x220   :  { %v1807_v26 = vsel %vm1682_vm2, %v21606_v5, %v10772_v58  ;;  %v1789_v60 = vsel %vm1682_vm2, %v10767_v43, %v21001_v3  ;;  %v21609_v43 = vunpack.i.h.bf16 %v14884_v1 }
 0x221   :  { %v1826_v20 = vsel %vm1682_vm2, %v21607_v36, %v10787_v54  ;;  %v15253_v12 = vpop.permute.xlu1 %10779  ;;  %v2226_v39 = vpack.c.bf16 %v1789_v60, %v1770_v53  ;;  %v15271_v53 = vsel %vm427_vm6, %v10776_v52, %v21002_v21 }
 0x222   :  { %v21003_v49 = vunpack.i.l.bf16 %v15253_v12  ;;  %v15256_v5 = vpop.permute.xlu0 %10794  ;;  %v2244_v29 = vpack.c.bf16 %v1826_v20, %v1807_v26  ;;  %v15263_v3 = vsel %vm427_vm6, %v21609_v43, %v10776_v52  ;;  %v21610_v26 = vunpack.i.h.bf16 %v14910_v25 }
 0x223   :  { %21608 = vst [vmem:[#allocation23_spill] sm:$0xff] %v15256_v5  ;;  %v10796_v44 = vunpack.i.l.bf16 %v15256_v5  ;;  %2572 = vmatprep.subr.bf16.mxu1 %v2226_v39  ;;  %v21611_v52 = vunpack.i.l.bf16 %v14892_v19 }
 0x224   :  { %v1319_v50 = vsel %vm1303_vm3, %v10667_v6, %v21003_v49  ;;  %2573 = vmatpush1.bf16.msra.mxu1 %v2225_v22  ;;  %v21613_v49 = vld [vmem:[#allocation26_spill] sm:$0xff] }
 0x225   :  { %v15276_v39 = vsel %vm506_vm4, %v21610_v26, %v10796_v44  ;;  %v10953_v1 = vpack.i.bf16 %v15263_v3, %v1319_v50  ;;  %v756_v25 = vsel %vm743_vm10, %v21611_v52, %v10672_v45 }
 0x226   :  { %v15279_v60 = vpop.permute.xlu0 %10804  ;;  %v10958_v36 = vpack.i.bf16 %v15276_v39, %v15271_v53  ;;  %v2113_v13 = vpack.c.bf16 %v756_v25, %v21613_v49 }
 0x227   :  { %v21005_v6 = vunpack.i.h.bf16 %v15279_v60  ;;  %v10806_v22 = vunpack.i.l.bf16 %v15279_v60  ;;  %10954 = vrot.lane.b32.xlu0 %v10953_v1, %s12435_s28 }
 0x228   :  { %10959 = vrot.lane.b32.xlu1 %v10958_v36, %s12435_s28 }
 0x229   :  { %v15294_v43 = vsel %vm743_vm10, %v10806_v22, %v21005_v6  ;;  %v15296_v50 = vpop.permute.xlu1 %10789  ;;  %v757_v26 = vsel %vm743_vm10, %v10672_v45, %v10806_v22  ;;  %v21614_v45 = vunpack.i.l.bf16 %v15236_v46 }
 0x22a   :  { %v21007_v21 = vunpack.i.l.bf16 %v15296_v50  ;;  %v15300_v1 = vpop.permute.xlu0 %10814  ;;  %v2114_v19 = vpack.c.bf16 %v757_v26, %v14980_v23  ;;  %v10792_v6 = vunpack.i.h.bf16 %v15296_v50 }
 0x22b   :  { %21612 = vst [vmem:[#allocation21_spill] sm:$0xff] %v15300_v1  ;;  %v10816_v20 = vunpack.i.l.bf16 %v15300_v1  ;;  %v1808_v22 = vsel %vm1682_vm2, %v10772_v58, %v21614_v45  ;;  %v15325_v58 = vld [vmem:[%s20788_s0 + $0x98] sm:$0xff] }
 0x22c   :  { %2601 = vmatprep.subr.bf16.mxu0 %v2114_v19  ;;  %v1827_v23 = vsel %vm1682_vm2, %v10787_v54, %v21007_v21  ;;  %21616 = vst [vmem:[#allocation6_spill] sm:$0xff] %v15325_v58  ;;  %v21617_v19 = vunpack.i.h.bf16 %v15256_v5  ;;  %v21619_v54 = vunpack.i.h.bf16 %v14961_v15  ;;  %v10692_v15 = vunpack.i.h.bf16 %v14947_v31 }
 0x22d   :  { %2602 = vmatpush1.bf16.msra.mxu0 %v2113_v13  ;;  %v15315_v26 = vpop.permute.xlu1 %10799  ;;  %v2245_v52 = vpack.c.bf16 %v1827_v23, %v1808_v22  ;;  %v21621_v22 = vunpack.i.h.bf16 %v14968_v51 }
 0x22e   :  { %21615 = vst [vmem:[#allocation5_spill] sm:$0xff] %v15315_v26  ;;  %v21008_v49 = vunpack.i.h.bf16 %v15315_v26  ;;  %v10801_v25 = vunpack.i.l.bf16 %v15315_v26  ;;  %v15320_v61 = vpop.permute.xlu0 %10824  ;;  %v15330_v13 = vsel %vm506_vm4, %v10796_v44, %v21617_v19  ;;  %v15335_v45 = vsel %vm21620_vm7, %v21619_v54, %v10816_v20 }
 0x22f   :  { %21618 = vst [vmem:[#allocation10_spill] sm:$0xff] %v15330_v13  ;;  %2574 = vmatprep.subr.bf16.mxu1 %v2245_v52  ;;  %v21623_v44 = vunpack.i.l.bf16 %v14954_v40  ;;  %v10697_v26 = vunpack.i.h.bf16 %v15004_v35  ;;  %vm21636_vm7 = vcmask 261120  }
 0x230   :  { %v15340_v23 = vsel %vm585_vm5, %v21621_v22, %v10801_v25  ;;  %v15345_v21 = vsel %vm585_vm5, %v10801_v25, %v21008_v49  ;;  %2575 = vmatpush1.bf16.msra.mxu1 %v2244_v29  ;;  %v21624_v22 = vld [vmem:[#allocation19_spill] sm:$0xff]  ;;  %v21625_v29 = vunpack.i.h.bf16 %v15300_v1  ;;  %v10826_v1 = vunpack.i.l.bf16 %v15320_v61 }
 0x231   :  { %21622 = vst [vmem:[#allocation12_spill] sm:$0xff] %v15345_v21  ;;  %v1845_v52 = vsel %vm1682_vm2, %v21623_v44, %v10792_v6  ;;  %v15351_v19 = vpop.permute.xlu1 %10809  ;;  %v10968_v51 = vpack.i.bf16 %v15335_v45, %v15345_v21  ;;  %v10963_v54 = vpack.i.bf16 %v15340_v23, %v15330_v13  ;;  %v15359_v36 = vpack.i.bf16 %v15325_v58, %v21624_v22 }
 0x232   :  { %v15364_v40 = vsel %vm21626_vm9, %v10816_v20, %v21625_v29  ;;  %v21014_v44 = vunpack.i.l.bf16 %v15351_v19  ;;  %v15371_v5 = vpop.permute.xlu0 %10834  ;;  %v2263_v22 = vpack.c.bf16 %v1845_v52, %v1845_v52  ;;  %v2039_v29 = vpack.c.bf16 %v14839_v7, %v14589_v11  ;;  %v15390_v52 = vld [vmem:[%s20788_s0 + $0x88] sm:$0xff] }
 0x233   :  { %21627 = vst [vmem:[#allocation13_spill] sm:$0xff] %v15364_v40  ;;  %10969 = vrot.lane.b32.xlu1 %v10968_v51, %s12435_s28  ;;  %10964 = vrot.lane.b32.xlu0 %v10963_v54, %s12435_s28  ;;  %v21628_v49 = vunpack.i.l.bf16 %v14947_v31  ;;  %v10712_v13 = vunpack.i.h.bf16 %v15002_v2  ;;  %v10973_v51 = vpack.i.bf16 %v15390_v52, %v15364_v40  ;;  %v21629_v54 = vunpack.i.h.bf16 %v15320_v61 }
 0x234   :  { %v1846_v20 = vsel %vm1682_vm2, %v10792_v6, %v21014_v44  ;;  %v21630_v44 = vunpack.i.l.bf16 %v15004_v35  ;;  %v10836_v7 = vunpack.i.l.bf16 %v15371_v5  ;;  %v915_v40 = vsel %vm901_vm12, %v10697_v26, %v10826_v1 }
 0x235   :  { %v835_v25 = vsel %vm822_vm11, %v21628_v49, %v10692_v15  ;;  %v15385_v21 = vpop.permute.xlu1 %10819  ;;  %v2264_v6 = vpack.c.bf16 %v1846_v20, %v1846_v20  ;;  %v15397_v11 = vsel %vm901_vm12, %v10826_v1, %v21629_v54  ;;  %v2321_v20 = vsel %vm21631_vm15, %v2263_v22, 0  ;;  %vm21639_vm15 = vmmov %vm21636_vm7 }
 0x236   :  { %v21020_v31 = vunpack.i.h.bf16 %v15385_v21  ;;  %v10821_v49 = vunpack.i.l.bf16 %v15385_v21  ;;  %v914_v32 = vsel %vm901_vm12, %v21630_v44, %v10697_v26  ;;  %v2040_v54 = vpack.c.bf16 %v15138_v17, %v15020_v9  ;;  %v15425_v9 = vpop.permute.xlu0 %10844 }
 0x237   :  { %10979 = vrot.lane.b32.xlu1 %v15359_v36, %s12420_s30  ;;  %10974 = vrot.lane.b32.xlu0 %v10973_v51, %s12435_s28  ;;  %v21633_v51 = vunpack.i.l.bf16 %v15002_v2  ;;  %v21021_v2 = vunpack.i.h.bf16 %v15425_v9  ;;  %vm21637_vm9 = vcmask 588800  }
 0x238   :  { %v15416_v35 = vsel %vm822_vm11, %v10821_v49, %v21020_v31  ;;  %8886 = vmatprep.subr.msk.bf16.mxu1 %vm21632_vm8, %v2264_v6  ;;  %v836_v44 = vsel %vm822_vm11, %v10692_v15, %v10821_v49  ;;  %v21634_v6 = vunpack.i.h.bf16 %v15371_v5  ;;  %v21635_v49 = vunpack.i.l.bf16 %v15040_v28 }
 0x239   :  { %v1072_v22 = vsel %vm1059_vm14, %v21633_v51, %v10712_v13  ;;  %2577 = vmatpush1.bf16.msra.mxu1 %v2321_v20  ;;  %v15427_v17 = vpop.permute.xlu1 %10829  ;;  %v2133_v37 = vpack.c.bf16 %v915_v40, %v836_v44  ;;  %v10717_v40 = vunpack.i.h.bf16 %v15074_v8  ;;  %v2132_v44 = vpack.c.bf16 %v914_v32, %v835_v25 }
 0x23a   :  { %v15434_v15 = vsel %vm1059_vm14, %v10836_v7, %v21634_v6  ;;  %v21023_v1 = vunpack.i.h.bf16 %v15427_v17  ;;  %v10831_v26 = vunpack.i.l.bf16 %v15427_v17  ;;  %2634 = vmatprep.subr.bf16.mxu1 %v2040_v54  ;;  %v993_v20 = vsel %vm980_vm13, %v21635_v49, %v10707_v63 }
 0x23b   :  { %10989 = vrot.lane.b32.xlu1 %v15359_v36, %s21476_s15  ;;  %10984 = vrot.lane.b32.xlu0 %v15359_v36, %s12419_s29  ;;  %v2059_v51 = vpack.c.bf16 %v15203_v27, %v15129_v18  ;;  %v10846_v6 = vunpack.i.l.bf16 %v15425_v9  ;;  %v1073_v49 = vsel %vm1059_vm14, %v10712_v13, %v10836_v7  ;;  %v15481_v7 = vld [vmem:[%s20788_s0 + $0x90] sm:$0xff]  ;;  %vm21641_vm8 = vcmask 490496   ;;  %s12437_s0 = smov 120  }
 0x23c   :  { %v15453_v28 = vsel %vm980_vm13, %v10831_v26, %v21023_v1  ;;  %2585 = vmatmul.mubr.bf16.vlgmr.msra.gmra.mrb[8].mxu1 %v13490_v34  ;;  %2603 = vmatprep.subr.bf16.mxu0 %v2133_v37  ;;  %v994_v54 = vsel %vm980_vm13, %v10707_v63, %v10831_v26  ;;  %v21638_v63 = vunpack.i.l.bf16 %v15026_v48  ;;  %v10999_v26 = vpack.i.bf16 %v15325_v58, %v15481_v7 }
 0x23d   :  { %2604 = vmatpush1.bf16.msra.mxu0 %v2132_v44  ;;  %2635 = vmatpush1.bf16.msra.mxu1 %v2039_v29  ;;  %v15458_v32 = vpop.permute.xlu1 %10839  ;;  %v2152_v25 = vpack.c.bf16 %v1073_v49, %v994_v54  ;;  %v15465_v27 = vsel %vm21636_vm7, %v10846_v6, %v21021_v2  ;;  %v2151_v29 = vpack.c.bf16 %v1072_v22, %v993_v20  ;;  %v21640_v44 = vunpack.i.l.bf16 %v15074_v8  ;;  %vm21642_vm7 = vmmov %vm21641_vm8 }
 0x23e   :  { %v21022_v31 = vunpack.i.h.bf16 %v15458_v32  ;;  %v10841_v37 = vunpack.i.l.bf16 %v15458_v32  ;;  %2636 = vmatprep.subr.bf16.mxu1 %v2059_v51  ;;  %8891 = vmatprep.mubr.msk.bf16.mxu1 %vm21637_vm9, %v12854_v38  ;;  %v1230_v13 = vsel %vm21639_vm15, %v21638_v63, %v10722_v10  ;;  %vm21643_vm9 = vmmov %vm21642_vm7  ;;  %v1231_v20 = vsel %vm21639_vm15, %v10722_v10, %v10846_v6  ;;  %v15504_v63 = vpop.f32.mrb[0].mxu1 }
 0x23f   :  { %1301 = vrot.lane.b32.xlu1 %v15325_v58, %s12423_s17  ;;  %10994 = vrot.lane.b32.xlu0 %v15359_v36, %s21486_s18  ;;  %v1151_v48 = vsel %vm21641_vm8, %v21640_v44, %v10717_v40  ;;  %v2273_v36 = vld [vmem:[%s20790_s2] sm:$0xff]  ;;  %v21644_v8 = vpack.c.bf16 %v14873_v42, %v14856_v0  ;;  %v15506_v44 = vpop.f32.mrb[0].mxu0  ;;  %v15508_v10 = vpop.f32.mrb[1].mxu1  ;;  %v21648_v18 = vunpack.i.l.bf16 %v15095_v30  ;;  %vm21652_vm8 = vcmask 1014784   ;;  %s12438_s2 = smov 122  }
 0x240   :  { %v15491_v51 = vsel %vm21642_vm7, %v10841_v37, %v21022_v31  ;;  %2605 = vmatprep.subr.bf16.mxu0 %v2152_v25  ;;  %v1152_v22 = vsel %vm21643_vm9, %v10717_v40, %v10841_v37  ;;  %v2170_v25 = vpack.c.bf16 %v1230_v13, %v1151_v48  ;;  %21645 = vst [vmem:[#allocation22_spill] sm:$0xff] %v15506_v44  ;;  %v15510_v40 = vpop.f32.mrb[1].mxu0  ;;  %v2426_v0 = vpop.f32.mrb[2].mxu1  ;;  %vm21654_vm7 = vmmov %vm21652_vm8  ;;  %vm21663_vm9 = vcmask 1043456  }
 0x241   :  { %2606 = vmatpush1.bf16.msra.mxu0 %v2151_v29  ;;  %2637 = vmatpush1.bf16.msra.mxu1 %v21644_v8  ;;  %v2171_v54 = vpack.c.bf16 %v1231_v20, %v1152_v22  ;;  %21646 = vst [vmem:[#allocation11_spill] sm:$0xff] %v15510_v40  ;;  %v2385_v42 = vpop.f32.mrb[2].mxu0  ;;  %v2427_v6 = vpop.f32.mrb[3].mxu1  ;;  %v21649_v40 = vunpack.i.l.bf16 %v15149_v56  ;;  %vm21664_vm15 = vmmov %vm21663_vm9 }
 0x242   :  { %v2386_v37 = vpop.f32.mrb[3].mxu0 }
 0x243   :  { %11000 = vrot.lane.b32.xlu1 %v10999_v26, %s21286_s1  ;;  %2276 = vperm.xlu0 %10998, %v2273_v36   ;;  %v10812_v36 = vunpack.i.h.bf16 %v15351_v19 }
 0x244   :  { %2607 = vmatprep.subr.bf16.mxu0 %v2171_v54  ;;  %v21647_v54 = vunpack.i.l.bf16 %v15056_v14 }
 0x245   :  { %2608 = vmatpush1.bf16.msra.mxu0 %v2170_v25  ;;  %v1695_v2 = vsel %vm1682_vm2, %v21648_v18, %v10812_v36 }
 0x247   :  { %11005 = vrot.lane.b32.xlu1 %v10999_v26, %s12425_s21  ;;  %11010 = vrot.lane.b32.xlu0 %v10999_v26, %s21301_s13  ;;  %s12439_s21 = smov 56  }
 0x24b   :  { %346 = vrot.lane.b32.xlu1 %v15481_v7, %s12427_s23  ;;  %11015 = vrot.lane.b32.xlu0 %v10999_v26, %s12428_s26  ;;  %s12440_s26 = smov 66  }
 0x24d   :  { %v15519_v13 = vpop.permute.xlu1 %10849 }
 0x24e   :  { %v10852_v29 = vunpack.i.h.bf16 %v15519_v13  ;;  %v21025_v48 = vunpack.i.l.bf16 %v15519_v13 }
 0x24f   :  { %11020 = vrot.lane.b32.xlu1 %v10999_v26, %s12429_s27  ;;  %11025 = vrot.lane.b32.xlu0 %v10999_v26, %s21280_s22 }
 0x250   :  { %v1714_v25 = vsel %vm1682_vm2, %v21647_v54, %v10852_v29  ;;  %v1696_v49 = vsel %vm1682_vm2, %v10812_v36, %v21025_v48 }
 0x251   :  { %v2189_v58 = vpack.c.bf16 %v1714_v25, %v1695_v2 }
 0x253   :  { %11030 = vrot.lane.b32.xlu1 %v10999_v26, %s12432_s20  ;;  %11035 = vrot.lane.b32.xlu0 %v10999_v26, %s12431_s19 }
 0x255   :  { %v15526_v22 = vpop.permute.xlu0 %10854 }
 0x256   :  { %v15528_v20 = vpop.permute.xlu1 %10859  ;;  %v21026_v8 = vunpack.i.l.bf16 %v15526_v22  ;;  %v10857_v42 = vunpack.i.h.bf16 %v15526_v22  ;;  %v15538_v6 = vpop.f32.mrb[4].mxu0 }
 0x257   :  { %v10862_v0 = vunpack.i.h.bf16 %v15528_v20  ;;  %11040 = vrot.lane.b32.xlu1 %v10999_v26, %s12433_s24  ;;  %11045 = vrot.lane.b32.xlu0 %v10999_v26, %s12434_s25  ;;  %v15547_v54 = vpop.f32.mrb[5].mxu0  ;;  %s12445_s25 = smov [#allocation2]  }
 0x258   :  { %v1715_v14 = vsel %vm1682_vm2, %v10852_v29, %v21026_v8  ;;  %v2467_v1 = vpop.f32.mrb[6].mxu0  ;;  %v21650_v8 = vunpack.i.l.bf16 %v15080_v4  ;;  %s8866_s22 = sshll.u32 %s12445_s25, 4  ;;  %s8867_s22 = int_to_ptr.vmem [resolvable:$true] %s8866_s22 }
 0x259   :  { %v15552_v31 = vpop.permute.xlu0 %10864  ;;  %v2190_v26 = vpack.c.bf16 %v1715_v14, %v1696_v49  ;;  %v2468_v48 = vpop.f32.mrb[7].mxu0  ;;  %v1752_v29 = vsel %vm1682_vm2, %v21649_v40, %v10862_v0  ;;  %v21651_v1 = vunpack.i.l.bf16 %v15528_v20  ;;  %v21653_v40 = vunpack.i.h.bf16 %v15145_v57  ;;  %p12400_p1 = scmp.lt.s32.totalorder %s8867_s22, %s8867_s22 }
 0x25a   :  { %v15554_v44 = vpop.permute.xlu1 %10869  ;;  %v10866_v37 = vunpack.i.l.bf16 %v15552_v31  ;;  %v1733_v30 = vsel %vm1682_vm2, %v21650_v8, %v10857_v42  ;;  %v10867_v57 = vunpack.i.h.bf16 %v15552_v31 }
 0x25b   :  { %v10872_v18 = vunpack.i.h.bf16 %v15554_v44  ;;  %v10871_v36 = vunpack.i.l.bf16 %v15554_v44  ;;  %2609 = vmatprep.subr.bf16.mxu0 %v2190_v26  ;;  %v1734_v49 = vsel %vm1682_vm2, %v10857_v42, %v21651_v1  ;;  %v2208_v8 = vpack.c.bf16 %v1752_v29, %v1733_v30 }
 0x25c   :  { %2610 = vmatpush1.bf16.msra.mxu0 %v2189_v58  ;;  %v1753_v56 = vsel %vm1682_vm2, %v10862_v0, %v10866_v37  ;;  %v2097_v0 = vpack.c.bf16 %v15340_v23, %v15276_v39  ;;  %v21655_v42 = vpack.c.bf16 %v14925_v47, %v15167_v62  ;;  %v21657_v47 = vunpack.i.l.bf16 %v15210_v16 }
 0x25d   :  { %v15574_v4 = vsel %vm21652_vm8, %v10871_v36, %v10872_v18  ;;  %v2209_v2 = vpack.c.bf16 %v1753_v56, %v1734_v49  ;;  %v364_v48 = vsel %vm21654_vm7, %v21653_v40, %v10871_v36  ;;  %v21658_v23 = vunpack.i.l.bf16 %v15232_v24 }
 0x25e   :  { %v2078_v58 = vpack.c.bf16 %v15263_v3, %v364_v48  ;;  %v2079_v25 = vpack.c.bf16 %v15271_v53, %v15574_v4  ;;  %v21656_v3 = vpack.c.bf16 %v15000_v55, %v14973_v33  ;;  %v1771_v62 = vsel %vm1682_vm2, %v21657_v47, %v10867_v57  ;;  %v21711_v4 = vld [vmem:[#allocation10_spill] sm:$0xff] }
 0x25f   :  { %2611 = vmatprep.subr.bf16.mxu0 %v2209_v2  ;;  %v21661_v47 = vunpack.i.l.bf16 %v15351_v19  ;;  %v21662_v19 = vunpack.i.h.bf16 %v15279_v60  ;;  %vm21670_vm8 = vcmask 588800   ;;  %vm21672_vm7 = vcmask 261120  }
 0x260   :  { %2638 = vmatprep.subr.bf16.mxu1 %v2078_v58  ;;  %2612 = vmatpush1.bf16.msra.mxu0 %v2208_v8  ;;  %v21659_v8 = vunpack.i.l.bf16 %v15236_v46 }
 0x261   :  { %2639 = vmatpush1.bf16.msra.mxu1 %v21655_v42  ;;  %v21660_v42 = vunpack.i.l.bf16 %v15296_v50 }
 0x262   :  { %2640 = vmatprep.subr.bf16.mxu1 %v2097_v0 }
 0x265   :  { %2641 = vmatpush1.bf16.msra.mxu1 %v21656_v3  ;;  %v15591_v14 = vpop.permute.xlu1 %10879 }
 0x266   :  { %v10881_v26 = vunpack.i.l.bf16 %v15591_v14  ;;  %v15594_v29 = vpop.permute.xlu0 %10874  ;;  %v10882_v56 = vunpack.i.h.bf16 %v15591_v14 }
 0x267   :  { %v10877_v30 = vunpack.i.h.bf16 %v15594_v29  ;;  %v10876_v39 = vunpack.i.l.bf16 %v15594_v29 }
 0x268   :  { %v1809_v0 = vsel %vm1682_vm2, %v21659_v8, %v10882_v56 }
 0x269   :  { %v1790_v36 = vsel %vm1682_vm2, %v21658_v23, %v10877_v30  ;;  %v1772_v33 = vsel %vm1682_vm2, %v10867_v57, %v10876_v39  ;;  %v1791_v55 = vsel %vm1682_vm2, %v10877_v30, %v10881_v26 }
 0x26a   :  { %v2228_v1 = vpack.c.bf16 %v1791_v55, %v1772_v33  ;;  %v2227_v49 = vpack.c.bf16 %v1790_v36, %v1771_v62 }
 0x26c   :  { %2613 = vmatprep.subr.bf16.mxu0 %v2228_v1 }
 0x26d   :  { %2614 = vmatpush1.bf16.msra.mxu0 %v2227_v49 }
 0x26e   :  { %v15611_v16 = vpop.permute.xlu1 %10889  ;;  %v15613_v2 = vpop.permute.xlu0 %10884 }
 0x26f   :  { %v10892_v24 = vunpack.i.h.bf16 %v15611_v16  ;;  %v10891_v40 = vunpack.i.l.bf16 %v15611_v16  ;;  %v10887_v48 = vunpack.i.h.bf16 %v15613_v2  ;;  %v10886_v58 = vunpack.i.l.bf16 %v15613_v2 }
 0x271   :  { %v1828_v57 = vsel %vm1682_vm2, %v21660_v42, %v10887_v48  ;;  %v1810_v3 = vsel %vm1682_vm2, %v10882_v56, %v10886_v58  ;;  %v1829_v30 = vsel %vm1682_vm2, %v10887_v48, %v10891_v40  ;;  %v1847_v62 = vsel %vm1682_vm2, %v21661_v47, %v10892_v24 }
 0x272   :  { %v15634_v23 = vpop.permute.xlu1 %10899  ;;  %v15636_v46 = vpop.permute.xlu0 %10894  ;;  %v2247_v36 = vpack.c.bf16 %v1829_v30, %v1810_v3  ;;  %v2246_v50 = vpack.c.bf16 %v1828_v57, %v1809_v0  ;;  %v2265_v1 = vpack.c.bf16 %v1847_v62, %v1847_v62  ;;  %v21665_v62 = vpack.c.bf16 %v15294_v43, %v14990_v59 }
 0x273   :  { %v10901_v33 = vunpack.i.l.bf16 %v15634_v23  ;;  %v10896_v55 = vunpack.i.l.bf16 %v15636_v46 }
 0x274   :  { %2615 = vmatprep.subr.bf16.mxu0 %v2247_v36  ;;  %v2327_v60 = vsel %vm21664_vm15, %v2265_v1, 0  ;;  %v21666_v36 = vunpack.i.h.bf16 %v15385_v21 }
 0x275   :  { %2616 = vmatpush1.bf16.msra.mxu0 %v2246_v50  ;;  %v1848_v49 = vsel %vm1682_vm2, %v10892_v24, %v10901_v33  ;;  %v759_v56 = vsel %vm743_vm10, %v21662_v19, %v10896_v55  ;;  %v21667_v19 = vunpack.i.h.bf16 %v15320_v61 }
 0x276   :  { %v15648_v48 = vpop.permute.xlu1 %10909  ;;  %v2266_v0 = vpack.c.bf16 %v1848_v49, %v1848_v49  ;;  %v2116_v42 = vpack.c.bf16 %v759_v56, %v15335_v45 }
 0x277   :  { %v15650_v8 = vpop.permute.xlu0 %10904  ;;  %v21043_v57 = vunpack.i.h.bf16 %v15648_v48  ;;  %v10911_v3 = vunpack.i.l.bf16 %v15648_v48 }
 0x278   :  { %v21047_v30 = vunpack.i.h.bf16 %v15650_v8  ;;  %v10906_v24 = vunpack.i.l.bf16 %v15650_v8  ;;  %8888 = vmatprep.subr.msk.bf16.mxu0 %vm21663_vm9, %v2266_v0  ;;  %2642 = vmatprep.subr.bf16.mxu1 %v2116_v42  ;;  %vm21673_vm9 = vcmask 490496  }
 0x279   :  { %v15662_v47 = vsel %vm901_vm12, %v10911_v3, %v21043_v57  ;;  %2618 = vmatpush1.bf16.msra.mxu0 %v2327_v60  ;;  %2643 = vmatpush1.bf16.msra.mxu1 %v21665_v62  ;;  %v917_v56 = vsel %vm901_vm12, %v21667_v19, %v10911_v3  ;;  %v21668_v60 = vunpack.i.h.bf16 %v15427_v17  ;;  %v21671_v17 = vpack.c.bf16 %v15397_v11, %v15416_v35  ;;  %vm21675_vm15 = vmmov %vm21673_vm9 }
 0x27a   :  { %v15667_v45 = vsel %vm822_vm11, %v10906_v24, %v21047_v30  ;;  %v838_v50 = vsel %vm822_vm11, %v21666_v36, %v10906_v24  ;;  %v15675_v1 = vpop.permute.xlu1 %10919  ;;  %v21669_v36 = vunpack.i.h.bf16 %v15371_v5  ;;  %v21674_v11 = vunpack.i.h.bf16 %v15458_v32 }
 0x27b   :  { %v15677_v49 = vpop.permute.xlu0 %10914  ;;  %v21027_v42 = vunpack.i.h.bf16 %v15675_v1  ;;  %v10921_v59 = vunpack.i.l.bf16 %v15675_v1  ;;  %v2135_v24 = vpack.c.bf16 %v917_v56, %v838_v50 }
 0x27c   :  { %v21029_v43 = vunpack.i.h.bf16 %v15677_v49  ;;  %v10916_v21 = vunpack.i.l.bf16 %v15677_v49  ;;  %2626 = vmatmul.mubr.bf16.vlgmr.msra.gmra.mrb[12].mxu0 %v13490_v34 }
 0x27d   :  { %v15692_v61 = vsel %vm1059_vm14, %v10921_v59, %v21027_v42  ;;  %v1075_v19 = vsel %vm1059_vm14, %v21669_v36, %v10921_v59  ;;  %8893 = vmatprep.mubr.msk.bf16.mxu0 %vm21670_vm8, %v12854_v38  ;;  %2644 = vmatprep.subr.bf16.mxu1 %v2135_v24  ;;  %v21676_v36 = vunpack.i.h.bf16 %v15425_v9  ;;  %vm21677_vm8 = vmmov %vm21672_vm7 }
 0x27e   :  { %v15697_v3 = vsel %vm980_vm13, %v10916_v21, %v21029_v43  ;;  %v996_v62 = vsel %vm980_vm13, %v21668_v60, %v10916_v21  ;;  %v15707_v50 = vpop.permute.xlu1 %10929  ;;  %2645 = vmatpush1.bf16.msra.mxu1 %v21671_v17 }
 0x27f   :  { %v15709_v56 = vpop.permute.xlu0 %10924  ;;  %v2154_v42 = vpack.c.bf16 %v1075_v19, %v996_v62  ;;  %v21028_v5 = vunpack.i.h.bf16 %v15707_v50  ;;  %v10931_v59 = vunpack.i.l.bf16 %v15707_v50 }
 0x280   :  { %v21030_v21 = vunpack.i.h.bf16 %v15709_v56  ;;  %v10926_v24 = vunpack.i.l.bf16 %v15709_v56 }
 0x281   :  { %2646 = vmatprep.subr.bf16.mxu1 %v2154_v42  ;;  %v15723_v60 = vsel %vm21672_vm7, %v10931_v59, %v21028_v5  ;;  %v1233_v19 = vsel %vm21677_vm8, %v21676_v36, %v10931_v59  ;;  %v10902_v42 = vunpack.i.h.bf16 %v15634_v23  ;;  %vm21684_vm7 = vcmask 1043456  }
 0x282   :  { %v15728_v62 = vsel %vm21673_vm9, %v10926_v24, %v21030_v21  ;;  %v1154_v35 = vsel %vm21675_vm15, %v21674_v11, %v10926_v24  ;;  %v15737_v17 = vpop.permute.xlu1 %10939  ;;  %v21678_v21 = vpack.c.bf16 %v15434_v15, %v15453_v28  ;;  %v21679_v24 = vunpack.i.l.bf16 %v15526_v22  ;;  %vm21692_vm15 = vmmov %vm21684_vm7 }
 0x283   :  { %v15739_v0 = vpop.permute.xlu0 %10934  ;;  %v2173_v5 = vpack.c.bf16 %v1233_v19, %v1154_v35  ;;  %v21039_v32 = vunpack.i.l.bf16 %v15737_v17  ;;  %v21680_v28 = vunpack.i.l.bf16 %v15519_v13  ;;  %v10942_v19 = vunpack.i.h.bf16 %v15737_v17 }
 0x284   :  { %2647 = vmatpush1.bf16.msra.mxu1 %v21678_v21  ;;  %v10937_v9 = vunpack.i.h.bf16 %v15739_v0  ;;  %v21031_v59 = vunpack.i.l.bf16 %v15739_v0  ;;  %vm21689_vm9 = vcmask 1022976  }
 0x285   :  { %2648 = vmatprep.subr.bf16.mxu1 %v2173_v5  ;;  %v1697_v21 = vsel %vm1682_vm2, %v21680_v28, %v10902_v42  ;;  %v21681_v5 = vpack.c.bf16 %v15465_v27, %v15491_v51  ;;  %vm21693_vm8 = vmmov %vm21689_vm9 }
 0x286   :  { %v1716_v11 = vsel %vm1682_vm2, %v21679_v24, %v10937_v9  ;;  %v1698_v35 = vsel %vm1682_vm2, %v10902_v42, %v21031_v59  ;;  %v1717_v15 = vsel %vm1682_vm2, %v10937_v9, %v21039_v32 }
 0x287   :  { %v2192_v36 = vpack.c.bf16 %v1717_v15, %v1698_v35  ;;  %v2191_v22 = vpack.c.bf16 %v1716_v11, %v1697_v21  ;;  %v21682_v35 = vunpack.i.l.bf16 %v15528_v20 }
 0x288   :  { %2649 = vmatpush1.bf16.msra.mxu1 %v21681_v5 }
 0x289   :  { %2650 = vmatprep.subr.bf16.mxu1 %v2192_v36  ;;  %v1735_v27 = vsel %vm1682_vm2, %v21682_v35, %v10942_v19 }
 0x28a   :  { %v15765_v24 = vpop.permute.xlu1 %10949  ;;  %v15767_v59 = vpop.permute.xlu0 %10944 }
 0x28b   :  { %v21038_v9 = vunpack.i.l.bf16 %v15765_v24  ;;  %v10947_v13 = vunpack.i.h.bf16 %v15767_v59  ;;  %v21037_v42 = vunpack.i.l.bf16 %v15767_v59  ;;  %v10952_v20 = vunpack.i.h.bf16 %v15765_v24 }
 0x28c   :  { %2651 = vmatpush1.bf16.msra.mxu1 %v2191_v22 }
 0x28d   :  { %v1754_v51 = vsel %vm1682_vm2, %v10866_v37, %v10947_v13  ;;  %v1736_v11 = vsel %vm1682_vm2, %v10942_v19, %v21037_v42  ;;  %v1755_v15 = vsel %vm1682_vm2, %v10947_v13, %v21038_v9  ;;  %v1773_v19 = vsel %vm1682_vm2, %v10876_v39, %v10952_v20 }
 0x28e   :  { %v2211_v28 = vpack.c.bf16 %v1755_v15, %v1736_v11  ;;  %v2210_v21 = vpack.c.bf16 %v1754_v51, %v1735_v27  ;;  %v10782_v42 = vunpack.i.h.bf16 %v15253_v12 }
 0x290   :  { %2652 = vmatprep.subr.bf16.mxu1 %v2211_v28 }
 0x291   :  { %2653 = vmatpush1.bf16.msra.mxu1 %v2210_v21 }
 0x299   :  { %v15785_v36 = vpop.permute.xlu0 %10954 }
 0x29a   :  { %v15787_v5 = vpop.permute.xlu1 %10959  ;;  %v10957_v31 = vunpack.i.h.bf16 %v15785_v36  ;;  %v21032_v37 = vunpack.i.l.bf16 %v15785_v36 }
 0x29b   :  { %v21036_v22 = vunpack.i.l.bf16 %v15787_v5 }
 0x29c   :  { %v1792_v13 = vsel %vm1682_vm2, %v10881_v26, %v10957_v31  ;;  %v1774_v35 = vsel %vm1682_vm2, %v10952_v20, %v21032_v37  ;;  %v10962_v26 = vunpack.i.h.bf16 %v15787_v5 }
 0x29d   :  { %v1793_v27 = vsel %vm1682_vm2, %v10957_v31, %v21036_v22  ;;  %v2229_v51 = vpack.c.bf16 %v1792_v13, %v1773_v19 }
 0x29e   :  { %v2230_v11 = vpack.c.bf16 %v1793_v27, %v1774_v35  ;;  %v1811_v35 = vsel %vm1682_vm2, %v10886_v58, %v10962_v26 }
 0x29f   :  { %v15804_v15 = vpop.f32.mrb[4].mxu1 }
 0x2a0   :  { %v15806_v28 = vpop.f32.mrb[5].mxu1  ;;  %2654 = vmatprep.subr.bf16.mxu1 %v2230_v11 }
 0x2a1   :  { %v2508_v29 = vpop.f32.mrb[6].mxu1  ;;  %2655 = vmatpush1.bf16.msra.mxu1 %v2229_v51 }
 0x2a2   :  { %v2509_v14 = vpop.f32.mrb[7].mxu1 }
 0x2a5   :  { %v15809_v39 = vpop.permute.xlu1 %10969  ;;  %v15811_v21 = vpop.permute.xlu0 %10964 }
 0x2a6   :  { %v10972_v20 = vunpack.i.h.bf16 %v15809_v39  ;;  %v21035_v31 = vunpack.i.l.bf16 %v15809_v39  ;;  %v10967_v19 = vunpack.i.h.bf16 %v15811_v21  ;;  %v21033_v13 = vunpack.i.l.bf16 %v15811_v21 }
 0x2a8   :  { %v1830_v27 = vsel %vm1682_vm2, %v10891_v40, %v10967_v19  ;;  %v1812_v51 = vsel %vm1682_vm2, %v10962_v26, %v21033_v13  ;;  %v1831_v11 = vsel %vm1682_vm2, %v10967_v19, %v21035_v31  ;;  %v1849_v16 = vsel %vm1682_vm2, %v10901_v33, %v10972_v20  ;;  %v21686_v31 = vld [vmem:[#allocation14_spill] sm:$0xff] }
 0x2a9   :  { %v15829_v29 = vpop.permute.xlu1 %10979  ;;  %v15831_v14 = vpop.permute.xlu0 %10974  ;;  %v2249_v37 = vpack.c.bf16 %v1831_v11, %v1812_v51  ;;  %v2248_v2 = vpack.c.bf16 %v1830_v27, %v1811_v35  ;;  %v21683_v13 = vunpack.i.h.bf16 %v15120_v41  ;;  %v2267_v27 = vpack.c.bf16 %v1849_v16, %v1849_v16 }
 0x2aa   :  { %v21040_v40 = vunpack.i.h.bf16 %v15829_v29  ;;  %v10981_v58 = vunpack.i.l.bf16 %v15829_v29  ;;  %v21034_v26 = vunpack.i.l.bf16 %v15831_v14 }
 0x2ab   :  { %2656 = vmatprep.subr.bf16.mxu1 %v2249_v37 }
 0x2ac   :  { %v138_v19 = vsel %vm120_vm0, %v21683_v13, %v10981_v58  ;;  %2657 = vmatpush1.bf16.msra.mxu1 %v2248_v2  ;;  %v1850_v35 = vsel %vm1682_vm2, %v10972_v20, %v21034_v26  ;;  %v1258_v23 = vsel %vm120_vm0, %v10981_v58, %v21040_v40  ;;  %v21685_v26 = vld [vmem:[#allocation17_spill] sm:$0xff]  ;;  %v2333_v40 = vsel %vm21692_vm15, %v2267_v27, 0 }
 0x2ad   :  { %v15848_v33 = vpop.permute.xlu1 %10989  ;;  %v15850_v51 = vpop.permute.xlu0 %10984  ;;  %v11049_v37 = vpack.i.bf16 %v138_v19, %v15481_v7  ;;  %v2268_v11 = vpack.c.bf16 %v1850_v35, %v1850_v35  ;;  %v2042_v41 = vpack.c.bf16 %v138_v19, %v15390_v52  ;;  %v2041_v22 = vpack.c.bf16 %v21686_v31, %v21685_v26  ;;  %v21687_v35 = vld [vmem:[#allocation8_spill] sm:$0xff] }
 0x2ae   :  { %v21041_v13 = vunpack.i.h.bf16 %v15848_v33  ;;  %v10991_v2 = vunpack.i.l.bf16 %v15848_v33  ;;  %v21042_v20 = vunpack.i.h.bf16 %v15850_v51  ;;  %v10986_v16 = vunpack.i.l.bf16 %v15850_v51  ;;  %v21690_v19 = vld [vmem:[#allocation16_spill] sm:$0xff] }
 0x2af   :  { %11050 = vrot.lane.b32.xlu1 %v11049_v37, %s12435_s28  ;;  %8890 = vmatprep.subr.msk.bf16.mxu1 %vm21684_vm7, %v2268_v11  ;;  %v21688_v9 = vunpack.i.h.bf16 %v21687_v35  ;;  %v21691_v32 = vunpack.i.h.bf16 %v21690_v19  ;;  %v2043_v19 = vpack.c.bf16 %v10981_v58, %v15481_v7  ;;  %v21698_v7 = vld [vmem:[#allocation18_spill] sm:$0xff]  ;;  %v21699_v58 = vld [vmem:[#allocation15_spill] sm:$0xff]  ;;  %vm21706_vm7 = vcmask 1014784  }
 0x2b0   :  { %2675 = vmatprep.subr.bf16.mxu0 %v2042_v41  ;;  %v1261_v37 = vsel %vm196_vm1, %v10986_v16, %v21042_v20  ;;  %2659 = vmatpush1.bf16.msra.mxu1 %v2333_v40  ;;  %v21694_v41 = vmov 0  }
 0x2b1   :  { %v290_v52 = vsel %vm21689_vm9, %v21688_v9, %v10991_v2  ;;  %v214_v43 = vsel %vm196_vm1, %v21691_v32, %v10986_v16  ;;  %2676 = vmatpush1.bf16.msra.mxu0 %v2041_v22  ;;  %v15873_v31 = vpop.permute.xlu1 %1301  ;;  %v15875_v26 = vpop.permute.xlu0 %10994  ;;  %v1264_v9 = vsel %vm21693_vm8, %v10991_v2, %v21041_v13  ;;  %2716 = vmatprep.subr.bf16.mxu1 %v21694_v41  ;;  %v21695_v22 = vunpack.i.l.bf16 %v15253_v12  ;;  %v21696_v13 = vld [vmem:[#allocation7_spill] sm:$0xff]  ;;  %vm21751_vm8 = vmmov %vm21692_vm15 }
 0x2b2   :  { %v11054_v11 = vpack.i.bf16 %v214_v43, %v1258_v23  ;;  %v2061_v35 = vpack.c.bf16 %v290_v52, %v214_v43  ;;  %v21046_v32 = vunpack.i.h.bf16 %v15875_v26  ;;  %v10996_v27 = vunpack.i.l.bf16 %v15875_v26 }
 0x2b3   :  { %v11059_v40 = vpack.i.bf16 %v290_v52, %v1261_v37  ;;  %v1320_v43 = vsel %vm1303_vm3, %v21695_v22, %v10782_v42  ;;  %v1321_v23 = vsel %vm1303_vm3, %v10782_v42, %v15873_v31  ;;  %v21697_v20 = vunpack.i.h.bf16 %v21696_v13  ;;  %2667 = vmatmul.mubr.bf16.vlgmr.msra.gmra.mrb[12].mxu1 %v13490_v34 }
 0x2b4   :  { %11055 = vrot.lane.b32.xlu0 %v11054_v11, %s12435_s28  ;;  %2677 = vmatprep.subr.bf16.mxu0 %v2061_v35  ;;  %v21700_v52 = vpack.c.bf16 %v21698_v7, %v21699_v58  ;;  %v11064_v11 = vpack.i.bf16 %v1320_v43, %v1264_v9  ;;  %v446_v42 = vsel %vm427_vm6, %v10996_v27, %v21046_v32  ;;  %vm21701_vm3 = vcmask 588800  }
 0x2b5   :  { %v445_v57 = vsel %vm427_vm6, %v21697_v20, %v10996_v27  ;;  %11060 = vrot.lane.b32.xlu1 %v11059_v40, %s12435_s28  ;;  %v15898_v37 = vpop.permute.xlu1 %11000  ;;  %2717 = vmatpush1.bf16.msra.mxu1 %v2043_v19  ;;  %v2062_v35 = vpack.c.bf16 %v10991_v2, %v10986_v16  ;;  %v21702_v40 = vld [vmem:[#allocation23_spill] sm:$0xff]  ;;  %v21704_v19 = vld [vmem:[#allocation5_spill] sm:$0xff] }
 0x2b6   :  { %2678 = vmatpush1.bf16.msra.mxu0 %v21700_v52  ;;  %v11069_v12 = vpack.i.bf16 %v445_v57, %v1321_v23  ;;  %v21045_v13 = vunpack.i.h.bf16 %v15898_v37  ;;  %v11002_v20 = vunpack.i.l.bf16 %v15898_v37  ;;  %8894 = vmatprep.mubr.msk.bf16.mxu1 %vm21701_vm3, %v12854_v38  ;;  %v21703_v22 = vunpack.i.h.bf16 %v21702_v40  ;;  %vm21754_vm3 = vmmov %vm21751_vm8 }
 0x2b7   :  { %2718 = vmatprep.subr.bf16.mxu1 %v21694_v41  ;;  %v21705_v23 = vunpack.i.h.bf16 %v21704_v19 }
 0x2b8   :  { %11065 = vrot.lane.b32.xlu0 %v11064_v11, %s12435_s28  ;;  %v524_v9 = vsel %vm506_vm4, %v21703_v22, %v11002_v20  ;;  %v525_v2 = vsel %vm506_vm4, %v11002_v20, %v21045_v13  ;;  %vm21716_vm4 = vcmask 760832  }
 0x2b9   :  { %11070 = vrot.lane.b32.xlu1 %v11069_v12, %s12435_s28  ;;  %v15913_v27 = vpop.permute.xlu1 %11005  ;;  %v11074_v43 = vpack.i.bf16 %v524_v9, %v446_v42  ;;  %2719 = vmatpush1.bf16.msra.mxu1 %v2062_v35 }
 0x2ba   :  { %v11007_v16 = vunpack.i.l.bf16 %v15913_v27  ;;  %v21044_v38 = vunpack.i.h.bf16 %v15913_v27  ;;  %2720 = vmatprep.subr.bf16.mxu1 %v21694_v41 }
 0x2bc   :  { %11075 = vrot.lane.b32.xlu0 %v11074_v43, %s12435_s28  ;;  %v603_v7 = vsel %vm585_vm5, %v21705_v23, %v11007_v16  ;;  %v604_v20 = vsel %vm585_vm5, %v11007_v16, %v21044_v38  ;;  %vm21717_vm5 = vmmov %vm21716_vm4 }
 0x2bd   :  { %v347_v58 = vpop.permute.xlu1 %346  ;;  %v11079_v52 = vpack.i.bf16 %v603_v7, %v525_v2  ;;  %v2100_v40 = vpack.c.bf16 %v604_v20, %v525_v2  ;;  %v2099_v22 = vpack.c.bf16 %v603_v7, %v524_v9 }
 0x2be   :  { %v366_v12 = vsel %vm21706_vm7, %v10872_v18, %v347_v58  ;;  %v2081_v11 = vpack.c.bf16 %v446_v42, %v347_v58 }
 0x2bf   :  { %11080 = vrot.lane.b32.xlu1 %v11079_v52, %s12435_s28  ;;  %v2080_v35 = vpack.c.bf16 %v445_v57, %v366_v12  ;;  %v21714_v52 = vld [vmem:[#allocation21_spill] sm:$0xff] }
 0x2c0   :  { %2721 = vmatpush1.bf16.msra.mxu1 %v2081_v11  ;;  %v21715_v12 = vunpack.i.h.bf16 %v21714_v52 }
 0x2c1   :  { %2679 = vmatprep.subr.bf16.mxu0 %v2080_v35  ;;  %2722 = vmatprep.subr.bf16.mxu1 %v21694_v41  ;;  %v11021_v57 = vpop.permute.xlu1 %11020 }
 0x2c2   :  { %v15933_v43 = vpop.permute.xlu0 %2276  ;;  %2680 = vmatpush1.bf16.msra.mxu0 %v2079_v25  ;;  %v11023_v38 = vunpack.i.h.bf16 %v11021_v57  ;;  %v11022_v32 = vunpack.i.l.bf16 %v11021_v57 }
 0x2c3   :  { %21707 = vst [vmem:[#allocation25_spill] sm:$0xff] %v15933_v43  ;;  %2681 = vmatprep.subr.bf16.mxu0 %v2099_v22  ;;  %v15940_v44 = vadd.f32 %v15538_v6, %v15933_v43  ;;  %v15944_v18 = vadd.f32 %v15547_v54, %v15933_v43  ;;  %v15948_v42 = vadd.f32 %v15504_v63, %v15933_v43  ;;  %v21710_v6 = vld [vmem:[#allocation12_spill] sm:$0xff]  ;;  %v10897_v54 = vunpack.i.h.bf16 %v15636_v46  ;;  %v21713_v63 = vld [vmem:[#allocation11_spill] sm:$0xff] }
 0x2c4   :  { %2723 = vmatpush1.bf16.msra.mxu1 %v2100_v40  ;;  %v15952_v9 = vadd.f32 %v15508_v10, %v15933_v43  ;;  %v21712_v25 = vpack.c.bf16 %v21710_v6, %v21711_v4  ;;  %v15965_v19 = vadd.f32 %v21713_v63, %v15933_v43  ;;  %v15979_v40 = vadd.f32 %v15804_v15, %v15933_v43  ;;  %v21718_v6 = vld [vmem:[#allocation6_spill] sm:$0xff] }
 0x2c5   :  { %21708 = vst [vmem:[#allocation20_spill] sm:$0xff] %v15948_v42  ;;  %2724 = vmatprep.subr.bf16.mxu1 %v21694_v41  ;;  %v21049_v10 = vmax.f32 %v15940_v44, 0.0  ;;  %v21048_v23 = vmax.f32 %v15944_v18, 0.0  ;;  %v21052_v7 = vmax.f32 %v15948_v42, 0.0  ;;  %v760_v63 = vsel %vm743_vm10, %v10896_v55, %v10897_v54  ;;  %v11031_v52 = vpop.permute.xlu1 %11030  ;;  %v21719_v42 = vld [vmem:[#allocation13_spill] sm:$0xff] }
 0x2c6   :  { %21709 = vst [vmem:[#allocation9_spill] sm:$0xff] %v15952_v9  ;;  %v15955_v53 = vpop.permute.xlu0 %11010  ;;  %2682 = vmatpush1.bf16.msra.mxu0 %v21712_v25  ;;  %v21053_v58 = vmax.f32 %v15952_v9, 0.0 }
 0x2c7   :  { %v21050_v2 = vunpack.i.h.bf16 %v15955_v53  ;;  %v11012_v16 = vunpack.i.l.bf16 %v15955_v53  ;;  %v11099_v15 = vpack.i.bf16 %v21048_v23, %v21049_v10 }
 0x2c8   :  { %v11094_v46 = vpack.i.bf16 %v21053_v58, %v21052_v7  ;;  %v2117_v7 = vpack.c.bf16 %v760_v63, %v21719_v42 }
 0x2c9   :  { %v682_v11 = vsel %vm21716_vm4, %v21715_v12, %v11012_v16  ;;  %v683_v35 = vsel %vm21717_vm5, %v11012_v16, %v21050_v2  ;;  %v11033_v16 = vunpack.i.h.bf16 %v11031_v52  ;;  %vm21772_vm4 = vmmov %vm21706_vm7 }
 0x2ca   :  { %v11016_v22 = vpop.permute.xlu0 %11015  ;;  %v11089_v4 = vpack.i.bf16 %v21718_v6, %v683_v35  ;;  %v11084_v25 = vpack.i.bf16 %v682_v11, %v604_v20  ;;  %v15999_v20 = vadd.f32 %v15806_v28, %v15933_v43  ;;  %v2762_v6 = vmax.f32 %v15979_v40, 0.0  ;;  %vm21773_vm5 = vmmov %vm21772_vm4 }
 0x2cb   :  { %v11018_v13 = vunpack.i.h.bf16 %v11016_v22  ;;  %v11017_v12 = vunpack.i.l.bf16 %v11016_v22  ;;  %v11032_v22 = vunpack.i.l.bf16 %v11031_v52  ;;  %v21722_v52 = vunpack.i.h.bf16 %v15648_v48 }
 0x2cc   :  { %11090 = vrot.lane.b32.xlu1 %v11089_v4, %s12435_s28  ;;  %11085 = vrot.lane.b32.xlu0 %v11084_v25, %s12435_s28  ;;  %v841_v25 = vsel %vm822_vm11, %v11022_v32, %v11023_v38 }
 0x2cd   :  { %v762_v55 = vsel %vm743_vm10, %v11017_v12, %v11018_v13  ;;  %v761_v57 = vsel %vm743_vm10, %v10897_v54, %v11017_v12  ;;  %v21720_v13 = vld [vmem:[#allocation22_spill] sm:$0xff]  ;;  %v999_v28 = vsel %vm980_vm13, %v11032_v22, %v11033_v16  ;;  %v21721_v54 = vunpack.i.h.bf16 %v15650_v8 }
 0x2ce   :  { %v11026_v23 = vpop.permute.xlu0 %11025  ;;  %v2118_v4 = vpack.c.bf16 %v761_v57, %v682_v11  ;;  %v2119_v10 = vpack.c.bf16 %v762_v55, %v683_v35  ;;  %v16007_v58 = vadd.f32 %v21720_v13, %v15933_v43  ;;  %v11041_v35 = vpop.permute.xlu1 %11040  ;;  %v21723_v8 = vmax.f32 %v15965_v19, 0.0 }
 0x2cf   :  { %v11028_v2 = vunpack.i.h.bf16 %v11026_v23  ;;  %v11027_v30 = vunpack.i.l.bf16 %v11026_v23  ;;  %v840_v11 = vsel %vm822_vm11, %v21721_v54, %v11022_v32  ;;  %v2763_v23 = vmax.f32 %v15999_v20, 0.0 }
 0x2d0   :  { %v2545_v9 = vpop.f32.mrb[8].mxu0  ;;  %2683 = vmatprep.subr.bf16.mxu0 %v2118_v4  ;;  %11100 = vrot.lane.b32.xlu1 %v11099_v15, %s12420_s30  ;;  %v11104_v32 = vpack.i.bf16 %v21723_v8, %v2762_v6  ;;  %v11043_v57 = vunpack.i.h.bf16 %v11041_v35  ;;  %v21724_v54 = vunpack.i.h.bf16 %v15677_v49  ;;  %vm21729_vm10 = vcmask 490496  }
 0x2d1   :  { %v920_v38 = vsel %vm901_vm12, %v11027_v30, %v11028_v2  ;;  %v16017_v42 = vadd.f32 %v2545_v9, %v15933_v43  ;;  %v2547_v63 = vpop.f32.mrb[9].mxu0  ;;  %11095 = vrot.lane.b32.xlu0 %v11094_v46, %s12420_s30  ;;  %2684 = vmatpush1.bf16.msra.mxu0 %v2117_v7  ;;  %v919_v12 = vsel %vm901_vm12, %v21722_v52, %v11027_v30  ;;  %v2756_v30 = vmax.f32 %v16007_v58, 0.0 }
 0x2d2   :  { %v16028_v2 = vadd.f32 %v2547_v63, %v15933_v43  ;;  %v11036_v16 = vpop.permute.xlu0 %11035  ;;  %v2137_v15 = vpack.c.bf16 %v919_v12, %v840_v11  ;;  %2725 = vmatpush1.bf16.msra.mxu1 %v2119_v10  ;;  %v2549_v9 = vpop.f32.mrb[10].mxu0  ;;  %v2138_v55 = vpack.c.bf16 %v920_v38, %v841_v25  ;;  %v998_v11 = vsel %vm980_vm13, %v21724_v54, %v11032_v22 }
 0x2d3   :  { %v2764_v7 = vmax.f32 %v16017_v42, 0.0  ;;  %v11038_v46 = vunpack.i.h.bf16 %v11036_v16  ;;  %v11037_v48 = vunpack.i.l.bf16 %v11036_v16  ;;  %v2550_v4 = vpop.f32.mrb[11].mxu0  ;;  %2726 = vmatprep.subr.bf16.mxu1 %v21694_v41  ;;  %v11042_v10 = vunpack.i.l.bf16 %v11041_v35 }
 0x2d4   :  { %v2765_v13 = vmax.f32 %v16028_v2, 0.0  ;;  %2685 = vmatprep.subr.bf16.mxu0 %v2137_v15  ;;  %v21725_v63 = vpack.c.bf16 %v15662_v47, %v15667_v45  ;;  %v21726_v52 = vunpack.i.h.bf16 %v15675_v1  ;;  %v21727_v22 = vunpack.i.h.bf16 %v15829_v29 }
 0x2d5   :  { %v11109_v25 = vpack.i.bf16 %v2764_v7, %v2763_v23  ;;  %v1078_v38 = vsel %vm1059_vm14, %v11037_v48, %v11038_v46  ;;  %11105 = vrot.lane.b32.xlu0 %v11104_v32, %s12420_s30  ;;  %v21728_v35 = vunpack.i.h.bf16 %v15850_v51  ;;  %v1157_v9 = vsel %vm21729_vm10, %v11042_v10, %v11043_v57 }
 0x2d6   :  { %2686 = vmatpush1.bf16.msra.mxu0 %v21725_v63  ;;  %v1077_v49 = vsel %vm1059_vm14, %v21726_v52, %v11037_v48  ;;  %v11046_v8 = vpop.permute.xlu0 %11045  ;;  %2727 = vmatpush1.bf16.msra.mxu1 %v2138_v55  ;;  %v2157_v15 = vpack.c.bf16 %v1078_v38, %v999_v28  ;;  %v11114_v47 = vpack.i.bf16 %v2765_v13, %v2756_v30  ;;  %v21730_v29 = vunpack.i.h.bf16 %v15848_v33  ;;  %vm21734_vm14 = vmmov %vm21729_vm10 }
 0x2d7   :  { %v11119_v12 = vpack.i.bf16 %v21728_v35, %v21727_v22  ;;  %v2156_v16 = vpack.c.bf16 %v1077_v49, %v998_v11  ;;  %11110 = vrot.lane.b32.xlu1 %v11109_v25, %s12420_s30  ;;  %v11048_v45 = vunpack.i.h.bf16 %v11046_v8  ;;  %v11047_v1 = vunpack.i.l.bf16 %v11046_v8  ;;  %2728 = vmatprep.subr.bf16.mxu1 %v21694_v41 }
 0x2d8   :  { %v11124_v51 = vpack.i.bf16 %v15873_v31, %v21730_v29  ;;  %vm21731_vm12 = vcmask 261120   ;;  %v21732_v32 = vpack.c.bf16 %v15692_v61, %v15697_v3  ;;  %v21733_v55 = vunpack.i.h.bf16 %v15709_v56 }
 0x2d9   :  { %2687 = vmatprep.subr.bf16.mxu0 %v2156_v16  ;;  %v1236_v28 = vsel %vm21731_vm12, %v11047_v1, %v11048_v45  ;;  %11115 = vrot.lane.b32.xlu0 %v11114_v47, %s12420_s30  ;;  %v21735_v46 = vunpack.i.h.bf16 %v15707_v50  ;;  %vm21736_vm9 = vmmov %vm21731_vm12  ;;  %v21737_v4 = vunpack.i.h.bf16 %v15875_v26  ;;  %v21738_v54 = vunpack.i.h.bf16 %v15898_v37 }
 0x2da   :  { %2688 = vmatpush1.bf16.msra.mxu0 %v21732_v32  ;;  %v1156_v57 = vsel %vm21734_vm14, %v21733_v55, %v11042_v10  ;;  %2729 = vmatpush1.bf16.msra.mxu1 %v2157_v15  ;;  %v2176_v31 = vpack.c.bf16 %v1236_v28, %v1157_v9  ;;  %v21739_v61 = vunpack.i.h.bf16 %v15913_v27  ;;  %v21740_v3 = vunpack.i.h.bf16 %v15955_v53 }
 0x2db   :  { %v1235_v48 = vsel %vm21736_vm9, %v21735_v46, %v11047_v1  ;;  %v11129_v11 = vpack.i.bf16 %v21738_v54, %v21737_v4  ;;  %11120 = vrot.lane.b32.xlu1 %v11119_v12, %s12435_s28  ;;  %2730 = vmatprep.subr.bf16.mxu1 %v21694_v41  ;;  %v21741_v56 = vpack.c.bf16 %v15723_v60, %v15728_v62  ;;  %v10977_v22 = vunpack.i.h.bf16 %v15831_v14 }
 0x2dc   :  { %v2175_v33 = vpack.c.bf16 %v1235_v48, %v1156_v57  ;;  %v11134_v50 = vpack.i.bf16 %v21740_v3, %v21739_v61  ;;  %v21742_v8 = vunpack.i.l.bf16 %v15737_v17  ;;  %v21743_v17 = vunpack.i.l.bf16 %v15739_v0 }
 0x2dd   :  { %11125 = vrot.lane.b32.xlu0 %v11124_v51, %s12435_s28  ;;  %v21744_v46 = vunpack.i.l.bf16 %v15765_v24  ;;  %v21760_v2 = vmax.f32 %v15965_v19, 0.0  ;;  %vm3709_vm10 = vcmask 539648   ;;  %vm3254_vm12 = vcmask 982016  }
 0x2de   :  { %2689 = vmatprep.subr.bf16.mxu0 %v2175_v33  ;;  %2731 = vmatpush1.bf16.msra.mxu1 %v2176_v31  ;;  %v1699_v51 = vsel %vm1682_vm2, %v21743_v17, %v10977_v22  ;;  %v21745_v33 = vunpack.i.l.bf16 %v15767_v59  ;;  %vm3606_vm14 = vcmask 457728   ;;  %vm3535_vm9 = vcmask 474112  }
 0x2df   :  { %2690 = vmatpush1.bf16.msra.mxu0 %v21741_v56  ;;  %11130 = vrot.lane.b32.xlu1 %v11129_v11, %s12435_s28 }
 0x2e0   :  { %2732 = vmatprep.subr.bf16.mxu1 %v21694_v41 }
 0x2e1   :  { %11135 = vrot.lane.b32.xlu0 %v11134_v50, %s12435_s28  ;;  %s12441_s28 = smov 58  }
 0x30f   :  { %v2586_v26 = vpop.f32.mrb[8].mxu1 }
 0x310   :  { %v16092_v37 = vadd.f32 %v2586_v26, %v15933_v43  ;;  %v2588_v27 = vpop.f32.mrb[9].mxu1  ;;  %v21746_v26 = vunpack.i.l.bf16 %v15787_v5 }
 0x311   :  { %v16095_v53 = vadd.f32 %v2588_v27, %v15933_v43  ;;  %v2590_v10 = vpop.f32.mrb[10].mxu1 }
 0x312   :  { %v2766_v25 = vmax.f32 %v16092_v37, 0.0  ;;  %v2591_v60 = vpop.f32.mrb[11].mxu1  ;;  %v21747_v10 = vunpack.i.l.bf16 %v15785_v36 }
 0x313   :  { %v2767_v62 = vmax.f32 %v16095_v53, 0.0 }
 0x315   :  { %v11139_v38 = vpack.i.bf16 %v2767_v62, %v2766_v25 }
 0x317   :  { %11140 = vrot.lane.b32.xlu1 %v11139_v38, %s12420_s30 }
 0x321   :  { %v16104_v63 = vpop.permute.xlu1 %11050 }
 0x322   :  { %v11053_v52 = vunpack.i.h.bf16 %v16104_v63  ;;  %v11052_v49 = vunpack.i.l.bf16 %v16104_v63 }
 0x324   :  { %v1718_v16 = vsel %vm1682_vm2, %v21742_v8, %v11053_v52  ;;  %v1700_v1 = vsel %vm1682_vm2, %v10977_v22, %v11052_v49 }
 0x325   :  { %v2193_v57 = vpack.c.bf16 %v1718_v16, %v1699_v51 }
 0x326   :  { %v16109_v35 = vpop.permute.xlu0 %11055 }
 0x327   :  { %v11057_v12 = vunpack.i.l.bf16 %v16109_v35  ;;  %v16115_v15 = vpop.permute.xlu1 %11060  ;;  %v11058_v9 = vunpack.i.h.bf16 %v16109_v35 }
 0x328   :  { %v11063_v47 = vunpack.i.h.bf16 %v16115_v15  ;;  %v11062_v45 = vunpack.i.l.bf16 %v16115_v15 }
 0x329   :  { %v1719_v29 = vsel %vm1682_vm2, %v11053_v52, %v11057_v12  ;;  %v1737_v31 = vsel %vm1682_vm2, %v21745_v33, %v11058_v9 }
 0x32a   :  { %v16129_v28 = vpop.permute.xlu0 %11065  ;;  %v2194_v32 = vpack.c.bf16 %v1719_v29, %v1700_v1  ;;  %v1756_v48 = vsel %vm1682_vm2, %v21744_v46, %v11063_v47  ;;  %v1738_v24 = vsel %vm1682_vm2, %v11058_v9, %v11062_v45 }
 0x32b   :  { %v11067_v55 = vunpack.i.l.bf16 %v16129_v28  ;;  %v16138_v4 = vpop.permute.xlu1 %11070  ;;  %v11068_v0 = vunpack.i.h.bf16 %v16129_v28  ;;  %v2212_v56 = vpack.c.bf16 %v1756_v48, %v1737_v31  ;;  %v21749_v31 = vunpack.i.l.bf16 %v15831_v14 }
 0x32c   :  { %2691 = vmatprep.subr.bf16.mxu0 %v2194_v32  ;;  %v11073_v54 = vunpack.i.h.bf16 %v16138_v4  ;;  %v11072_v11 = vunpack.i.l.bf16 %v16138_v4  ;;  %v21748_v32 = vunpack.i.l.bf16 %v15809_v39  ;;  %v21750_v39 = vunpack.i.l.bf16 %v15811_v21 }
 0x32d   :  { %2692 = vmatpush1.bf16.msra.mxu0 %v2193_v57  ;;  %v1757_v59 = vsel %vm1682_vm2, %v11063_v47, %v11067_v55  ;;  %v1775_v60 = vsel %vm1682_vm2, %v21747_v10, %v11068_v0 }
 0x32e   :  { %v16149_v61 = vpop.permute.xlu0 %11075  ;;  %v2213_v3 = vpack.c.bf16 %v1757_v59, %v1738_v24  ;;  %v1794_v27 = vsel %vm1682_vm2, %v21746_v26, %v11073_v54  ;;  %v1776_v38 = vsel %vm1682_vm2, %v11068_v0, %v11072_v11 }
 0x32f   :  { %v11077_v50 = vunpack.i.l.bf16 %v16149_v61  ;;  %v2231_v8 = vpack.c.bf16 %v1794_v27, %v1775_v60  ;;  %v11078_v9 = vunpack.i.h.bf16 %v16149_v61 }
 0x330   :  { %2693 = vmatprep.subr.bf16.mxu0 %v2213_v3 }
 0x331   :  { %2694 = vmatpush1.bf16.msra.mxu0 %v2212_v56  ;;  %v1795_v52 = vsel %vm1682_vm2, %v11073_v54, %v11077_v50  ;;  %v16164_v5 = vpop.permute.xlu1 %11080  ;;  %v1813_v54 = vsel %vm1682_vm2, %v21750_v39, %v11078_v9 }
 0x332   :  { %v2232_v22 = vpack.c.bf16 %v1795_v52, %v1776_v38  ;;  %v11083_v36 = vunpack.i.h.bf16 %v16164_v5  ;;  %v11082_v16 = vunpack.i.l.bf16 %v16164_v5 }
 0x334   :  { %2695 = vmatprep.subr.bf16.mxu0 %v2232_v22  ;;  %v1832_v57 = vsel %vm1682_vm2, %v21748_v32, %v11083_v36  ;;  %v1814_v46 = vsel %vm1682_vm2, %v11078_v9, %v11082_v16  ;;  %v21752_v32 = vmax.f32 %v15940_v44, 0.0 }
 0x335   :  { %2696 = vmatpush1.bf16.msra.mxu0 %v2231_v8  ;;  %v2250_v56 = vpack.c.bf16 %v1832_v57, %v1813_v54 }
 0x33e   :  { %v16169_v47 = vpop.permute.xlu1 %11090  ;;  %v16171_v1 = vpop.permute.xlu0 %11085 }
 0x33f   :  { %v11092_v29 = vunpack.i.l.bf16 %v16169_v47  ;;  %v11088_v17 = vunpack.i.h.bf16 %v16171_v1  ;;  %v11087_v51 = vunpack.i.l.bf16 %v16171_v1 }
 0x341   :  { %v1833_v48 = vsel %vm1682_vm2, %v11083_v36, %v11087_v51  ;;  %v1852_v33 = vsel %vm1682_vm2, %v11088_v17, %v11092_v29  ;;  %v1851_v0 = vsel %vm1682_vm2, %v21749_v31, %v11088_v17  ;;  %v11093_v17 = vunpack.i.h.bf16 %v16169_v47 }
 0x342   :  { %v16194_v24 = vpop.permute.xlu1 %11100  ;;  %v2251_v59 = vpack.c.bf16 %v1833_v48, %v1814_v46  ;;  %v2270_v10 = vpack.c.bf16 %v1852_v33, %v1852_v33  ;;  %v2269_v60 = vpack.c.bf16 %v1851_v0, %v1851_v0  ;;  %v21753_v46 = vmax.f32 %v15944_v18, 0.0 }
 0x343   :  { %v16196_v3 = vpop.permute.xlu0 %11095  ;;  %v11103_v26 = vunpack.i.h.bf16 %v16194_v24  ;;  %v11102_v27 = vunpack.i.l.bf16 %v16194_v24 }
 0x344   :  { %2697 = vmatprep.subr.bf16.mxu0 %v2251_v59  ;;  %v2339_v52 = vsel %vm21751_vm8, %v2269_v60, 0 }
 0x345   :  { %2698 = vmatpush1.bf16.msra.mxu0 %v2250_v56  ;;  %v2836_v21 = vsel %vm120_vm0, %v11102_v27, %v11103_v26 }
 0x346   :  { %8892 = vmatprep.subr.msk.bf16.mxu0 %vm21692_vm15, %v2270_v10  ;;  %v16216_v57 = vmax.f32 %v21752_v32, %v2836_v21  ;;  %vm21779_vm15 = vcmask 490496  }
 0x347   :  { %v16201_v14 = vpop.permute.xlu0 %11105  ;;  %vm21782_vm8 = vmmov %vm21779_vm15 }
 0x348   :  { %v11107_v38 = vunpack.i.l.bf16 %v16201_v14  ;;  %v11108_v31 = vunpack.i.h.bf16 %v16201_v14 }
 0x349   :  { %v16208_v22 = vpop.permute.xlu1 %11110  ;;  %2700 = vmatpush1.bf16.msra.mxu0 %v2339_v52 }
 0x34a   :  { %v2837_v8 = vsel %vm120_vm0, %v11103_v26, %v11107_v38  ;;  %v11113_v36 = vunpack.i.h.bf16 %v16208_v22  ;;  %v11112_v9 = vunpack.i.l.bf16 %v16208_v22 }
 0x34b   :  { %v16220_v48 = vmax.f32 %v21753_v46, %v2837_v8  ;;  %v16222_v33 = vpop.permute.xlu0 %11115 }
 0x34c   :  { %v16226_v0 = vsel %vm120_vm0, %v11107_v38, %v11112_v9  ;;  %v2839_v39 = vsel %vm120_vm0, %v11112_v9, %v11113_v36  ;;  %v11117_v54 = vunpack.i.l.bf16 %v16222_v33  ;;  %2708 = vmatmul.mubr.bf16.vlgmr.msra.gmra.mrb[16].mxu0 %v13490_v34  ;;  %v1701_v38 = vsel %vm1682_vm2, %v11052_v49, %v11093_v17 }
 0x34d   :  { %v11121_v44 = vpop.permute.xlu1 %11120  ;;  %v11154_v18 = vpack.i.bf16 %v16220_v48, %v16216_v57  ;;  %v16240_v26 = vmax.f32 %v2763_v23, %v2839_v39  ;;  %v11118_v1 = vunpack.i.h.bf16 %v16222_v33 }
 0x34e   :  { %v2832_v59 = vsel %vm120_vm0, %v11117_v54, %v11108_v31  ;;  %v11122_v56 = vunpack.i.l.bf16 %v11121_v44  ;;  %v11123_v52 = vunpack.i.h.bf16 %v11121_v44 }
 0x34f   :  { %v16244_v10 = vmax.f32 %v2756_v30, %v2832_v59  ;;  %v2627_v60 = vpop.f32.mrb[12].mxu0  ;;  %v11126_v21 = vpop.permute.xlu0 %11125  ;;  %11155 = vrot.lane.b32.xlu1 %v11154_v18, %s21486_s18 }
 0x350   :  { %v1720_v8 = vsel %vm1682_vm2, %v11057_v12, %v11122_v56  ;;  %v2629_v20 = vpop.f32.mrb[13].mxu0  ;;  %v11127_v23 = vunpack.i.l.bf16 %v11126_v21  ;;  %v11128_v46 = vunpack.i.h.bf16 %v11126_v21  ;;  %v1739_v35 = vsel %vm1682_vm2, %v11062_v45, %v11123_v52 }
 0x351   :  { %v11131_v9 = vpop.permute.xlu1 %11130  ;;  %v2195_v32 = vpack.c.bf16 %v1720_v8, %v1701_v38  ;;  %v11164_v58 = vpack.i.bf16 %v16244_v10, %v16240_v26  ;;  %v2631_v30 = vpop.f32.mrb[14].mxu0  ;;  %v2630_v5 = vadd.f32 %v2629_v20, %v15933_v43 }
 0x352   :  { %v11132_v39 = vunpack.i.l.bf16 %v11131_v9  ;;  %v2632_v54 = vpop.f32.mrb[15].mxu0  ;;  %v1758_v63 = vsel %vm1682_vm2, %v11067_v55, %v11127_v23  ;;  %v1777_v44 = vsel %vm1682_vm2, %v11072_v11, %v11128_v46  ;;  %v11133_v18 = vunpack.i.h.bf16 %v11131_v9 }
 0x353   :  { %2733 = vmatpush1.bf16.msra.mxu1 %v2195_v32  ;;  %v11136_v49 = vpop.permute.xlu0 %11135  ;;  %11165 = vrot.lane.b32.xlu1 %v11164_v58, %s21486_s18  ;;  %v2214_v17 = vpack.c.bf16 %v1758_v63, %v1739_v35  ;;  %v21756_v58 = vld [vmem:[#allocation9_spill] sm:$0xff] }
 0x354   :  { %2734 = vmatprep.subr.bf16.mxu1 %v21694_v41  ;;  %v11138_v12 = vunpack.i.h.bf16 %v11136_v49  ;;  %v1796_v28 = vsel %vm1682_vm2, %v11077_v50, %v11132_v39  ;;  %v11137_v55 = vunpack.i.l.bf16 %v11136_v49  ;;  %v1815_v11 = vsel %vm1682_vm2, %v11082_v16, %v11133_v18 }
 0x355   :  { %v2233_v15 = vpack.c.bf16 %v1796_v28, %v1777_v44  ;;  %v11098_v16 = vunpack.i.h.bf16 %v16196_v3  ;;  %v21757_v24 = vmax.f32 %v21756_v58, 0.0 }
 0x356   :  { %v1853_v45 = vsel %vm1682_vm2, %v11092_v29, %v11138_v12  ;;  %v1834_v4 = vsel %vm1682_vm2, %v11087_v51, %v11137_v55  ;;  %v2628_v29 = vadd.f32 %v2627_v60, %v15933_v43  ;;  %v11097_v51 = vunpack.i.l.bf16 %v16196_v3 }
 0x357   :  { %2735 = vmatpush1.bf16.msra.mxu1 %v2214_v17  ;;  %v2271_v61 = vpack.c.bf16 %v1853_v45, %v1853_v45  ;;  %v2252_v50 = vpack.c.bf16 %v1834_v4, %v1815_v11  ;;  %v2769_v60 = vmax.f32 %v2630_v5, 0.0  ;;  %v2835_v3 = vsel %vm120_vm0, %v11098_v16, %v11102_v27  ;;  %v21758_v27 = vld [vmem:[#allocation20_spill] sm:$0xff] }
 0x358   :  { %2736 = vmatprep.subr.bf16.mxu1 %v21694_v41  ;;  %v2768_v52 = vmax.f32 %v2628_v29, 0.0  ;;  %v2834_v9 = vsel %vm120_vm0, %v11097_v51, %v11098_v16  ;;  %v2872_v30 = vmax.f32 %v21757_v24, %v2835_v3  ;;  %v21759_v46 = vmax.f32 %v21758_v27, 0.0 }
 0x359   :  { %v2345_v47 = vsel %vm21754_vm3, %v2271_v61, 0  ;;  %v2833_v63 = vsel %vm120_vm0, %v11108_v31, %v11097_v51  ;;  %vm3186_vm2 = vcmask 998400   ;;  %vm21791_vm3 = vmmov %vm21772_vm4 }
 0x35a   :  { %v2871_v39 = vmax.f32 %v21759_v46, %v2834_v9  ;;  %v11144_v54 = vpack.i.bf16 %v2769_v60, %v2768_v52 }
 0x35b   :  { %2737 = vmatpush1.bf16.msra.mxu1 %v2233_v15 }
 0x35c   :  { %2738 = vmatprep.subr.bf16.mxu1 %v21694_v41  ;;  %v11149_v49 = vpack.i.bf16 %v2872_v30, %v2871_v39 }
 0x35f   :  { %2739 = vmatpush1.bf16.msra.mxu1 %v2252_v50 }
 0x360   :  { %2740 = vmatprep.subr.bf16.mxu1 %v21694_v41 }
 0x363   :  { %2741 = vmatpush1.bf16.msra.mxu1 %v2345_v47 }
 0x366   :  { %2749 = vmatmul.mubr.bf16.vlgmr.msra.gmra.mrb[16].mxu1 %v13490_v34  ;;  %v2840_v34 = vsel %vm120_vm0, %v11113_v36, %v11118_v1 }
 0x367   :  { %v16307_v22 = vmax.f32 %v2764_v7, %v2840_v34  ;;  %v2870_v7 = vmax.f32 %v21760_v2, %v2833_v63 }
 0x386   :  { %v2668_v59 = vpop.f32.mrb[12].mxu1 }
 0x387   :  { %v16289_v56 = vadd.f32 %v2668_v59, %v15933_v43  ;;  %v16291_v21 = vpop.f32.mrb[13].mxu1 }
 0x388   :  { %v2672_v38 = vpop.f32.mrb[14].mxu1 }
 0x389   :  { %21755 = vst [vmem:[#allocation24_spill] sm:$0xff] %v16289_v56  ;;  %v11141_v33 = vpop.permute.xlu1 %11140  ;;  %v21055_v8 = vmax.f32 %v16289_v56, 0.0  ;;  %v2673_v23 = vpop.f32.mrb[15].mxu1 }
 0x38a   :  { %v11142_v20 = vunpack.i.l.bf16 %v11141_v33  ;;  %v11143_v35 = vunpack.i.h.bf16 %v11141_v33 }
 0x38b   :  { %2822 = vrot.lane.b32.xlu0 %v21055_v8, %s12420_s30 }
 0x38c   :  { %v2841_v32 = vsel %vm120_vm0, %v11118_v1, %v11142_v20  ;;  %v2842_v17 = vsel %vm120_vm0, %v11142_v20, %v11143_v35 }
 0x38d   :  { %v16311_v36 = vmax.f32 %v2765_v13, %v2841_v32  ;;  %v16329_v13 = vmax.f32 %v2762_v6, %v16226_v0  ;;  %v16340_v6 = vmax.f32 %v2766_v25, %v2842_v17 }
 0x38f   :  { %v11169_v42 = vpack.i.bf16 %v16311_v36, %v16307_v22  ;;  %11145 = vrot.lane.b32.xlu0 %v11144_v54, %s12420_s30  ;;  %v11159_v14 = vpack.i.bf16 %v16329_v13, %v2870_v7 }
 0x391   :  { %11170 = vrot.lane.b32.xlu1 %v11169_v42, %s21486_s18 }
 0x393   :  { %11150 = vrot.lane.b32.xlu0 %v11149_v49, %s21486_s18 }
 0x397   :  { %11160 = vrot.lane.b32.xlu0 %v11159_v14, %s21486_s18 }
 0x3c1   :  { %v11156_v28 = vpop.permute.xlu1 %11155 }
 0x3c2   :  { %v11157_v45 = vunpack.i.l.bf16 %v11156_v28  ;;  %v11158_v34 = vunpack.i.h.bf16 %v11156_v28 }
 0x3c4   :  { %v2949_v33 = vsel %vm427_vm6, %v11157_v45, %v11158_v34 }
 0x3c5   :  { %v11166_v3 = vpop.permute.xlu1 %11165 }
 0x3c6   :  { %v11167_v54 = vunpack.i.l.bf16 %v11166_v3 }
 0x3fd   :  { %v16334_v31 = vpop.permute.xlu0 %2822 }
 0x3fe   :  { %21761 = vst [vmem:[#allocation26_spill] sm:$0xff] %v16334_v31 }
 0x401   :  { %v11146_v12 = vpop.permute.xlu0 %11145 }
 0x402   :  { %v11148_v19 = vunpack.i.h.bf16 %v11146_v12  ;;  %v11147_v44 = vunpack.i.l.bf16 %v11146_v12 }
 0x403   :  { %v11171_v14 = vpop.permute.xlu1 %11170 }
 0x404   :  { %v2843_v40 = vsel %vm120_vm0, %v11143_v35, %v11147_v44  ;;  %v2845_v0 = vsel %vm120_vm0, %v11148_v19, %v16334_v31  ;;  %v2844_v55 = vsel %vm120_vm0, %v11147_v44, %v11148_v19 }
 0x405   :  { %v16347_v18 = vmax.f32 %v2767_v62, %v2843_v40  ;;  %v11151_v15 = vpop.permute.xlu0 %11150  ;;  %v16351_v50 = vmax.f32 %v2769_v60, %v2845_v0  ;;  %v16353_v37 = vmax.f32 %v2768_v52, %v2844_v55  ;;  %v16378_v52 = vmax.f32 %v16216_v57, %v2949_v33 }
 0x406   :  { %v11153_v4 = vunpack.i.h.bf16 %v11151_v15  ;;  %v11152_v11 = vunpack.i.l.bf16 %v11151_v15 }
 0x407   :  { %v11174_v61 = vpack.i.bf16 %v16347_v18, %v16340_v6  ;;  %21762 = vst [vmem:[#allocation19_spill] sm:$0xff] %v16351_v50  ;;  %v11179_v51 = vpack.i.bf16 %v16351_v50, %v16353_v37 }
 0x408   :  { %v2948_v25 = vsel %vm427_vm6, %v11153_v4, %v11157_v45  ;;  %v2947_v47 = vsel %vm427_vm6, %v11152_v11, %v11153_v4 }
 0x409   :  { %v16357_v1 = vmax.f32 %v2872_v30, %v2948_v25  ;;  %v16359_v53 = vmax.f32 %v2871_v39, %v2947_v47  ;;  %11175 = vrot.lane.b32.xlu0 %v11174_v61, %s21486_s18  ;;  %v11161_v62 = vpop.permute.xlu0 %11160  ;;  %v11168_v30 = vunpack.i.h.bf16 %v11166_v3 }
 0x40a   :  { %v11162_v29 = vunpack.i.l.bf16 %v11161_v62  ;;  %v11163_v20 = vunpack.i.h.bf16 %v11161_v62 }
 0x40b   :  { %v11194_v5 = vpack.i.bf16 %v16357_v1, %v16359_v53 }
 0x40c   :  { %v2946_v16 = vsel %vm427_vm6, %v11162_v29, %v11152_v11  ;;  %v2950_v23 = vsel %vm427_vm6, %v11158_v34, %v11163_v20  ;;  %v2945_v27 = vsel %vm427_vm6, %v11168_v30, %v11162_v29  ;;  %v2951_v63 = vsel %vm427_vm6, %v11163_v20, %v11167_v54 }
 0x40d   :  { %v16367_v59 = vmax.f32 %v2870_v7, %v2946_v16  ;;  %11195 = vrot.lane.b32.xlu1 %v11194_v5, %s12419_s29  ;;  %11180 = vrot.lane.b32.xlu0 %v11179_v51, %s21486_s18  ;;  %v16393_v32 = vmax.f32 %v16220_v48, %v2950_v23  ;;  %v16403_v39 = vmax.f32 %v16244_v10, %v2945_v27 }
 0x40e   :  { %v16415_v10 = vmax.f32 %v16329_v13, %v2951_v63  ;;  %v11172_v13 = vunpack.i.l.bf16 %v11171_v14 }
 0x40f   :  { %v11184_v38 = vpack.i.bf16 %v16359_v53, %v16367_v59  ;;  %v11199_v60 = vpack.i.bf16 %v16367_v59, %v16378_v52  ;;  %21764 = vst [vmem:[#allocation14_spill] sm:$0xff] %v16393_v32  ;;  %v11229_v46 = vpack.i.bf16 %v16393_v32, %v16378_v52  ;;  %v11274_v48 = vpack.i.bf16 %v16357_v1, %v16403_v39 }
 0x410   :  { %21765 = vst [vmem:[#allocation8_spill] sm:$0xff] %v16415_v10  ;;  %v11294_v42 = vpack.i.bf16 %v16415_v10, %v16393_v32  ;;  %v11319_v12 = vpack.i.bf16 %v16367_v59, %v16415_v10  ;;  %v2952_v17 = vsel %vm427_vm6, %v11167_v54, %v11172_v13 }
 0x411   :  { %11205 = vrot.lane.b32.xlu1 %v11194_v5, %s12427_s23  ;;  %11185 = vrot.lane.b32.xlu0 %v11184_v38, %s12437_s0  ;;  %v16433_v19 = vmax.f32 %v16240_v26, %v2952_v17  ;;  %v11173_v26 = vunpack.i.h.bf16 %v11171_v14 }
 0x413   :  { %21767 = vst [vmem:[#allocation7_spill] sm:$0xff] %v16433_v19  ;;  %v11329_v44 = vpack.i.bf16 %v16433_v19, %v16403_v39  ;;  %v16443_v28 = vpack.i.bf16 %v16433_v19, %v16415_v10  ;;  %v2953_v0 = vsel %vm427_vm6, %v11172_v13, %v11173_v26 }
 0x414   :  { %v16454_v45 = vmax.f32 %v16307_v22, %v2953_v0 }
 0x415   :  { %11215 = vrot.lane.b32.xlu1 %v11194_v5, %s12438_s2  ;;  %11190 = vrot.lane.b32.xlu0 %v11184_v38, %s12439_s21 }
 0x416   :  { %21768 = vst [vmem:[#allocation18_spill] sm:$0xff] %v16454_v45  ;;  %v11389_v29 = vpack.i.bf16 %v16454_v45, %v16433_v19 }
 0x419   :  { %11225 = vrot.lane.b32.xlu1 %v11194_v5, %s12429_s27  ;;  %11200 = vrot.lane.b32.xlu0 %v11199_v60, %s12419_s29 }
 0x41d   :  { %11235 = vrot.lane.b32.xlu1 %v11194_v5, %s12440_s26  ;;  %11210 = vrot.lane.b32.xlu0 %v11199_v60, %s12427_s23 }
 0x41f   :  { %v16388_v57 = vpop.f32.mrb[16].mxu0 }
 0x420   :  { %v16390_v9 = vpop.f32.mrb[17].mxu0 }
 0x421   :  { %21763 = vst [vmem:[#allocation17_spill] sm:$0xff] %v16390_v9  ;;  %v2713_v58 = vpop.f32.mrb[18].mxu0  ;;  %11245 = vrot.lane.b32.xlu1 %v11194_v5, %s12432_s20  ;;  %11220 = vrot.lane.b32.xlu0 %v11199_v60, %s12438_s2 }
 0x422   :  { %v2714_v24 = vpop.f32.mrb[19].mxu0 }
 0x425   :  { %11255 = vrot.lane.b32.xlu1 %v11194_v5, %s12433_s24  ;;  %11230 = vrot.lane.b32.xlu0 %v11229_v46, %s12429_s27 }
 0x429   :  { %11265 = vrot.lane.b32.xlu1 %v11194_v5, %s12441_s28  ;;  %11240 = vrot.lane.b32.xlu0 %v11229_v46, %s12440_s26 }
 0x42d   :  { %11275 = vrot.lane.b32.xlu1 %v11274_v48, %s12437_s0  ;;  %11250 = vrot.lane.b32.xlu0 %v11229_v46, %s12432_s20 }
 0x431   :  { %11285 = vrot.lane.b32.xlu1 %v11229_v46, %s12437_s0  ;;  %11260 = vrot.lane.b32.xlu0 %v11229_v46, %s12433_s24 }
 0x435   :  { %11290 = vrot.lane.b32.xlu1 %v11229_v46, %s12439_s21  ;;  %11270 = vrot.lane.b32.xlu0 %v11229_v46, %s12441_s28 }
 0x439   :  { %v16421_v2 = vpop.f32.mrb[16].mxu1  ;;  %11295 = vrot.lane.b32.xlu1 %v11294_v42, %s12419_s29  ;;  %11280 = vrot.lane.b32.xlu0 %v11274_v48, %s12439_s21 }
 0x43a   :  { %21766 = vst [vmem:[#allocation16_spill] sm:$0xff] %v16421_v2  ;;  %v2752_v7 = vpop.f32.mrb[17].mxu1 }
 0x43b   :  { %v2753_v49 = vpop.f32.mrb[18].mxu1 }
 0x43c   :  { %v2754_v35 = vpop.f32.mrb[19].mxu1 }
 0x43d   :  { %11300 = vrot.lane.b32.xlu1 %v11294_v42, %s12427_s23  ;;  %11305 = vrot.lane.b32.xlu0 %v11294_v42, %s12438_s2 }
 0x441   :  { %11320 = vrot.lane.b32.xlu1 %v11319_v12, %s12433_s24  ;;  %11310 = vrot.lane.b32.xlu0 %v11319_v12, %s12429_s27 }
 0x445   :  { %11325 = vrot.lane.b32.xlu1 %v11319_v12, %s12441_s28  ;;  %11315 = vrot.lane.b32.xlu0 %v11319_v12, %s12432_s20 }
 0x449   :  { %11330 = vrot.lane.b32.xlu1 %v11329_v44, %s12419_s29  ;;  %11340 = vrot.lane.b32.xlu0 %v11329_v44, %s12427_s23 }
 0x44d   :  { %11335 = vrot.lane.b32.xlu1 %v16443_v28, %s12440_s26  ;;  %11350 = vrot.lane.b32.xlu0 %v11329_v44, %s12429_s27 }
 0x451   :  { %11345 = vrot.lane.b32.xlu1 %v11329_v44, %s12438_s2 }
 0x455   :  { %11355 = vrot.lane.b32.xlu1 %v11329_v44, %s12433_s24 }
 0x459   :  { %11360 = vrot.lane.b32.xlu1 %v11329_v44, %s12441_s28 }
 0x47b   :  { %v11176_v40 = vpop.permute.xlu0 %11175 }
 0x47c   :  { %v11177_v55 = vunpack.i.l.bf16 %v11176_v40  ;;  %v11178_v38 = vunpack.i.h.bf16 %v11176_v40 }
 0x47e   :  { %v2954_v15 = vsel %vm427_vm6, %v11173_v26, %v11177_v55  ;;  %v2955_v27 = vsel %vm427_vm6, %v11177_v55, %v11178_v38 }
 0x47f   :  { %v16457_v4 = vmax.f32 %v16311_v36, %v2954_v15  ;;  %v11196_v11 = vpop.permute.xlu1 %11195  ;;  %v16459_v61 = vpop.permute.xlu0 %11180 }
 0x480   :  { %21769 = vst [vmem:[#allocation15_spill] sm:$0xff] %v16459_v61  ;;  %v21056_v5 = vunpack.i.l.bf16 %v16459_v61  ;;  %v11198_v16 = vunpack.i.h.bf16 %v11196_v11  ;;  %v11197_v51 = vunpack.i.l.bf16 %v11196_v11 }
 0x481   :  { %v16463_v25 = vpack.i.bf16 %v16457_v4, %v16454_v45 }
 0x482   :  { %v2956_v23 = vsel %vm427_vm6, %v11178_v38, %v21056_v5  ;;  %v3054_v3 = vsel %vm196_vm1, %v11197_v51, %v11198_v16 }
 0x483   :  { %v16465_v47 = vpop.permute.xlu1 %11205  ;;  %11370 = vrot.lane.b32.xlu0 %v16463_v25, %s12427_s23  ;;  %11365 = vrot.lane.b32.xlu1 %v16463_v25, %s12419_s29  ;;  %v16471_v22 = vpop.permute.xlu0 %11185  ;;  %v16523_v42 = vmax.f32 %v16347_v18, %v2956_v23  ;;  %v16534_v13 = vpack.c.bf16 %v3054_v3, %v16359_v53 }
 0x484   :  { %v11208_v12 = vunpack.i.h.bf16 %v16465_v47  ;;  %v11207_v17 = vunpack.i.l.bf16 %v16465_v47 }
 0x485   :  { %21771 = vst [vmem:[#allocation5_spill] sm:$0xff] %v16523_v42 }
 0x487   :  { %v11216_v62 = vpop.permute.xlu1 %11215  ;;  %11385 = vrot.lane.b32.xlu0 %v16463_v25, %s12440_s26  ;;  %11375 = vrot.lane.b32.xlu1 %v16463_v25, %s12438_s2  ;;  %v16477_v36 = vpop.permute.xlu0 %11190 }
 0x488   :  { %v11218_v49 = vunpack.i.h.bf16 %v11216_v62  ;;  %v11217_v14 = vunpack.i.l.bf16 %v11216_v62 }
 0x48a   :  { %v16559_v0 = vsel %vm3186_vm2, %v11217_v14, %v11218_v49 }
 0x48b   :  { %v16482_v34 = vpop.permute.xlu1 %11225  ;;  %11390 = vrot.lane.b32.xlu0 %v11389_v29, %s12432_s20  ;;  %11380 = vrot.lane.b32.xlu1 %v16463_v25, %s12429_s27  ;;  %v16487_v33 = vpop.permute.xlu0 %11200 }
 0x48c   :  { %v21059_v60 = vunpack.i.h.bf16 %v16487_v33  ;;  %v21062_v20 = vunpack.i.l.bf16 %v16487_v33  ;;  %v16513_v46 = vunpack.i.l.bf16 %v16482_v34 }
 0x48e   :  { %v16504_v24 = vsel %vm196_vm1, %v21059_v60, %v11197_v51  ;;  %v16509_v30 = vsel %vm196_vm1, %v11198_v16, %v21062_v20  ;;  %v16586_v16 = vsel %vm21773_vm5, %v11207_v17, %v11208_v12  ;;  %vm21810_vm5 = vmmov %vm21782_vm8 }
 0x48f   :  { %v16495_v58 = vpop.permute.xlu1 %11235  ;;  %11405 = vrot.lane.b32.xlu0 %v16443_v28, %s12437_s0  ;;  %11395 = vrot.lane.b32.xlu1 %v16463_v25, %s12433_s24  ;;  %v16516_v54 = vpop.permute.xlu0 %11210  ;;  %v16520_v63 = vpack.c.bf16 %v16504_v24, %v16367_v59  ;;  %v16527_v7 = vpack.c.bf16 %v16509_v30, %v16357_v1  ;;  %v16537_v59 = vmax.f32 %v16340_v6, %v2955_v27 }
 0x490   :  { %v21063_v48 = vunpack.i.l.bf16 %v16495_v58  ;;  %v21060_v18 = vunpack.i.l.bf16 %v16516_v54  ;;  %v21058_v53 = vunpack.i.h.bf16 %v16516_v54  ;;  %v16596_v23 = vpack.c.bf16 %v16559_v0, %v16586_v16 }
 0x491   :  { %21770 = vst [vmem:[#allocation23_spill] sm:$0xff] %v16520_v63  ;;  %4549 = vmatprep.subr.bf16.mxu0 %v16520_v63  ;;  %4592 = vmatprep.subr.bf16.mxu1 %v16527_v7  ;;  %v16556_v40 = vpack.i.bf16 %v16523_v42, %v16537_v59  ;;  %v11238_v50 = vunpack.i.h.bf16 %v16495_v58 }
 0x492   :  { %v11419_v35 = vpack.i.bf16 %v16513_v46, %v21063_v48  ;;  %4593 = vmatpush1.bf16.msra.mxu1 %v16534_v13  ;;  %v16576_v47 = vsel %vm21706_vm7, %v11208_v12, %v21060_v18  ;;  %v16581_v62 = vsel %vm21772_vm4, %v21058_v53, %v11207_v17  ;;  %21774 = vst [vmem:[#allocation12_spill] sm:$0xff] %v16596_v23  ;;  %vm21794_vm7 = vmmov %vm21791_vm3  ;;  %vm21808_vm4 = vcmask 588800  }
 0x493   :  { %v16541_v1 = vpop.permute.xlu1 %11245  ;;  %11400 = vrot.lane.b32.xlu1 %v16463_v25, %s12441_s28  ;;  %v16549_v6 = vpop.permute.xlu0 %11220  ;;  %v11434_v12 = vpack.i.bf16 %v3054_v3, %v16403_v39  ;;  %v21066_v3 = vunpack.i.h.bf16 %v16471_v22 }
 0x494   :  { %11420 = vrot.lane.b32.xlu0 %v11419_v35, %s12432_s20  ;;  %v21057_v44 = vunpack.i.h.bf16 %v16549_v6  ;;  %v21061_v26 = vunpack.i.l.bf16 %v16549_v6  ;;  %v11248_v48 = vunpack.i.h.bf16 %v16541_v1 }
 0x496   :  { %v16564_v55 = vsel %vm3186_vm2, %v21057_v44, %v11217_v14  ;;  %v16571_v11 = vsel %vm3186_vm2, %v11218_v49, %v21061_v26  ;;  %v16606_v14 = vunpack.i.l.bf16 %v16541_v1  ;;  %v11228_v44 = vunpack.i.h.bf16 %v16482_v34 }
 0x497   :  { %v11256_v15 = vpop.permute.xlu1 %11255  ;;  %11410 = vrot.lane.b32.xlu1 %v16556_v40, %s12419_s29  ;;  %v16583_v29 = vpop.permute.xlu0 %11230  ;;  %v16590_v51 = vpack.c.bf16 %v16571_v11, %v16576_v47  ;;  %v11429_v38 = vpack.i.bf16 %v16564_v55, %v16581_v62 }
 0x498   :  { %v16598_v27 = vunpack.i.l.bf16 %v11256_v15  ;;  %v11258_v18 = vunpack.i.h.bf16 %v11256_v15  ;;  %v16642_v53 = vsel %vm822_vm11, %v16513_v46, %v11228_v44  ;;  %v21776_v60 = vunpack.i.l.bf16 %v16583_v29 }
 0x499   :  { %4594 = vmatprep.subr.bf16.mxu1 %v16590_v51  ;;  %11430 = vrot.lane.b32.xlu0 %v11429_v38, %s12432_s20 }
 0x49a   :  { %4595 = vmatpush1.bf16.msra.mxu1 %v16596_v23  ;;  %v11424_v17 = vpack.i.bf16 %v16598_v27, %v16606_v14  ;;  %v16647_v41 = vsel %vm822_vm11, %v11228_v44, %v21776_v60 }
 0x49b   :  { %v16603_v49 = vpop.permute.xlu1 %11265  ;;  %v16608_v35 = vpop.permute.xlu0 %11240  ;;  %11415 = vrot.lane.b32.xlu1 %v16556_v40, %s12427_s23 }
 0x49c   :  { %v11268_v2 = vunpack.i.h.bf16 %v16603_v49  ;;  %v21785_v19 = vunpack.i.l.bf16 %v16608_v35 }
 0x49d   :  { %11435 = vrot.lane.b32.xlu0 %v11434_v12, %s12432_s20 }
 0x49f   :  { %v16616_v38 = vpop.permute.xlu1 %11275  ;;  %v16618_v8 = vpop.permute.xlu0 %11250  ;;  %11425 = vrot.lane.b32.xlu1 %v11424_v17, %s12432_s20 }
 0x4a0   :  { %v11278_v5 = vunpack.i.h.bf16 %v16616_v38 }
 0x4a1   :  { %11440 = vrot.lane.b32.xlu0 %v16556_v40, %s12438_s2 }
 0x4a2   :  { %v3257_v26 = vsel %vm3254_vm12, %v21066_v3, %v11278_v5 }
 0x4a3   :  { %v16627_v12 = vpop.permute.xlu1 %11285  ;;  %v16630_v17 = vpop.permute.xlu0 %11260  ;;  %11445 = vrot.lane.b32.xlu1 %v16556_v40, %s12429_s27  ;;  %v16673_v3 = vpack.c.bf16 %v16642_v53, %v3257_v26  ;;  %v11474_v26 = vpack.i.bf16 %v16571_v11, %v16559_v0  ;;  %v3711_v0 = vsel %vm3709_vm10, %v11238_v50, %v21785_v19 }
 0x4a4   :  { %21775 = vst [vmem:[#allocation10_spill] sm:$0xff] %v16627_v12  ;;  %v21068_v34 = vunpack.i.l.bf16 %v16627_v12  ;;  %v21778_v56 = vunpack.i.l.bf16 %v16630_v17 }
 0x4a5   :  { %11450 = vrot.lane.b32.xlu0 %v16556_v40, %s12440_s26  ;;  %21780 = vst [vmem:[#allocation21_spill] sm:$0xff] %v16673_v3 }
 0x4a6   :  { %v3258_v15 = vsel %vm3254_vm12, %v11278_v5, %v21068_v34  ;;  %v16664_v60 = vsel %vm21779_vm15, %v11258_v18, %v21778_v56  ;;  %vm21811_vm15 = vmmov %vm21808_vm4 }
 0x4a7   :  { %v16656_v1 = vpop.permute.xlu1 %11290  ;;  %v16659_v20 = vpack.c.bf16 %v16647_v41, %v3258_v15  ;;  %v16666_v44 = vpop.permute.xlu0 %11270  ;;  %11455 = vrot.lane.b32.xlu1 %v16443_v28, %s12439_s21  ;;  %v21781_v15 = vunpack.i.l.bf16 %v16618_v8  ;;  %v16685_v28 = vsel %vm21782_vm8, %v16598_v27, %v11258_v18  ;;  %v16703_v18 = vsel %vm980_vm13, %v16606_v14, %v11248_v48  ;;  %vm21814_vm8 = vmmov %vm21791_vm3 }
 0x4a8   :  { %21777 = vst [vmem:[#allocation11_spill] sm:$0xff] %v16656_v1  ;;  %v11292_v34 = vunpack.i.l.bf16 %v16656_v1  ;;  %v11272_v9 = vunpack.i.l.bf16 %v16666_v44  ;;  %v21783_v56 = vunpack.i.h.bf16 %v16656_v1  ;;  %v21786_v11 = vunpack.i.h.bf16 %v16666_v44 }
 0x4a9   :  { %v16678_v31 = vsel %vm980_vm13, %v11248_v48, %v21781_v15  ;;  %4596 = vmatprep.subr.bf16.mxu1 %v16659_v20  ;;  %v16693_v15 = vunpack.i.l.bf16 %v16603_v49  ;;  %11460 = vrot.lane.b32.xlu0 %v16556_v40, %s12433_s24  ;;  %v4349_v19 = vpack.c.bf16 %v16685_v28, %v16703_v18 }
 0x4aa   :  { %v4350_v5 = vpack.c.bf16 %v16664_v60, %v16678_v31  ;;  %v16698_v10 = vsel %vm3606_vm14, %v11292_v34, %v21783_v56  ;;  %4597 = vmatpush1.bf16.msra.mxu1 %v16673_v3  ;;  %v16711_v49 = vsel %vm3535_vm9, %v11272_v9, %v21786_v11  ;;  %v21078_v11 = vunpack.i.h.bf16 %v16477_v36 }
 0x4ab   :  { %21784 = vst [vmem:[#allocation6_spill] sm:$0xff] %v16698_v10  ;;  %v16715_v56 = vpop.permute.xlu1 %11295  ;;  %v16717_v1 = vpop.permute.xlu0 %11280  ;;  %11475 = vrot.lane.b32.xlu1 %v11474_v26, %s12432_s20  ;;  %v21787_v3 = vunpack.i.l.bf16 %v16495_v58  ;;  %v16734_v26 = vsel %vm3535_vm9, %v16693_v15, %v11268_v2 }
 0x4ac   :  { %4598 = vmatprep.subr.bf16.mxu1 %v4350_v5  ;;  %v11464_v5 = vpack.i.bf16 %v16504_v24, %v16509_v30  ;;  %v11283_v63 = vunpack.i.h.bf16 %v16717_v1  ;;  %v21788_v30 = vunpack.i.l.bf16 %v16715_v56 }
 0x4ad   :  { %v3710_v23 = vsel %vm3709_vm10, %v21787_v3, %v11238_v50  ;;  %v3539_v50 = vsel %vm3535_vm9, %v11268_v2, %v11272_v9  ;;  %v21789_v3 = vunpack.i.l.bf16 %v16487_v33  ;;  %v11469_v9 = vpack.i.bf16 %v16576_v47, %v16586_v16 }
 0x4ae   :  { %4599 = vmatpush1.bf16.msra.mxu1 %v4349_v19  ;;  %v11479_v48 = vpack.i.bf16 %v3711_v0, %v3710_v23  ;;  %v3609_v32 = vsel %vm3606_vm14, %v21078_v11, %v11283_v63  ;;  %11465 = vrot.lane.b32.xlu0 %v11464_v5, %s12432_s20  ;;  %v3610_v24 = vsel %vm3606_vm14, %v11283_v63, %v11292_v34 }
 0x4af   :  { %v16740_v58 = vpop.permute.xlu1 %11300  ;;  %v3056_v10 = vsel %vm196_vm1, %v21789_v3, %v21788_v30  ;;  %v16749_v19 = vpop.permute.xlu0 %11305  ;;  %v4367_v5 = vpack.c.bf16 %v3610_v24, %v3539_v50  ;;  %v4366_v11 = vpack.c.bf16 %v3609_v32, %v16734_v26  ;;  %v11489_v34 = vpack.i.bf16 %v16678_v31, %v16703_v18 }
 0x4b0   :  { %11480 = vrot.lane.b32.xlu1 %v11479_v48, %s12432_s20  ;;  %v21079_v23 = vunpack.i.h.bf16 %v16740_v58  ;;  %v11302_v0 = vunpack.i.l.bf16 %v16740_v58  ;;  %v21080_v2 = vunpack.i.h.bf16 %v16749_v19  ;;  %v11307_v63 = vunpack.i.l.bf16 %v16749_v19 }
 0x4b1   :  { %4600 = vmatprep.subr.bf16.mxu1 %v4367_v5  ;;  %v16762_v48 = vpack.c.bf16 %v3056_v10, %v16378_v52  ;;  %v21081_v32 = vunpack.i.h.bf16 %v16627_v12  ;;  %v21792_v30 = vunpack.i.l.bf16 %v16549_v6  ;;  %v21793_v3 = vunpack.i.l.bf16 %v16516_v54 }
 0x4b2   :  { %v3124_v24 = vsel %vm21791_vm3, %v11302_v0, %v21079_v23  ;;  %v16771_v47 = vsel %vm3186_vm2, %v11307_v63, %v21080_v2  ;;  %11470 = vrot.lane.b32.xlu0 %v11469_v9, %s12432_s20  ;;  %4601 = vmatpush1.bf16.msra.mxu1 %v4366_v11  ;;  %v21082_v9 = vunpack.i.h.bf16 %v16583_v29  ;;  %v11484_v11 = vpack.i.bf16 %v16647_v41, %v16642_v53 }
 0x4b3   :  { %21790 = vst [vmem:[#allocation13_spill] sm:$0xff] %v16762_v48  ;;  %v16774_v16 = vpop.permute.xlu1 %11320  ;;  %v3191_v52 = vsel %vm3186_vm2, %v21792_v30, %v11307_v63  ;;  %v16782_v5 = vsel %vm21794_vm7, %v21793_v3, %v11302_v0  ;;  %v16784_v23 = vpop.permute.xlu0 %11310  ;;  %4602 = vmatprep.subr.bf16.mxu1 %v16762_v48  ;;  %v16792_v2 = vpack.c.bf16 %v16771_v47, %v3124_v24  ;;  %v21089_v41 = vunpack.i.l.bf16 %v16477_v36  ;;  %vm21825_vm7 = vmmov %vm21810_vm5 }
 0x4b4   :  { %11490 = vrot.lane.b32.xlu1 %v11489_v34, %s12432_s20  ;;  %v11504_v63 = vpack.i.bf16 %v3056_v10, %v3539_v50  ;;  %v16795_v30 = vpack.c.bf16 %v3191_v52, %v16782_v5  ;;  %v21797_v34 = vunpack.i.l.bf16 %v16627_v12  ;;  %v21798_v50 = vunpack.i.l.bf16 %v16583_v29 }
 0x4b5   :  { %21795 = vst [vmem:[#allocation22_spill] sm:$0xff] %v16792_v2  ;;  %v21801_v2 = vunpack.i.h.bf16 %v16487_v33  ;;  %v11263_v48 = vunpack.i.h.bf16 %v16630_v17 }
 0x4b6   :  { %21796 = vst [vmem:[#allocation9_spill] sm:$0xff] %v16795_v30  ;;  %11485 = vrot.lane.b32.xlu0 %v11484_v11, %s12432_s20  ;;  %4603 = vmatpush1.bf16.msra.mxu1 %v16527_v7  ;;  %v3259_v3 = vsel %vm3254_vm12, %v21797_v34, %v21081_v32  ;;  %v11494_v7 = vpack.i.bf16 %v16664_v60, %v16685_v28  ;;  %v11243_v28 = vunpack.i.h.bf16 %v16608_v35 }
 0x4b7   :  { %v16799_v0 = vpop.permute.xlu1 %11325  ;;  %v16807_v53 = vpop.permute.xlu0 %11315  ;;  %4604 = vmatprep.subr.bf16.mxu1 %v16795_v30  ;;  %v3329_v11 = vsel %vm822_vm11, %v21798_v50, %v21082_v9  ;;  %v11519_v30 = vpack.i.bf16 %v3191_v52, %v3124_v24  ;;  %v21803_v24 = vunpack.i.l.bf16 %v16471_v22 }
 0x4b8   :  { %v21083_v10 = vunpack.i.h.bf16 %v16799_v0  ;;  %11505 = vrot.lane.b32.xlu1 %v11504_v63, %s12432_s20  ;;  %v16819_v34 = vpack.c.bf16 %v3329_v11, %v3259_v3  ;;  %v21091_v12 = vunpack.i.l.bf16 %v16807_v53  ;;  %v21813_v63 = vunpack.i.h.bf16 %v16516_v54 }
 0x4b9   :  { %v21097_v54 = vunpack.i.h.bf16 %v16774_v16 }
 0x4ba   :  { %21799 = vst [vmem:[#allocation20_spill] sm:$0xff] %v16819_v34  ;;  %v16825_v32 = vsel %vm3535_vm9, %v21083_v10, %v16693_v15  ;;  %11495 = vrot.lane.b32.xlu0 %v11494_v7, %s12432_s20  ;;  %4605 = vmatpush1.bf16.msra.mxu1 %v16590_v51  ;;  %v21800_v10 = vunpack.i.h.bf16 %v16477_v36  ;;  %v11499_v7 = vpack.i.bf16 %v16734_v26, %v16693_v15  ;;  %v21802_v26 = vunpack.i.h.bf16 %v16471_v22 }
 0x4bb   :  { %v16830_v60 = vpop.permute.xlu1 %11330  ;;  %v16834_v3 = vpop.permute.xlu0 %11340  ;;  %4606 = vmatprep.subr.bf16.mxu1 %v16819_v34 }
 0x4bc   :  { %v11332_v9 = vunpack.i.l.bf16 %v16830_v60  ;;  %11510 = vrot.lane.b32.xlu1 %v16556_v40, %s12441_s28  ;;  %v16845_v51 = vsel %vm3606_vm14, %v21089_v41, %v21800_v10  ;;  %v3256_v33 = vsel %vm3254_vm12, %v21803_v24, %v21802_v26  ;;  %v11313_v26 = vunpack.i.h.bf16 %v16784_v23 }
 0x4bd   :  { %v21094_v24 = vunpack.i.l.bf16 %v16784_v23 }
 0x4be   :  { %v3052_v34 = vsel %vm196_vm1, %v11332_v9, %v21801_v2  ;;  %11500 = vrot.lane.b32.xlu0 %v11499_v7, %s12432_s20  ;;  %4607 = vmatpush1.bf16.msra.mxu1 %v16659_v20  ;;  %v21804_v2 = vunpack.i.l.bf16 %v16608_v35  ;;  %v21805_v9 = vunpack.i.h.bf16 %v16715_v56  ;;  %v21806_v7 = vunpack.i.l.bf16 %v16715_v56  ;;  %v16886_v35 = vld [vmem:[%s20791_s3 + $0x4] ss:$8 sps:$4 sm:$0xff]  }
 0x4bf   :  { %v16859_v10 = vpop.permute.xlu1 %11335  ;;  %v4296_v15 = vpack.c.bf16 %v3052_v34, %v16403_v39  ;;  %v16881_v39 = vpack.c.bf16 %v16564_v55, %v16581_v62  ;;  %21807 = vst [vmem:[#allocation27_spill] sm:$0xff] %v16886_v35  ;;  %v11253_v34 = vunpack.i.h.bf16 %v16618_v8  ;;  %v11277_v55 = vunpack.i.l.bf16 %v16616_v38  ;;  %8898 = vmatprep.mubr.msk.bf16.mxu0 %vm21808_vm4, %v16886_v35  ;;  %8900 = vmatprep.mubr.msk.bf16.mxu1 %vm21811_vm15, %v16886_v35  ;;  %vm21826_vm4 = vmmov %vm21810_vm5 }
 0x4c0   :  { %v3712_v52 = vsel %vm3709_vm10, %v21804_v2, %v11243_v28  ;;  %v16875_v20 = vsel %vm196_vm1, %v21806_v7, %v21805_v9  ;;  %v21090_v50 = vunpack.i.l.bf16 %v16859_v10  ;;  %11520 = vrot.lane.b32.xlu1 %v11519_v30, %s12432_s20  ;;  %v16893_v9 = vpop.permute.xlu0 %11350  ;;  %v11342_v30 = vunpack.i.l.bf16 %v16834_v3  ;;  %vm21834_vm15 = vmmov %vm21791_vm3 }
 0x4c1   :  { %v11514_v2 = vpack.i.bf16 %v16782_v5, %v16875_v20  ;;  %4550 = vmatpush1.bf16.msra.mxu0 %v4296_v15  ;;  %v21809_v5 = vunpack.i.l.bf16 %v16630_v17  ;;  %v16913_v15 = vsel %vm980_vm13, %v11253_v34, %v21091_v12  ;;  %v11333_v17 = vunpack.i.h.bf16 %v16830_v60 }
 0x4c2   :  { %v3713_v7 = vsel %vm3709_vm10, %v11243_v28, %v21090_v50  ;;  %4551 = vmatprep.subr.bf16.mxu0 %v16881_v39  ;;  %v21812_v12 = vunpack.i.h.bf16 %v16583_v29  ;;  %v3326_v60 = vsel %vm822_vm11, %v11313_v26, %v16513_v46  ;;  %v3119_v62 = vsel %vm21814_vm8, %v11342_v30, %v21813_v63  ;;  %vm21840_vm8 = vmmov %vm21826_vm4 }
 0x4c3   :  { %v16907_v41 = vsel %vm21810_vm5, %v21809_v5, %v11263_v48  ;;  %11515 = vrot.lane.b32.xlu0 %v11514_v2, %s12432_s20  ;;  %v16916_v28 = vpop.permute.xlu1 %11345  ;;  %v11529_v50 = vpack.i.bf16 %v3329_v11, %v3713_v7  ;;  %v11352_v5 = vunpack.i.l.bf16 %v16893_v9  ;;  %v11524_v7 = vpack.i.bf16 %v3712_v52, %v16771_v47  ;;  %vm21832_vm5 = vmmov %vm21791_vm3 }
 0x4c4   :  { %v11347_v38 = vunpack.i.l.bf16 %v16916_v28  ;;  %v16929_v2 = vsel %vm822_vm11, %v21812_v12, %v21094_v24  ;;  %v21815_v35 = vunpack.i.h.bf16 %v16834_v3  ;;  %v21816_v29 = vunpack.i.h.bf16 %v16740_v58 }
 0x4c5   :  { %11530 = vrot.lane.b32.xlu1 %v11529_v50, %s12432_s20  ;;  %v21817_v24 = vunpack.i.h.bf16 %v16916_v28  ;;  %v21818_v11 = vunpack.i.h.bf16 %v16749_v19  ;;  %v21819_v50 = vunpack.i.h.bf16 %v16549_v6  ;;  %v11539_v58 = vpack.i.bf16 %v16907_v41, %v16913_v15 }
 0x4c6   :  { %v3125_v12 = vsel %vm21791_vm3, %v21816_v29, %v21815_v35  ;;  %v21820_v19 = vunpack.i.l.bf16 %v16618_v8  ;;  %v21821_v6 = vunpack.i.h.bf16 %v16715_v56  ;;  %v3325_v30 = vsel %vm822_vm11, %v11352_v5, %v11313_v26  ;;  %vm21841_vm3 = vmmov %vm21826_vm4 }
 0x4c7   :  { %v16949_v47 = vsel %vm3186_vm2, %v21818_v11, %v21817_v24  ;;  %v3187_v46 = vsel %vm3186_vm2, %v11347_v38, %v21819_v50  ;;  %11525 = vrot.lane.b32.xlu0 %v11524_v7, %s12432_s20  ;;  %v16972_v38 = vpack.c.bf16 %v3326_v60, %v3256_v33  ;;  %v21822_v8 = vunpack.i.h.bf16 %v16807_v53 }
 0x4c8   :  { %v4313_v63 = vpack.c.bf16 %v3187_v46, %v3119_v62  ;;  %v16959_v52 = vpack.c.bf16 %v16949_v47, %v3125_v12  ;;  %v16964_v35 = vsel %vm980_vm13, %v21820_v19, %v11253_v34  ;;  %v16969_v24 = vsel %vm196_vm1, %v21821_v6, %v11333_v17 }
 0x4c9   :  { %v11534_v62 = vpack.i.bf16 %v16964_v35, %v16929_v2  ;;  %11540 = vrot.lane.b32.xlu1 %v11539_v58, %s12432_s20  ;;  %v16981_v34 = vsel %vm980_vm13, %v21822_v8, %v16606_v14  ;;  %v21823_v56 = vunpack.i.l.bf16 %v16471_v22  ;;  %v21824_v26 = vunpack.i.l.bf16 %v16774_v16 }
 0x4ca   :  { %4552 = vmatpush1.bf16.msra.mxu0 %v4313_v63  ;;  %v21100_v5 = vunpack.i.l.bf16 %v16799_v0  ;;  %v11554_v7 = vpack.i.bf16 %v16969_v24, %v16537_v59  ;;  %v3466_v22 = vsel %vm21826_vm4, %v21097_v54, %v16598_v27  ;;  %v21829_v46 = vunpack.i.h.bf16 %v16666_v44  ;;  %vm21852_vm4 = vmmov %vm21841_vm3 }
 0x4cb   :  { %v3255_v11 = vsel %vm3254_vm12, %v11277_v55, %v21823_v56  ;;  %v16989_v33 = vsel %vm21825_vm7, %v11263_v48, %v21824_v26  ;;  %4553 = vmatprep.subr.bf16.mxu0 %v16972_v38  ;;  %11535 = vrot.lane.b32.xlu0 %v11534_v62, %s12432_s20  ;;  %v21827_v55 = vunpack.i.h.bf16 %v16459_v61  ;;  %v21828_v48 = vunpack.i.l.bf16 %v16459_v61  ;;  %vm21850_vm7 = vmmov %vm21832_vm5 }
 0x4cc   :  { %v4330_v14 = vpack.c.bf16 %v3325_v30, %v3255_v11  ;;  %v4348_v29 = vpack.c.bf16 %v3466_v22, %v16981_v34  ;;  %v11544_v50 = vpack.i.bf16 %v16711_v49, %v16989_v33  ;;  %v17014_v27 = vsel %vm3535_vm9, %v21829_v46, %v21100_v5 }
 0x4cd   :  { %v2957_v60 = vsel %vm427_vm6, %v21828_v48, %v21827_v55  ;;  %11555 = vrot.lane.b32.xlu1 %v11554_v7, %s12432_s20  ;;  %v11549_v58 = vpack.i.bf16 %v16457_v4, %v17014_v27  ;;  %v11338_v62 = vunpack.i.h.bf16 %v16859_v10 }
 0x4ce   :  { %4554 = vmatpush1.bf16.msra.mxu0 %v4330_v14  ;;  %v17017_v63 = vmax.f32 %v16353_v37, %v2957_v60  ;;  %v17039_v37 = vpop.permute.xlu1 %11355  ;;  %v21831_v14 = vunpack.i.h.bf16 %v16834_v3 }
 0x4cf   :  { %4555 = vmatprep.subr.bf16.mxu0 %v4348_v29  ;;  %11545 = vrot.lane.b32.xlu0 %v11544_v50, %s12432_s20  ;;  %v11353_v29 = vunpack.i.h.bf16 %v16893_v9 }
 0x4d0   :  { %21830 = vst [vmem:[#allocation28_spill] sm:$0xff] %v17017_v63 }
 0x4d1   :  { %3042 = vrot.lane.b32.xlu1 %v17017_v63, %s12419_s29 }
 0x4d2   :  { %v17041_v44 = vpop.permute.xlu1 %11360 }
 0x4d3   :  { %11550 = vrot.lane.b32.xlu0 %v11549_v58, %s12432_s20  ;;  %v11363_v54 = vunpack.i.h.bf16 %v17041_v44 }
 0x4d5   :  { %3176 = vrot.lane.b32.xlu1 %v17017_v63, %s12438_s2 }
 0x4d7   :  { %3109 = vrot.lane.b32.xlu0 %v17017_v63, %s12427_s23 }
 0x4d9   :  { %3313 = vrot.lane.b32.xlu1 %v17017_v63, %s12429_s27 }
 0x4db   :  { %11560 = vrot.lane.b32.xlu0 %v16463_v25, %s12437_s0 }
 0x4dd   :  { %3586 = vrot.lane.b32.xlu1 %v16454_v45, %s12439_s21 }
 0x4df   :  { %3695 = vrot.lane.b32.xlu0 %v17017_v63, %s12440_s26 }
 0x4e3   :  { %3453 = vrot.lane.b32.xlu0 %v17017_v63, %s12433_s24 }
 0x4f5   :  { %v17043_v19 = vpop.permute.xlu0 %11370  ;;  %v17045_v6 = vpop.permute.xlu1 %11365 }
 0x4f6   :  { %v11372_v30 = vunpack.i.l.bf16 %v17043_v19  ;;  %v11367_v25 = vunpack.i.l.bf16 %v17045_v6  ;;  %v21098_v8 = vunpack.i.h.bf16 %v17043_v19 }
 0x4f8   :  { %v17052_v56 = vsel %vm196_vm1, %v11333_v17, %v11367_v25  ;;  %v3126_v22 = vsel %vm21832_vm5, %v21831_v14, %v11372_v30  ;;  %v21833_v17 = vunpack.i.l.bf16 %v16859_v10  ;;  %v17073_v3 = vsel %vm21834_vm15, %v11372_v30, %v21098_v8 }
 0x4f9   :  { %v17054_v11 = vpop.permute.xlu0 %11385  ;;  %v17056_v26 = vpop.permute.xlu1 %11375  ;;  %v11564_v7 = vpack.i.bf16 %v3125_v12, %v17052_v56  ;;  %v21835_v12 = vunpack.i.h.bf16 %v16916_v28  ;;  %v11569_v10 = vpack.i.bf16 %v16949_v47, %v3126_v22  ;;  %v21837_v47 = vunpack.i.l.bf16 %v16784_v23 }
 0x4fa   :  { %v21096_v55 = vunpack.i.l.bf16 %v17054_v11  ;;  %v21095_v48 = vunpack.i.h.bf16 %v17056_v26  ;;  %v11377_v60 = vunpack.i.l.bf16 %v17056_v26  ;;  %v3714_v50 = vsel %vm3709_vm10, %v21833_v17, %v11338_v62 }
 0x4fb   :  { %11565 = vrot.lane.b32.xlu0 %v11564_v7, %s12432_s20  ;;  %vm21870_vm15 = vcmask 1043456  }
 0x4fc   :  { %v3194_v46 = vsel %vm3186_vm2, %v21835_v12, %v11377_v60  ;;  %v17081_v58 = vsel %vm3186_vm2, %v11377_v60, %v21095_v48  ;;  %v3715_v28 = vsel %vm3709_vm10, %v11338_v62, %v21096_v55 }
 0x4fd   :  { %v17083_v9 = vpop.permute.xlu0 %11390  ;;  %v17085_v7 = vpop.permute.xlu1 %11380  ;;  %v11574_v14 = vpack.i.bf16 %v3714_v50, %v3194_v46  ;;  %v17088_v17 = vpack.c.bf16 %v3194_v46, %v3126_v22  ;;  %v17092_v30 = vpack.c.bf16 %v17081_v58, %v17073_v3  ;;  %v17105_v22 = vsel %vm822_vm11, %v21837_v47, %v11353_v29 }
 0x4fe   :  { %v21101_v60 = vunpack.i.h.bf16 %v17083_v9  ;;  %v11392_v12 = vunpack.i.l.bf16 %v17083_v9  ;;  %v21099_v48 = vunpack.i.l.bf16 %v17085_v7  ;;  %v11358_v50 = vunpack.i.h.bf16 %v17039_v37 }
 0x4ff   :  { %21836 = vst [vmem:[#allocation29_spill] sm:$0xff] %v17092_v30  ;;  %11570 = vrot.lane.b32.xlu0 %v11569_v10, %s12432_s20  ;;  %11575 = vrot.lane.b32.xlu1 %v11574_v14, %s12432_s20  ;;  %v21838_v46 = vunpack.i.l.bf16 %v16807_v53  ;;  %v11579_v47 = vpack.i.bf16 %v17105_v22, %v3715_v28  ;;  %v11368_v28 = vunpack.i.h.bf16 %v17045_v6 }
 0x500   :  { %v17116_v55 = vsel %vm822_vm11, %v11353_v29, %v21099_v48  ;;  %v21839_v29 = vunpack.i.l.bf16 %v16774_v16 }
 0x501   :  { %v17111_v62 = vsel %vm980_vm13, %v21838_v46, %v11392_v12  ;;  %v17118_v10 = vpop.permute.xlu0 %11405  ;;  %v17120_v14 = vpop.permute.xlu1 %11395  ;;  %v17129_v46 = vsel %vm980_vm13, %v11392_v12, %v21101_v60  ;;  %v17147_v12 = vadd.f32 %v16388_v57, %v15933_v43  ;;  %v17170_v61 = vsel %vm196_vm1, %v11367_v25, %v11368_v28 }
 0x502   :  { %v11584_v23 = vpack.i.bf16 %v17111_v62, %v17116_v55  ;;  %v21102_v8 = vunpack.i.l.bf16 %v17120_v14  ;;  %v17137_v48 = vsel %vm21840_vm8, %v21839_v29, %v11358_v50  ;;  %v21843_v29 = vunpack.i.l.bf16 %v16799_v0  ;;  %21846 = vst [vmem:[#allocation33_spill] sm:$0xff] %v17170_v61  ;;  %vm21872_vm8 = vmmov %vm21870_vm15 }
 0x503   :  { %11580 = vrot.lane.b32.xlu1 %v11579_v47, %s12432_s20  ;;  %21842 = vst [vmem:[#allocation30_spill] sm:$0xff] %v17147_v12  ;;  %v11589_v47 = vpack.i.bf16 %v17137_v48, %v17129_v46 }
 0x504   :  { %11585 = vrot.lane.b32.xlu0 %v11584_v23, %s12432_s20  ;;  %v17143_v5 = vsel %vm21841_vm3, %v11358_v50, %v21102_v8  ;;  %v17158_v6 = vsel %vm3535_vm9, %v21843_v29, %v11363_v54  ;;  %v17163_v8 = vadd.f32 %v16291_v21, %v15933_v43  ;;  %vm21884_vm3 = vcmask 588800  }
 0x505   :  { %v17149_v60 = vpop.permute.xlu1 %11400  ;;  %v11594_v23 = vpack.i.bf16 %v16523_v42, %v17143_v5  ;;  %21844 = vst [vmem:[#allocation31_spill] sm:$0xff] %v17158_v6  ;;  %v21112_v42 = vmax.f32 %v17147_v12, 0.0 }
 0x506   :  { %v21107_v50 = vunpack.i.l.bf16 %v17149_v60  ;;  %21845 = vst [vmem:[#allocation32_spill] sm:$0xff] %v17163_v8  ;;  %v17165_v57 = vpop.permute.xlu0 %11420  ;;  %v21113_v25 = vmax.f32 %v17163_v8, 0.0 }
 0x507   :  { %11590 = vrot.lane.b32.xlu1 %v11589_v47, %s12432_s20 }
 0x508   :  { %11595 = vrot.lane.b32.xlu0 %v11594_v23, %s12432_s20  ;;  %v17175_v29 = vsel %vm3535_vm9, %v11363_v54, %v21107_v50  ;;  %v11599_v23 = vpack.i.bf16 %v17158_v6, %v17017_v63  ;;  %v11614_v54 = vpack.i.bf16 %v21112_v42, %v21113_v25  ;;  %v11362_v25 = vunpack.i.l.bf16 %v17041_v44 }
 0x509   :  { %21847 = vst [vmem:[#allocation34_spill] sm:$0xff] %v17175_v29  ;;  %v17178_v30 = vpop.permute.xlu1 %11410  ;;  %v11604_v21 = vpack.i.bf16 %v17170_v61, %v17175_v29  ;;  %v11388_v44 = vunpack.i.h.bf16 %v17054_v11  ;;  %v21854_v6 = vunpack.i.h.bf16 %v16799_v0  ;;  %v21124_v0 = vunpack.i.h.bf16 %v17085_v7 }
 0x50a   :  { %v21114_v47 = vunpack.i.l.bf16 %v17178_v30 }
 0x50b   :  { %11600 = vrot.lane.b32.xlu1 %v11599_v23, %s12432_s20  ;;  %v17192_v50 = vpop.permute.xlu0 %11430 }
 0x50c   :  { %11605 = vrot.lane.b32.xlu0 %v11604_v21, %s12432_s20  ;;  %v17197_v43 = vsel %vm196_vm1, %v11368_v28, %v21114_v47  ;;  %v11357_v21 = vunpack.i.l.bf16 %v17039_v37  ;;  %v21849_v28 = vunpack.i.h.bf16 %v17043_v19  ;;  %v21851_v37 = vunpack.i.h.bf16 %v16774_v16 }
 0x50d   :  { %21848 = vst [vmem:[#allocation35_spill] sm:$0xff] %v17197_v43  ;;  %v17199_v61 = vpop.permute.xlu1 %11415  ;;  %v11619_v42 = vpack.i.bf16 %v17073_v3, %v17197_v43  ;;  %v21853_v19 = vunpack.i.h.bf16 %v16807_v53  ;;  %v21855_v53 = vunpack.i.l.bf16 %v16477_v36 }
 0x50e   :  { %v11417_v45 = vunpack.i.l.bf16 %v17199_v61  ;;  %v3465_v3 = vsel %vm21852_vm4, %v11357_v21, %v21851_v37 }
 0x50f   :  { %3523 = vrot.lane.b32.xlu1 %v17017_v63, %s12441_s28  ;;  %v11436_v23 = vpop.permute.xlu0 %11435  ;;  %v21122_v63 = vunpack.i.h.bf16 %v17199_v61 }
 0x510   :  { %11615 = vrot.lane.b32.xlu0 %v11614_v54, %s12420_s30  ;;  %v3128_v47 = vsel %vm21850_vm7, %v21849_v28, %v11417_v45  ;;  %v11437_v12 = vunpack.i.l.bf16 %v11436_v23  ;;  %v11282_v54 = vunpack.i.l.bf16 %v16717_v1  ;;  %vm21892_vm7 = vmmov %vm21852_vm4 }
 0x511   :  { %v17212_v8 = vpop.permute.xlu1 %11425 }
 0x512   :  { %v3395_v28 = vsel %vm980_vm13, %v11437_v12, %v21853_v19  ;;  %v3607_v12 = vsel %vm3606_vm14, %v11282_v54, %v21855_v53  ;;  %v21858_v19 = vpack.c.bf16 %v16845_v51, %v16825_v32 }
 0x513   :  { %11610 = vrot.lane.b32.xlu1 %v16556_v40, %s12437_s0  ;;  %v17226_v43 = vpop.permute.xlu0 %11440  ;;  %v4347_v1 = vpack.c.bf16 %v3465_v3, %v3395_v28  ;;  %v3536_v40 = vsel %vm3535_vm9, %v11362_v25, %v21854_v6  ;;  %v21856_v3 = vunpack.i.l.bf16 %v17054_v11  ;;  %v21857_v6 = vunpack.i.h.bf16 %v17056_v26 }
 0x514   :  { %11620 = vrot.lane.b32.xlu0 %v11619_v42, %s12432_s20  ;;  %v11624_v42 = vpack.i.bf16 %v17081_v58, %v3128_v47  ;;  %v21123_v16 = vunpack.i.h.bf16 %v17226_v43  ;;  %v11442_v21 = vunpack.i.l.bf16 %v17226_v43  ;;  %v4364_v28 = vpack.c.bf16 %v3607_v12, %v3536_v40 }
 0x515   :  { %v17234_v37 = vpop.permute.xlu1 %11445  ;;  %4556 = vmatpush1.bf16.msra.mxu0 %v4347_v1  ;;  %v3716_v58 = vsel %vm3709_vm10, %v21856_v3, %v11388_v44  ;;  %v17260_v1 = vsel %vm21832_vm5, %v11417_v45, %v21122_v63  ;;  %v21861_v40 = vunpack.i.l.bf16 %v17085_v7  ;;  %v21863_v3 = vld [vmem:[#allocation23_spill] sm:$0xff]  ;;  %v11432_v63 = vunpack.i.l.bf16 %v17192_v50 }
 0x516   :  { %v3196_v25 = vsel %vm3186_vm2, %v21857_v6, %v11442_v21  ;;  %4557 = vmatprep.subr.bf16.mxu0 %v21858_v19  ;;  %v17253_v36 = vsel %vm3186_vm2, %v11442_v21, %v21123_v16 }
 0x517   :  { %11625 = vrot.lane.b32.xlu1 %v11624_v42, %s12432_s20  ;;  %v17255_v54 = vpop.permute.xlu0 %11450  ;;  %v11629_v11 = vpack.i.bf16 %v3716_v58, %v3196_v25  ;;  %v17262_v26 = vpack.c.bf16 %v3196_v25, %v3128_v47  ;;  %v17269_v51 = vpack.c.bf16 %v17253_v36, %v17260_v1  ;;  %v17277_v45 = vsel %vm822_vm11, %v21861_v40, %v21124_v0  ;;  %v21864_v58 = vld [vmem:[#allocation12_spill] sm:$0xff]  ;;  %v21865_v40 = vld [vmem:[#allocation21_spill] sm:$0xff] }
 0x518   :  { %v21121_v42 = vunpack.i.l.bf16 %v17255_v54  ;;  %21862 = vst [vmem:[#allocation38_spill] sm:$0xff] %v17277_v45  ;;  %v11438_v25 = vunpack.i.h.bf16 %v11436_v23 }
 0x519   :  { %21859 = vst [vmem:[#allocation36_spill] sm:$0xff] %v17262_v26  ;;  %v17265_v32 = vpop.permute.xlu1 %11455  ;;  %21860 = vst [vmem:[#allocation37_spill] sm:$0xff] %v17269_v51  ;;  %11630 = vrot.lane.b32.xlu0 %v11629_v11, %s12432_s20  ;;  %4558 = vmatpush1.bf16.msra.mxu0 %v4364_v28 }
 0x51a   :  { %v3717_v47 = vsel %vm3709_vm10, %v11388_v44, %v21121_v42  ;;  %4559 = vmatprep.subr.bf16.mxu0 %v16534_v13 }
 0x51b   :  { %v17283_v21 = vpop.permute.xlu0 %11460  ;;  %v11634_v53 = vpack.i.bf16 %v17277_v45, %v3717_v47 }
 0x51d   :  { %v17286_v12 = vpop.permute.xlu1 %11475  ;;  %11635 = vrot.lane.b32.xlu0 %v11634_v53, %s12432_s20  ;;  %4560 = vmatpush1.bf16.msra.mxu0 %v21863_v3 }
 0x51e   :  { %4561 = vmatprep.subr.bf16.mxu0 %v21864_v58  ;;  %v21129_v11 = vunpack.i.h.bf16 %v17286_v12  ;;  %v11477_v28 = vunpack.i.l.bf16 %v17286_v12 }
 0x520   :  { %v17291_v6 = vpop.permute.xlu0 %11465 }
 0x521   :  { %v11468_v19 = vunpack.i.h.bf16 %v17291_v6  ;;  %v21125_v44 = vunpack.i.l.bf16 %v17291_v6  ;;  %4562 = vmatpush1.bf16.msra.mxu0 %v16881_v39 }
 0x522   :  { %v17295_v13 = vpop.permute.xlu1 %11480  ;;  %4563 = vmatprep.subr.bf16.mxu0 %v21865_v40 }
 0x523   :  { %v4024_v47 = vsel %vm980_vm13, %v11438_v25, %v21125_v44  ;;  %v4023_v3 = vsel %vm980_vm13, %v11468_v19, %v11438_v25  ;;  %v11482_v16 = vunpack.i.l.bf16 %v17295_v13  ;;  %v4058_v25 = vsel %vm980_vm13, %v11477_v28, %v21129_v11 }
 0x524   :  { %v17304_v53 = vpop.permute.xlu0 %11470  ;;  %v4388_v23 = vpack.c.bf16 %v4024_v47, %v16703_v18  ;;  %v11433_v19 = vunpack.i.h.bf16 %v17192_v50  ;;  %v4387_v0 = vpack.c.bf16 %v4023_v3, %v16981_v34  ;;  %v21866_v34 = vunpack.i.h.bf16 %v17295_v13 }
 0x525   :  { %v21127_v58 = vunpack.i.h.bf16 %v17304_v53  ;;  %v11472_v39 = vunpack.i.l.bf16 %v17304_v53  ;;  %4564 = vmatpush1.bf16.msra.mxu0 %v16972_v38 }
 0x526   :  { %v17310_v42 = vpop.permute.xlu1 %11490  ;;  %4565 = vmatprep.subr.bf16.mxu0 %v4388_v23  ;;  %v4057_v26 = vsel %vm980_vm13, %v11433_v19, %v11477_v28  ;;  %v11422_v28 = vunpack.i.l.bf16 %v17165_v57 }
 0x527   :  { %v4041_v18 = vsel %vm980_vm13, %v11472_v39, %v21127_v58  ;;  %v4040_v44 = vsel %vm980_vm13, %v11432_v63, %v11472_v39  ;;  %v11423_v58 = vunpack.i.h.bf16 %v17165_v57  ;;  %v11492_v11 = vunpack.i.l.bf16 %v17310_v42 }
 0x528   :  { %v17323_v47 = vpop.permute.xlu0 %11485  ;;  %v4405_v38 = vpack.c.bf16 %v4058_v25, %v4041_v18  ;;  %v4075_v63 = vsel %vm980_vm13, %v11482_v16, %v21866_v34  ;;  %v4404_v18 = vpack.c.bf16 %v4057_v26, %v4040_v44  ;;  %v11428_v34 = vunpack.i.h.bf16 %v17212_v8 }
 0x529   :  { %v21131_v40 = vunpack.i.h.bf16 %v17323_v47  ;;  %v11487_v23 = vunpack.i.l.bf16 %v17323_v47  ;;  %4566 = vmatpush1.bf16.msra.mxu0 %v4387_v0  ;;  %v4074_v45 = vsel %vm980_vm13, %v11422_v28, %v11482_v16  ;;  %v11427_v44 = vunpack.i.l.bf16 %v17212_v8 }
 0x52a   :  { %v17329_v51 = vpop.permute.xlu1 %11505  ;;  %4567 = vmatprep.subr.bf16.mxu0 %v4405_v38 }
 0x52b   :  { %v4092_v3 = vsel %vm980_vm13, %v11487_v23, %v21131_v40  ;;  %v4091_v0 = vsel %vm980_vm13, %v11423_v58, %v11487_v23  ;;  %v21867_v40 = vunpack.i.h.bf16 %v17310_v42 }
 0x52c   :  { %v17341_v39 = vpop.permute.xlu0 %11495  ;;  %v4422_v25 = vpack.c.bf16 %v4092_v3, %v4075_v63  ;;  %v4421_v23 = vpack.c.bf16 %v4091_v0, %v4074_v45  ;;  %v21134_v3 = vunpack.i.l.bf16 %v17329_v51 }
 0x52d   :  { %v21135_v19 = vunpack.i.h.bf16 %v17341_v39  ;;  %v11497_v38 = vunpack.i.l.bf16 %v17341_v39  ;;  %4568 = vmatpush1.bf16.msra.mxu0 %v4404_v18  ;;  %v4109_v26 = vsel %vm980_vm13, %v11492_v11, %v21867_v40  ;;  %v4108_v40 = vsel %vm980_vm13, %v11427_v44, %v11492_v11 }
 0x52e   :  { %v17347_v50 = vpop.permute.xlu1 %11510  ;;  %4569 = vmatprep.subr.bf16.mxu0 %v4422_v25  ;;  %v11508_v25 = vunpack.i.h.bf16 %v17329_v51 }
 0x52f   :  { %v4126_v57 = vsel %vm980_vm13, %v11497_v38, %v21135_v19  ;;  %v4125_v18 = vsel %vm980_vm13, %v11428_v34, %v11497_v38 }
 0x530   :  { %v11501_v58 = vpop.permute.xlu0 %11500  ;;  %v4439_v63 = vpack.c.bf16 %v4126_v57, %v4109_v26  ;;  %v4438_v26 = vpack.c.bf16 %v4125_v18, %v4108_v40  ;;  %v21871_v40 = vld [vmem:[#allocation14_spill] sm:$0xff] }
 0x531   :  { %v11503_v29 = vunpack.i.h.bf16 %v11501_v58  ;;  %v11502_v16 = vunpack.i.l.bf16 %v11501_v58  ;;  %4570 = vmatpush1.bf16.msra.mxu0 %v4421_v23  ;;  %v21868_v58 = vunpack.i.l.bf16 %v17291_v6 }
 0x532   :  { %v17361_v28 = vpop.permute.xlu1 %11520  ;;  %4571 = vmatprep.subr.bf16.mxu0 %v4439_v63  ;;  %v21138_v63 = vunpack.i.l.bf16 %v17118_v10 }
 0x533   :  { %v4143_v8 = vsel %vm980_vm13, %v11503_v29, %v21134_v3  ;;  %v4142_v45 = vsel %vm980_vm13, %v11502_v16, %v11503_v29  ;;  %v4025_v23 = vsel %vm980_vm13, %v21868_v58, %v11508_v25  ;;  %v11523_v18 = vunpack.i.h.bf16 %v17361_v28  ;;  %v17397_v58 = vld [vmem:[%s20791_s3] ss:$8 sps:$4 sm:$0xff]  }
 0x534   :  { %v4456_v38 = vpack.c.bf16 %v4143_v8, %v4143_v8  ;;  %v4455_v57 = vpack.c.bf16 %v4142_v45, %v4142_v45  ;;  %v17388_v8 = vpack.c.bf16 %v16875_v20, %v21871_v40  ;;  %v21136_v45 = vunpack.i.l.bf16 %v17361_v28 }
 0x535   :  { %v17368_v0 = vpop.permute.xlu0 %11515  ;;  %4572 = vmatpush1.bf16.msra.mxu0 %v4438_v26 }
 0x536   :  { %v21133_v34 = vunpack.i.l.bf16 %v17368_v0  ;;  %v11518_v11 = vunpack.i.h.bf16 %v17368_v0  ;;  %8897 = vmatprep.subr.msk.bf16.mxu0 %vm21870_vm15, %v4456_v38  ;;  %v4499_v38 = vsel %vm21872_vm8, %v4455_v57, 0  ;;  %v21876_v57 = vld [vmem:[#allocation10_spill] sm:$0xff]  ;;  %vm21906_vm15 = vmmov %vm21872_vm8 }
 0x537   :  { %v17375_v44 = vpop.permute.xlu1 %11530 }
 0x538   :  { %21869 = vst [vmem:[#allocation23_spill] sm:$0xff] %v17375_v44  ;;  %v4026_v29 = vsel %vm980_vm13, %v11508_v25, %v21133_v34  ;;  %v4389_v25 = vpack.c.bf16 %v4025_v23, %v16678_v31  ;;  %v21873_v34 = vunpack.i.h.bf16 %v17304_v53  ;;  %v11533_v40 = vunpack.i.h.bf16 %v17375_v44 }
 0x539   :  { %v17383_v16 = vpop.permute.xlu0 %11525  ;;  %v4390_v6 = vpack.c.bf16 %v4026_v29, %v16964_v35  ;;  %4574 = vmatpush1.bf16.msra.mxu0 %v4499_v38  ;;  %v4043_v31 = vsel %vm980_vm13, %v11518_v11, %v21136_v45 }
 0x53a   :  { %v21137_v26 = vunpack.i.l.bf16 %v17383_v16  ;;  %v4042_v29 = vsel %vm980_vm13, %v21873_v34, %v11518_v11  ;;  %v11528_v20 = vunpack.i.h.bf16 %v17383_v16  ;;  %4635 = vmatprep.subr.bf16.mxu0 %v17388_v8  ;;  %v21874_v34 = vunpack.i.h.bf16 %v17286_v12 }
 0x53b   :  { %4608 = vmatprep.subr.bf16.mxu1 %v4390_v6  ;;  %v17404_v3 = vpop.permute.xlu1 %11540  ;;  %v21877_v11 = vunpack.i.h.bf16 %v21876_v57  ;;  %v21883_v57 = vld [vmem:[#allocation27_spill] sm:$0xff] }
 0x53c   :  { %4609 = vmatpush1.bf16.msra.mxu1 %v4389_v25  ;;  %v4060_v53 = vsel %vm980_vm13, %v11523_v18, %v21137_v26  ;;  %v4059_v23 = vsel %vm980_vm13, %v21874_v34, %v11523_v18  ;;  %4582 = vmatmul.mubr.bf16.vlgmr.msra.gmra.mrb[20].mxu0 %v17397_v58  ;;  %v21878_v26 = vunpack.i.h.bf16 %v17295_v13  ;;  %v21879_v18 = vunpack.i.h.bf16 %v17323_v47 }
 0x53d   :  { %v17417_v6 = vpop.permute.xlu0 %11535  ;;  %v4407_v38 = vpack.c.bf16 %v4060_v53, %v4043_v31  ;;  %v4406_v25 = vpack.c.bf16 %v4059_v23, %v4042_v29  ;;  %v3260_v45 = vsel %vm3254_vm12, %v21877_v11, %v21138_v63  ;;  %v11543_v53 = vunpack.i.h.bf16 %v17404_v3  ;;  %v21880_v29 = vld [vmem:[#allocation13_spill] sm:$0xff]  ;;  %v21881_v11 = vld [vmem:[#allocation22_spill] sm:$0xff]  ;;  %8902 = vmatprep.mubr.msk.bf16.mxu0 %vm21884_vm3, %v21883_v57 }
 0x53e   :  { %21875 = vst [vmem:[#allocation12_spill] sm:$0xff] %v17417_v6  ;;  %v21140_v19 = vunpack.i.l.bf16 %v17417_v6  ;;  %v4076_v12 = vsel %vm980_vm13, %v21878_v26, %v11528_v20  ;;  %v4093_v34 = vsel %vm980_vm13, %v21879_v18, %v11533_v40  ;;  %v11538_v31 = vunpack.i.h.bf16 %v17417_v6  ;;  %4636 = vmatpush1.bf16.msra.mxu0 %v21880_v29 }
 0x53f   :  { %4610 = vmatprep.subr.bf16.mxu1 %v4407_v38  ;;  %v17435_v23 = vpop.permute.xlu1 %11555  ;;  %4637 = vmatprep.subr.bf16.mxu0 %v21881_v11  ;;  %v21882_v13 = vunpack.i.l.bf16 %v17375_v44  ;;  %v11398_v18 = vunpack.i.h.bf16 %v17120_v14  ;;  %v4352_v63 = vpack.c.bf16 %v16989_v33, %v16913_v15  ;;  %v4423_v6 = vpack.c.bf16 %v4093_v34, %v4076_v12  ;;  %v21887_v44 = vld [vmem:[#allocation9_spill] sm:$0xff] }
 0x540   :  { %4611 = vmatpush1.bf16.msra.mxu1 %v4406_v25  ;;  %v4094_v26 = vsel %vm980_vm13, %v11533_v40, %v21140_v19  ;;  %v4351_v25 = vpack.c.bf16 %v16907_v41, %v16964_v35  ;;  %v17457_v40 = vpack.c.bf16 %v16929_v2, %v3260_v45  ;;  %v21143_v19 = vunpack.i.l.bf16 %v17234_v37 }
 0x541   :  { %v4077_v47 = vsel %vm980_vm13, %v11528_v20, %v21882_v13  ;;  %v17446_v38 = vpop.permute.xlu0 %11545  ;;  %v21885_v33 = vunpack.i.h.bf16 %v17310_v42  ;;  %v21886_v41 = vunpack.i.h.bf16 %v17341_v39  ;;  %v21888_v2 = vunpack.i.l.bf16 %v17404_v3 }
 0x542   :  { %v4424_v29 = vpack.c.bf16 %v4094_v26, %v4077_v47  ;;  %v11548_v20 = vunpack.i.h.bf16 %v17446_v38  ;;  %v21142_v47 = vunpack.i.l.bf16 %v17265_v32  ;;  %4638 = vmatpush1.bf16.msra.mxu0 %v21887_v44  ;;  %v21889_v42 = vunpack.i.l.bf16 %v17446_v38 }
 0x543   :  { %v4110_v26 = vsel %vm980_vm13, %v21885_v33, %v11538_v31  ;;  %v4127_v35 = vsel %vm980_vm13, %v21886_v41, %v11543_v53  ;;  %v17468_v13 = vpop.permute.xlu1 %3042  ;;  %4639 = vmatprep.subr.bf16.mxu0 %v17457_v40  ;;  %v4111_v45 = vsel %vm980_vm13, %v11538_v31, %v21888_v2  ;;  %v21890_v39 = vunpack.i.l.bf16 %v17329_v51  ;;  %v21894_v33 = vld [vmem:[#allocation20_spill] sm:$0xff] }
 0x544   :  { %4612 = vmatprep.subr.bf16.mxu1 %v4424_v29  ;;  %v4128_v12 = vsel %vm980_vm13, %v11543_v53, %v21889_v42  ;;  %v21891_v29 = vunpack.i.l.bf16 %v17120_v14  ;;  %v4440_v42 = vpack.c.bf16 %v4127_v35, %v4110_v26  ;;  %v21893_v14 = vunpack.i.h.bf16 %v17085_v7 }
 0x545   :  { %4613 = vmatpush1.bf16.msra.mxu1 %v4423_v6  ;;  %v4144_v34 = vsel %vm980_vm13, %v21890_v39, %v11548_v20  ;;  %v17487_v41 = vpop.permute.xlu0 %11550  ;;  %v4441_v31 = vpack.c.bf16 %v4128_v12, %v4111_v45  ;;  %v11403_v39 = vunpack.i.h.bf16 %v17149_v60  ;;  %v21895_v6 = vld [vmem:[#allocation11_spill] sm:$0xff]  ;;  %v11413_v35 = vunpack.i.h.bf16 %v17178_v30 }
 0x546   :  { %v17483_v44 = vsel %vm21892_vm7, %v21891_v29, %v11398_v18  ;;  %v11553_v53 = vunpack.i.h.bf16 %v17487_v41  ;;  %v17498_v29 = vsel %vm822_vm11, %v21893_v14, %v21143_v19  ;;  %4640 = vmatpush1.bf16.msra.mxu0 %v21894_v33  ;;  %v4457_v12 = vpack.c.bf16 %v4144_v34, %v4144_v34  ;;  %vm21933_vm7 = vmmov %vm21852_vm4 }
 0x547   :  { %4614 = vmatprep.subr.bf16.mxu1 %v4441_v31  ;;  %v17501_v45 = vpop.permute.xlu1 %3176  ;;  %v21896_v51 = vunpack.i.h.bf16 %v21895_v6  ;;  %v21897_v2 = vunpack.i.h.bf16 %v17083_v9  ;;  %v21898_v31 = vunpack.i.l.bf16 %v17435_v23  ;;  %4641 = vmatprep.subr.bf16.mxu0 %v4352_v63  ;;  %v21899_v34 = vunpack.i.h.bf16 %v17226_v43 }
 0x548   :  { %v21901_v63 = vunpack.i.l.bf16 %v17487_v41 }
 0x549   :  { %v3612_v26 = vsel %vm3606_vm14, %v21896_v51, %v21142_v47  ;;  %v17512_v7 = vsel %vm980_vm13, %v21897_v2, %v11553_v53  ;;  %v17517_v33 = vsel %vm980_vm13, %v11553_v53, %v21898_v31  ;;  %4615 = vmatpush1.bf16.msra.mxu1 %v4440_v42  ;;  %v17523_v6 = vsel %vm3186_vm2, %v21899_v34, %v17501_v45  ;;  %v17530_v2 = vpop.permute.xlu0 %3109 }
 0x54a   :  { %v21900_v51 = vunpack.i.l.bf16 %v17283_v21  ;;  %v11639_v14 = vpack.i.bf16 %v17512_v7, %v17498_v29  ;;  %v11644_v53 = vpack.i.bf16 %v17483_v44, %v17517_v33  ;;  %v4145_v43 = vsel %vm980_vm13, %v11548_v20, %v21901_v63  ;;  %4642 = vmatpush1.bf16.msra.mxu0 %v4351_v25 }
 0x54b   :  { %v21902_v42 = vunpack.i.l.bf16 %v17347_v50  ;;  %v4369_v20 = vpack.c.bf16 %v3612_v26, %v17014_v27  ;;  %v11408_v25 = vunpack.i.h.bf16 %v17118_v10  ;;  %v21932_v47 = vunpack.i.l.bf16 %v17446_v38 }
 0x54c   :  { %v17528_v9 = vsel %vm21852_vm4, %v11398_v18, %v21900_v51  ;;  %v21903_v18 = vunpack.i.h.bf16 %v17199_v61  ;;  %v4458_v51 = vpack.c.bf16 %v4145_v43, %v4145_v43  ;;  %11640 = vrot.lane.b32.xlu1 %v11639_v14, %s12432_s20  ;;  %11645 = vrot.lane.b32.xlu0 %v11644_v53, %s12432_s20  ;;  %v21905_v61 = vunpack.i.l.bf16 %v17178_v30  ;;  %v21907_v53 = vld [vmem:[#allocation7_spill] sm:$0xff] }
 0x54d   :  { %v17542_v31 = vsel %vm3535_vm9, %v11403_v39, %v21902_v42  ;;  %v21904_v42 = vunpack.i.l.bf16 %v17149_v60  ;;  %v4505_v14 = vsel %vm21872_vm8, %v4457_v12, 0  ;;  %v4303_v27 = vpack.c.bf16 %v17052_v56, %v21907_v53  ;;  %4643 = vmatprep.subr.bf16.mxu0 %v4369_v20  ;;  %v17570_v26 = vpop.permute.xlu0 %11560  ;;  %v21908_v56 = vld [vmem:[#allocation8_spill] sm:$0xff]  ;;  %v17584_v20 = vpop.permute.xlu1 %3313 }
 0x54e   :  { %v3130_v34 = vsel %vm21832_vm5, %v21903_v18, %v17530_v2  ;;  %v17564_v43 = vsel %vm196_vm1, %v21905_v61, %v11413_v35  ;;  %8899 = vmatprep.subr.msk.bf16.mxu1 %vm21906_vm15, %v4458_v51  ;;  %v4302_v12 = vpack.c.bf16 %v16969_v24, %v21908_v56  ;;  %v11448_v18 = vunpack.i.h.bf16 %v17234_v37  ;;  %vm21938_vm5 = vmmov %vm21872_vm8 }
 0x54f   :  { %v17554_v63 = vpack.c.bf16 %v17523_v6, %v3130_v34  ;;  %v17559_v19 = vsel %vm3535_vm9, %v21904_v42, %v11403_v39  ;;  %4617 = vmatpush1.bf16.msra.mxu1 %v4505_v14  ;;  %v11659_v30 = vpack.i.bf16 %v17564_v43, %v17542_v31  ;;  %v11562_v39 = vunpack.i.l.bf16 %v17570_v26  ;;  %v21909_v42 = vld [vmem:[#allocation6_spill] sm:$0xff]  ;;  %vm21940_vm15 = vmmov %vm21938_vm5 }
 0x550   :  { %v11649_v60 = vpack.i.bf16 %v17559_v19, %v17528_v9  ;;  %4678 = vmatprep.subr.bf16.mxu1 %v4303_v27  ;;  %v11453_v51 = vunpack.i.h.bf16 %v17255_v54  ;;  %v21910_v61 = vpack.c.bf16 %v21909_v42, %v16711_v49  ;;  %v11669_v14 = vpack.i.bf16 %v17253_v36, %v3130_v34  ;;  %vm21948_vm8 = vmmov %vm21884_vm3 }
 0x551   :  { %11660 = vrot.lane.b32.xlu0 %v11659_v30, %s12432_s20  ;;  %v17591_v53 = vpop.permute.xlu0 %3695  ;;  %v11654_v24 = vpack.i.bf16 %v16537_v59, %v16457_v4  ;;  %v17598_v30 = vsel %vm196_vm1, %v11413_v35, %v17468_v13  ;;  %v21911_v36 = vunpack.i.l.bf16 %v17234_v37  ;;  %v21912_v56 = vunpack.i.l.bf16 %v17118_v10 }
 0x552   :  { %11650 = vrot.lane.b32.xlu1 %v11649_v60, %s12432_s20  ;;  %4644 = vmatpush1.bf16.msra.mxu0 %v21910_v61  ;;  %v3262_v60 = vsel %vm3254_vm12, %v11408_v25, %v11562_v39  ;;  %v3719_v49 = vsel %vm3709_vm10, %v11453_v51, %v17591_v53  ;;  %v17624_v61 = vpop.permute.xlu1 %3586  ;;  %v21913_v10 = vunpack.i.l.bf16 %v17255_v54  ;;  %v21914_v54 = vunpack.i.l.bf16 %v17265_v32 }
 0x553   :  { %4625 = vmatmul.mubr.bf16.vlgmr.msra.gmra.mrb[20].mxu1 %v17397_v58  ;;  %4645 = vmatprep.subr.bf16.mxu0 %v4302_v12  ;;  %v17612_v34 = vsel %vm822_vm11, %v21911_v36, %v11448_v18  ;;  %v4337_v35 = vpack.c.bf16 %v17116_v55, %v3262_v60  ;;  %v21917_v60 = vld [vmem:[#allocation18_spill] sm:$0xff] }
 0x554   :  { %4679 = vmatpush1.bf16.msra.mxu1 %v4302_v12  ;;  %8904 = vmatprep.mubr.msk.bf16.mxu1 %vm21884_vm3, %v21883_v57  ;;  %v3261_v12 = vsel %vm3254_vm12, %v21912_v56, %v11408_v25  ;;  %v11664_v57 = vpack.i.bf16 %v17260_v1, %v17598_v30  ;;  %v11679_v42 = vpack.i.bf16 %v17612_v34, %v3719_v49  ;;  %v21918_v49 = vld [vmem:[#allocation33_spill] sm:$0xff]  ;;  %v21152_v56 = vunpack.i.h.bf16 %v17570_v26  ;;  %vm21958_vm3 = vmmov %vm21938_vm5 }
 0x555   :  { %4680 = vmatprep.subr.bf16.mxu1 %v17088_v17  ;;  %11670 = vrot.lane.b32.xlu0 %v11669_v14, %s12432_s20  ;;  %v4336_v55 = vpack.c.bf16 %v17105_v22, %v3261_v12  ;;  %v3718_v1 = vsel %vm3709_vm10, %v21913_v10, %v11453_v51  ;;  %v4353_v22 = vpack.c.bf16 %v17137_v48, %v17111_v62 }
 0x556   :  { %11655 = vrot.lane.b32.xlu1 %v11654_v24, %s12439_s21  ;;  %4646 = vmatpush1.bf16.msra.mxu0 %v17388_v8  ;;  %v11458_v8 = vunpack.i.h.bf16 %v17265_v32  ;;  %v11674_v25 = vpack.i.bf16 %v3718_v1, %v17523_v6  ;;  %v21916_v6 = vld [vmem:[#allocation31_spill] sm:$0xff]  ;;  %v17650_v36 = vpack.c.bf16 %v21918_v49, %v21917_v60  ;;  %v3263_v48 = vsel %vm3254_vm12, %v11562_v39, %v21152_v56  ;;  %v21919_v32 = vld [vmem:[#allocation29_spill] sm:$0xff] }
 0x557   :  { %4647 = vmatprep.subr.bf16.mxu0 %v16959_v52  ;;  %v21921_v39 = vunpack.i.l.bf16 %v17368_v0 }
 0x558   :  { %4681 = vmatpush1.bf16.msra.mxu1 %v16959_v52  ;;  %v4354_v52 = vpack.c.bf16 %v17143_v5, %v17129_v46  ;;  %v3614_v14 = vsel %vm3606_vm14, %v11458_v8, %v17624_v61  ;;  %v21915_v5 = vld [vmem:[#allocation34_spill] sm:$0xff] }
 0x559   :  { %4682 = vmatprep.subr.bf16.mxu1 %v4337_v35  ;;  %11680 = vrot.lane.b32.xlu0 %v11679_v42, %s12432_s20  ;;  %v4371_v51 = vpack.c.bf16 %v3614_v14, %v21915_v5  ;;  %v11558_v42 = vunpack.i.h.bf16 %v17435_v23  ;;  %v21923_v5 = vunpack.i.l.bf16 %v17383_v16 }
 0x55a   :  { %11665 = vrot.lane.b32.xlu1 %v11664_v57, %s12432_s20  ;;  %4648 = vmatpush1.bf16.msra.mxu0 %v21881_v11  ;;  %v3613_v11 = vsel %vm3606_vm14, %v21914_v54, %v11458_v8  ;;  %v17661_v57 = vpop.permute.xlu0 %3453  ;;  %v21922_v54 = vunpack.i.l.bf16 %v17361_v28 }
 0x55b   :  { %4649 = vmatprep.subr.bf16.mxu0 %v4336_v55  ;;  %v4370_v24 = vpack.c.bf16 %v3613_v11, %v21916_v6 }
 0x55c   :  { %4683 = vmatpush1.bf16.msra.mxu1 %v4336_v55  ;;  %v4027_v55 = vsel %vm980_vm13, %v21921_v39, %v11558_v42  ;;  %v21924_v39 = vld [vmem:[#allocation23_spill] sm:$0xff] }
 0x55d   :  { %4684 = vmatprep.subr.bf16.mxu1 %v4354_v52 }
 0x55e   :  { %11675 = vrot.lane.b32.xlu1 %v11674_v25, %s12432_s20  ;;  %4650 = vmatpush1.bf16.msra.mxu0 %v17457_v40  ;;  %v21920_v40 = vld [vmem:[#allocation38_spill] sm:$0xff] }
 0x55f   :  { %v17659_v12 = vpack.c.bf16 %v21920_v40, %v3263_v48 }
 0x560   :  { %4685 = vmatpush1.bf16.msra.mxu1 %v4353_v22  ;;  %v4391_v22 = vpack.c.bf16 %v4027_v55, %v16913_v15  ;;  %v21925_v55 = vunpack.i.l.bf16 %v21924_v39 }
 0x561   :  { %4686 = vmatprep.subr.bf16.mxu1 %v4371_v51 }
 0x564   :  { %4687 = vmatpush1.bf16.msra.mxu1 %v4370_v24 }
 0x565   :  { %4688 = vmatprep.subr.bf16.mxu1 %v17650_v36 }
 0x568   :  { %4689 = vmatpush1.bf16.msra.mxu1 %v4303_v27 }
 0x569   :  { %4690 = vmatprep.subr.bf16.mxu1 %v21919_v32 }
 0x56c   :  { %4691 = vmatpush1.bf16.msra.mxu1 %v17088_v17 }
 0x56d   :  { %4692 = vmatprep.subr.bf16.mxu1 %v17659_v12  ;;  %v17666_v8 = vpop.permute.xlu0 %11565 }
 0x56e   :  { %v21153_v27 = vunpack.i.l.bf16 %v17666_v8  ;;  %v11568_v10 = vunpack.i.h.bf16 %v17666_v8 }
 0x570   :  { %4693 = vmatpush1.bf16.msra.mxu1 %v4337_v35  ;;  %v4028_v1 = vsel %vm980_vm13, %v11558_v42, %v21153_v27  ;;  %v4044_v11 = vsel %vm980_vm13, %v21922_v54, %v11568_v10 }
 0x571   :  { %v17676_v17 = vpop.permute.xlu0 %11570  ;;  %v17678_v52 = vpop.permute.xlu1 %11575  ;;  %v4392_v35 = vpack.c.bf16 %v4028_v1, %v17111_v62  ;;  %v21926_v1 = vld [vmem:[#allocation12_spill] sm:$0xff] }
 0x572   :  { %v11573_v25 = vunpack.i.h.bf16 %v17676_v17  ;;  %v21150_v14 = vunpack.i.l.bf16 %v17676_v17  ;;  %v21151_v0 = vunpack.i.l.bf16 %v17678_v52  ;;  %v11578_v6 = vunpack.i.h.bf16 %v17678_v52 }
 0x573   :  { %4651 = vmatprep.subr.bf16.mxu0 %v4392_v35  ;;  %v21927_v35 = vunpack.i.l.bf16 %v21926_v1 }
 0x574   :  { %v4061_v51 = vsel %vm980_vm13, %v21923_v5, %v11573_v25  ;;  %4652 = vmatpush1.bf16.msra.mxu0 %v4391_v22  ;;  %v4045_v62 = vsel %vm980_vm13, %v11568_v10, %v21150_v14  ;;  %v4062_v15 = vsel %vm980_vm13, %v11573_v25, %v21151_v0  ;;  %v4078_v10 = vsel %vm980_vm13, %v21925_v55, %v11578_v6  ;;  %v21929_v5 = vld [vmem:[#allocation16_spill] sm:$0xff] }
 0x575   :  { %v17700_v28 = vpop.permute.xlu1 %11580  ;;  %v4409_v60 = vpack.c.bf16 %v4062_v15, %v4045_v62  ;;  %v4408_v49 = vpack.c.bf16 %v4061_v51, %v4044_v11  ;;  %v21928_v11 = vld [vmem:[#allocation25_spill] sm:$0xff] }
 0x576   :  { %v17698_v24 = vpop.permute.xlu0 %11585  ;;  %v11583_v48 = vunpack.i.h.bf16 %v17700_v28  ;;  %v21147_v40 = vunpack.i.l.bf16 %v17700_v28  ;;  %v17720_v51 = vadd.f32 %v21929_v5, %v21928_v11  ;;  %v17736_v5 = vsel %vm822_vm11, %v11448_v18, %v17584_v20 }
 0x577   :  { %v21144_v16 = vunpack.i.l.bf16 %v17698_v24  ;;  %v11588_v42 = vunpack.i.h.bf16 %v17698_v24  ;;  %4653 = vmatprep.subr.bf16.mxu0 %v4409_v60 }
 0x578   :  { %v4095_v25 = vsel %vm980_vm13, %v21927_v35, %v11583_v48  ;;  %4654 = vmatpush1.bf16.msra.mxu0 %v4408_v49  ;;  %v4079_v22 = vsel %vm980_vm13, %v11578_v6, %v21147_v40  ;;  %v11513_v35 = vunpack.i.h.bf16 %v17347_v50  ;;  %v21935_v40 = vunpack.i.l.bf16 %v17283_v21 }
 0x579   :  { %v4096_v54 = vsel %vm980_vm13, %v11583_v48, %v21144_v16  ;;  %v17724_v15 = vpop.permute.xlu1 %11590  ;;  %v4425_v39 = vpack.c.bf16 %v4095_v25, %v4078_v10  ;;  %v11463_v48 = vunpack.i.h.bf16 %v17283_v21  ;;  %v21930_v10 = vunpack.i.l.bf16 %v17404_v3 }
 0x57a   :  { %v17722_v62 = vpop.permute.xlu0 %11595  ;;  %v4426_v60 = vpack.c.bf16 %v4096_v54, %v4079_v22  ;;  %v11593_v6 = vunpack.i.h.bf16 %v17724_v15  ;;  %v21146_v1 = vunpack.i.l.bf16 %v17724_v15  ;;  %v21931_v22 = vunpack.i.l.bf16 %v17435_v23 }
 0x57b   :  { %v11598_v49 = vunpack.i.h.bf16 %v17722_v62  ;;  %v21145_v55 = vunpack.i.l.bf16 %v17722_v62  ;;  %v4112_v25 = vsel %vm980_vm13, %v21930_v10, %v11588_v42 }
 0x57c   :  { %4655 = vmatprep.subr.bf16.mxu0 %v4426_v60  ;;  %v4129_v16 = vsel %vm980_vm13, %v21932_v47, %v11593_v6  ;;  %v4113_v37 = vsel %vm980_vm13, %v11588_v42, %v21146_v1  ;;  %v17763_v47 = vsel %vm21933_vm7, %v11463_v48, %v17661_v57  ;;  %v21157_v1 = vmax.f32 %v17720_v51, 0.0  ;;  %vm21959_vm7 = vmmov %vm21958_vm3 }
 0x57d   :  { %v17744_v54 = vsel %vm980_vm13, %v21931_v22, %v11598_v49  ;;  %4656 = vmatpush1.bf16.msra.mxu0 %v4425_v39  ;;  %v4130_v3 = vsel %vm980_vm13, %v11593_v6, %v21145_v55  ;;  %v17757_v60 = vpop.permute.xlu1 %11600  ;;  %v4442_v38 = vpack.c.bf16 %v4129_v16, %v4112_v25  ;;  %v21934_v6 = vld [vmem:[#allocation17_spill] sm:$0xff]  ;;  %v17776_v16 = vsel %vm21852_vm4, %v21935_v40, %v11463_v48  ;;  %vm21962_vm4 = vmmov %vm21948_vm8 }
 0x57e   :  { %v17755_v18 = vpop.permute.xlu0 %11605  ;;  %v11684_v23 = vpack.i.bf16 %v17744_v54, %v17736_v5  ;;  %v4443_v10 = vpack.c.bf16 %v4130_v3, %v4113_v37  ;;  %v11603_v42 = vunpack.i.h.bf16 %v17757_v60  ;;  %v21148_v22 = vunpack.i.l.bf16 %v17757_v60 }
 0x57f   :  { %v21149_v39 = vunpack.i.l.bf16 %v17755_v18  ;;  %v17770_v55 = vadd.f32 %v21934_v6, %v21928_v11  ;;  %v21936_v25 = vunpack.i.l.bf16 %v17347_v50  ;;  %v21937_v40 = vunpack.i.l.bf16 %v17487_v41 }
 0x580   :  { %11685 = vrot.lane.b32.xlu1 %v11684_v23, %s12432_s20  ;;  %4657 = vmatprep.subr.bf16.mxu0 %v4443_v10  ;;  %v17787_v11 = vsel %vm980_vm13, %v11598_v49, %v21148_v22  ;;  %v21939_v22 = vld [vmem:[#allocation26_spill] sm:$0xff] }
 0x581   :  { %v17782_v37 = vsel %vm3535_vm9, %v21936_v25, %v11513_v35  ;;  %4658 = vmatpush1.bf16.msra.mxu0 %v4442_v38  ;;  %v4147_v21 = vsel %vm980_vm13, %v11603_v42, %v21149_v39  ;;  %v4146_v48 = vsel %vm980_vm13, %v21937_v40, %v11603_v42  ;;  %v17799_v23 = vpop.permute.xlu1 %3523  ;;  %v11689_v49 = vpack.i.bf16 %v17776_v16, %v17787_v11 }
 0x582   :  { %v11694_v50 = vpack.i.bf16 %v17782_v37, %v17763_v47  ;;  %v17797_v3 = vpop.permute.xlu0 %11615  ;;  %v4460_v10 = vpack.c.bf16 %v4147_v21, %v4147_v21  ;;  %v4459_v38 = vpack.c.bf16 %v4146_v48, %v4146_v48  ;;  %v21156_v41 = vmax.f32 %v17770_v55, 0.0  ;;  %v21941_v48 = vld [vmem:[#allocation35_spill] sm:$0xff] }
 0x583   :  { %v21154_v6 = vunpack.i.h.bf16 %v17797_v3  ;;  %v11617_v25 = vunpack.i.l.bf16 %v17797_v3  ;;  %v11608_v42 = vunpack.i.h.bf16 %v17755_v18  ;;  %11690 = vrot.lane.b32.xlu0 %v11689_v49, %s12432_s20  ;;  %v17818_v14 = vpack.c.bf16 %v21941_v48, %v16457_v4  ;;  %v21942_v49 = vld [vmem:[#allocation24_spill] sm:$0xff] }
 0x584   :  { %11695 = vrot.lane.b32.xlu1 %v11694_v50, %s12432_s20  ;;  %v4511_v40 = vsel %vm21938_vm5, %v4459_v38, 0  ;;  %8901 = vmatprep.subr.msk.bf16.mxu0 %vm21940_vm15, %v4460_v10  ;;  %v11699_v50 = vpack.i.bf16 %v21157_v1, %v21156_v41  ;;  %v21943_v38 = vmax.f32 %v21942_v49, 0.0  ;;  %vm21978_vm5 = vmmov %vm21958_vm3 }
 0x585   :  { %v2846_v39 = vsel %vm120_vm0, %v21939_v22, %v11617_v25  ;;  %v2847_v21 = vsel %vm120_vm0, %v11617_v25, %v21154_v6  ;;  %v21944_v22 = vld [vmem:[#allocation32_spill] sm:$0xff]  ;;  %4660 = vmatpush1.bf16.msra.mxu0 %v4511_v40  ;;  %v17834_v10 = vpop.permute.xlu1 %11610  ;;  %vm21979_vm15 = vmmov %vm21958_vm3 }
 0x586   :  { %v17826_v0 = vmax.f32 %v21943_v38, %v2846_v39  ;;  %v21945_v56 = vmax.f32 %v21944_v22, 0.0  ;;  %v17832_v25 = vpop.permute.xlu0 %11620  ;;  %v21155_v48 = vunpack.i.h.bf16 %v17834_v10  ;;  %v11612_v6 = vunpack.i.l.bf16 %v17834_v10  ;;  %4721 = vmatprep.subr.bf16.mxu0 %v17818_v14 }
 0x587   :  { %v21158_v4 = vunpack.i.l.bf16 %v17832_v25  ;;  %v17842_v39 = vsel %vm3535_vm9, %v11513_v35, %v17799_v23  ;;  %v21947_v38 = vunpack.i.h.bf16 %v17570_v26 }
 0x588   :  { %v17830_v27 = vmax.f32 %v21945_v56, %v2847_v21  ;;  %v21946_v56 = vunpack.i.l.bf16 %v17666_v8  ;;  %11700 = vrot.lane.b32.xlu1 %v11699_v50, %s12420_s30  ;;  %4007 = vrot.lane.b32.xlu0 %v17842_v39, %s12432_s20  ;;  %v3265_v8 = vsel %vm3254_vm12, %v11612_v6, %v21155_v48 }
 0x589   :  { %4668 = vmatmul.mubr.bf16.vlgmr.msra.gmra.mrb[24].mxu0 %v17397_v58  ;;  %v4030_v49 = vsel %vm980_vm13, %v11608_v42, %v21158_v4  ;;  %v17860_v35 = vpop.permute.xlu1 %11625  ;;  %v3264_v22 = vsel %vm3254_vm12, %v21947_v38, %v11612_v6  ;;  %v11623_v6 = vunpack.i.h.bf16 %v17832_v25  ;;  %v21952_v4 = vunpack.i.l.bf16 %v17700_v28 }
 0x58a   :  { %v4029_v40 = vsel %vm980_vm13, %v21946_v56, %v11608_v42  ;;  %v11704_v21 = vpack.i.bf16 %v17830_v27, %v17826_v0  ;;  %4722 = vmatpush1.bf16.msra.mxu0 %v17650_v36  ;;  %v4394_v50 = vpack.c.bf16 %v4030_v49, %v17512_v7  ;;  %v17867_v56 = vpack.c.bf16 %v17612_v34, %v3265_v8  ;;  %v17872_v42 = vld [vmem:[%s20791_s3 + $0x4] ss:$8 sps:$4 sm:$0xff]   ;;  %v21949_v36 = vld [vmem:[#allocation36_spill] sm:$0xff] }
 0x58b   :  { %8906 = vmatprep.mubr.msk.bf16.mxu0 %vm21948_vm8, %v17872_v42  ;;  %4723 = vmatprep.subr.bf16.mxu0 %v21949_v36  ;;  %v4393_v48 = vpack.c.bf16 %v4029_v40, %v17129_v46  ;;  %v11628_v49 = vunpack.i.h.bf16 %v17860_v35  ;;  %v11627_v26 = vunpack.i.l.bf16 %v17860_v35  ;;  %v17882_v34 = vpack.c.bf16 %v17498_v29, %v3264_v22  ;;  %v17885_v8 = vpop.permute.xlu0 %11630 }
 0x58c   :  { %11705 = vrot.lane.b32.xlu0 %v11704_v21, %s21486_s18  ;;  %4694 = vmatprep.subr.bf16.mxu1 %v4394_v50  ;;  %v11632_v38 = vunpack.i.l.bf16 %v17885_v8  ;;  %v21950_v46 = vunpack.i.l.bf16 %v17678_v52  ;;  %v11633_v21 = vunpack.i.h.bf16 %v17885_v8  ;;  %v21951_v50 = vunpack.i.l.bf16 %v17676_v17 }
 0x58d   :  { %4695 = vmatpush1.bf16.msra.mxu1 %v4393_v48  ;;  %v4047_v29 = vsel %vm980_vm13, %v11623_v6, %v11627_v26  ;;  %v21963_v8 = vunpack.i.l.bf16 %v17832_v25 }
 0x58e   :  { %4724 = vmatpush1.bf16.msra.mxu0 %v21919_v32  ;;  %v4063_v40 = vsel %vm980_vm13, %v21950_v46, %v11628_v49  ;;  %v4064_v48 = vsel %vm980_vm13, %v11628_v49, %v11632_v38  ;;  %v4356_v32 = vpack.c.bf16 %v17528_v9, %v17517_v33  ;;  %v4046_v22 = vsel %vm980_vm13, %v21951_v50, %v11623_v6 }
 0x58f   :  { %4725 = vmatprep.subr.bf16.mxu0 %v17882_v34  ;;  %v17905_v52 = vpop.permute.xlu0 %11635  ;;  %v4411_v46 = vpack.c.bf16 %v4064_v48, %v4047_v29  ;;  %v4410_v1 = vpack.c.bf16 %v4063_v40, %v4046_v22  ;;  %v4080_v49 = vsel %vm980_vm13, %v21952_v4, %v11633_v21  ;;  %v21953_v9 = vunpack.i.l.bf16 %v17698_v24 }
 0x590   :  { %v11638_v41 = vunpack.i.h.bf16 %v17905_v52  ;;  %v21954_v6 = vpack.c.bf16 %v17483_v44, %v17512_v7  ;;  %v21159_v29 = vunpack.i.l.bf16 %v17905_v52 }
 0x591   :  { %4696 = vmatprep.subr.bf16.mxu1 %v4411_v46 }
 0x592   :  { %4726 = vmatpush1.bf16.msra.mxu0 %v17659_v12  ;;  %v4097_v17 = vsel %vm980_vm13, %v21953_v9, %v11638_v41  ;;  %4697 = vmatpush1.bf16.msra.mxu1 %v4410_v1  ;;  %v4081_v44 = vsel %vm980_vm13, %v11633_v21, %v21159_v29  ;;  %v21956_v21 = vunpack.i.l.bf16 %v17722_v62 }
 0x593   :  { %4727 = vmatprep.subr.bf16.mxu0 %v4356_v32  ;;  %v4427_v12 = vpack.c.bf16 %v4097_v17, %v4080_v49  ;;  %v21955_v17 = vunpack.i.l.bf16 %v17724_v15 }
 0x596   :  { %4728 = vmatpush1.bf16.msra.mxu0 %v21954_v6 }
 0x5be   :  { %v17919_v48 = vpop.permute.xlu1 %11640  ;;  %v17921_v40 = vpop.permute.xlu0 %11645 }
 0x5bf   :  { %v11642_v28 = vunpack.i.l.bf16 %v17919_v48  ;;  %v11643_v4 = vunpack.i.h.bf16 %v17919_v48  ;;  %v11648_v24 = vunpack.i.h.bf16 %v17921_v40  ;;  %v21160_v32 = vunpack.i.l.bf16 %v17921_v40 }
 0x5c1   :  { %v4098_v7 = vsel %vm980_vm13, %v11638_v41, %v11642_v28  ;;  %v4114_v6 = vsel %vm980_vm13, %v21955_v17, %v11643_v4  ;;  %v4131_v29 = vsel %vm980_vm13, %v21956_v21, %v11648_v24  ;;  %v4115_v41 = vsel %vm980_vm13, %v11643_v4, %v21160_v32 }
 0x5c2   :  { %v4428_v22 = vpack.c.bf16 %v4098_v7, %v4081_v44  ;;  %v21957_v7 = vunpack.i.l.bf16 %v17755_v18  ;;  %v4444_v32 = vpack.c.bf16 %v4131_v29, %v4114_v6 }
 0x5c3   :  { %v17935_v50 = vpop.permute.xlu0 %11660 }
 0x5c4   :  { %v17933_v1 = vpop.permute.xlu1 %11650  ;;  %v21162_v9 = vunpack.i.l.bf16 %v17935_v50  ;;  %4698 = vmatprep.subr.bf16.mxu1 %v4428_v22  ;;  %v11663_v35 = vunpack.i.h.bf16 %v17935_v50 }
 0x5c5   :  { %v11653_v46 = vunpack.i.h.bf16 %v17933_v1  ;;  %v21161_v49 = vunpack.i.l.bf16 %v17933_v1  ;;  %4699 = vmatpush1.bf16.msra.mxu1 %v4427_v12 }
 0x5c7   :  { %v4132_v44 = vsel %vm980_vm13, %v11648_v24, %v21161_v49  ;;  %v4149_v15 = vsel %vm980_vm13, %v11653_v46, %v21162_v9  ;;  %v4148_v62 = vsel %vm980_vm13, %v21957_v7, %v11653_v46  ;;  %v17960_v22 = vpop.permute.xlu0 %11670 }
 0x5c8   :  { %v17958_v17 = vpop.permute.xlu1 %11655  ;;  %v4445_v12 = vpack.c.bf16 %v4132_v44, %v4115_v41  ;;  %v4462_v24 = vpack.c.bf16 %v4149_v15, %v4149_v15  ;;  %v4461_v49 = vpack.c.bf16 %v4148_v62, %v4148_v62  ;;  %v11673_v18 = vunpack.i.h.bf16 %v17960_v22  ;;  %v21960_v44 = vld [vmem:[#allocation5_spill] sm:$0xff] }
 0x5c9   :  { %v21173_v21 = vunpack.i.h.bf16 %v17958_v17  ;;  %v11657_v4 = vunpack.i.l.bf16 %v17958_v17  ;;  %v17981_v15 = vpack.c.bf16 %v17598_v30, %v21960_v44  ;;  %v21961_v30 = vld [vmem:[#allocation37_spill] sm:$0xff] }
 0x5ca   :  { %4700 = vmatprep.subr.bf16.mxu1 %v4445_v12  ;;  %v4065_v62 = vsel %vm980_vm13, %v11632_v38, %v11673_v18  ;;  %v4031_v38 = vsel %vm980_vm13, %v21963_v8, %v11663_v35 }
 0x5cb   :  { %v3615_v9 = vsel %vm3606_vm14, %v17624_v61, %v11657_v4  ;;  %4701 = vmatpush1.bf16.msra.mxu1 %v4444_v32  ;;  %v3616_v46 = vsel %vm3606_vm14, %v11657_v4, %v21173_v21  ;;  %v4517_v61 = vsel %vm21959_vm7, %v4461_v49, 0  ;;  %v4306_v32 = vpack.c.bf16 %v17564_v43, %v16537_v59 }
 0x5cc   :  { %v17970_v7 = vpop.permute.xlu1 %11665  ;;  %8903 = vmatprep.subr.msk.bf16.mxu1 %vm21958_vm3, %v4462_v24  ;;  %v4373_v41 = vpack.c.bf16 %v3616_v46, %v17542_v31  ;;  %v4372_v29 = vpack.c.bf16 %v3615_v9, %v17559_v19  ;;  %v21169_v9 = vunpack.i.l.bf16 %v17960_v22  ;;  %v4395_v12 = vpack.c.bf16 %v4031_v38, %v17517_v33  ;;  %v18020_v24 = vpop.permute.xlu0 %11680 }
 0x5cd   :  { %v11668_v6 = vunpack.i.h.bf16 %v17970_v7  ;;  %v21170_v59 = vunpack.i.l.bf16 %v17970_v7  ;;  %21964 = vst [vmem:[#allocation21_spill] sm:$0xff] %v18020_v24  ;;  %v21966_v33 = vunpack.i.l.bf16 %v17905_v52  ;;  %v21969_v38 = vunpack.i.l.bf16 %v17921_v40 }
 0x5ce   :  { %4729 = vmatprep.subr.bf16.mxu0 %v4373_v41  ;;  %vm22003_vm3 = vcmask 490496  }
 0x5cf   :  { %v4048_v19 = vsel %vm980_vm13, %v11627_v26, %v11668_v6  ;;  %4703 = vmatpush1.bf16.msra.mxu1 %v4517_v61  ;;  %4730 = vmatpush1.bf16.msra.mxu0 %v4372_v29  ;;  %v4049_v4 = vsel %vm980_vm13, %v11668_v6, %v21169_v9  ;;  %vm22004_vm7 = vmmov %vm22003_vm3 }
 0x5d0   :  { %4731 = vmatprep.subr.bf16.mxu0 %v4306_v32  ;;  %4764 = vmatprep.subr.bf16.mxu1 %v17981_v15  ;;  %v4412_v31 = vpack.c.bf16 %v4065_v62, %v4048_v19  ;;  %v17993_v43 = vpop.permute.xlu1 %11675 }
 0x5d1   :  { %v21167_v26 = vunpack.i.l.bf16 %v17993_v43  ;;  %v11678_v46 = vunpack.i.h.bf16 %v17993_v43 }
 0x5d2   :  { %4711 = vmatmul.mubr.bf16.vlgmr.msra.gmra.mrb[24].mxu1 %v17397_v58 }
 0x5d3   :  { %4732 = vmatpush1.bf16.msra.mxu0 %v17818_v14  ;;  %4765 = vmatpush1.bf16.msra.mxu1 %v4306_v32  ;;  %v4032_v14 = vsel %vm980_vm13, %v11663_v35, %v21170_v59  ;;  %v4082_v29 = vsel %vm980_vm13, %v21966_v33, %v11678_v46 }
 0x5d4   :  { %4733 = vmatprep.subr.bf16.mxu0 %v21961_v30  ;;  %4766 = vmatprep.subr.bf16.mxu1 %v17554_v63  ;;  %v4396_v49 = vpack.c.bf16 %v4032_v14, %v17744_v54 }
 0x5d5   :  { %8908 = vmatprep.mubr.msk.bf16.mxu1 %vm21962_vm4, %v17872_v42 }
 0x5d7   :  { %4734 = vmatpush1.bf16.msra.mxu0 %v21949_v36  ;;  %4767 = vmatpush1.bf16.msra.mxu1 %v21961_v30  ;;  %v4066_v36 = vsel %vm980_vm13, %v11673_v18, %v21167_v26  ;;  %v21166_v18 = vunpack.i.l.bf16 %v18020_v24 }
 0x5d8   :  { %4735 = vmatprep.subr.bf16.mxu0 %v17867_v56  ;;  %v4413_v25 = vpack.c.bf16 %v4066_v36, %v4049_v4  ;;  %v21970_v36 = vunpack.i.l.bf16 %v17933_v1 }
 0x5d9   :  { %v4083_v62 = vsel %vm980_vm13, %v11678_v46, %v21166_v18  ;;  %v21971_v46 = vunpack.i.l.bf16 %v17935_v50  ;;  %v21974_v50 = vunpack.i.h.bf16 %v17797_v3 }
 0x5db   :  { %4736 = vmatpush1.bf16.msra.mxu0 %v17882_v34  ;;  %v11683_v34 = vunpack.i.h.bf16 %v18020_v24 }
 0x5dc   :  { %4737 = vmatprep.subr.bf16.mxu0 %v4396_v49 }
 0x5dd   :  { %v4099_v32 = vsel %vm980_vm13, %v11642_v28, %v11683_v34 }
 0x5de   :  { %v4429_v35 = vpack.c.bf16 %v4099_v32, %v4082_v29 }
 0x5df   :  { %4738 = vmatpush1.bf16.msra.mxu0 %v4395_v12 }
 0x5e0   :  { %4739 = vmatprep.subr.bf16.mxu0 %v4413_v25 }
 0x5e3   :  { %4740 = vmatpush1.bf16.msra.mxu0 %v4412_v31 }
 0x5f2   :  { %v18024_v41 = vpop.permute.xlu1 %11685 }
 0x5f3   :  { %21965 = vst [vmem:[#allocation14_spill] sm:$0xff] %v18024_v41  ;;  %v21165_v6 = vunpack.i.l.bf16 %v18024_v41  ;;  %v11688_v61 = vunpack.i.h.bf16 %v18024_v41 }
 0x5f5   :  { %v4100_v19 = vsel %vm980_vm13, %v11683_v34, %v21165_v6  ;;  %v18043_v52 = vpop.permute.xlu0 %11690  ;;  %v4116_v49 = vsel %vm980_vm13, %v21969_v38, %v11688_v61 }
 0x5f6   :  { %v18041_v31 = vpop.permute.xlu1 %11695  ;;  %21968 = vst [vmem:[#allocation13_spill] sm:$0xff] %v18043_v52  ;;  %v4430_v30 = vpack.c.bf16 %v4100_v19, %v4083_v62  ;;  %v11693_v28 = vunpack.i.h.bf16 %v18043_v52  ;;  %v21164_v8 = vunpack.i.l.bf16 %v18043_v52 }
 0x5f7   :  { %21967 = vst [vmem:[#allocation10_spill] sm:$0xff] %v18041_v31  ;;  %v11698_v14 = vunpack.i.h.bf16 %v18041_v31  ;;  %v21163_v48 = vunpack.i.l.bf16 %v18041_v31 }
 0x5f8   :  { %4741 = vmatprep.subr.bf16.mxu0 %v4430_v30  ;;  %v4133_v12 = vsel %vm980_vm13, %v21970_v36, %v11693_v28  ;;  %v4117_v4 = vsel %vm980_vm13, %v11688_v61, %v21164_v8 }
 0x5f9   :  { %4742 = vmatpush1.bf16.msra.mxu0 %v4429_v35  ;;  %v4134_v25 = vsel %vm980_vm13, %v11693_v28, %v21163_v48  ;;  %v4150_v40 = vsel %vm980_vm13, %v21971_v46, %v11698_v14  ;;  %v4446_v1 = vpack.c.bf16 %v4133_v12, %v4116_v49  ;;  %v21973_v35 = vmax.f32 %v17720_v51, 0.0 }
 0x5fa   :  { %v11701_v34 = vpop.permute.xlu1 %11700  ;;  %v18064_v33 = vpop.permute.xlu0 %4007  ;;  %v4447_v29 = vpack.c.bf16 %v4134_v25, %v4117_v4  ;;  %v4463_v61 = vpack.c.bf16 %v4150_v40, %v4150_v40  ;;  %v21975_v4 = vld [vmem:[#allocation30_spill] sm:$0xff]  ;;  %v21977_v25 = vmax.f32 %v17770_v55, 0.0 }
 0x5fb   :  { %21972 = vst [vmem:[#allocation22_spill] sm:$0xff] %v18064_v33  ;;  %v11703_v32 = vunpack.i.h.bf16 %v11701_v34  ;;  %v11702_v62 = vunpack.i.l.bf16 %v11701_v34  ;;  %v4151_v19 = vsel %vm980_vm13, %v11698_v14, %v18064_v33  ;;  %v21976_v49 = vmax.f32 %v21975_v4, 0.0 }
 0x5fc   :  { %v4464_v30 = vpack.c.bf16 %v4151_v19, %v4151_v19  ;;  %4743 = vmatprep.subr.bf16.mxu0 %v4447_v29  ;;  %v4523_v51 = vsel %vm21979_vm15, %v4463_v61, 0  ;;  %v21980_v29 = vld [vmem:[#allocation15_spill] sm:$0xff] }
 0x5fd   :  { %v2887_v28 = vmax.f32 %v21973_v35, %v11703_v32  ;;  %v2848_v38 = vsel %vm120_vm0, %v21974_v50, %v11702_v62  ;;  %v2849_v36 = vsel %vm120_vm0, %v11702_v62, %v11703_v32  ;;  %4744 = vmatpush1.bf16.msra.mxu0 %v4446_v1  ;;  %v21981_v19 = vunpack.i.h.bf16 %v21980_v29  ;;  %v21982_v62 = vld [vmem:[#allocation19_spill] sm:$0xff]  ;;  %vm21984_vm0 = vmmov %vm21962_vm4 }
 0x5fe   :  { %v2885_v12 = vmax.f32 %v21976_v49, %v2848_v38  ;;  %v2886_v46 = vmax.f32 %v21977_v25, %v2849_v36  ;;  %v11706_v14 = vpop.permute.xlu0 %11705  ;;  %8905 = vmatprep.subr.msk.bf16.mxu0 %vm21978_vm5, %v4464_v30  ;;  %v21985_v36 = vld [vmem:[#allocation28_spill] sm:$0xff] }
 0x5ff   :  { %v11708_v40 = vunpack.i.h.bf16 %v11706_v14  ;;  %v11707_v34 = vunpack.i.l.bf16 %v11706_v14  ;;  %2943 = vrot.lane.b32.xlu0 %v2887_v28, %s21486_s18  ;;  %v11760_v4 = vpack.i.bf16 %v21985_v36, %v21960_v44 }
 0x600   :  { %v11709_v3 = vpack.i.bf16 %v2886_v46, %v2885_v12 }
 0x601   :  { %v2958_v1 = vsel %vm427_vm6, %v21981_v19, %v11707_v34  ;;  %v2959_v32 = vsel %vm427_vm6, %v11707_v34, %v11708_v40  ;;  %4746 = vmatpush1.bf16.msra.mxu0 %v4523_v51 }
 0x602   :  { %v18086_v55 = vmax.f32 %v21982_v62, %v2958_v1  ;;  %v18089_v35 = vmax.f32 %v17826_v0, %v2959_v32  ;;  %11710 = vrot.lane.b32.xlu1 %v11709_v3, %s21486_s18  ;;  %v4475_v0 = vld [vmem:[%s20792_s4 + $0x8] sm:$0xff] }
 0x604   :  { %21983 = vst [vmem:[#allocation27_spill] sm:$0xff] %v18086_v55  ;;  %4754 = vmatmul.mubr.bf16.vlgmr.msra.gmra.mrb[28].mxu0 %v17397_v58  ;;  %v11719_v30 = vpack.i.bf16 %v18089_v35, %v18086_v55  ;;  %v11755_v49 = vpack.i.bf16 %v18086_v55, %v21985_v36 }
 0x605   :  { %8910 = vmatprep.mubr.msk.bf16.mxu0 %vm21984_vm0, %v17872_v42  ;;  %v4474_v42 = vld [vmem:[%s20792_s4] sm:$0xff] }
 0x606   :  { %11720 = vrot.lane.b32.xlu0 %v11719_v30, %s12427_s23  ;;  %11715 = vrot.lane.b32.xlu1 %v11719_v30, %s12419_s29 }
 0x60a   :  { %11730 = vrot.lane.b32.xlu0 %v11719_v30, %s12429_s27  ;;  %11725 = vrot.lane.b32.xlu1 %v11719_v30, %s12438_s2 }
 0x60e   :  { %11740 = vrot.lane.b32.xlu0 %v11719_v30, %s12432_s20  ;;  %11735 = vrot.lane.b32.xlu1 %v11719_v30, %s12440_s26 }
 0x60f   :  { %v18105_v58 = vpop.f32.mrb[20].mxu0 }
 0x610   :  { %v18113_v61 = vpop.f32.mrb[21].mxu0 }
 0x611   :  { %v18115_v50 = vpop.f32.mrb[22].mxu0 }
 0x612   :  { %11750 = vrot.lane.b32.xlu0 %v11719_v30, %s12441_s28  ;;  %11745 = vrot.lane.b32.xlu1 %v11719_v30, %s12433_s24  ;;  %v18117_v38 = vpop.f32.mrb[23].mxu0 }
 0x616   :  { %4483 = vperm.xlu0 %10998, %v4475_v0   ;;  %4478 = vperm.xlu1 %11754, %v4474_v42  }
 0x61a   :  { %11761 = vrot.lane.b32.xlu0 %v11760_v4, %s12439_s21  ;;  %11756 = vrot.lane.b32.xlu1 %v11755_v49, %s12437_s0 }
 0x626   :  { %v18125_v25 = vpop.f32.mrb[20].mxu1 }
 0x627   :  { %v18127_v14 = vpop.f32.mrb[21].mxu1 }
 0x628   :  { %v18129_v34 = vpop.f32.mrb[22].mxu1 }
 0x629   :  { %v18131_v51 = vpop.f32.mrb[23].mxu1 }
 0x65c   :  { %v18133_v3 = vpop.f32.mrb[24].mxu0 }
 0x65d   :  { %v18135_v29 = vpop.f32.mrb[25].mxu0 }
 0x65e   :  { %v18137_v44 = vpop.f32.mrb[26].mxu0 }
 0x65f   :  { %v18139_v19 = vpop.f32.mrb[27].mxu0 }
 0x671   :  { %v2944_v1 = vpop.permute.xlu0 %2943 }
 0x672   :  { %v3000_v49 = vmax.f32 %v2887_v28, %v2944_v1 }
 0x674   :  { %v11711_v32 = vpop.permute.xlu1 %11710 }
 0x675   :  { %v11713_v62 = vunpack.i.h.bf16 %v11711_v32  ;;  %v11712_v30 = vunpack.i.l.bf16 %v11711_v32 }
 0x677   :  { %v2960_v0 = vsel %vm427_vm6, %v11708_v40, %v11712_v30  ;;  %v2961_v42 = vsel %vm427_vm6, %v11712_v30, %v11713_v62  ;;  %v2962_v4 = vsel %vm427_vm6, %v11713_v62, %v2944_v1  ;;  %vm21991_vm6 = vcmask 1014784  }
 0x678   :  { %v18145_v48 = vmax.f32 %v17830_v27, %v2960_v0  ;;  %v18147_v8 = vmax.f32 %v2885_v12, %v2961_v42  ;;  %v18149_v6 = vmax.f32 %v2886_v46, %v2962_v4  ;;  %v18151_v18 = vpop.permute.xlu0 %11720  ;;  %v18153_v26 = vpop.permute.xlu1 %11715  ;;  %vm21992_vm8 = vmmov %vm21991_vm6 }
 0x679   :  { %21989 = vst [vmem:[#allocation7_spill] sm:$0xff] %v18153_v26  ;;  %v21168_v32 = vunpack.i.h.bf16 %v18153_v26  ;;  %v11717_v40 = vunpack.i.l.bf16 %v18153_v26  ;;  %v21171_v27 = vunpack.i.h.bf16 %v18151_v18  ;;  %v11722_v12 = vunpack.i.l.bf16 %v18151_v18  ;;  %vm22019_vm4 = vmmov %vm21991_vm6 }
 0x67a   :  { %21986 = vst [vmem:[#allocation9_spill] sm:$0xff] %v18145_v48  ;;  %21987 = vst [vmem:[#allocation20_spill] sm:$0xff] %v18147_v8  ;;  %v11770_v30 = vpack.i.bf16 %v18145_v48, %v3000_v49  ;;  %v11765_v28 = vpack.i.bf16 %v18149_v6, %v18147_v8 }
 0x67b   :  { %21988 = vst [vmem:[#allocation11_spill] sm:$0xff] %v18149_v6  ;;  %v3064_v46 = vsel %vm196_vm1, %v17468_v13, %v11717_v40  ;;  %v3065_v1 = vsel %vm196_vm1, %v11717_v40, %v21168_v32  ;;  %v3131_v40 = vsel %vm21991_vm6, %v17530_v2, %v11722_v12  ;;  %v3132_v32 = vsel %vm21992_vm8, %v11722_v12, %v21171_v27  ;;  %vm22023_vm5 = vmmov %vm22019_vm4 }
 0x67c   :  { %v18168_v62 = vpack.c.bf16 %v3064_v46, %v21985_v36  ;;  %11771 = vrot.lane.b32.xlu0 %v11770_v30, %s12419_s29  ;;  %11766 = vrot.lane.b32.xlu1 %v11765_v28, %s12419_s29  ;;  %v18172_v0 = vpop.permute.xlu1 %11725  ;;  %v18175_v42 = vpack.c.bf16 %v3065_v1, %v18086_v55  ;;  %v11840_v55 = vpack.i.bf16 %v3000_v49, %v18149_v6  ;;  %vm22025_vm15 = vmmov %vm22019_vm4  ;;  %vm22072_vm8 = vcmask 1043456  }
 0x67d   :  { %v21172_v4 = vunpack.i.h.bf16 %v18172_v0  ;;  %v11727_v13 = vunpack.i.l.bf16 %v18172_v0  ;;  %v11845_v33 = vpack.i.bf16 %v3065_v1, %v3064_v46  ;;  %v11850_v52 = vpack.i.bf16 %v3132_v32, %v3131_v40  ;;  %vm22026_vm0 = vmmov %vm22019_vm4 }
 0x67e   :  { %21990 = vst [vmem:[#allocation8_spill] sm:$0xff] %v18175_v42  ;;  %4807 = vmatprep.subr.bf16.mxu0 %v18175_v42  ;;  %v18228_v42 = vpack.i.bf16 %v18147_v8, %v18145_v48 }
 0x67f   :  { %v18184_v36 = vsel %vm3186_vm2, %v17501_v45, %v11727_v13  ;;  %4808 = vmatpush1.bf16.msra.mxu0 %v18168_v62  ;;  %v3200_v9 = vsel %vm3186_vm2, %v11727_v13, %v21172_v4  ;;  %v18204_v45 = vpop.permute.xlu0 %11730 }
 0x680   :  { %v18194_v59 = vpack.c.bf16 %v18184_v36, %v3131_v40  ;;  %11781 = vrot.lane.b32.xlu0 %v11765_v28, %s12438_s2  ;;  %11776 = vrot.lane.b32.xlu1 %v11765_v28, %s12427_s23  ;;  %v18198_v2 = vpack.c.bf16 %v3200_v9, %v3132_v32  ;;  %v18210_v13 = vpop.permute.xlu1 %11735  ;;  %v11732_v46 = vunpack.i.l.bf16 %v18204_v45 }
 0x681   :  { %v11737_v26 = vunpack.i.l.bf16 %v18210_v13 }
 0x682   :  { %21993 = vst [vmem:[#allocation6_spill] sm:$0xff] %v18198_v2  ;;  %4809 = vmatprep.subr.bf16.mxu0 %v18198_v2 }
 0x683   :  { %4810 = vmatpush1.bf16.msra.mxu0 %v18194_v59  ;;  %v18208_v12 = vpop.permute.xlu0 %11740  ;;  %v3720_v49 = vsel %vm3709_vm10, %v17591_v53, %v11737_v26  ;;  %v21995_v53 = vunpack.i.h.bf16 %v17834_v10 }
 0x684   :  { %11791 = vrot.lane.b32.xlu0 %v11770_v30, %s12438_s2  ;;  %11786 = vrot.lane.b32.xlu1 %v11770_v30, %s12427_s23  ;;  %v18218_v4 = vpop.permute.xlu1 %11745  ;;  %v11742_v8 = vunpack.i.l.bf16 %v18208_v12  ;;  %v21997_v32 = vunpack.i.h.bf16 %v18208_v12 }
 0x686   :  { %v18271_v10 = vsel %vm980_vm13, %v11742_v8, %v21997_v32 }
 0x687   :  { %v18216_v27 = vpop.permute.xlu0 %11750  ;;  %21998 = vst [vmem:[#allocation31_spill] sm:$0xff] %v18271_v10 }
 0x688   :  { %11796 = vrot.lane.b32.xlu0 %v11765_v28, %s12429_s27  ;;  %11801 = vrot.lane.b32.xlu1 %v11770_v30, %s12429_s27 }
 0x68c   :  { %11806 = vrot.lane.b32.xlu0 %v11765_v28, %s12440_s26  ;;  %11811 = vrot.lane.b32.xlu1 %v11770_v30, %s12440_s26 }
 0x690   :  { %11816 = vrot.lane.b32.xlu0 %v11765_v28, %s12432_s20  ;;  %11821 = vrot.lane.b32.xlu1 %v11765_v28, %s12433_s24  ;;  %v21186_v28 = vunpack.i.h.bf16 %v18210_v13 }
 0x692   :  { %v3721_v48 = vsel %vm3709_vm10, %v11737_v26, %v21186_v28  ;;  %v11855_v26 = vpack.i.bf16 %v3200_v9, %v18184_v36  ;;  %v11752_v9 = vunpack.i.l.bf16 %v18216_v27  ;;  %v21999_v36 = vunpack.i.h.bf16 %v18204_v45 }
 0x693   :  { %v11860_v31 = vpack.i.bf16 %v3721_v48, %v3720_v49  ;;  %v21189_v48 = vunpack.i.h.bf16 %v18216_v27  ;;  %v11747_v49 = vunpack.i.l.bf16 %v18218_v4 }
 0x694   :  { %11826 = vrot.lane.b32.xlu0 %v11770_v30, %s12432_s20  ;;  %11831 = vrot.lane.b32.xlu1 %v11770_v30, %s12433_s24 }
 0x695   :  { %v18222_v21 = vpop.permute.xlu0 %4483  ;;  %v18224_v2 = vpop.permute.xlu1 %4478 }
 0x698   :  { %11836 = vrot.lane.b32.xlu0 %v18228_v42, %s12441_s28  ;;  %11841 = vrot.lane.b32.xlu1 %v11840_v55, %s12441_s28  ;;  %v4358_v55 = vpack.c.bf16 %v17763_v47, %v17787_v11  ;;  %v18280_v47 = vsel %vm822_vm11, %v11732_v46, %v21999_v36 }
 0x699   :  { %v18236_v30 = vpop.permute.xlu1 %11756  ;;  %v18239_v41 = vpop.permute.xlu0 %11761 }
 0x69a   :  { %21994 = vst [vmem:[#allocation34_spill] sm:$0xff] %v18239_v41  ;;  %v11758_v24 = vunpack.i.l.bf16 %v18236_v30  ;;  %v11763_v1 = vunpack.i.l.bf16 %v18239_v41 }
 0x69c   :  { %11851 = vrot.lane.b32.xlu0 %v11850_v52, %s12432_s20  ;;  %11846 = vrot.lane.b32.xlu1 %v11845_v33, %s12432_s20  ;;  %v3266_v40 = vsel %vm3254_vm12, %v21995_v53, %v11758_v24  ;;  %v21996_v52 = vunpack.i.l.bf16 %v17757_v60  ;;  %v21190_v60 = vunpack.i.h.bf16 %v18218_v4  ;;  %v18296_v53 = vsel %vm3535_vm9, %v17799_v23, %v11752_v9 }
 0x69d   :  { %v18259_v28 = vpack.c.bf16 %v17736_v5, %v3266_v40  ;;  %v3337_v5 = vsel %vm822_vm11, %v17584_v20, %v11732_v46  ;;  %22001 = vst [vmem:[#allocation18_spill] sm:$0xff] %v18296_v53  ;;  %v4357_v40 = vpack.c.bf16 %v17776_v16, %v17744_v54  ;;  %v22005_v23 = vunpack.i.h.bf16 %v17958_v17 }
 0x69e   :  { %v18266_v33 = vsel %vm980_vm13, %v21996_v52, %v11742_v8  ;;  %v22000_v8 = vunpack.i.h.bf16 %v18239_v41  ;;  %v11865_v32 = vpack.i.bf16 %v18280_v47, %v3337_v5 }
 0x69f   :  { %4768 = vmatprep.subr.bf16.mxu1 %v18259_v28  ;;  %v11870_v46 = vpack.i.bf16 %v18271_v10, %v18266_v33  ;;  %v3617_v52 = vsel %vm3606_vm14, %v22005_v23, %v11763_v1 }
 0x6a0   :  { %11861 = vrot.lane.b32.xlu0 %v11860_v31, %s12432_s20  ;;  %11856 = vrot.lane.b32.xlu1 %v11855_v26, %s12432_s20  ;;  %v3618_v20 = vsel %vm3606_vm14, %v11763_v1, %v22000_v8  ;;  %v18301_v31 = vsel %vm3535_vm9, %v11752_v9, %v21189_v48  ;;  %v18314_v26 = vsel %vm22004_vm7, %v11747_v49, %v21190_v60  ;;  %vm22078_vm7 = vcmask 588800  }
 0x6a1   :  { %4769 = vmatpush1.bf16.msra.mxu1 %v17867_v56  ;;  %22002 = vst [vmem:[#allocation33_spill] sm:$0xff] %v18301_v31  ;;  %v4375_v36 = vpack.c.bf16 %v3618_v20, %v17842_v39  ;;  %v4374_v1 = vpack.c.bf16 %v3617_v52, %v17782_v37  ;;  %v21199_v39 = vunpack.i.h.bf16 %v18236_v30  ;;  %v18342_v8 = vadd.f32 %v18125_v25, %v18224_v2 }
 0x6a2   :  { %4770 = vmatprep.subr.bf16.mxu1 %v4358_v55  ;;  %v18309_v55 = vsel %vm22003_vm3, %v17661_v57, %v11747_v49  ;;  %v11880_v57 = vpack.i.bf16 %v18301_v31, %v18296_v53  ;;  %v18338_v49 = vadd.f32 %v18113_v61, %v18224_v2  ;;  %v11890_v37 = vpack.i.bf16 %v18149_v6, %v18089_v35 }
 0x6a3   :  { %v11875_v17 = vpack.i.bf16 %v18314_v26, %v18309_v55  ;;  %v18349_v20 = vadd.f32 %v18117_v38, %v18222_v21  ;;  %v3267_v61 = vsel %vm3254_vm12, %v11758_v24, %v21199_v39  ;;  %v21192_v38 = vmax.f32 %v18342_v8, 0.0 }
 0x6a4   :  { %11871 = vrot.lane.b32.xlu0 %v11870_v46, %s12432_s20  ;;  %11866 = vrot.lane.b32.xlu1 %v11865_v32, %s12432_s20  ;;  %v18353_v46 = vadd.f32 %v18127_v14, %v18224_v2  ;;  %v21191_v25 = vmax.f32 %v18338_v49, 0.0  ;;  %v18369_v32 = vadd.f32 %v18105_v58, %v18224_v2  ;;  %v18377_v24 = vadd.f32 %v18129_v34, %v18222_v21 }
 0x6a5   :  { %v18303_v56 = vpop.f32.mrb[24].mxu1  ;;  %4771 = vmatpush1.bf16.msra.mxu1 %v4357_v40  ;;  %v18381_v40 = vadd.f32 %v18131_v51, %v18222_v21  ;;  %v22022_v53 = vunpack.i.h.bf16 %v18151_v18 }
 0x6a6   :  { %v18319_v9 = vpop.f32.mrb[25].mxu1  ;;  %4772 = vmatprep.subr.bf16.mxu1 %v4375_v36  ;;  %22006 = vst [vmem:[#allocation29_spill] sm:$0xff] %v18353_v46  ;;  %v21188_v14 = vmax.f32 %v18353_v46, 0.0  ;;  %v11900_v58 = vpack.i.bf16 %v21192_v38, %v21191_v25  ;;  %v21196_v34 = vmax.f32 %v18369_v32, 0.0 }
 0x6a7   :  { %v18323_v54 = vpop.f32.mrb[26].mxu1  ;;  %22007 = vst [vmem:[#allocation38_spill] sm:$0xff] %v18381_v40 }
 0x6a8   :  { %v18328_v16 = vpop.f32.mrb[27].mxu1  ;;  %11881 = vrot.lane.b32.xlu0 %v11880_v57, %s12432_s20  ;;  %11876 = vrot.lane.b32.xlu1 %v11875_v17, %s12432_s20 }
 0x6a9   :  { %4773 = vmatpush1.bf16.msra.mxu1 %v4374_v1 }
 0x6aa   :  { %4774 = vmatprep.subr.bf16.mxu1 %v18168_v62  ;;  %v21195_v62 = vmax.f32 %v18349_v20, 0.0 }
 0x6ac   :  { %11891 = vrot.lane.b32.xlu0 %v11890_v37, %s12437_s0  ;;  %11886 = vrot.lane.b32.xlu1 %v18228_v42, %s12437_s0 }
 0x6ad   :  { %4775 = vmatpush1.bf16.msra.mxu1 %v17981_v15  ;;  %v18373_v15 = vadd.f32 %v18115_v50, %v18222_v21  ;;  %v11905_v50 = vpack.i.bf16 %v21195_v62, %v21188_v14 }
 0x6ae   :  { %4776 = vmatprep.subr.bf16.mxu1 %v18194_v59  ;;  %v18385_v59 = vpack.c.bf16 %v3337_v5, %v3267_v61 }
 0x6af   :  { %v21197_v51 = vmax.f32 %v18373_v15, 0.0 }
 0x6b0   :  { %3598 = vrot.lane.b32.xlu0 %v18089_v35, %s12439_s21  ;;  %11896 = vrot.lane.b32.xlu1 %v18228_v42, %s12439_s21  ;;  %v21194_v42 = vmax.f32 %v18377_v24, 0.0 }
 0x6b1   :  { %4777 = vmatpush1.bf16.msra.mxu1 %v17554_v63  ;;  %v21187_v63 = vmax.f32 %v18381_v40, 0.0  ;;  %v11910_v5 = vpack.i.bf16 %v21197_v51, %v21196_v34 }
 0x6b2   :  { %4778 = vmatprep.subr.bf16.mxu1 %v18385_v59 }
 0x6b3   :  { %v11915_v23 = vpack.i.bf16 %v21187_v63, %v21194_v42 }
 0x6b4   :  { %11906 = vrot.lane.b32.xlu0 %v11905_v50, %s12419_s29  ;;  %11901 = vrot.lane.b32.xlu1 %v11900_v58, %s12419_s29 }
 0x6b5   :  { %4779 = vmatpush1.bf16.msra.mxu1 %v18259_v28 }
 0x6b8   :  { %11911 = vrot.lane.b32.xlu0 %v11910_v5, %s12419_s29  ;;  %11916 = vrot.lane.b32.xlu1 %v11915_v23, %s12419_s29 }
 0x6d7   :  { %v18416_v52 = vpop.f32.mrb[28].mxu0 }
 0x6d8   :  { %22008 = vst [vmem:[#allocation23_spill] sm:$0xff] %v18416_v52  ;;  %v18418_v36 = vpop.f32.mrb[29].mxu0 }
 0x6d9   :  { %22009 = vst [vmem:[#allocation12_spill] sm:$0xff] %v18418_v36  ;;  %v18420_v28 = vpop.f32.mrb[30].mxu0 }
 0x6da   :  { %22010 = vst [vmem:[#allocation25_spill] sm:$0xff] %v18420_v28  ;;  %v18422_v57 = vpop.f32.mrb[31].mxu0 }
 0x6db   :  { %22011 = vst [vmem:[#allocation16_spill] sm:$0xff] %v18422_v57 }
 0x6ee   :  { %v18424_v17 = vpop.permute.xlu0 %11771  ;;  %v11767_v1 = vpop.permute.xlu1 %11766 }
 0x6ef   :  { %v21193_v37 = vunpack.i.l.bf16 %v18424_v17  ;;  %v18427_v61 = vunpack.i.h.bf16 %v11767_v1  ;;  %v18429_v58 = vunpack.i.l.bf16 %v11767_v1  ;;  %v21198_v50 = vunpack.i.h.bf16 %v18424_v17 }
 0x6f1   :  { %22012 = vst [vmem:[#allocation17_spill] sm:$0xff] %v18427_v61  ;;  %22013 = vst [vmem:[#allocation26_spill] sm:$0xff] %v18429_v58  ;;  %v3668_v5 = vsel %vm196_vm1, %v18427_v61, %v21193_v37  ;;  %v18439_v23 = vsel %vm196_vm1, %v18429_v58, %v18427_v61  ;;  %v18454_v37 = vsel %vm196_vm1, %v21198_v50, %v18429_v58  ;;  %v22021_v58 = vunpack.i.h.bf16 %v18172_v0 }
 0x6f2   :  { %v11920_v63 = vpack.i.bf16 %v3668_v5, %v18439_v23  ;;  %v11782_v14 = vpop.permute.xlu0 %11781  ;;  %v11777_v48 = vpop.permute.xlu1 %11776 }
 0x6f3   :  { %v18442_v60 = vunpack.i.h.bf16 %v11782_v14  ;;  %v18444_v1 = vunpack.i.l.bf16 %v11782_v14  ;;  %v18446_v25 = vunpack.i.h.bf16 %v11777_v48  ;;  %v18448_v38 = vunpack.i.l.bf16 %v11777_v48 }
 0x6f4   :  { %11921 = vrot.lane.b32.xlu1 %v11920_v63, %s12432_s20 }
 0x6f5   :  { %22014 = vst [vmem:[#allocation35_spill] sm:$0xff] %v18442_v60  ;;  %22015 = vst [vmem:[#allocation24_spill] sm:$0xff] %v18444_v1  ;;  %v18460_v5 = vsel %vm3186_vm2, %v18444_v1, %v18442_v60  ;;  %v18467_v48 = vsel %vm22019_vm4, %v18448_v38, %v18446_v25 }
 0x6f6   :  { %22016 = vst [vmem:[#allocation32_spill] sm:$0xff] %v18446_v25  ;;  %22017 = vst [vmem:[#allocation36_spill] sm:$0xff] %v18448_v38  ;;  %v11925_v62 = vpack.i.bf16 %v18467_v48, %v18454_v37  ;;  %v11792_v63 = vpop.permute.xlu0 %11791  ;;  %v11787_v34 = vpop.permute.xlu1 %11786 }
 0x6f7   :  { %22018 = vst [vmem:[#allocation5_spill] sm:$0xff] %v18460_v5  ;;  %22020 = vst [vmem:[#allocation37_spill] sm:$0xff] %v18467_v48  ;;  %v11794_v50 = vunpack.i.h.bf16 %v11792_v63  ;;  %v11793_v39 = vunpack.i.l.bf16 %v11792_v63  ;;  %v11789_v61 = vunpack.i.h.bf16 %v11787_v34  ;;  %v11788_v14 = vunpack.i.l.bf16 %v11787_v34 }
 0x6f8   :  { %11926 = vrot.lane.b32.xlu0 %v11925_v62, %s12432_s20 }
 0x6f9   :  { %v18479_v31 = vsel %vm3186_vm2, %v22021_v58, %v11794_v50  ;;  %v3674_v42 = vsel %vm3186_vm2, %v18442_v60, %v11793_v39  ;;  %v18486_v41 = vsel %vm22023_vm5, %v22022_v53, %v11789_v61  ;;  %v18488_v51 = vpack.i.bf16 %v11793_v39, %v11788_v14 }
 0x6fa   :  { %v3671_v34 = vsel %vm22025_vm15, %v18446_v25, %v11788_v14  ;;  %v18494_v62 = vsel %vm22026_vm0, %v11789_v61, %v18448_v38  ;;  %v11797_v58 = vpop.permute.xlu0 %11796  ;;  %v11802_v63 = vpop.permute.xlu1 %11801  ;;  %v18504_v46 = vsel %vm3186_vm2, %v11794_v50, %v18444_v1  ;;  %v22029_v50 = vunpack.i.h.bf16 %v18210_v13  ;;  %vm22032_vm2 = vmmov %vm22003_vm3 }
 0x6fb   :  { %22024 = vst [vmem:[#allocation30_spill] sm:$0xff] %v18488_v51  ;;  %v11930_v60 = vpack.i.bf16 %v18460_v5, %v3671_v34  ;;  %v11935_v18 = vpack.i.bf16 %v18494_v62, %v3674_v42  ;;  %v11799_v53 = vunpack.i.h.bf16 %v11797_v58  ;;  %v11798_v6 = vunpack.i.l.bf16 %v11797_v58  ;;  %vm22039_vm6 = vmmov %vm22032_vm2 }
 0x6fc   :  { %v11804_v39 = vunpack.i.h.bf16 %v11802_v63  ;;  %v11803_v14 = vunpack.i.l.bf16 %v11802_v63  ;;  %v22028_v63 = vunpack.i.h.bf16 %v18204_v45  ;;  %vm22076_vm3 = vmmov %vm22072_vm8 }
 0x6fd   :  { %11931 = vrot.lane.b32.xlu1 %v11930_v60, %s12432_s20  ;;  %11936 = vrot.lane.b32.xlu0 %v11935_v18, %s12432_s20  ;;  %v18507_v42 = vsel %vm822_vm11, %v11798_v6, %v11799_v53  ;;  %vm22089_vm4 = vmmov %vm22032_vm2 }
 0x6fe   :  { %v11807_v25 = vpop.permute.xlu0 %11806  ;;  %v11812_v61 = vpop.permute.xlu1 %11811  ;;  %v18516_v18 = vsel %vm822_vm11, %v22028_v63, %v11804_v39  ;;  %v18529_v63 = vsel %vm822_vm11, %v11804_v39, %v11798_v6  ;;  %v18534_v13 = vsel %vm822_vm11, %v11799_v53, %v11803_v14  ;;  %vm22122_vm5 = vmmov %vm22076_vm3 }
 0x6ff   :  { %v11809_v38 = vunpack.i.h.bf16 %v11807_v25  ;;  %v11808_v51 = vunpack.i.l.bf16 %v11807_v25  ;;  %v11814_v40 = vunpack.i.h.bf16 %v11812_v61  ;;  %v11813_v0 = vunpack.i.l.bf16 %v11812_v61  ;;  %vm22180_vm15 = vmmov %vm22076_vm3 }
 0x700   :  { %vm22181_vm0 = vmmov %vm22076_vm3 }
 0x701   :  { %v3724_v34 = vsel %vm3709_vm10, %v11808_v51, %v11809_v38  ;;  %v3725_v60 = vsel %vm3709_vm10, %v11809_v38, %v11813_v0  ;;  %v18511_v58 = vpack.i.bf16 %v11803_v14, %v11813_v0  ;;  %v18523_v1 = vsel %vm3709_vm10, %v22029_v50, %v11814_v40 }
 0x702   :  { %v11940_v25 = vpack.i.bf16 %v3724_v34, %v18504_v46  ;;  %v11945_v61 = vpack.i.bf16 %v18507_v42, %v3725_v60  ;;  %22030 = vst [vmem:[#allocation19_spill] sm:$0xff] %v18523_v1  ;;  %v11817_v57 = vpop.permute.xlu0 %11816  ;;  %v11822_v28 = vpop.permute.xlu1 %11821  ;;  %v3723_v38 = vsel %vm3709_vm10, %v11814_v40, %v11808_v51  ;;  %vm22036_vm10 = vmmov %vm22032_vm2 }
 0x703   :  { %22027 = vst [vmem:[#allocation15_spill] sm:$0xff] %v18511_v58  ;;  %v11819_v45 = vunpack.i.h.bf16 %v11817_v57  ;;  %v11818_v58 = vunpack.i.l.bf16 %v11817_v57  ;;  %v11824_v60 = vunpack.i.h.bf16 %v11822_v28  ;;  %v11823_v40 = vunpack.i.l.bf16 %v11822_v28 }
 0x704   :  { %11941 = vrot.lane.b32.xlu1 %v11940_v25, %s12432_s20  ;;  %11946 = vrot.lane.b32.xlu0 %v11945_v61, %s12432_s20  ;;  %v11950_v51 = vpack.i.bf16 %v3723_v38, %v18534_v13  ;;  %v18553_v28 = vadd.f32 %v18137_v44, %v18222_v21 }
 0x705   :  { %v18537_v34 = vsel %vm980_vm13, %v11818_v58, %v11819_v45  ;;  %v18556_v14 = vsel %vm22032_vm2, %v11823_v40, %v11824_v60  ;;  %vm22184_vm2 = vmmov %vm22078_vm7 }
 0x706   :  { %22031 = vst [vmem:[#allocation28_spill] sm:$0xff] %v18537_v34  ;;  %v18540_v50 = vpop.permute.xlu0 %11826  ;;  %v18542_v57 = vpop.permute.xlu1 %11831  ;;  %v11955_v6 = vpack.i.bf16 %v18537_v34, %v18529_v63  ;;  %22033 = vst [vmem:[#allocation39_spill] sm:$0xff] %v18556_v14 }
 0x707   :  { %v21214_v39 = vunpack.i.h.bf16 %v18540_v50  ;;  %v11828_v25 = vunpack.i.l.bf16 %v18540_v50  ;;  %v11833_v53 = vunpack.i.l.bf16 %v18542_v57 }
 0x708   :  { %11951 = vrot.lane.b32.xlu1 %v11950_v51, %s12432_s20  ;;  %11956 = vrot.lane.b32.xlu0 %v11955_v6, %s12432_s20  ;;  %v21216_v6 = vunpack.i.h.bf16 %v18542_v57 }
 0x709   :  { %v18561_v61 = vsel %vm980_vm13, %v21214_v39, %v11818_v58  ;;  %v18564_v38 = vsel %vm980_vm13, %v11819_v45, %v11828_v25  ;;  %v18569_v0 = vpack.i.bf16 %v11833_v53, %v11828_v25  ;;  %v3731_v44 = vsel %vm22036_vm10, %v11824_v60, %v11833_v53  ;;  %vm22215_vm10 = vmmov %vm22181_vm0 }
 0x70a   :  { %22034 = vst [vmem:[#allocation40_spill] sm:$0xff] %v18564_v38  ;;  %v11960_v51 = vpack.i.bf16 %v18556_v14, %v18564_v38  ;;  %v18572_v1 = vpop.permute.xlu0 %11836  ;;  %v18574_v36 = vpop.permute.xlu1 %11841  ;;  %v11965_v52 = vpack.i.bf16 %v18561_v61, %v3731_v44  ;;  %v18580_v45 = vadd.f32 %v18133_v3, %v18224_v2  ;;  %v18584_v39 = vadd.f32 %v18135_v29, %v18224_v2 }
 0x70b   :  { %22035 = vst [vmem:[#allocation41_spill] sm:$0xff] %v18569_v0  ;;  %22037 = vst [vmem:[#allocation42_spill] sm:$0xff] %v18574_v36  ;;  %v11839_v58 = vunpack.i.h.bf16 %v18572_v1  ;;  %v18588_v25 = vadd.f32 %v18139_v19, %v18222_v21  ;;  %v21218_v60 = vunpack.i.l.bf16 %v18572_v1  ;;  %v21220_v53 = vunpack.i.h.bf16 %v18574_v36 }
 0x70c   :  { %v11843_v44 = vunpack.i.l.bf16 %v18574_v36  ;;  %11961 = vrot.lane.b32.xlu1 %v11960_v51, %s12432_s20  ;;  %11966 = vrot.lane.b32.xlu0 %v11965_v52, %s12432_s20  ;;  %v18598_v3 = vsel %vm22039_vm6, %v21216_v6, %v11823_v40  ;;  %vm12444_vm6 = vmmov 0  }
 0x70d   :  { %22038 = vst [vmem:[#allocation43_spill] sm:$0xff] %v18588_v25  ;;  %v18603_v29 = vsel %vm3535_vm9, %v21218_v60, %v11839_v58 }
 0x70e   :  { %v18606_v19 = vsel %vm3535_vm9, %v11839_v58, %v11843_v44  ;;  %v3734_v38 = vsel %vm3535_vm9, %v11843_v44, %v21220_v53  ;;  %v18611_v51 = vpop.permute.xlu0 %11851  ;;  %v18613_v52 = vpop.permute.xlu1 %11846  ;;  %v11970_v40 = vpack.i.bf16 %v18603_v29, %v18598_v3 }
 0x70f   :  { %22040 = vst [vmem:[#allocation44_spill] sm:$0xff] %v18606_v19  ;;  %22041 = vst [vmem:[#allocation45_spill] sm:$0xff] %v18611_v51  ;;  %v11975_v6 = vpack.i.bf16 %v3734_v38, %v18606_v19  ;;  %v21227_v36 = vunpack.i.h.bf16 %v18613_v52  ;;  %v11848_v44 = vunpack.i.l.bf16 %v18613_v52  ;;  %v11853_v34 = vunpack.i.l.bf16 %v18611_v51 }
 0x710   :  { %22042 = vst [vmem:[#allocation46_spill] sm:$0xff] %v18613_v52  ;;  %11971 = vrot.lane.b32.xlu1 %v11970_v40, %s12432_s20  ;;  %v22043_v38 = vunpack.i.l.bf16 %v17970_v7  ;;  %v22046_v40 = vmax.f32 %v18580_v45, 0.0  ;;  %v22048_v7 = vmax.f32 %v18553_v28, 0.0 }
 0x711   :  { %11976 = vrot.lane.b32.xlu0 %v11975_v6, %s12432_s20  ;;  %v4034_v0 = vsel %vm980_vm13, %v11848_v44, %v21227_v36  ;;  %v22047_v6 = vmax.f32 %v18584_v39, 0.0 }
 0x712   :  { %v4033_v60 = vsel %vm980_vm13, %v22043_v38, %v11848_v44  ;;  %v18631_v14 = vpop.permute.xlu0 %11861  ;;  %v18637_v19 = vpop.permute.xlu1 %11856  ;;  %v4398_v53 = vpack.c.bf16 %v4034_v0, %v18266_v33  ;;  %v22049_v38 = vmax.f32 %v18588_v25, 0.0  ;;  %v22051_v0 = vunpack.i.h.bf16 %v18611_v51 }
 0x713   :  { %22044 = vst [vmem:[#allocation47_spill] sm:$0xff] %v18631_v14  ;;  %v4397_v58 = vpack.c.bf16 %v4033_v60, %v17787_v11  ;;  %22045 = vst [vmem:[#allocation48_spill] sm:$0xff] %v18637_v19  ;;  %v11980_v48 = vpack.i.bf16 %v22047_v6, %v22046_v40  ;;  %v21231_v52 = vunpack.i.h.bf16 %v18637_v19  ;;  %v11858_v44 = vunpack.i.l.bf16 %v18637_v19  ;;  %v22057_v19 = vld [vmem:[#allocation14_spill] sm:$0xff] }
 0x714   :  { %v11985_v5 = vpack.i.bf16 %v22049_v38, %v22048_v7  ;;  %v22050_v11 = vunpack.i.l.bf16 %v17960_v22  ;;  %4780 = vmatprep.subr.bf16.mxu1 %v4398_v53  ;;  %v4051_v40 = vsel %vm980_vm13, %v11853_v34, %v22051_v0  ;;  %v11863_v36 = vunpack.i.l.bf16 %v18631_v14 }
 0x715   :  { %11981 = vrot.lane.b32.xlu1 %v11980_v48, %s12419_s29  ;;  %v22052_v7 = vunpack.i.l.bf16 %v17993_v43  ;;  %4781 = vmatpush1.bf16.msra.mxu1 %v4397_v58  ;;  %v4068_v48 = vsel %vm980_vm13, %v11858_v44, %v21231_v52  ;;  %v22058_v25 = vunpack.i.l.bf16 %v22057_v19  ;;  %v22062_v43 = vld [vmem:[#allocation13_spill] sm:$0xff] }
 0x716   :  { %v4050_v60 = vsel %vm980_vm13, %v22050_v11, %v11853_v34  ;;  %11986 = vrot.lane.b32.xlu0 %v11985_v5, %s12419_s29  ;;  %v18663_v22 = vpop.permute.xlu0 %11871  ;;  %v18668_v11 = vpop.permute.xlu1 %11866  ;;  %v4415_v34 = vpack.c.bf16 %v4068_v48, %v4051_v40  ;;  %v22055_v5 = vld [vmem:[#allocation21_spill] sm:$0xff]  ;;  %v22060_v40 = vunpack.i.h.bf16 %v18631_v14  ;;  %v22063_v14 = vunpack.i.l.bf16 %v22062_v43  ;;  %v22067_v43 = vld [vmem:[#allocation22_spill] sm:$0xff] }
 0x717   :  { %v4067_v38 = vsel %vm980_vm13, %v22052_v7, %v11858_v44  ;;  %22053 = vst [vmem:[#allocation49_spill] sm:$0xff] %v18663_v22  ;;  %22054 = vst [vmem:[#allocation50_spill] sm:$0xff] %v18668_v11  ;;  %v21233_v0 = vunpack.i.h.bf16 %v18668_v11  ;;  %v11868_v6 = vunpack.i.l.bf16 %v18668_v11  ;;  %v11873_v7 = vunpack.i.l.bf16 %v18663_v22 }
 0x718   :  { %v4414_v53 = vpack.c.bf16 %v4067_v38, %v4050_v60  ;;  %4782 = vmatprep.subr.bf16.mxu1 %v4415_v34  ;;  %v22056_v58 = vunpack.i.l.bf16 %v22055_v5  ;;  %v4085_v38 = vsel %vm980_vm13, %v11863_v36, %v22060_v40  ;;  %v22064_v40 = vunpack.i.h.bf16 %v18663_v22 }
 0x719   :  { %v4101_v44 = vsel %vm980_vm13, %v22058_v25, %v11868_v6  ;;  %v4102_v48 = vsel %vm980_vm13, %v11868_v6, %v21233_v0  ;;  %v22080_v11 = vmax.f32 %v18369_v32, 0.0 }
 0x71a   :  { %v4084_v51 = vsel %vm980_vm13, %v22056_v58, %v11863_v36  ;;  %4783 = vmatpush1.bf16.msra.mxu1 %v4414_v53  ;;  %v18680_v60 = vpop.permute.xlu0 %11881  ;;  %v18690_v52 = vpop.permute.xlu1 %11876  ;;  %v4432_v19 = vpack.c.bf16 %v4102_v48, %v4085_v38  ;;  %v4118_v36 = vsel %vm980_vm13, %v22063_v14, %v11873_v7 }
 0x71b   :  { %22059 = vst [vmem:[#allocation21_spill] sm:$0xff] %v18680_v60  ;;  %v4431_v34 = vpack.c.bf16 %v4101_v44, %v4084_v51  ;;  %v21235_v5 = vunpack.i.h.bf16 %v18680_v60  ;;  %v11883_v58 = vunpack.i.l.bf16 %v18680_v60  ;;  %22061 = vst [vmem:[#allocation14_spill] sm:$0xff] %v18690_v52  ;;  %v21237_v25 = vunpack.i.h.bf16 %v18690_v52  ;;  %v22065_v44 = vld [vmem:[#allocation10_spill] sm:$0xff] }
 0x71c   :  { %v11878_v53 = vunpack.i.l.bf16 %v18690_v52  ;;  %4784 = vmatprep.subr.bf16.mxu1 %v4432_v19  ;;  %v4119_v51 = vsel %vm980_vm13, %v11873_v7, %v22064_v40  ;;  %v22066_v0 = vunpack.i.l.bf16 %v22065_v44 }
 0x71d   :  { %v4153_v6 = vsel %vm980_vm13, %v11883_v58, %v21235_v5  ;;  %v4152_v19 = vsel %vm980_vm13, %v22067_v43, %v11883_v58 }
 0x71e   :  { %v4135_v38 = vsel %vm980_vm13, %v22066_v0, %v11878_v53  ;;  %4785 = vmatpush1.bf16.msra.mxu1 %v4431_v34  ;;  %v18706_v48 = vpop.permute.xlu0 %11891  ;;  %v4136_v14 = vsel %vm980_vm13, %v11878_v53, %v21237_v25  ;;  %v11887_v5 = vpop.permute.xlu1 %11886  ;;  %v4466_v0 = vpack.c.bf16 %v4153_v6, %v4153_v6  ;;  %v22070_v53 = vunpack.i.h.bf16 %v18236_v30 }
 0x71f   :  { %v4448_v22 = vpack.c.bf16 %v4135_v38, %v4118_v36  ;;  %v21238_v7 = vunpack.i.h.bf16 %v18706_v48  ;;  %v11893_v40 = vunpack.i.l.bf16 %v18706_v48  ;;  %v4449_v60 = vpack.c.bf16 %v4136_v14, %v4119_v51  ;;  %v22074_v14 = vld [vmem:[#allocation7_spill] sm:$0xff] }
 0x720   :  { %v18715_v44 = vunpack.i.h.bf16 %v11887_v5  ;;  %v4465_v36 = vpack.c.bf16 %v4152_v19, %v4152_v19  ;;  %v4360_v30 = vpack.c.bf16 %v18314_v26, %v18271_v10  ;;  %v22075_v19 = vunpack.i.h.bf16 %v22074_v14 }
 0x721   :  { %v18720_v34 = vpack.c.bf16 %v18534_v13, %v21238_v7  ;;  %4786 = vmatprep.subr.bf16.mxu1 %v4449_v60  ;;  %v3268_v58 = vsel %vm3254_vm12, %v22070_v53, %v11893_v40  ;;  %v11888_v13 = vunpack.i.l.bf16 %v11887_v5  ;;  %v22073_v60 = vunpack.i.h.bf16 %v18424_v17  ;;  %v22077_v53 = vld [vmem:[#allocation9_spill] sm:$0xff] }
 0x722   :  { %22068 = vst [vmem:[#allocation13_spill] sm:$0xff] %v18715_v44  ;;  %4787 = vmatpush1.bf16.msra.mxu1 %v4448_v22  ;;  %v18727_v43 = vpop.permute.xlu0 %3598  ;;  %v18730_v51 = vpack.c.bf16 %v18280_v47, %v3268_v58  ;;  %v18732_v6 = vpop.permute.xlu1 %11896  ;;  %v4529_v47 = vsel %vm22076_vm3, %v4465_v36, 0  ;;  %v18753_v5 = vadd.f32 %v18303_v56, %v18224_v2  ;;  %v4359_v58 = vpack.c.bf16 %v18309_v55, %v18266_v33  ;;  %v18774_v33 = vld [vmem:[%s20791_s3] ss:$8 sps:$4 sm:$0xff]  }
 0x723   :  { %22069 = vst [vmem:[#allocation10_spill] sm:$0xff] %v18720_v34  ;;  %22071 = vst [vmem:[#allocation22_spill] sm:$0xff] %v18732_v6  ;;  %8907 = vmatprep.subr.msk.bf16.mxu1 %vm22072_vm8, %v4466_v0  ;;  %v18743_v22 = vsel %vm196_vm1, %v22075_v19, %v22073_v60  ;;  %v18749_v0 = vpack.c.bf16 %v18454_v37, %v22077_v53  ;;  %v3270_v56 = vsel %vm3254_vm12, %v11888_v13, %v18715_v44  ;;  %vm6162_vm8 = vsmask.f32 7424 }
 0x724   :  { %4811 = vmatprep.subr.bf16.mxu0 %v18730_v51  ;;  %v18766_v37 = vpack.c.bf16 %v18743_v22, %v18089_v35  ;;  %v18779_v55 = vpack.c.bf16 %v18504_v46, %v18494_v62  ;;  %v18788_v19 = vpack.c.bf16 %v18479_v31, %v18486_v41  ;;  %v12328_v46 = vld [vmem:[%s20791_s3 + $0x4] ss:$8 sps:$4 sm:$0xff]   ;;  %v4345_v38 = vpack.c.bf16 %v18529_v63, %v3270_v56 }
 0x725   :  { %4812 = vmatpush1.bf16.msra.mxu0 %v18385_v59  ;;  %v18762_v59 = vadd.f32 %v18319_v9, %v18224_v2  ;;  %v18784_v9 = vadd.f32 %v18323_v54, %v18222_v21 }
 0x726   :  { %4789 = vmatpush1.bf16.msra.mxu1 %v4529_v47  ;;  %4813 = vmatprep.subr.bf16.mxu0 %v4360_v30  ;;  %v18755_v26 = vpop.permute.xlu0 %11906  ;;  %v11902_v36 = vpop.permute.xlu1 %11901  ;;  %v3269_v47 = vsel %vm3254_vm12, %v11893_v40, %v11888_v13  ;;  %v11898_v13 = vunpack.i.l.bf16 %v18732_v6  ;;  %v22079_v40 = vmax.f32 %v18373_v15, 0.0  ;;  %v22082_v15 = vmax.f32 %v18377_v24, 0.0 }
 0x727   :  { %4850 = vmatprep.subr.bf16.mxu1 %v18749_v0  ;;  %v21259_v30 = vunpack.i.l.bf16 %v18755_v26  ;;  %v11904_v60 = vunpack.i.h.bf16 %v11902_v36  ;;  %v11903_v14 = vunpack.i.l.bf16 %v11902_v36  ;;  %v11909_v62 = vunpack.i.h.bf16 %v18755_v26 }
 0x728   :  { %v18838_v32 = vpack.c.bf16 %v18516_v18, %v3269_v47  ;;  %v22086_v24 = vunpack.i.h.bf16 %v18208_v12  ;;  %v22087_v47 = vunpack.i.h.bf16 %v18542_v57  ;;  %v22090_v12 = vunpack.i.h.bf16 %v18732_v6 }
 0x729   :  { %4797 = vmatmul.mubr.bf16.vlgmr.msra.gmra.mrb[28].mxu1 %v18774_v33  ;;  %4814 = vmatpush1.bf16.msra.mxu0 %v4359_v58  ;;  %v5071_v35 = vsel %vm196_vm1, %v11903_v14, %v11904_v60 }
 0x72a   :  { %4851 = vmatpush1.bf16.msra.mxu1 %v18766_v37  ;;  %v11912_v53 = vpop.permute.xlu0 %11911  ;;  %8912 = vmatprep.mubr.msk.bf16.mxu1 %vm22078_vm7, %v12328_v46  ;;  %v18798_v54 = vpop.permute.xlu1 %11916  ;;  %v5072_v46 = vsel %vm196_vm1, %v11904_v60, %v21259_v30  ;;  %v21255_v60 = vmax.f32 %v18762_v59, 0.0  ;;  %vm6242_vm7 = vcmask 1046528  }
 0x72b   :  { %4852 = vmatprep.subr.bf16.mxu1 %v18779_v55  ;;  %v11914_v58 = vunpack.i.h.bf16 %v11912_v53  ;;  %v11913_v36 = vunpack.i.l.bf16 %v11912_v53  ;;  %v21257_v25 = vunpack.i.h.bf16 %v18798_v54  ;;  %v11918_v7 = vunpack.i.l.bf16 %v18798_v54 }
 0x72d   :  { %v5086_v34 = vsel %vm196_vm1, %v11914_v58, %v11909_v62  ;;  %v5070_v53 = vsel %vm196_vm1, %v11913_v36, %v11903_v14  ;;  %v5087_v63 = vsel %vm196_vm1, %v11909_v62, %v11918_v7  ;;  %v5088_v56 = vsel %vm196_vm1, %v11918_v7, %v21257_v25 }
 0x72e   :  { %v18817_v52 = vmax.f32 %v22079_v40, %v5086_v34  ;;  %v18821_v10 = vmax.f32 %v22080_v11, %v5070_v53  ;;  %4853 = vmatpush1.bf16.msra.mxu1 %v18788_v19  ;;  %v18827_v14 = vadd.f32 %v18328_v16, %v18222_v21  ;;  %v22081_v62 = vmax.f32 %v18349_v20, 0.0 }
 0x72f   :  { %v18835_v7 = vmax.f32 %v22082_v15, %v5088_v56  ;;  %4854 = vmatprep.subr.bf16.mxu1 %v4345_v38  ;;  %v22083_v11 = vmax.f32 %v18342_v8, 0.0  ;;  %v22084_v36 = vmax.f32 %v18338_v49, 0.0  ;;  %v22085_v40 = vunpack.i.h.bf16 %v18540_v50 }
 0x730   :  { %v18831_v58 = vmax.f32 %v22081_v62, %v5087_v63  ;;  %v11990_v20 = vpack.i.bf16 %v18817_v52, %v18821_v10  ;;  %v22088_v8 = vunpack.i.h.bf16 %v18218_v4  ;;  %v4362_v49 = vpack.c.bf16 %v18598_v3, %v18561_v61 }
 0x731   :  { %v18842_v34 = vmax.f32 %v22083_v11, %v5072_v46  ;;  %v18846_v16 = vmax.f32 %v22084_v36, %v5071_v35  ;;  %v18855_v53 = vsel %vm980_vm13, %v22086_v24, %v22085_v40  ;;  %v3622_v50 = vsel %vm3606_vm14, %v11898_v13, %v22090_v12  ;;  %v22094_v24 = vld [vmem:[#allocation20_spill] sm:$0xff] }
 0x732   :  { %v18862_v46 = vsel %vm22089_vm4, %v22088_v8, %v22087_v47  ;;  %v12000_v35 = vpack.i.bf16 %v18835_v7, %v18831_v58  ;;  %4855 = vmatpush1.bf16.msra.mxu1 %v18838_v32  ;;  %11991 = vrot.lane.b32.xlu1 %v11990_v20, %s12429_s27  ;;  %v21256_v4 = vmax.f32 %v18784_v9, 0.0  ;;  %v21249_v57 = vmax.f32 %v18827_v14, 0.0  ;;  %v22096_v8 = vld [vmem:[#allocation5_spill] sm:$0xff] }
 0x733   :  { %4856 = vmatprep.subr.bf16.mxu1 %v4362_v49  ;;  %v4361_v3 = vpack.c.bf16 %v18862_v46, %v18855_v53  ;;  %v11995_v63 = vpack.i.bf16 %v18842_v34, %v18846_v16  ;;  %v22091_v56 = vmax.f32 %v18753_v5, 0.0  ;;  %v3621_v15 = vsel %vm3606_vm14, %v18727_v43, %v11898_v13  ;;  %v22097_v49 = vld [vmem:[#allocation37_spill] sm:$0xff] }
 0x734   :  { %12001 = vrot.lane.b32.xlu0 %v12000_v35, %s12429_s27  ;;  %v4379_v11 = vpack.c.bf16 %v3622_v50, %v18603_v29  ;;  %v22092_v36 = vunpack.i.l.bf16 %v18572_v1  ;;  %v22093_v20 = vunpack.i.h.bf16 %v18216_v27  ;;  %v12010_v13 = vpack.i.bf16 %v21249_v57, %v21256_v4 }
 0x735   :  { %v12005_v62 = vpack.i.bf16 %v21255_v60, %v22091_v56  ;;  %v4381_v47 = vpack.c.bf16 %v18439_v23, %v22094_v24  ;;  %v22095_v27 = vunpack.i.h.bf16 %v18706_v48  ;;  %v22098_v35 = vpack.c.bf16 %v22096_v8, %v22097_v49 }
 0x736   :  { %4857 = vmatpush1.bf16.msra.mxu1 %v4361_v3  ;;  %11996 = vrot.lane.b32.xlu1 %v11995_v63, %s12429_s27  ;;  %v18893_v40 = vsel %vm3535_vm9, %v22093_v20, %v22092_v36  ;;  %v22100_v63 = vld [vmem:[#allocation28_spill] sm:$0xff]  ;;  %vm22113_vm9 = vmmov %vm22076_vm3  ;;  %vm6095_vm3 = vcmask 203776   ;;  %vm6309_vm4 = vsmask.f32 6400 }
 0x737   :  { %4858 = vmatprep.subr.bf16.mxu1 %v4379_v11  ;;  %v4378_v29 = vpack.c.bf16 %v3621_v15, %v18893_v40  ;;  %v3658_v1 = vsel %vm3254_vm12, %v18715_v44, %v22095_v27 }
 0x738   :  { %12006 = vrot.lane.b32.xlu0 %v12005_v62, %s12419_s29  ;;  %v4385_v12 = vpack.c.bf16 %v18507_v42, %v3658_v1 }
 0x73a   :  { %4859 = vmatpush1.bf16.msra.mxu1 %v4378_v29  ;;  %12011 = vrot.lane.b32.xlu1 %v12010_v13, %s12419_s29 }
 0x73b   :  { %4860 = vmatprep.subr.bf16.mxu1 %v4381_v47 }
 0x73e   :  { %4861 = vmatpush1.bf16.msra.mxu1 %v18749_v0 }
 0x73f   :  { %4862 = vmatprep.subr.bf16.mxu1 %v22098_v35 }
 0x742   :  { %4863 = vmatpush1.bf16.msra.mxu1 %v18779_v55 }
 0x743   :  { %4864 = vmatprep.subr.bf16.mxu1 %v4385_v12 }
 0x746   :  { %4865 = vmatpush1.bf16.msra.mxu1 %v4345_v38 }
 0x766   :  { %v18914_v23 = vpop.permute.xlu1 %11921 }
 0x767   :  { %22099 = vst [vmem:[#allocation7_spill] sm:$0xff] %v18914_v23  ;;  %v21244_v50 = vunpack.i.h.bf16 %v18914_v23  ;;  %v11923_v0 = vunpack.i.l.bf16 %v18914_v23 }
 0x769   :  { %v4038_v48 = vsel %vm980_vm13, %v11923_v0, %v21244_v50 }
 0x76a   :  { %v18921_v3 = vpop.permute.xlu0 %11926  ;;  %v4402_v56 = vpack.c.bf16 %v4038_v48, %v22100_v63 }
 0x76b   :  { %v21248_v62 = vunpack.i.l.bf16 %v18921_v3  ;;  %v11929_v36 = vunpack.i.h.bf16 %v18921_v3 }
 0x76c   :  { %4866 = vmatprep.subr.bf16.mxu1 %v4402_v56 }
 0x76d   :  { %v4037_v38 = vsel %vm980_vm13, %v21248_v62, %v11923_v0 }
 0x76e   :  { %v4401_v55 = vpack.c.bf16 %v4037_v38, %v18561_v61 }
 0x76f   :  { %v18929_v15 = vpop.permute.xlu1 %11931  ;;  %v18931_v11 = vpop.permute.xlu0 %11936 }
 0x770   :  { %22101 = vst [vmem:[#allocation9_spill] sm:$0xff] %v18929_v15  ;;  %v11934_v20 = vunpack.i.h.bf16 %v18929_v15  ;;  %v21243_v13 = vunpack.i.l.bf16 %v18929_v15  ;;  %v21242_v29 = vunpack.i.l.bf16 %v18931_v11  ;;  %4867 = vmatpush1.bf16.msra.mxu1 %v4401_v55  ;;  %v21246_v1 = vunpack.i.h.bf16 %v18931_v11 }
 0x772   :  { %v4055_v47 = vsel %vm980_vm13, %v11929_v36, %v21243_v13  ;;  %v4072_v61 = vsel %vm980_vm13, %v11934_v20, %v21242_v29  ;;  %v4054_v12 = vsel %vm980_vm13, %v21246_v1, %v11929_v36 }
 0x773   :  { %v4419_v27 = vpack.c.bf16 %v4072_v61, %v4055_v47 }
 0x775   :  { %4868 = vmatprep.subr.bf16.mxu1 %v4419_v27 }
 0x776   :  { %v18944_v8 = vpop.permute.xlu1 %11941  ;;  %v18946_v49 = vpop.permute.xlu0 %11946 }
 0x777   :  { %22102 = vst [vmem:[#allocation20_spill] sm:$0xff] %v18946_v49  ;;  %v21245_v35 = vunpack.i.l.bf16 %v18944_v8  ;;  %v11944_v0 = vunpack.i.h.bf16 %v18944_v8  ;;  %v21251_v56 = vunpack.i.l.bf16 %v18946_v49  ;;  %v11949_v61 = vunpack.i.h.bf16 %v18946_v49 }
 0x779   :  { %v4071_v48 = vsel %vm980_vm13, %v21245_v35, %v11934_v20 }
 0x77a   :  { %v4418_v38 = vpack.c.bf16 %v4071_v48, %v4054_v12  ;;  %v18957_v55 = vpop.permute.xlu1 %11951  ;;  %v18959_v47 = vpop.permute.xlu0 %11956  ;;  %v4089_v48 = vsel %vm980_vm13, %v11944_v0, %v21251_v56 }
 0x77b   :  { %v21247_v27 = vunpack.i.h.bf16 %v18957_v55  ;;  %v21252_v29 = vunpack.i.l.bf16 %v18957_v55  ;;  %v21250_v36 = vunpack.i.l.bf16 %v18959_v47  ;;  %v11959_v1 = vunpack.i.h.bf16 %v18959_v47 }
 0x77c   :  { %4869 = vmatpush1.bf16.msra.mxu1 %v4418_v38 }
 0x77d   :  { %v4088_v20 = vsel %vm980_vm13, %v21247_v27, %v11944_v0  ;;  %v4105_v12 = vsel %vm980_vm13, %v21250_v36, %v11949_v61  ;;  %v4106_v13 = vsel %vm980_vm13, %v11949_v61, %v21252_v29 }
 0x77e   :  { %v4435_v50 = vpack.c.bf16 %v4105_v12, %v4088_v20  ;;  %v18977_v35 = vpop.permute.xlu1 %11961  ;;  %v4436_v38 = vpack.c.bf16 %v4106_v13, %v4089_v48  ;;  %v18982_v57 = vpop.permute.xlu0 %11966 }
 0x77f   :  { %22103 = vst [vmem:[#allocation5_spill] sm:$0xff] %v18977_v35  ;;  %v11964_v27 = vunpack.i.h.bf16 %v18977_v35  ;;  %v21253_v62 = vunpack.i.l.bf16 %v18977_v35  ;;  %v21254_v36 = vunpack.i.l.bf16 %v18982_v57  ;;  %v21258_v61 = vunpack.i.h.bf16 %v18982_v57 }
 0x780   :  { %4870 = vmatprep.subr.bf16.mxu1 %v4436_v38 }
 0x781   :  { %4871 = vmatpush1.bf16.msra.mxu1 %v4435_v50  ;;  %v4123_v0 = vsel %vm980_vm13, %v11959_v1, %v21253_v62  ;;  %v4140_v13 = vsel %vm980_vm13, %v11964_v27, %v21254_v36  ;;  %v4122_v62 = vsel %vm980_vm13, %v21258_v61, %v11959_v1 }
 0x782   :  { %v18992_v20 = vpop.permute.xlu1 %11971  ;;  %v4453_v48 = vpack.c.bf16 %v4140_v13, %v4123_v0 }
 0x783   :  { %v18994_v12 = vpop.permute.xlu0 %11976  ;;  %v21263_v56 = vunpack.i.h.bf16 %v18992_v20  ;;  %v21260_v38 = vunpack.i.l.bf16 %v18992_v20 }
 0x784   :  { %22104 = vst [vmem:[#allocation37_spill] sm:$0xff] %v18994_v12  ;;  %v21261_v50 = vunpack.i.h.bf16 %v18994_v12  ;;  %v11978_v29 = vunpack.i.l.bf16 %v18994_v12  ;;  %4872 = vmatprep.subr.bf16.mxu1 %v4453_v48 }
 0x785   :  { %v4139_v36 = vsel %vm980_vm13, %v21260_v38, %v11964_v27  ;;  %v22105_v27 = vld [vmem:[#allocation23_spill] sm:$0xff] }
 0x786   :  { %v4157_v0 = vsel %vm980_vm13, %v11978_v29, %v21261_v50  ;;  %v4156_v13 = vsel %vm980_vm13, %v21263_v56, %v11978_v29  ;;  %v4452_v60 = vpack.c.bf16 %v4139_v36, %v4122_v62  ;;  %v19020_v38 = vadd.f32 %v22105_v27, %v18224_v2  ;;  %v22106_v50 = vld [vmem:[#allocation12_spill] sm:$0xff]  ;;  %v22108_v36 = vld [vmem:[#allocation25_spill] sm:$0xff] }
 0x787   :  { %v4470_v4 = vpack.c.bf16 %v4157_v0, %v4157_v0  ;;  %v19012_v25 = vpop.permute.xlu1 %11981  ;;  %v4469_v30 = vpack.c.bf16 %v4156_v13, %v4156_v13  ;;  %v19024_v12 = vadd.f32 %v22106_v50, %v18224_v2  ;;  %v19030_v0 = vadd.f32 %v22108_v36, %v18222_v21  ;;  %v22109_v56 = vld [vmem:[#allocation16_spill] sm:$0xff]  ;;  %v22114_v36 = vld [vmem:[#allocation29_spill] sm:$0xff] }
 0x788   :  { %v11983_v1 = vunpack.i.l.bf16 %v19012_v25  ;;  %v19016_v61 = vpop.permute.xlu0 %11986  ;;  %4873 = vmatpush1.bf16.msra.mxu1 %v4452_v60  ;;  %v19034_v13 = vadd.f32 %v22109_v56, %v18222_v21  ;;  %v22111_v27 = vunpack.i.l.bf16 %v18755_v26  ;;  %v22112_v50 = vunpack.i.h.bf16 %v19012_v25  ;;  %v12165_v60 = vld [vmem:[%s20793_s5 + $0x40] sm:$0xff]  }
 0x789   :  { %22107 = vst [vmem:[#allocation23_spill] sm:$0xff] %v19024_v12  ;;  %v11988_v29 = vunpack.i.l.bf16 %v19016_v61  ;;  %8911 = vmatprep.subr.msk.bf16.mxu1 %vm22113_vm9, %v4470_v4  ;;  %v22115_v62 = vmax.f32 %v22114_v36, 0.0  ;;  %v22116_v56 = vmax.f32 %v18580_v45, 0.0  ;;  %v22117_v26 = vunpack.i.h.bf16 %v18798_v54 }
 0x78a   :  { %22110 = vst [vmem:[#allocation12_spill] sm:$0xff] %v19034_v13  ;;  %v5073_v48 = vsel %vm196_vm1, %v22111_v27, %v11983_v1  ;;  %v5074_v35 = vsel %vm196_vm1, %v11983_v1, %v22112_v50  ;;  %v22118_v1 = vunpack.i.h.bf16 %v19016_v61  ;;  %v22119_v50 = vld [vmem:[#allocation38_spill] sm:$0xff]  ;;  %v22121_v36 = vmax.f32 %v18553_v28, 0.0 }
 0x78b   :  { %v19048_v49 = vmax.f32 %v22115_v62, %v5073_v48  ;;  %v19052_v15 = vmax.f32 %v22116_v56, %v5074_v35  ;;  %v5089_v27 = vsel %vm196_vm1, %v22117_v26, %v11988_v29  ;;  %v22120_v23 = vmax.f32 %v22119_v50, 0.0  ;;  %v12172_v50 = vld [vmem:[%s20793_s5 + $0x18] sm:$0xff]  }
 0x78c   :  { %v5090_v4 = vsel %vm196_vm1, %v11988_v29, %v22118_v1  ;;  %v4541_v45 = vsel %vm22122_vm5, %v4469_v30, 0  ;;  %v21272_v35 = vmax.f32 %v19020_v38, 0.0  ;;  %v21270_v54 = vmax.f32 %v19024_v12, 0.0  ;;  %v12166_v29 = vld [vmem:[%s20793_s5] sm:$0xff]   ;;  %v12167_v30 = vld [vmem:[%s20793_s5 + $0x48] sm:$0xff]   ;;  %v12170_v1 = vld [vmem:[%s20793_s5 + $0x10] sm:$0xff]  }
 0x78d   :  { %v19062_v6 = vmax.f32 %v22120_v23, %v5089_v27  ;;  %v19066_v48 = vmax.f32 %v22121_v36, %v5090_v4  ;;  %4875 = vmatpush1.bf16.msra.mxu1 %v4541_v45  ;;  %v12015_v62 = vpack.i.bf16 %v19052_v15, %v19048_v49  ;;  %v21271_v23 = vmax.f32 %v19030_v0, 0.0  ;;  %v12171_v4 = vld [vmem:[%s20793_s5 + $0x58] sm:$0xff]   ;;  %v12173_v36 = vld [vmem:[%s20793_s5 + $0x60] sm:$0xff]  }
 0x78e   :  { %v21269_v28 = vmax.f32 %v19034_v13, 0.0  ;;  %9092 = vmatprep.subr.bf16.mxu1 %v12165_v60  ;;  %v12020_v26 = vpack.i.bf16 %v21270_v54, %v21272_v35  ;;  %v12168_v60 = vld [vmem:[%s20793_s5 + $0x8] sm:$0xff]   ;;  %v12174_v45 = vld [vmem:[%s20793_s5 + $0x20] sm:$0xff]   ;;  %v22123_v13 = vunpack.i.h.bf16 %v19012_v25  ;;  %vm6390_vm9 = vcmask 1045504  }
 0x78f   :  { %v12025_v56 = vpack.i.bf16 %v19066_v48, %v19062_v6  ;;  %12016 = vrot.lane.b32.xlu0 %v12015_v62, %s12429_s27  ;;  %v12175_v62 = vld [vmem:[%s20793_s5 + $0x68] sm:$0xff]   ;;  %vm6457_vm5 = vsmask.f32 5376 }
 0x790   :  { %4883 = vmatmul.mubr.bf16.vlgmr.msra.gmra.mrb[32].mxu1 %v18774_v33  ;;  %v12030_v27 = vpack.i.bf16 %v21269_v28, %v21271_v23  ;;  %v12169_v33 = vld [vmem:[%s20793_s5 + $0x50] sm:$0xff]  }
 0x791   :  { %12026 = vrot.lane.b32.xlu1 %v12025_v56, %s12429_s27  ;;  %9093 = vmatpush3.bf16.msra.mxu1 %v12166_v29  ;;  %v12176_v29 = vld [vmem:[%s20793_s5 + $0x28] sm:$0xff]   ;;  %v12177_v56 = vld [vmem:[%s20793_s5 + $0x70] sm:$0xff]  }
 0x792   :  { %9094 = vmatprep.subr.bf16.mxu1 %v12167_v30 }
 0x793   :  { %12021 = vrot.lane.b32.xlu0 %v12020_v26, %s12419_s29 }
 0x795   :  { %12031 = vrot.lane.b32.xlu1 %v12030_v27, %s12419_s29  ;;  %9095 = vmatpush3.bf16.msra.mxu1 %v12168_v60  ;;  %v12178_v27 = vld [vmem:[%s20793_s5 + $0x30] sm:$0xff]  }
 0x796   :  { %9096 = vmatprep.subr.bf16.mxu1 %v12169_v33 }
 0x799   :  { %9097 = vmatpush3.bf16.msra.mxu1 %v12170_v1 }
 0x79a   :  { %9098 = vmatprep.subr.bf16.mxu1 %v12171_v4  ;;  %v12179_v4 = vld [vmem:[%s20793_s5 + $0x78] sm:$0xff]  }
 0x79d   :  { %9099 = vmatpush3.bf16.msra.mxu1 %v12172_v50 }
 0x79e   :  { %9100 = vmatprep.subr.bf16.mxu1 %v12173_v36 }
 0x7a1   :  { %9101 = vmatpush3.bf16.msra.mxu1 %v12174_v45 }
 0x7a2   :  { %9102 = vmatprep.subr.bf16.mxu1 %v12175_v62 }
 0x7a4   :  { %v11992_v30 = vpop.permute.xlu1 %11991 }
 0x7a5   :  { %v11994_v60 = vunpack.i.h.bf16 %v11992_v30  ;;  %9103 = vmatpush3.bf16.msra.mxu1 %v12176_v29  ;;  %v11993_v62 = vunpack.i.l.bf16 %v11992_v30  ;;  %v12181_v30 = vld [vmem:[%s20793_s5 + $0xc0] sm:$0xff]  }
 0x7a6   :  { %v19126_v26 = vpop.permute.xlu0 %12001  ;;  %9104 = vmatprep.subr.bf16.mxu1 %v12177_v56  ;;  %v12180_v56 = vld [vmem:[%s20793_s5 + $0x38] sm:$0xff]  }
 0x7a7   :  { %v21273_v33 = vunpack.i.h.bf16 %v19126_v26  ;;  %v12003_v1 = vunpack.i.l.bf16 %v19126_v26 }
 0x7a8   :  { %v19140_v45 = vpop.permute.xlu1 %11996 }
 0x7a9   :  { %v5289_v50 = vsel %vm822_vm11, %v12003_v1, %v21273_v33  ;;  %v5288_v36 = vsel %vm822_vm11, %v11994_v60, %v12003_v1  ;;  %v11999_v28 = vunpack.i.h.bf16 %v19140_v45  ;;  %v11998_v54 = vunpack.i.l.bf16 %v19140_v45  ;;  %9105 = vmatpush3.bf16.msra.mxu1 %v12178_v27 }
 0x7aa   :  { %v19142_v29 = vpop.permute.xlu0 %12006  ;;  %9106 = vmatprep.subr.bf16.mxu1 %v12179_v4  ;;  %v5352_v60 = vmax.f32 %v18817_v52, %v5288_v36  ;;  %v5353_v33 = vmax.f32 %v18831_v58, %v5289_v50  ;;  %v22125_v36 = vmax.f32 %v18584_v39, 0.0  ;;  %v22126_v58 = vmax.f32 %v18753_v5, 0.0 }
 0x7ab   :  { %v12008_v35 = vunpack.i.l.bf16 %v19142_v29  ;;  %v5272_v1 = vsel %vm822_vm11, %v11993_v62, %v11998_v54  ;;  %v5273_v27 = vsel %vm822_vm11, %v11998_v54, %v11999_v28  ;;  %v22124_v4 = vunpack.i.h.bf16 %v19142_v29 }
 0x7ac   :  { %v5336_v63 = vmax.f32 %v18821_v10, %v5272_v1  ;;  %v19167_v44 = vpop.permute.xlu1 %12011  ;;  %v5337_v52 = vmax.f32 %v18846_v16, %v5273_v27  ;;  %v12182_v10 = vld [vmem:[%s20793_s5 + $0x80] sm:$0xff]   ;;  %v22127_v39 = vunpack.i.h.bf16 %v19016_v61  ;;  %v12184_v1 = vld [vmem:[%s20793_s5 + $0x88] sm:$0xff]   ;;  %v12185_v27 = vld [vmem:[%s20793_s5 + $0xd0] sm:$0xff]  }
 0x7ad   :  { %v5075_v23 = vsel %vm196_vm1, %v22123_v13, %v12008_v35  ;;  %v5076_v12 = vsel %vm196_vm1, %v12008_v35, %v22124_v4  ;;  %v12014_v25 = vunpack.i.h.bf16 %v19167_v44  ;;  %v12013_v13 = vunpack.i.l.bf16 %v19167_v44  ;;  %9107 = vmatpush3.bf16.msra.mxu1 %v12180_v56  ;;  %v12187_v4 = vld [vmem:[%s20793_s5 + $0xd8] sm:$0xff]  }
 0x7ae   :  { %v19172_v62 = vmax.f32 %v22125_v36, %v5075_v23  ;;  %v19176_v54 = vmax.f32 %v22126_v58, %v5076_v12  ;;  %v5523_v35 = vpack.c.bf16 %v5353_v33, %v5337_v52  ;;  %v5522_v50 = vpack.c.bf16 %v5352_v60, %v5336_v63  ;;  %9114 = vmatprep.subr.bf16.mxu1 %v12181_v30  ;;  %v12183_v63 = vld [vmem:[%s20793_s5 + $0xc8] sm:$0xff]   ;;  %v22128_v23 = vld [vmem:[#allocation43_spill] sm:$0xff]  ;;  %v12189_v36 = vld [vmem:[%s20793_s5 + $0xe0] sm:$0xff]  }
 0x7af   :  { %v5091_v16 = vsel %vm196_vm1, %v22127_v39, %v12013_v13  ;;  %v5092_v5 = vsel %vm196_vm1, %v12013_v13, %v12014_v25  ;;  %v22129_v33 = vmax.f32 %v22128_v23, 0.0  ;;  %v22130_v30 = vmax.f32 %v18784_v9, 0.0  ;;  %v12186_v9 = vld [vmem:[%s20793_s5 + $0x90] sm:$0xff]   ;;  %v12188_v52 = vld [vmem:[%s20793_s5 + $0x98] sm:$0xff]   ;;  %v12190_v58 = vld [vmem:[%s20793_s5 + $0xa0] sm:$0xff]  }
 0x7b0   :  { %v12035_v12 = vpack.i.bf16 %v19176_v54, %v19172_v62  ;;  %5946 = vmatprep.mubr.bf16.mxu1 %v5523_v35  ;;  %v12191_v13 = vld [vmem:[%s20793_s5 + $0xe8] sm:$0xff]   ;;  %v12195_v39 = vld [vmem:[%s20793_s5 + $0xf8] sm:$0xff]  }
 0x7b1   :  { %v19196_v56 = vmax.f32 %v22129_v33, %v5091_v16  ;;  %v19200_v61 = vmax.f32 %v22130_v30, %v5092_v5  ;;  %5947 = vmatmul.mubr.bf16.vlgmr.msra.gmra.mrb[36].mxu1 %v5522_v50  ;;  %v12192_v35 = vld [vmem:[%s20793_s5 + $0xa8] sm:$0xff]   ;;  %v12193_v50 = vld [vmem:[%s20793_s5 + $0xf0] sm:$0xff]   ;;  %v12196_v16 = vld [vmem:[%s20793_s5 + $0xb8] sm:$0xff]  }
 0x7b2   :  { %12036 = vrot.lane.b32.xlu0 %v12035_v12, %s12429_s27  ;;  %9115 = vmatpush3.bf16.msra.mxu1 %v12182_v10  ;;  %v12194_v10 = vld [vmem:[%s20793_s5 + $0xb0] sm:$0xff]   ;;  %v12197_v5 = vld [vmem:[%s20793_s5 + $0x140] sm:$0xff]  }
 0x7b3   :  { %v12040_v60 = vpack.i.bf16 %v19200_v61, %v19196_v56  ;;  %9116 = vmatprep.subr.bf16.mxu1 %v12183_v63 }
 0x7b5   :  { %12041 = vrot.lane.b32.xlu1 %v12040_v60, %s12429_s27 }
 0x7b6   :  { %9117 = vmatpush3.bf16.msra.mxu1 %v12184_v1 }
 0x7b7   :  { %9118 = vmatprep.subr.bf16.mxu1 %v12185_v27 }
 0x7ba   :  { %9119 = vmatpush3.bf16.msra.mxu1 %v12186_v9 }
 0x7bb   :  { %9120 = vmatprep.subr.bf16.mxu1 %v12187_v4 }
 0x7be   :  { %9121 = vmatpush3.bf16.msra.mxu1 %v12188_v52 }
 0x7bf   :  { %9122 = vmatprep.subr.bf16.mxu1 %v12189_v36 }
 0x7c2   :  { %9123 = vmatpush3.bf16.msra.mxu1 %v12190_v58 }
 0x7c3   :  { %9124 = vmatprep.subr.bf16.mxu1 %v12191_v13  ;;  %v22131_v13 = vunpack.i.h.bf16 %v19126_v26 }
 0x7c6   :  { %9125 = vmatpush3.bf16.msra.mxu1 %v12192_v35 }
 0x7c7   :  { %9126 = vmatprep.subr.bf16.mxu1 %v12193_v50 }
 0x7ca   :  { %9127 = vmatpush3.bf16.msra.mxu1 %v12194_v10 }
 0x7cb   :  { %9128 = vmatprep.subr.bf16.mxu1 %v12195_v39 }
 0x7ce   :  { %9129 = vmatpush3.bf16.msra.mxu1 %v12196_v16 }
 0x7cf   :  { %9136 = vmatprep.subr.bf16.mxu1 %v12197_v5 }
 0x7fc   :  { %v19248_v12 = vpop.f32.mrb[28].mxu1 }
 0x7fd   :  { %v19250_v63 = vpop.f32.mrb[29].mxu1 }
 0x7fe   :  { %v19252_v23 = vpop.f32.mrb[30].mxu1 }
 0x7ff   :  { %v19254_v33 = vpop.f32.mrb[31].mxu1 }
 0x801   :  { %v19256_v30 = vpop.permute.xlu0 %12016 }
 0x802   :  { %v12019_v60 = vunpack.i.h.bf16 %v19256_v30  ;;  %v12018_v1 = vunpack.i.l.bf16 %v19256_v30 }
 0x803   :  { %v19260_v27 = vpop.permute.xlu1 %12026 }
 0x804   :  { %v21277_v9 = vunpack.i.h.bf16 %v19260_v27  ;;  %v12028_v4 = vunpack.i.l.bf16 %v19260_v27  ;;  %v5274_v52 = vsel %vm822_vm11, %v11999_v28, %v12018_v1  ;;  %v5275_v36 = vsel %vm822_vm11, %v12018_v1, %v12019_v60 }
 0x805   :  { %v5338_v58 = vmax.f32 %v18842_v34, %v5274_v52  ;;  %v19277_v10 = vpop.permute.xlu0 %12021  ;;  %v5339_v45 = vmax.f32 %v19048_v49, %v5275_v36 }
 0x806   :  { %v5290_v35 = vsel %vm822_vm11, %v22131_v13, %v12028_v4  ;;  %v5291_v50 = vsel %vm822_vm11, %v12028_v4, %v21277_v9  ;;  %v12024_v39 = vunpack.i.h.bf16 %v19277_v10  ;;  %v12023_v16 = vunpack.i.l.bf16 %v19277_v10  ;;  %v12198_v13 = vld [vmem:[%s20793_s5 + $0x100] sm:$0xff]  }
 0x807   :  { %v5354_v28 = vmax.f32 %v18835_v7, %v5290_v35  ;;  %v19283_v5 = vpop.permute.xlu1 %12031  ;;  %v5355_v34 = vmax.f32 %v19062_v6, %v5291_v50  ;;  %v22132_v4 = vunpack.i.h.bf16 %v19142_v29  ;;  %v22133_v6 = vmax.f32 %v18762_v59, 0.0 }
 0x808   :  { %v12034_v26 = vunpack.i.h.bf16 %v19283_v5  ;;  %v12033_v1 = vunpack.i.l.bf16 %v19283_v5  ;;  %v5078_v7 = vsel %vm196_vm1, %v12023_v16, %v12024_v39  ;;  %v22134_v50 = vmax.f32 %v19020_v38, 0.0 }
 0x809   :  { %v5077_v52 = vsel %vm196_vm1, %v22132_v4, %v12023_v16  ;;  %v5525_v49 = vpack.c.bf16 %v5355_v34, %v5339_v45  ;;  %v5524_v36 = vpack.c.bf16 %v5354_v28, %v5338_v58  ;;  %v12199_v45 = vld [vmem:[%s20793_s5 + $0x148] sm:$0xff]   ;;  %v22135_v59 = vmax.f32 %v18827_v14, 0.0  ;;  %v12201_v14 = vld [vmem:[%s20793_s5 + $0x150] sm:$0xff]   ;;  %v12203_v4 = vld [vmem:[%s20793_s5 + $0x158] sm:$0xff]  }
 0x80a   :  { %v19299_v35 = vmax.f32 %v22133_v6, %v5077_v52  ;;  %v19303_v9 = vmax.f32 %v22134_v50, %v5078_v7  ;;  %v5093_v29 = vsel %vm196_vm1, %v12014_v25, %v12033_v1  ;;  %v5094_v58 = vsel %vm196_vm1, %v12033_v1, %v12034_v26  ;;  %v12200_v34 = vld [vmem:[%s20793_s5 + $0x108] sm:$0xff]   ;;  %v22137_v1 = vld [vmem:[#allocation27_spill] sm:$0xff]  ;;  %v12206_v6 = vld [vmem:[%s20793_s5 + $0x120] sm:$0xff]  }
 0x80b   :  { %v19316_v28 = vmax.f32 %v22135_v59, %v5093_v29  ;;  %v22136_v38 = vmax.f32 %v19030_v0, 0.0  ;;  %5987 = vmatprep.mubr.bf16.mxu1 %v5525_v49  ;;  %v12202_v0 = vld [vmem:[%s20793_s5 + $0x110] sm:$0xff]   ;;  %v12204_v52 = vld [vmem:[%s20793_s5 + $0x118] sm:$0xff]   ;;  %v22138_v7 = vpack.i.bf16 %v18479_v31, %v18486_v41  ;;  %v12205_v49 = vld [vmem:[%s20793_s5 + $0x160] sm:$0xff]   ;;  %v19379_v50 = vadd.f32 %v19248_v12, %v18224_v2 }
 0x80c   :  { %5988 = vmatmul.mubr.bf16.vlgmr.msra.gmra.mrb[40].mxu1 %v5524_v36  ;;  %v12045_v44 = vpack.i.bf16 %v19303_v9, %v19299_v35  ;;  %v22139_v36 = vld [vmem:[#allocation19_spill] sm:$0xff]  ;;  %v12207_v41 = vld [vmem:[%s20793_s5 + $0x168] sm:$0xff]   ;;  %v22142_v29 = vunpack.i.l.bf16 %v18424_v17 }
 0x80d   :  { %v19320_v16 = vmax.f32 %v22136_v38, %v5094_v58  ;;  %9137 = vmatpush3.bf16.msra.mxu1 %v12198_v13  ;;  %v22140_v13 = vpack.i.bf16 %v18516_v18, %v22139_v36  ;;  %v12208_v31 = vld [vmem:[%s20793_s5 + $0x128] sm:$0xff]   ;;  %v22141_v18 = vld [vmem:[#allocation11_spill] sm:$0xff]  ;;  %v19390_v58 = vadd.f32 %v19252_v23, %v18222_v21  ;;  %v4944_v23 = vmax.f32 %v19379_v50, 0.0 }
 0x80e   :  { %12046 = vrot.lane.b32.xlu0 %v12045_v44, %s12429_s27  ;;  %9138 = vmatprep.subr.bf16.mxu1 %v12199_v45  ;;  %v19394_v45 = vadd.f32 %v19254_v33, %v18222_v21  ;;  %v12210_v12 = vld [vmem:[%s20793_s5 + $0x130] sm:$0xff]   ;;  %v12211_v17 = vld [vmem:[%s20793_s5 + $0x178] sm:$0xff]  }
 0x80f   :  { %v12050_v25 = vpack.i.bf16 %v19320_v16, %v19316_v28  ;;  %v22144_v33 = vld [vmem:[#allocation15_spill] sm:$0xff]  ;;  %v4961_v44 = vmax.f32 %v19390_v58, 0.0 }
 0x811   :  { %12051 = vrot.lane.b32.xlu1 %v12050_v25, %s12429_s27  ;;  %9139 = vmatpush3.bf16.msra.mxu1 %v12200_v34  ;;  %v4962_v25 = vmax.f32 %v19394_v45, 0.0 }
 0x812   :  { %3596 = vrot.lane.b32.xlu0 %v22137_v1, %s12439_s21  ;;  %9140 = vmatprep.subr.bf16.mxu1 %v12201_v14  ;;  %v22145_v1 = vld [vmem:[#allocation41_spill] sm:$0xff] }
 0x815   :  { %3761 = vrot.lane.b32.xlu1 %v18743_v22, %s12432_s20  ;;  %9141 = vmatpush3.bf16.msra.mxu1 %v12202_v0  ;;  %v12065_v22 = vpack.i.bf16 %v18862_v46, %v18855_v53  ;;  %v12209_v46 = vld [vmem:[%s20793_s5 + $0x170] sm:$0xff]   ;;  %v12212_v0 = vld [vmem:[%s20793_s5 + $0x138] sm:$0xff]  }
 0x816   :  { %12056 = vrot.lane.b32.xlu0 %v22138_v7, %s12432_s20  ;;  %9142 = vmatprep.subr.bf16.mxu1 %v12203_v4  ;;  %v12213_v4 = vld [vmem:[%s20793_s5 + $0x1c0] sm:$0xff]   ;;  %v22146_v7 = vld [vmem:[#allocation42_spill] sm:$0xff] }
 0x819   :  { %12061 = vrot.lane.b32.xlu1 %v22140_v13, %s12432_s20  ;;  %9143 = vmatpush3.bf16.msra.mxu1 %v12204_v52 }
 0x81a   :  { %12066 = vrot.lane.b32.xlu0 %v12065_v22, %s12432_s20  ;;  %9144 = vmatprep.subr.bf16.mxu1 %v12205_v49  ;;  %v22147_v49 = vunpack.i.h.bf16 %v22146_v7  ;;  %v12223_v7 = vld [vmem:[%s20793_s5 + $0x1e8] sm:$0xff]  }
 0x81d   :  { %4013 = vrot.lane.b32.xlu1 %v18893_v40, %s12432_s20  ;;  %9145 = vmatpush3.bf16.msra.mxu1 %v12206_v6  ;;  %v19383_v40 = vadd.f32 %v19250_v63, %v18224_v2  ;;  %v22143_v63 = vld [vmem:[#allocation30_spill] sm:$0xff] }
 0x81e   :  { %3604 = vrot.lane.b32.xlu0 %v22141_v18, %s12439_s21  ;;  %9146 = vmatprep.subr.bf16.mxu1 %v12207_v41 }
 0x81f   :  { %v4945_v59 = vmax.f32 %v19383_v40, 0.0 }
 0x821   :  { %3769 = vrot.lane.b32.xlu1 %v22142_v29, %s12432_s20  ;;  %9147 = vmatpush3.bf16.msra.mxu1 %v12208_v31  ;;  %v12085_v52 = vpack.i.bf16 %v4945_v59, %v4944_v23  ;;  %v12090_v31 = vpack.i.bf16 %v4962_v25, %v4961_v44 }
 0x822   :  { %12071 = vrot.lane.b32.xlu0 %v22143_v63, %s12432_s20  ;;  %9148 = vmatprep.subr.bf16.mxu1 %v12209_v46  ;;  %v22148_v46 = vunpack.i.h.bf16 %v19260_v27  ;;  %v12214_v27 = vld [vmem:[%s20793_s5 + $0x180] sm:$0xff]  }
 0x824   :  { %v19408_v38 = vpop.permute.xlu0 %12036 }
 0x825   :  { %12076 = vrot.lane.b32.xlu1 %v22144_v33, %s12432_s20  ;;  %v12039_v34 = vunpack.i.h.bf16 %v19408_v38  ;;  %v12038_v14 = vunpack.i.l.bf16 %v19408_v38  ;;  %9149 = vmatpush3.bf16.msra.mxu1 %v12210_v12  ;;  %v22149_v38 = vld [vmem:[#allocation34_spill] sm:$0xff] }
 0x826   :  { %12081 = vrot.lane.b32.xlu0 %v22145_v1, %s12432_s20  ;;  %9150 = vmatprep.subr.bf16.mxu1 %v12211_v17  ;;  %v12220_v1 = vld [vmem:[%s20793_s5 + $0x198] sm:$0xff]  }
 0x827   :  { %v19429_v36 = vpop.permute.xlu1 %12041  ;;  %v5276_v13 = vsel %vm822_vm11, %v12019_v60, %v12038_v14  ;;  %v5277_v22 = vsel %vm822_vm11, %v12038_v14, %v12039_v34 }
 0x828   :  { %v12044_v6 = vunpack.i.h.bf16 %v19429_v36  ;;  %v12043_v41 = vunpack.i.l.bf16 %v19429_v36  ;;  %v5340_v29 = vmax.f32 %v19052_v15, %v5276_v13  ;;  %v5341_v63 = vmax.f32 %v19172_v62, %v5277_v22  ;;  %v12216_v15 = vld [vmem:[%s20793_s5 + $0x188] sm:$0xff]   ;;  %v12218_v62 = vld [vmem:[%s20793_s5 + $0x190] sm:$0xff]   ;;  %v12227_v22 = vld [vmem:[%s20793_s5 + $0x1f8] sm:$0xff]  }
 0x829   :  { %4021 = vrot.lane.b32.xlu1 %v22147_v49, %s12432_s20  ;;  %9151 = vmatpush3.bf16.msra.mxu1 %v12212_v0  ;;  %v12215_v0 = vld [vmem:[%s20793_s5 + $0x1c8] sm:$0xff]   ;;  %v12225_v36 = vld [vmem:[%s20793_s5 + $0x1f0] sm:$0xff]  }
 0x82a   :  { %v5292_v30 = vsel %vm822_vm11, %v22148_v46, %v12043_v41  ;;  %v5293_v60 = vsel %vm822_vm11, %v12043_v41, %v12044_v6  ;;  %12086 = vrot.lane.b32.xlu0 %v12085_v52, %s12419_s29  ;;  %9158 = vmatprep.subr.bf16.mxu1 %v12213_v4  ;;  %v12221_v4 = vld [vmem:[%s20793_s5 + $0x1e0] sm:$0xff]   ;;  %v12224_v49 = vld [vmem:[%s20793_s5 + $0x1a8] sm:$0xff]   ;;  %v12226_v13 = vld [vmem:[%s20793_s5 + $0x1b0] sm:$0xff]  }
 0x82b   :  { %v5356_v12 = vmax.f32 %v19066_v48, %v5292_v30  ;;  %v5357_v17 = vmax.f32 %v19196_v56, %v5293_v60  ;;  %v12217_v48 = vld [vmem:[%s20793_s5 + $0x1d0] sm:$0xff]   ;;  %v12219_v56 = vld [vmem:[%s20793_s5 + $0x1d8] sm:$0xff]   ;;  %v12222_v52 = vld [vmem:[%s20793_s5 + $0x1a0] sm:$0xff]  }
 0x82c   :  { %v12228_v41 = vld [vmem:[%s20793_s5 + $0x1b8] sm:$0xff]  }
 0x82d   :  { %12091 = vrot.lane.b32.xlu1 %v12090_v31, %s12419_s29  ;;  %v5527_v33 = vpack.c.bf16 %v5357_v17, %v5341_v63  ;;  %v5526_v14 = vpack.c.bf16 %v5356_v12, %v5340_v29 }
 0x82f   :  { %6028 = vmatprep.mubr.bf16.mxu1 %v5527_v33 }
 0x830   :  { %6029 = vmatmul.mubr.bf16.vlgmr.msra.gmra.mrb[44].mxu1 %v5526_v14 }
 0x831   :  { %9159 = vmatpush3.bf16.msra.mxu1 %v12214_v27 }
 0x832   :  { %9160 = vmatprep.subr.bf16.mxu1 %v12215_v0 }
 0x835   :  { %9161 = vmatpush3.bf16.msra.mxu1 %v12216_v15 }
 0x836   :  { %9162 = vmatprep.subr.bf16.mxu1 %v12217_v48 }
 0x839   :  { %9163 = vmatpush3.bf16.msra.mxu1 %v12218_v62 }
 0x83a   :  { %9164 = vmatprep.subr.bf16.mxu1 %v12219_v56 }
 0x83d   :  { %9165 = vmatpush3.bf16.msra.mxu1 %v12220_v1 }
 0x83e   :  { %9166 = vmatprep.subr.bf16.mxu1 %v12221_v4 }
 0x841   :  { %9167 = vmatpush3.bf16.msra.mxu1 %v12222_v52  ;;  %v22150_v52 = vunpack.i.h.bf16 %v22149_v38  ;;  %v22155_v38 = vld [vmem:[#allocation6_spill] sm:$0xff] }
 0x842   :  { %9168 = vmatprep.subr.bf16.mxu1 %v12223_v7 }
 0x845   :  { %9169 = vmatpush3.bf16.msra.mxu1 %v12224_v49 }
 0x846   :  { %9170 = vmatprep.subr.bf16.mxu1 %v12225_v36 }
 0x849   :  { %9171 = vmatpush3.bf16.msra.mxu1 %v12226_v13  ;;  %v22152_v13 = vld [vmem:[#allocation33_spill] sm:$0xff] }
 0x84a   :  { %9172 = vmatprep.subr.bf16.mxu1 %v12227_v22 }
 0x84d   :  { %9173 = vmatpush3.bf16.msra.mxu1 %v12228_v41 }
 0x863   :  { %v19498_v31 = vpop.f32.mrb[32].mxu1 }
 0x864   :  { %v19500_v46 = vpop.f32.mrb[33].mxu1 }
 0x865   :  { %v19502_v30 = vpop.f32.mrb[34].mxu1 }
 0x866   :  { %v19504_v60 = vpop.f32.mrb[35].mxu1 }
 0x880   :  { %v19506_v29 = vpop.permute.xlu0 %12046 }
 0x881   :  { %v12049_v12 = vunpack.i.h.bf16 %v19506_v29  ;;  %v12048_v63 = vunpack.i.l.bf16 %v19506_v29  ;;  %v12362_v29 = vld [vmem:[%s20793_s5 + $0x38] sm:$0xff]  }
 0x883   :  { %v19510_v17 = vpop.permute.xlu1 %12051  ;;  %v5278_v27 = vsel %vm822_vm11, %v12039_v34, %v12048_v63  ;;  %v5279_v0 = vsel %vm822_vm11, %v12048_v63, %v12049_v12 }
 0x884   :  { %v12054_v33 = vunpack.i.h.bf16 %v19510_v17  ;;  %v12053_v14 = vunpack.i.l.bf16 %v19510_v17  ;;  %v5342_v15 = vmax.f32 %v19176_v54, %v5278_v27  ;;  %v3597_v56 = vpop.permute.xlu0 %3596  ;;  %v5343_v1 = vmax.f32 %v19299_v35, %v5279_v0  ;;  %v9108_v49 = vpop.f32.mrb[36].mxu1 }
 0x885   :  { %v3619_v34 = vsel %vm3606_vm14, %v22150_v52, %v3597_v56  ;;  %v3620_v7 = vsel %vm3606_vm14, %v3597_v56, %v18727_v43  ;;  %v9109_v41 = vpop.f32.mrb[37].mxu1  ;;  %v12442_v43 = vmov 0.0   ;;  %v22154_v56 = vunpack.i.l.bf16 %v18921_v3 }
 0x886   :  { %v5294_v48 = vsel %vm822_vm11, %v12044_v6, %v12053_v14  ;;  %v5295_v62 = vsel %vm822_vm11, %v12053_v14, %v12054_v33  ;;  %v22151_v6 = vld [vmem:[#allocation18_spill] sm:$0xff]  ;;  %v4377_v22 = vpack.c.bf16 %v3620_v7, %v22152_v13  ;;  %v19535_v63 = vadd.f32 %v9109_v41, %v9108_v49  ;;  %v9111_v35 = vpop.f32.mrb[38].mxu1  ;;  %9524 = vmatprep.subr.bf16.mxu1 %v12442_v43 }
 0x887   :  { %v5358_v4 = vmax.f32 %v19200_v61, %v5294_v48  ;;  %v5359_v54 = vmax.f32 %v19316_v28, %v5295_v62  ;;  %v4376_v36 = vpack.c.bf16 %v3619_v34, %v22151_v6  ;;  %v9112_v61 = vpop.f32.mrb[39].mxu1  ;;  %v3762_v28 = vpop.permute.xlu1 %3761  ;;  %v22153_v48 = vld [vmem:[#allocation8_spill] sm:$0xff] }
 0x888   :  { %4815 = vmatprep.subr.bf16.mxu0 %v4377_v22  ;;  %v19537_v0 = vadd.f32 %v9112_v61, %v9111_v35  ;;  %v12057_v62 = vpop.permute.xlu0 %12056  ;;  %v22161_v35 = vld [vmem:[#allocation48_spill] sm:$0xff]  ;;  %v22163_v61 = vld [vmem:[#allocation45_spill] sm:$0xff] }
 0x889   :  { %v5529_v14 = vpack.c.bf16 %v5359_v54, %v5343_v1  ;;  %v5528_v27 = vpack.c.bf16 %v5358_v4, %v5342_v15  ;;  %4816 = vmatpush1.bf16.msra.mxu0 %v4376_v36  ;;  %v4036_v15 = vsel %vm980_vm13, %v3762_v28, %v22154_v56  ;;  %v12059_v1 = vunpack.i.h.bf16 %v12057_v62 }
 0x88a   :  { %4817 = vmatprep.subr.bf16.mxu0 %v18766_v37  ;;  %v12058_v4 = vunpack.i.l.bf16 %v12057_v62  ;;  %v22156_v37 = vld [vmem:[#allocation46_spill] sm:$0xff]  ;;  %v4400_v49 = vpack.c.bf16 %v4036_v15, %v18855_v53  ;;  %v22159_v36 = vunpack.i.l.bf16 %v18944_v8  ;;  %v22165_v8 = vunpack.i.h.bf16 %v18957_v55 }
 0x88b   :  { %6069 = vmatprep.mubr.bf16.mxu1 %v5529_v14  ;;  %v12062_v52 = vpop.permute.xlu1 %12061  ;;  %v22157_v34 = vunpack.i.h.bf16 %v22156_v37  ;;  %v22162_v14 = vunpack.i.h.bf16 %v22161_v35  ;;  %v22166_v15 = vunpack.i.l.bf16 %v18959_v47  ;;  %v22167_v37 = vld [vmem:[#allocation50_spill] sm:$0xff]  ;;  %v22172_v47 = vunpack.i.l.bf16 %v18992_v20 }
 0x88c   :  { %6070 = vmatmul.mubr.bf16.vlgmr.msra.gmra.mrb[48].mxu1 %v5528_v27  ;;  %v12064_v54 = vunpack.i.h.bf16 %v12062_v52  ;;  %v12063_v6 = vunpack.i.l.bf16 %v12062_v52  ;;  %v4070_v13 = vsel %vm980_vm13, %v12059_v1, %v22159_v36  ;;  %v12067_v22 = vpop.permute.xlu0 %12066  ;;  %v22164_v27 = vunpack.i.h.bf16 %v22163_v61 }
 0x88d   :  { %4818 = vmatpush1.bf16.msra.mxu0 %v22153_v48  ;;  %v4035_v7 = vsel %vm980_vm13, %v22157_v34, %v3762_v28  ;;  %v4069_v53 = vsel %vm980_vm13, %v22162_v14, %v12059_v1  ;;  %v12069_v48 = vunpack.i.h.bf16 %v12067_v22  ;;  %v12068_v62 = vunpack.i.l.bf16 %v12067_v22  ;;  %v22175_v14 = vld [vmem:[#allocation49_spill] sm:$0xff]  ;;  %9540 = vmatprep.mubr.msk.bf16.mxu1 %vm12444_vm6, %v12442_v43 }
 0x88e   :  { %4819 = vmatprep.subr.bf16.mxu0 %v18788_v19  ;;  %v22158_v19 = vunpack.i.h.bf16 %v18931_v11  ;;  %v4087_v56 = vsel %vm980_vm13, %v12063_v6, %v22165_v8  ;;  %v22168_v1 = vunpack.i.h.bf16 %v22167_v37  ;;  %v22179_v8 = vunpack.i.h.bf16 %v18992_v20  ;;  %v22183_v37 = vld [vmem:[#allocation26_spill] sm:$0xff] }
 0x88f   :  { %v4014_v22 = vpop.permute.xlu1 %4013  ;;  %v12329_v20 = vld [vmem:[%s20791_s3] ss:$8 sps:$4 sm:$0xff]  }
 0x890   :  { %v4053_v3 = vsel %vm980_vm13, %v12058_v4, %v22158_v19  ;;  %v4103_v34 = vsel %vm980_vm13, %v22168_v1, %v12064_v54  ;;  %v4312_v1 = vpack.c.bf16 %v22183_v37, %v22094_v24  ;;  %v3605_v24 = vpop.permute.xlu0 %3604 }
 0x891   :  { %4820 = vmatpush1.bf16.msra.mxu0 %v22155_v38  ;;  %v4417_v28 = vpack.c.bf16 %v4070_v13, %v4053_v3  ;;  %v4104_v38 = vsel %vm980_vm13, %v12064_v54, %v22166_v15  ;;  %v22171_v3 = vunpack.i.h.bf16 %v18982_v57  ;;  %v4138_v13 = vsel %vm980_vm13, %v12069_v48, %v22172_v47  ;;  %v22191_v47 = vld [vmem:[#allocation39_spill] sm:$0xff] }
 0x892   :  { %4821 = vmatprep.subr.bf16.mxu0 %v18838_v32  ;;  %v22160_v32 = vld [vmem:[#allocation31_spill] sm:$0xff]  ;;  %v4434_v19 = vpack.c.bf16 %v4104_v38, %v4087_v56  ;;  %v4155_v56 = vsel %vm980_vm13, %v4014_v22, %v22179_v8 }
 0x893   :  { %v4399_v41 = vpack.c.bf16 %v4035_v7, %v22160_v32  ;;  %v22169_v7 = vld [vmem:[#allocation47_spill] sm:$0xff]  ;;  %v4121_v36 = vsel %vm980_vm13, %v12068_v62, %v22171_v3 }
 0x894   :  { %v4451_v61 = vpack.c.bf16 %v4138_v13, %v4121_v36  ;;  %v22190_v36 = vld [vmem:[#allocation28_spill] sm:$0xff] }
 0x895   :  { %4822 = vmatpush1.bf16.msra.mxu0 %v18730_v51  ;;  %v4052_v51 = vsel %vm980_vm13, %v22164_v27, %v12058_v4  ;;  %v22170_v4 = vunpack.i.h.bf16 %v22169_v7  ;;  %v22177_v27 = vld [vmem:[#allocation21_spill] sm:$0xff]  ;;  %v22185_v7 = vld [vmem:[#allocation24_spill] sm:$0xff]  ;;  %v4363_v13 = vpack.c.bf16 %v22191_v47, %v22190_v36  ;;  %v22206_v47 = vunpack.i.l.bf16 %v18957_v55 }
 0x896   :  { %4823 = vmatprep.subr.bf16.mxu0 %v4400_v49  ;;  %v4416_v52 = vpack.c.bf16 %v4069_v53, %v4052_v51  ;;  %v22176_v53 = vunpack.i.h.bf16 %v22175_v14  ;;  %v22178_v51 = vunpack.i.h.bf16 %v22177_v27  ;;  %v22197_v27 = vld [vmem:[#allocation32_spill] sm:$0xff] }
 0x897   :  { %v4086_v49 = vsel %vm980_vm13, %v22170_v4, %v12063_v6  ;;  %v22186_v4 = vld [vmem:[#allocation36_spill] sm:$0xff] }
 0x898   :  { %v4433_v32 = vpack.c.bf16 %v4103_v34, %v4086_v49  ;;  %v4120_v6 = vsel %vm980_vm13, %v22176_v53, %v12068_v62  ;;  %v22182_v62 = vmov 0   ;;  %v12330_v34 = vld [vmem:[%s20791_s3 + $0x4] ss:$8 sps:$4 sm:$0xff]   ;;  %v22187_v49 = vpack.c.bf16 %v22185_v7, %v22186_v4  ;;  %v3770_v53 = vpop.permute.xlu1 %3769 }
 0x899   :  { %4824 = vmatpush1.bf16.msra.mxu0 %v4399_v41  ;;  %v22173_v41 = vld [vmem:[#allocation14_spill] sm:$0xff]  ;;  %v22205_v4 = vunpack.i.l.bf16 %v18931_v11 }
 0x89a   :  { %4825 = vmatprep.subr.bf16.mxu0 %v4417_v28  ;;  %v22174_v35 = vunpack.i.h.bf16 %v22173_v41  ;;  %v4154_v28 = vsel %vm980_vm13, %v22178_v51, %v4014_v22  ;;  %v22192_v22 = vld [vmem:[#allocation22_spill] sm:$0xff] }
 0x89b   :  { %v4467_v38 = vpack.c.bf16 %v4154_v28, %v4154_v28  ;;  %v22199_v28 = vld [vmem:[#allocation7_spill] sm:$0xff] }
 0x89c   :  { %v4137_v54 = vsel %vm980_vm13, %v22174_v35, %v12069_v48  ;;  %v22194_v35 = vld [vmem:[#allocation44_spill] sm:$0xff]  ;;  %v22200_v8 = vunpack.i.h.bf16 %v22199_v28 }
 0x89d   :  { %4826 = vmatpush1.bf16.msra.mxu0 %v4416_v52  ;;  %v4450_v15 = vpack.c.bf16 %v4137_v54, %v4120_v6  ;;  %v4468_v52 = vpack.c.bf16 %v4155_v56, %v4155_v56  ;;  %v4535_v48 = vsel %vm22181_vm0, %v4467_v38, 0  ;;  %v12072_v6 = vpop.permute.xlu0 %12071 }
 0x89e   :  { %4827 = vmatprep.subr.bf16.mxu0 %v4434_v19  ;;  %v22188_v19 = vld [vmem:[#allocation13_spill] sm:$0xff]  ;;  %v4039_v56 = vsel %vm980_vm13, %v22200_v8, %v3770_v53  ;;  %v12073_v38 = vunpack.i.l.bf16 %v12072_v6 }
 0x89f   :  { %v22189_v3 = vpack.c.bf16 %v18507_v42, %v22188_v19  ;;  %v22195_v42 = vld [vmem:[#allocation17_spill] sm:$0xff] }
 0x8a0   :  { %v4382_v14 = vpack.c.bf16 %v22195_v42, %v22141_v18  ;;  %v22202_v18 = vld [vmem:[#allocation40_spill] sm:$0xff] }
 0x8a1   :  { %4828 = vmatpush1.bf16.msra.mxu0 %v4433_v32  ;;  %v22193_v32 = vunpack.i.h.bf16 %v22192_v22  ;;  %v4403_v37 = vpack.c.bf16 %v4039_v56, %v22202_v18  ;;  %v22207_v22 = vld [vmem:[#allocation20_spill] sm:$0xff] }
 0x8a2   :  { %4829 = vmatprep.subr.bf16.mxu0 %v4451_v61  ;;  %v22196_v61 = vld [vmem:[#allocation35_spill] sm:$0xff] }
 0x8a3   :  { %v3623_v41 = vsel %vm3606_vm14, %v22193_v32, %v3605_v24  ;;  %v22198_v51 = vpack.c.bf16 %v22196_v61, %v22197_v27  ;;  %v22208_v32 = vunpack.i.l.bf16 %v22207_v22  ;;  %v22211_v61 = vunpack.i.l.bf16 %v18982_v57  ;;  %v22212_v27 = vld [vmem:[#allocation37_spill] sm:$0xff]  ;;  %vm22214_vm14 = vmmov %vm22181_vm0 }
 0x8a4   :  { %v4380_v54 = vpack.c.bf16 %v3623_v41, %v22194_v35  ;;  %v12229_v57 = vld [vmem:[%s20794_s6] sm:$0xff]  }
 0x8a5   :  { %4830 = vmatpush1.bf16.msra.mxu0 %v4450_v15  ;;  %v12074_v15 = vunpack.i.h.bf16 %v12072_v6 }
 0x8a6   :  { %8909 = vmatprep.subr.msk.bf16.mxu0 %vm22180_vm15, %v4468_v52  ;;  %v12077_v52 = vpop.permute.xlu1 %12076  ;;  %vm6605_vm15 = vsmask.f32 4352 }
 0x8a7   :  { %v12079_v24 = vunpack.i.h.bf16 %v12077_v52  ;;  %v12078_v19 = vunpack.i.l.bf16 %v12077_v52 }
 0x8a9   :  { %4832 = vmatpush1.bf16.msra.mxu0 %v4535_v48  ;;  %v22201_v48 = vld [vmem:[#allocation10_spill] sm:$0xff]  ;;  %v4090_v41 = vsel %vm980_vm13, %v22208_v32, %v12078_v19 }
 0x8aa   :  { %4893 = vmatprep.subr.bf16.mxu0 %v22182_v62  ;;  %v4022_v11 = vpop.permute.xlu1 %4021  ;;  %v12231_v32 = vld [vmem:[%s20794_s6 + $0xc] sm:$0xff]  }
 0x8ac   :  { %4840 = vmatmul.mubr.bf16.vlgmr.msra.gmra.mrb[32].mxu0 %v12329_v20 }
 0x8ad   :  { %4894 = vmatpush1.bf16.msra.mxu0 %v4312_v1  ;;  %8913 = vmatprep.mubr.msk.bf16.mxu0 %vm22184_vm2, %v12330_v34  ;;  %v22203_v1 = vld [vmem:[#allocation9_spill] sm:$0xff]  ;;  %vm7382_vm2 = vcmask 687104  }
 0x8ae   :  { %4895 = vmatprep.subr.bf16.mxu0 %v22182_v62  ;;  %v22204_v34 = vunpack.i.l.bf16 %v22203_v1 }
 0x8b0   :  { %v4056_v7 = vsel %vm980_vm13, %v22204_v34, %v12073_v38 }
 0x8b1   :  { %4896 = vmatpush1.bf16.msra.mxu0 %v22187_v49  ;;  %v4073_v49 = vsel %vm980_vm13, %v22205_v4, %v12074_v15  ;;  %v12443_v4 = vmov 65535  }
 0x8b2   :  { %4897 = vmatprep.subr.bf16.mxu0 %v22182_v62  ;;  %v4420_v36 = vpack.c.bf16 %v4073_v49, %v4056_v7  ;;  %v12230_v7 = vld [vmem:[%s20794_s6 + $0x8] sm:$0x1f]   ;;  %v6100_v49 = vsel %vm22215_vm10, 4294967295, %v12443_v4 }
 0x8b5   :  { %4898 = vmatpush1.bf16.msra.mxu0 %v22189_v3  ;;  %v12082_v3 = vpop.permute.xlu0 %12081 }
 0x8b6   :  { %4899 = vmatprep.subr.bf16.mxu0 %v22182_v62  ;;  %v12084_v35 = vunpack.i.h.bf16 %v12082_v3 }
 0x8b8   :  { %v4141_v55 = vsel %vm980_vm13, %v22211_v61, %v12084_v35  ;;  %v6166_v35 = vshll.u32 %v12231_v32, 16 }
 0x8b9   :  { %4900 = vmatpush1.bf16.msra.mxu0 %v4363_v13  ;;  %v4107_v13 = vsel %vm980_vm13, %v22206_v47, %v12079_v24 }
 0x8ba   :  { %4901 = vmatprep.subr.bf16.mxu0 %v22182_v62  ;;  %v4437_v42 = vpack.c.bf16 %v4107_v13, %v4090_v41  ;;  %v12232_v41 = vld [vmem:[%s20794_s6 + $0x14] sm:$0x1f]  }
 0x8bb   :  { %v6175_v61 = vshrl.u32 %v12232_v41, 16 }
 0x8bd   :  { %4902 = vmatpush1.bf16.msra.mxu0 %v4380_v54  ;;  %v12083_v54 = vunpack.i.l.bf16 %v12082_v3 }
 0x8be   :  { %4903 = vmatprep.subr.bf16.mxu0 %v22182_v62 }
 0x8c1   :  { %4904 = vmatpush1.bf16.msra.mxu0 %v4382_v14  ;;  %v22209_v14 = vld [vmem:[#allocation5_spill] sm:$0xff] }
 0x8c2   :  { %4905 = vmatprep.subr.bf16.mxu0 %v22182_v62  ;;  %v22210_v53 = vunpack.i.l.bf16 %v22209_v14 }
 0x8c4   :  { %v4124_v6 = vsel %vm980_vm13, %v22210_v53, %v12083_v54  ;;  %v6171_v54 = vshll.u32 %v12232_v41, 16 }
 0x8c5   :  { %4906 = vmatpush1.bf16.msra.mxu0 %v22198_v51  ;;  %v22213_v51 = vunpack.i.h.bf16 %v22212_v27  ;;  %v4454_v8 = vpack.c.bf16 %v4141_v55, %v4124_v6 }
 0x8c6   :  { %4907 = vmatprep.subr.bf16.mxu0 %v22182_v62  ;;  %v6173_v6 = vrot.slane %v6171_v54, 1 }
 0x8c7   :  { %v4158_v28 = vsel %vm980_vm13, %v22213_v51, %v4022_v11  ;;  %vm6099_vm13 = vcmask 1044480   ;;  %v6164_v11 = vshrl.u32 %v12231_v32, 16 }
 0x8c8   :  { %v4471_v56 = vpack.c.bf16 %v4158_v28, %v4158_v28 }
 0x8c9   :  { %4908 = vmatpush1.bf16.msra.mxu0 %v22201_v48 }
 0x8ca   :  { %4909 = vmatprep.subr.bf16.mxu0 %v22182_v62  ;;  %v4547_v15 = vsel %vm22214_vm14, %v4471_v56, 0 }
 0x8cd   :  { %4910 = vmatpush1.bf16.msra.mxu0 %v4403_v37 }
 0x8ce   :  { %4911 = vmatprep.subr.bf16.mxu0 %v22182_v62 }
 0x8d1   :  { %4912 = vmatpush1.bf16.msra.mxu0 %v4420_v36 }
 0x8d2   :  { %4913 = vmatprep.subr.bf16.mxu0 %v22182_v62 }
 0x8d5   :  { %4914 = vmatpush1.bf16.msra.mxu0 %v4437_v42  ;;  %v6168_v42 = vrot.slane %v6166_v35, 1  ;;  %v19727_v35 = vadd.f32 %v19498_v31, %v18224_v2  ;;  %v12237_v31 = vld [vmem:[%s20794_s6 + $0x30] sm:$0xfc]  }
 0x8d6   :  { %4915 = vmatprep.subr.bf16.mxu0 %v22182_v62 }
 0x8d7   :  { %v6169_v51 = vor.u32 %v6168_v42, %v6164_v11  ;;  %v19731_v42 = vpop.permute.xlu0 %12086 }
 0x8d9   :  { %4916 = vmatpush1.bf16.msra.mxu0 %v4454_v8 }
 0x8da   :  { %4917 = vmatprep.subr.bf16.mxu0 %v22182_v62 }
 0x8dd   :  { %4918 = vmatpush1.bf16.msra.mxu0 %v4547_v15  ;;  %v6177_v15 = vor.u32 %v6175_v61, %v6173_v6  ;;  %v4948_v61 = vmax.f32 %v19727_v35, 0.0 }
 0x8de   :  { %9396 = vmatprep.subr.bf16.mxu0 %v12442_v43 }
 0x8df   :  { %v9130_v38 = vpop.f32.mrb[40].mxu1 }
 0x8e0   :  { %v9131_v52 = vpop.f32.mrb[41].mxu1  ;;  %4926 = vmatmul.mubr.bf16.vlgmr.msra.gmra.mrb[36].mxu0 %v12329_v20 }
 0x8e1   :  { %v9132_v48 = vadd.f32 %v9131_v52, %v9130_v38  ;;  %v9133_v18 = vpop.f32.mrb[42].mxu1  ;;  %9397 = vmatpush3.bf16.msra.mxu0 %v12229_v57  ;;  %9400 = vmatprep.mubr.msk.bf16.mxu0 %vm12444_vm6, %v12442_v43  ;;  %v6174_v52 = vsel %vm6162_vm8, %v6169_v51, %v6173_v6  ;;  %v12238_v6 = vld [vmem:[%s20794_s6 + $0x38] sm:$0x7f]   ;;  %v19753_v51 = vadd.f32 %v19502_v30, %v18222_v21 }
 0x8e2   :  { %v9134_v37 = vpop.f32.mrb[43].mxu1  ;;  %9398 = vmatprep.subr.bf16.mxu0 %v12442_v43 }
 0x8e3   :  { %v5990_v62 = vadd.f32 %v9132_v48, %v19535_v63  ;;  %v9135_v1 = vadd.f32 %v9134_v37, %v9133_v18  ;;  %v19680_v63 = vsel %vm6099_vm13, %v6100_v49, 0  ;;  %v12233_v18 = vld [vmem:[%s20794_s6 + $0x18] sm:$0xfe]   ;;  %v12234_v37 = vld [vmem:[%s20794_s6 + $0x20] sm:$0x3f]  }
 0x8e4   :  { %v6183_v48 = vand.u32 %v6177_v15, %v19680_v63 }
 0x8e5   :  { %v5993_v34 = vadd.f32 %v9135_v1, %v19537_v0  ;;  %v6103_v0 = vand.u32 %v12230_v7, %v19680_v63  ;;  %v6244_v1 = vrot.slane %v12234_v37, 1  ;;  %v12236_v7 = vld [vmem:[%s20794_s6 + $0x2c] sm:$0x3f]  }
 0x8e7   :  { %9399 = vmatpush3.bf16.msra.mxu0 %v6103_v0 }
 0x8e8   :  { %9404 = vmatprep.subr.bf16.mxu0 %v12442_v43 }
 0x903   :  { %v9152_v20 = vpop.f32.mrb[44].mxu1 }
 0x904   :  { %v9153_v24 = vpop.f32.mrb[45].mxu1 }
 0x905   :  { %v9154_v19 = vadd.f32 %v9153_v24, %v9152_v20  ;;  %v9155_v3 = vpop.f32.mrb[46].mxu1  ;;  %v6319_v24 = vshrl.u32 %v12236_v7, 16 }
 0x906   :  { %v9156_v36 = vpop.f32.mrb[47].mxu1 }
 0x907   :  { %v6031_v47 = vadd.f32 %v9154_v19, %v5990_v62  ;;  %v9157_v13 = vadd.f32 %v9156_v36, %v9155_v3  ;;  %v6243_v62 = vrot.slane %v12233_v18, 1  ;;  %v6322_v19 = vshll.u32 %v12236_v7, 16  ;;  %v12239_v7 = vld [vmem:[%s20794_s6 + $0x3c] sm:$0xfc]  }
 0x908   :  { %v6251_v3 = vand.u32 %v6244_v1, %v19680_v63 }
 0x909   :  { %v6034_v22 = vadd.f32 %v9157_v13, %v5993_v34  ;;  %v12235_v34 = vld [vmem:[%s20794_s6 + $0x24] sm:$0xfe]   ;;  %v6245_v4 = vsel %vm6242_vm7, %v6243_v62, %v6244_v1  ;;  %v6321_v13 = vrot.slane %v6319_v24, 1  ;;  %v6391_v1 = vrot.slane %v12237_v31, 2 }
 0x90a   :  { %v6311_v49 = vshrl.u32 %v12235_v34, 16  ;;  %v6314_v20 = vshll.u32 %v12235_v34, 16  ;;  %v6392_v34 = vrot.slane %v12238_v6, 2  ;;  %v12240_v24 = vld [vmem:[%s20794_s6 + $0x44] sm:$0x7f]  }
 0x90b   :  { %v6470_v31 = vshll.u32 %v12240_v24, 16 }
 0x90c   :  { %v6313_v36 = vrot.slane %v6311_v49, 1 }
 0x95f   :  { %v9174_v14 = vpop.f32.mrb[48].mxu1 }
 0x960   :  { %v9175_v53 = vpop.f32.mrb[49].mxu1 }
 0x961   :  { %v9176_v55 = vadd.f32 %v9175_v53, %v9174_v14  ;;  %v9177_v27 = vpop.f32.mrb[50].mxu1  ;;  %v19734_v14 = vpop.permute.xlu1 %12091 }
 0x962   :  { %v9178_v28 = vpop.f32.mrb[51].mxu1 }
 0x963   :  { %v6072_v8 = vadd.f32 %v9176_v55, %v6031_v47  ;;  %v9179_v56 = vadd.f32 %v9178_v28, %v9177_v27  ;;  %v6316_v47 = vrot.slane %v6314_v20, 2  ;;  %v19748_v55 = vadd.f32 %v19500_v46, %v18224_v2 }
 0x964   :  { %v19757_v28 = vadd.f32 %v19504_v60, %v18222_v21  ;;  %v12089_v46 = vunpack.i.h.bf16 %v19731_v42 }
 0x965   :  { %v19690_v57 = vpack.c.bf16 %v6072_v8, %v6072_v8  ;;  %v19692_v38 = vadd.f32 %v9179_v56, %v6034_v22  ;;  %v6324_v22 = vrot.slane %v6322_v19, 2  ;;  %v6317_v32 = vor.u32 %v6316_v47, %v6313_v36 }
 0x966   :  { %v12088_v8 = vunpack.i.l.bf16 %v19731_v42  ;;  %v4965_v19 = vmax.f32 %v19753_v51, 0.0 }
 0x967   :  { %9401 = vmatmul.mubr.msk.bf16.vlgmr.msra.gmra.mrb[40].mxu0 %vm6095_vm3, %v19690_v57  ;;  %v19716_v0 = vshrl.u32 %v19690_v57, 16  ;;  %v6325_v41 = vor.u32 %v6324_v22, %v6321_v13  ;;  %v6231_v54 = vrot.slane %v19690_v57, 1 }
 0x968   :  { %9405 = vmatpush3.bf16.msra.mxu0 %v6174_v52  ;;  %9408 = vmatprep.mubr.msk.bf16.mxu0 %vm12444_vm6, %v12442_v43  ;;  %v12094_v52 = vunpack.i.h.bf16 %v19734_v14  ;;  %v5079_v36 = vsel %vm196_vm1, %v12024_v39, %v12088_v8  ;;  %v5080_v13 = vsel %vm196_vm1, %v12088_v8, %v12089_v46  ;;  %v6393_v39 = vsel %vm6390_vm9, %v6391_v1, %v6392_v34  ;;  %v22216_v8 = vld [vmem:[#allocation23_spill] sm:$0xff] }
 0x969   :  { %9406 = vmatprep.subr.bf16.mxu0 %v12442_v43  ;;  %v6326_v11 = vsel %vm6309_vm4, %v6317_v32, %v6325_v41  ;;  %v6332_v53 = vand.u32 %v6325_v41, %v19680_v63 }
 0x96c   :  { %9407 = vmatpush3.bf16.msra.mxu0 %v6183_v48  ;;  %v12093_v48 = vunpack.i.l.bf16 %v19734_v14 }
 0x96d   :  { %9412 = vmatprep.subr.bf16.mxu0 %v12442_v43 }
 0x96e   :  { %v5095_v22 = vsel %vm196_vm1, %v12034_v26, %v12093_v48  ;;  %v5096_v10 = vsel %vm196_vm1, %v12093_v48, %v12094_v52  ;;  %v6298_v26 = vrot.slane %v19716_v0, 1 }
 0x973   :  { %9409 = vmatmul.mubr.msk.bf16.vlgmr.msra.gmra.mrb[40].mxu0 %vm6095_vm3, %v19716_v0 }
 0x974   :  { %9413 = vmatpush3.bf16.msra.mxu0 %v6245_v4  ;;  %9416 = vmatprep.mubr.msk.bf16.mxu0 %vm12444_vm6, %v12442_v43  ;;  %v4949_v4 = vmax.f32 %v19748_v55, 0.0  ;;  %v20169_v55 = vld [vmem:[%s20796_s8 + $0x10] sm:$0xff]  }
 0x975   :  { %9414 = vmatprep.subr.bf16.mxu0 %v12442_v43 }
 0x976   :  { %v12105_v6 = vpack.i.bf16 %v4949_v4, %v4948_v61 }
 0x978   :  { %9415 = vmatpush3.bf16.msra.mxu0 %v6251_v3  ;;  %v4966_v3 = vmax.f32 %v19757_v28, 0.0 }
 0x979   :  { %9420 = vmatprep.subr.bf16.mxu0 %v12442_v43 }
 0x97f   :  { %9417 = vmatmul.mubr.msk.bf16.vlgmr.msra.gmra.mrb[40].mxu0 %vm6095_vm3, %v6231_v54  ;;  %v4841_v27 = vpop.f32.mrb[32].mxu0  ;;  %v6459_v54 = vshrl.u32 %v12239_v7, 16 }
 0x980   :  { %9421 = vmatpush3.bf16.msra.mxu0 %v6326_v11  ;;  %9424 = vmatprep.mubr.msk.bf16.mxu0 %vm12444_vm6, %v12442_v43  ;;  %v19761_v56 = vadd.f32 %v4841_v27, %v18224_v2  ;;  %v4843_v15 = vpop.f32.mrb[33].mxu0  ;;  %v6462_v11 = vshll.u32 %v12239_v7, 16  ;;  %v12110_v27 = vpack.i.bf16 %v4966_v3, %v4965_v19 }
 0x981   :  { %9422 = vmatprep.subr.bf16.mxu0 %v12442_v43  ;;  %v19767_v18 = vadd.f32 %v4843_v15, %v18224_v2  ;;  %v4845_v30 = vpop.f32.mrb[34].mxu0  ;;  %v22217_v15 = vmax.f32 %v22216_v8, 0.0  ;;  %v6461_v50 = vrot.slane %v6459_v54, 2 }
 0x982   :  { %v4946_v37 = vmax.f32 %v19761_v56, 0.0  ;;  %v19771_v60 = vadd.f32 %v4845_v30, %v18222_v21  ;;  %v4847_v62 = vpop.f32.mrb[35].mxu0  ;;  %v19826_v30 = vmax.f32 %v4944_v23, %v5080_v13  ;;  %v6464_v23 = vrot.slane %v6462_v11, 3  ;;  %v12241_v11 = vld [vmem:[%s20794_s6 + $0x48] sm:$0xf8]  }
 0x983   :  { %v4947_v49 = vmax.f32 %v19767_v18, 0.0  ;;  %v19779_v20 = vadd.f32 %v4847_v62, %v18222_v21  ;;  %v19822_v48 = vmax.f32 %v22217_v15, %v5079_v36  ;;  %v22218_v62 = vld [vmem:[#allocation12_spill] sm:$0xff]  ;;  %v6399_v36 = vand.u32 %v6392_v34, %v19680_v63 }
 0x984   :  { %9423 = vmatpush3.bf16.msra.mxu0 %v6332_v53  ;;  %v4963_v47 = vmax.f32 %v19771_v60, 0.0  ;;  %v6467_v53 = vshrl.u32 %v12240_v24, 16  ;;  %v22219_v1 = vmax.f32 %v22218_v62, 0.0  ;;  %v19836_v24 = vmax.f32 %v4961_v44, %v5096_v10 }
 0x985   :  { %9428 = vmatprep.subr.bf16.mxu0 %v12442_v43  ;;  %v12095_v32 = vpack.i.bf16 %v4947_v49, %v4946_v37  ;;  %v4964_v41 = vmax.f32 %v19779_v20, 0.0  ;;  %v12115_v58 = vpack.i.bf16 %v19826_v30, %v19822_v48  ;;  %v6465_v34 = vor.u32 %v6464_v23, %v6461_v50 }
 0x986   :  { %v19832_v7 = vmax.f32 %v22219_v1, %v5095_v22  ;;  %v6469_v13 = vrot.slane %v6467_v53, 2  ;;  %v6379_v10 = vrot.slane %v19690_v57, 2  ;;  %v6446_v15 = vrot.slane %v19716_v0, 2 }
 0x987   :  { %v12100_v5 = vpack.i.bf16 %v4964_v41, %v4963_v47  ;;  %12096 = vrot.lane.b32.xlu0 %v12095_v32, %s12419_s29  ;;  %v6472_v32 = vrot.slane %v6470_v31, 3  ;;  %v12243_v31 = vld [vmem:[%s20794_s6 + $0x54] sm:$0xf8]  }
 0x988   :  { %v12120_v44 = vpack.i.bf16 %v19836_v24, %v19832_v7  ;;  %v6607_v8 = vshrl.u32 %v12243_v31, 16  ;;  %v6610_v62 = vshll.u32 %v12243_v31, 16  ;;  %v12245_v31 = vld [vmem:[%s20794_s6 + $0x64] sm:$0xff]  }
 0x989   :  { %12101 = vrot.lane.b32.xlu1 %v12100_v5, %s12419_s29  ;;  %v6473_v22 = vor.u32 %v6472_v32, %v6469_v13  ;;  %v12242_v5 = vld [vmem:[%s20794_s6 + $0x50] sm:$0xff]  }
 0x98a   :  { %v6540_v53 = vrot.slane %v12242_v5, 3  ;;  %v6609_v23 = vrot.slane %v6607_v8, 3  ;;  %v6612_v13 = vrot.slane %v6610_v62, 4 }
 0x98b   :  { %9425 = vmatmul.mubr.msk.bf16.vlgmr.msra.gmra.mrb[40].mxu0 %vm6095_vm3, %v6298_v26  ;;  %12106 = vrot.lane.b32.xlu0 %v12105_v6, %s12419_s29  ;;  %v6480_v54 = vand.u32 %v6473_v22, %v19680_v63  ;;  %v6539_v26 = vrot.slane %v12241_v11, 3  ;;  %v12244_v6 = vld [vmem:[%s20794_s6 + $0x5c] sm:$0xff]  }
 0x98c   :  { %9429 = vmatpush3.bf16.msra.mxu0 %v6393_v39  ;;  %9432 = vmatprep.mubr.msk.bf16.mxu0 %vm12444_vm6, %v12442_v43  ;;  %v6474_v39 = vsel %vm6457_vm5, %v6465_v34, %v6473_v22  ;;  %v6615_v1 = vshrl.u32 %v12244_v6, 16  ;;  %v6547_v50 = vand.u32 %v6540_v53, %v19680_v63  ;;  %v6527_v22 = vrot.slane %v19690_v57, 3  ;;  %v12247_v57 = vld [vmem:[%s20794_s6 + $0x70] sm:$0xff]  }
 0x98d   :  { %9430 = vmatprep.subr.bf16.mxu0 %v12442_v43  ;;  %12111 = vrot.lane.b32.xlu1 %v12110_v27, %s12419_s29  ;;  %v6541_v27 = vsel %vm6099_vm13, %v6539_v26, %v6540_v53 }
 0x98e   :  { %v6617_v32 = vrot.slane %v6615_v1, 3 }
 0x98f   :  { %12116 = vrot.lane.b32.xlu0 %v12115_v58, %s12429_s27 }
 0x990   :  { %9431 = vmatpush3.bf16.msra.mxu0 %v6399_v36  ;;  %v6618_v36 = vshll.u32 %v12244_v6, 16  ;;  %v12246_v6 = vld [vmem:[%s20794_s6 + $0x6c] sm:$0x1f]  }
 0x991   :  { %9436 = vmatprep.subr.bf16.mxu0 %v12442_v43  ;;  %12121 = vrot.lane.b32.xlu1 %v12120_v44, %s12429_s27  ;;  %v6613_v44 = vor.u32 %v6612_v13, %v6609_v23 }
 0x992   :  { %v6620_v58 = vrot.slane %v6618_v36, 4  ;;  %v6691_v36 = vand.u32 %v12246_v6, %v19680_v63 }
 0x994   :  { %v6621_v34 = vor.u32 %v6620_v58, %v6617_v32 }
 0x997   :  { %9433 = vmatmul.mubr.msk.bf16.vlgmr.msra.gmra.mrb[40].mxu0 %vm6095_vm3, %v6379_v10  ;;  %v6622_v10 = vsel %vm6605_vm15, %v6613_v44, %v6621_v34 }
 0x998   :  { %9437 = vmatpush3.bf16.msra.mxu0 %v6474_v39  ;;  %9440 = vmatprep.mubr.msk.bf16.mxu0 %vm12444_vm6, %v12442_v43  ;;  %v6628_v39 = vand.u32 %v6621_v34, %v19680_v63  ;;  %v19921_v34 = vpack.c.bf16 %v19692_v38, %v19692_v38  ;;  %v12250_v38 = vld [vmem:[%s20794_s6 + $0x84] sm:$0x3f]  }
 0x999   :  { %9438 = vmatprep.subr.bf16.mxu0 %v12442_v43 }
 0x99c   :  { %9439 = vmatpush3.bf16.msra.mxu0 %v6480_v54 }
 0x99d   :  { %9444 = vmatprep.subr.bf16.mxu0 %v12442_v43 }
 0x9a3   :  { %9441 = vmatmul.mubr.msk.bf16.vlgmr.msra.gmra.mrb[40].mxu0 %vm6095_vm3, %v6446_v15  ;;  %v6753_v15 = vshll.u32 %v12247_v57, 16 }
 0x9a4   :  { %9445 = vmatpush3.bf16.msra.mxu0 %v6541_v27  ;;  %9448 = vmatprep.mubr.msk.bf16.mxu0 %vm12444_vm6, %v12442_v43  ;;  %v12248_v27 = vld [vmem:[%s20794_s6 + $0x78] sm:$0x1f]  }
 0x9a5   :  { %9446 = vmatprep.subr.bf16.mxu0 %v12442_v43  ;;  %v6755_v23 = vrot.slane %v6753_v15, 1  ;;  %v6762_v32 = vshrl.u32 %v12248_v27, 16 }
 0x9a8   :  { %9447 = vmatpush3.bf16.msra.mxu0 %v6547_v50  ;;  %v6758_v50 = vshll.u32 %v12248_v27, 16  ;;  %v19945_v27 = vshrl.u32 %v19921_v34, 16 }
 0x9a9   :  { %9452 = vmatprep.subr.bf16.mxu0 %v12442_v43 }
 0x9aa   :  { %v6760_v13 = vrot.slane %v6758_v50, 1 }
 0x9ac   :  { %v6764_v44 = vor.u32 %v6762_v32, %v6760_v13 }
 0x9af   :  { %9449 = vmatmul.mubr.msk.bf16.vlgmr.msra.gmra.mrb[40].mxu0 %vm6095_vm3, %v6527_v22 }
 0x9b0   :  { %9453 = vmatpush3.bf16.msra.mxu0 %v6622_v10  ;;  %9456 = vmatprep.mubr.msk.bf16.mxu0 %vm12444_vm6, %v12442_v43  ;;  %v6770_v10 = vand.u32 %v6764_v44, %v19680_v63 }
 0x9b1   :  { %9454 = vmatprep.subr.bf16.mxu0 %v12442_v43 }
 0x9b3   :  { %v4927_v54 = vpop.f32.mrb[36].mxu0 }
 0x9b4   :  { %9455 = vmatpush3.bf16.msra.mxu0 %v6628_v39  ;;  %v19891_v11 = vadd.f32 %v4927_v54, %v18224_v2  ;;  %v4929_v5 = vpop.f32.mrb[37].mxu0  ;;  %v6594_v2 = vrot.slane %v19716_v0, 3  ;;  %v6751_v0 = vshrl.u32 %v12247_v57, 16  ;;  %v12249_v39 = vld [vmem:[%s20794_s6 + $0x7c] sm:$0xfe]   ;;  %v6830_v57 = vrot.slane %v12250_v38, 1 }
 0x9b5   :  { %9460 = vmatprep.subr.bf16.mxu0 %v12442_v43  ;;  %v4930_v26 = vpop.f32.mrb[38].mxu0  ;;  %v6829_v54 = vrot.slane %v12249_v39, 1  ;;  %v12251_v5 = vld [vmem:[%s20794_s6 + $0x88] sm:$0xfe]   ;;  %v12254_v39 = vld [vmem:[%s20794_s6 + $0x9c] sm:$0x7f]  }
 0x9b6   :  { %v19894_v53 = vadd.f32 %v4930_v26, %v18222_v21  ;;  %v4932_v8 = vpop.f32.mrb[39].mxu0  ;;  %v4950_v62 = vmax.f32 %v19891_v11, 0.0  ;;  %v6756_v58 = vor.u32 %v6755_v23, %v6751_v0  ;;  %v12252_v26 = vld [vmem:[%s20794_s6 + $0x90] sm:$0x3f]   ;;  %v6896_v6 = vshrl.u32 %v12251_v5, 16  ;;  %v12345_v11 = vld [vmem:[%s20793_s5 + $0x178] sm:$0xff]  }
 0x9b7   :  { %v6899_v8 = vshll.u32 %v12251_v5, 16  ;;  %v6907_v15 = vshll.u32 %v12252_v26, 16  ;;  %v12256_v5 = vld [vmem:[%s20794_s6 + $0xa8] sm:$0x7f]  }
 0x9b8   :  { %v4967_v21 = vmax.f32 %v19894_v53, 0.0  ;;  %v6761_v22 = vsel %vm6162_vm8, %v6756_v58, %v6760_v13  ;;  %v6818_v58 = vrot.slane %v19921_v34, 1  ;;  %v12344_v53 = vld [vmem:[%s20793_s5 + $0x130] sm:$0xff]  }
 0x9b9   :  { %v6901_v50 = vrot.slane %v6899_v8, 2  ;;  %v6909_v23 = vrot.slane %v6907_v15, 2  ;;  %v7053_v15 = vshll.u32 %v12256_v5, 16 }
 0x9ba   :  { %v12125_v1 = vpack.i.bf16 %v4967_v21, %v4950_v62 }
 0x9bb   :  { %9457 = vmatmul.mubr.msk.bf16.vlgmr.msra.gmra.mrb[40].mxu0 %vm6095_vm3, %v6594_v2  ;;  %v6904_v2 = vshrl.u32 %v12252_v26, 16  ;;  %v6884_v26 = vrot.slane %v19945_v27, 1 }
 0x9bc   :  { %9461 = vmatpush3.bf16.msra.mxu0 %v12245_v31  ;;  %9464 = vmatprep.mubr.msk.bf16.mxu0 %vm12444_vm6, %v12442_v43  ;;  %v6831_v31 = vsel %vm6242_vm7, %v6829_v54, %v6830_v57  ;;  %v6976_v54 = vrot.slane %v12254_v39, 2 }
 0x9bd   :  { %9462 = vmatprep.subr.bf16.mxu0 %v12442_v43  ;;  %12126 = vrot.lane.b32.xlu0 %v12125_v1, %s12419_s29  ;;  %v6837_v1 = vand.u32 %v6830_v57, %v19680_v63  ;;  %v6906_v0 = vrot.slane %v6904_v2, 1  ;;  %v12255_v57 = vld [vmem:[%s20794_s6 + $0xa0] sm:$0xfc]   ;;  %v7050_v2 = vshrl.u32 %v12256_v5, 16 }
 0x9be   :  { %v7045_v8 = vshll.u32 %v12255_v57, 16 }
 0x9bf   :  { %v6910_v32 = vor.u32 %v6909_v23, %v6906_v0  ;;  %v7052_v0 = vrot.slane %v7050_v2, 2  ;;  %v7055_v23 = vrot.slane %v7053_v15, 3  ;;  %v7030_v2 = vrot.slane %v19945_v27, 2 }
 0x9c0   :  { %9463 = vmatpush3.bf16.msra.mxu0 %v6691_v36  ;;  %v6898_v36 = vrot.slane %v6896_v6, 1  ;;  %v7042_v6 = vshrl.u32 %v12255_v57, 16  ;;  %v12259_v57 = vld [vmem:[%s20794_s6 + $0xb8] sm:$0xf8]  }
 0x9c1   :  { %9468 = vmatprep.subr.bf16.mxu0 %v12442_v43 }
 0x9c2   :  { %v6902_v13 = vor.u32 %v6901_v50, %v6898_v36  ;;  %v7044_v36 = vrot.slane %v7042_v6, 2  ;;  %v7047_v50 = vrot.slane %v7045_v8, 3 }
 0x9c4   :  { %v6911_v44 = vsel %vm6309_vm4, %v6902_v13, %v6910_v32  ;;  %v7048_v13 = vor.u32 %v7047_v50, %v7044_v36  ;;  %v7188_v36 = vshrl.u32 %v12259_v57, 16 }
 0x9c7   :  { %9465 = vmatmul.mubr.msk.bf16.vlgmr.msra.gmra.mrb[40].mxu0 %vm6095_vm3, %v19921_v34 }
 0x9c8   :  { %9469 = vmatpush3.bf16.msra.mxu0 %v6761_v22  ;;  %9472 = vmatprep.mubr.msk.bf16.mxu0 %vm12444_vm6, %v12442_v43  ;;  %v6917_v22 = vand.u32 %v6910_v32, %v19680_v63  ;;  %v7056_v32 = vor.u32 %v7055_v23, %v7052_v0 }
 0x9c9   :  { %9470 = vmatprep.subr.bf16.mxu0 %v12442_v43 }
 0x9ca   :  { %v7063_v39 = vand.u32 %v7056_v32, %v19680_v63 }
 0x9cc   :  { %9471 = vmatpush3.bf16.msra.mxu0 %v6770_v10  ;;  %v12253_v10 = vld [vmem:[%s20794_s6 + $0x94] sm:$0xfc]  }
 0x9cd   :  { %9476 = vmatprep.subr.bf16.mxu0 %v12442_v43  ;;  %v6975_v38 = vrot.slane %v12253_v10, 2  ;;  %v12258_v10 = vld [vmem:[%s20794_s6 + $0xb4] sm:$0xff]  }
 0x9d3   :  { %9473 = vmatmul.mubr.msk.bf16.vlgmr.msra.gmra.mrb[40].mxu0 %vm6095_vm3, %v19945_v27 }
 0x9d4   :  { %9477 = vmatpush3.bf16.msra.mxu0 %v6831_v31  ;;  %9480 = vmatprep.mubr.msk.bf16.mxu0 %vm12444_vm6, %v12442_v43  ;;  %v6977_v31 = vsel %vm6390_vm9, %v6975_v38, %v6976_v54 }
 0x9d5   :  { %9478 = vmatprep.subr.bf16.mxu0 %v12442_v43 }
 0x9d8   :  { %9479 = vmatpush3.bf16.msra.mxu0 %v6837_v1  ;;  %v6983_v1 = vand.u32 %v6976_v54, %v19680_v63  ;;  %v7122_v54 = vrot.slane %v12258_v10, 3 }
 0x9d9   :  { %9484 = vmatprep.subr.bf16.mxu0 %v12442_v43 }
 0x9df   :  { %9481 = vmatmul.mubr.msk.bf16.vlgmr.msra.gmra.mrb[40].mxu0 %vm6095_vm3, %v6818_v58  ;;  %v6964_v58 = vrot.slane %v19921_v34, 2 }
 0x9e0   :  { %9485 = vmatpush3.bf16.msra.mxu0 %v6911_v44  ;;  %9488 = vmatprep.mubr.msk.bf16.mxu0 %vm12444_vm6, %v12442_v43  ;;  %v7057_v44 = vsel %vm6457_vm5, %v7048_v13, %v7056_v32 }
 0x9e1   :  { %9486 = vmatprep.subr.bf16.mxu0 %v12442_v43 }
 0x9e4   :  { %9487 = vmatpush3.bf16.msra.mxu0 %v6917_v22  ;;  %v12257_v22 = vld [vmem:[%s20794_s6 + $0xac] sm:$0xf8]  }
 0x9e5   :  { %9492 = vmatprep.subr.bf16.mxu0 %v12442_v43  ;;  %v7121_v38 = vrot.slane %v12257_v22, 3  ;;  %v7191_v22 = vshll.u32 %v12259_v57, 16 }
 0x9e7   :  { %v7123_v15 = vsel %vm6099_vm13, %v7121_v38, %v7122_v54  ;;  %v7193_v35 = vrot.slane %v7191_v22, 4  ;;  %v12338_v22 = vld [vmem:[%s20793_s5 + $0x118] sm:$0xff]  }
 0x9eb   :  { %9489 = vmatmul.mubr.msk.bf16.vlgmr.msra.gmra.mrb[40].mxu0 %vm6095_vm3, %v6884_v26  ;;  %v12260_v26 = vld [vmem:[%s20794_s6 + $0xc0] sm:$0xff]  }
 0x9ec   :  { %9493 = vmatpush3.bf16.msra.mxu0 %v6977_v31  ;;  %9496 = vmatprep.mubr.msk.bf16.mxu0 %vm12444_vm6, %v12442_v43  ;;  %v7196_v10 = vshrl.u32 %v12260_v26, 16 }
 0x9ed   :  { %9494 = vmatprep.subr.bf16.mxu0 %v12442_v43 }
 0x9f0   :  { %9495 = vmatpush3.bf16.msra.mxu0 %v6983_v1  ;;  %v7129_v1 = vand.u32 %v7122_v54, %v19680_v63 }
 0x9f1   :  { %9500 = vmatprep.subr.bf16.mxu0 %v12442_v43 }
 0x9f7   :  { %9497 = vmatmul.mubr.msk.bf16.vlgmr.msra.gmra.mrb[40].mxu0 %vm6095_vm3, %v6964_v58 }
 0x9f8   :  { %9501 = vmatpush3.bf16.msra.mxu0 %v7057_v44  ;;  %9504 = vmatprep.mubr.msk.bf16.mxu0 %vm12444_vm6, %v12442_v43 }
 0x9f9   :  { %9502 = vmatprep.subr.bf16.mxu0 %v12442_v43  ;;  %v12097_v5 = vpop.permute.xlu0 %12096 }
 0x9fa   :  { %v12099_v31 = vunpack.i.h.bf16 %v12097_v5  ;;  %v12098_v6 = vunpack.i.l.bf16 %v12097_v5  ;;  %v7190_v5 = vrot.slane %v7188_v36, 3  ;;  %v12332_v36 = vld [vmem:[%s20793_s5 + $0x100] sm:$0xff]  }
 0x9fb   :  { %v12102_v8 = vpop.permute.xlu1 %12101 }
 0x9fc   :  { %9503 = vmatpush3.bf16.msra.mxu0 %v7063_v39  ;;  %v5081_v50 = vsel %vm196_vm1, %v12089_v46, %v12098_v6  ;;  %v5082_v0 = vsel %vm196_vm1, %v12098_v6, %v12099_v31  ;;  %v12104_v23 = vunpack.i.h.bf16 %v12102_v8  ;;  %v12103_v13 = vunpack.i.l.bf16 %v12102_v8 }
 0x9fd   :  { %9508 = vmatprep.subr.bf16.mxu0 %v12442_v43  ;;  %v20011_v32 = vmax.f32 %v4945_v59, %v5081_v50  ;;  %v20015_v58 = vmax.f32 %v4946_v37, %v5082_v0  ;;  %v20017_v44 = vpop.permute.xlu0 %12106  ;;  %v7194_v51 = vor.u32 %v7193_v35, %v7190_v5  ;;  %v12333_v50 = vld [vmem:[%s20793_s5 + $0x148] sm:$0xff]   ;;  %v12343_v5 = vld [vmem:[%s20793_s5 + $0x170] sm:$0xff]  }
 0x9fe   :  { %v5097_v42 = vsel %vm196_vm1, %v12094_v52, %v12103_v13  ;;  %v5098_v46 = vsel %vm196_vm1, %v12103_v13, %v12104_v23  ;;  %v12109_v39 = vunpack.i.h.bf16 %v20017_v44  ;;  %v12108_v40 = vunpack.i.l.bf16 %v20017_v44  ;;  %v12334_v0 = vld [vmem:[%s20793_s5 + $0x108] sm:$0xff]   ;;  %v12337_v13 = vld [vmem:[%s20793_s5 + $0x158] sm:$0xff]  }
 0x9ff   :  { %v20027_v59 = vmax.f32 %v4962_v25, %v5097_v42  ;;  %v20031_v56 = vmax.f32 %v4963_v47, %v5098_v46  ;;  %v20033_v37 = vpop.permute.xlu1 %12111  ;;  %v12130_v14 = vpack.i.bf16 %v20015_v58, %v20011_v32  ;;  %v7199_v52 = vshll.u32 %v12260_v26, 16  ;;  %v12340_v46 = vld [vmem:[%s20793_s5 + $0x120] sm:$0xff]   ;;  %v20197_v44 = vld [vmem:[%s20796_s8 + $0x28] sm:$0xff]  }
 0xa00   :  { %v5083_v38 = vsel %vm196_vm1, %v12099_v31, %v12108_v40  ;;  %v5084_v54 = vsel %vm196_vm1, %v12108_v40, %v12109_v39  ;;  %v12114_v45 = vunpack.i.h.bf16 %v20033_v37  ;;  %v12113_v25 = vunpack.i.l.bf16 %v20033_v37  ;;  %v12341_v40 = vld [vmem:[%s20793_s5 + $0x168] sm:$0xff]   ;;  %v20207_v37 = vld [vmem:[%s20796_s8 + $0x30] sm:$0xff]  }
 0xa01   :  { %v20045_v60 = vmax.f32 %v4947_v49, %v5083_v38  ;;  %v20049_v47 = vmax.f32 %v4948_v61, %v5084_v54  ;;  %12131 = vrot.lane.b32.xlu1 %v12130_v14, %s12429_s27  ;;  %v12135_v57 = vpack.i.bf16 %v20031_v56, %v20027_v59  ;;  %v7198_v61 = vrot.slane %v7196_v10, 3  ;;  %v12339_v10 = vld [vmem:[%s20793_s5 + $0x160] sm:$0xff]   ;;  %v20114_v42 = vpop.permute.xlu0 %12116  ;;  %v12342_v38 = vld [vmem:[%s20793_s5 + $0x128] sm:$0xff]  }
 0xa02   :  { %v5099_v26 = vsel %vm196_vm1, %v12104_v23, %v12113_v25  ;;  %v5100_v18 = vsel %vm196_vm1, %v12113_v25, %v12114_v45  ;;  %v7201_v8 = vrot.slane %v7199_v52, 4  ;;  %v12336_v23 = vld [vmem:[%s20793_s5 + $0x110] sm:$0xff]   ;;  %v20125_v14 = vld [vmem:[%s20796_s8] sm:$0xff]   ;;  %v20134_v54 = vld [vmem:[%s20796_s8 + $0x8] sm:$0xff]  }
 0xa03   :  { %9505 = vmatmul.mubr.msk.bf16.vlgmr.msra.gmra.mrb[40].mxu0 %vm6095_vm3, %v7030_v2  ;;  %v20063_v49 = vmax.f32 %v4964_v41, %v5099_v26  ;;  %v20067_v31 = vmax.f32 %v4965_v19, %v5100_v18  ;;  %12136 = vrot.lane.b32.xlu0 %v12135_v57, %s12429_s27  ;;  %v12140_v6 = vpack.i.bf16 %v20049_v47, %v20045_v60  ;;  %v7110_v19 = vrot.slane %v19921_v34, 3 }
 0xa04   :  { %9509 = vmatpush3.bf16.msra.mxu0 %v7123_v15  ;;  %9512 = vmatprep.mubr.msk.bf16.mxu0 %vm12444_vm6, %v12442_v43  ;;  %v7202_v20 = vor.u32 %v7201_v8, %v7198_v61  ;;  %v7176_v34 = vrot.slane %v19945_v27, 3  ;;  %v12335_v27 = vld [vmem:[%s20793_s5 + $0x150] sm:$0xff]  }
 0xa05   :  { %9510 = vmatprep.subr.bf16.mxu0 %v12442_v43  ;;  %12141 = vrot.lane.b32.xlu1 %v12140_v6, %s12429_s27  ;;  %v12145_v2 = vpack.i.bf16 %v20067_v31, %v20063_v49 }
 0xa06   :  { %v7203_v41 = vsel %vm6605_vm15, %v7194_v51, %v7202_v20  ;;  %v7209_v15 = vand.u32 %v7202_v20, %v19680_v63  ;;  %9525 = vmatpush3.bf16.msra.mxu1 %v20125_v14  ;;  %v12119_v51 = vunpack.i.h.bf16 %v20114_v42 }
 0xa07   :  { %12146 = vrot.lane.b32.xlu0 %v12145_v2, %s12429_s27  ;;  %9526 = vmatprep.subr.bf16.mxu1 %v12442_v43 }
 0xa08   :  { %9511 = vmatpush3.bf16.msra.mxu0 %v7129_v1  ;;  %v12331_v1 = vld [vmem:[%s20793_s5 + $0x140] sm:$0xff]  }
 0xa09   :  { %9516 = vmatprep.subr.bf16.mxu0 %v12442_v43 }
 0xa0a   :  { %9527 = vmatpush3.bf16.msra.mxu1 %v20134_v54 }
 0xa0b   :  { %9528 = vmatprep.subr.bf16.mxu1 %v12442_v43 }
 0xa0e   :  { %9529 = vmatpush3.bf16.msra.mxu1 %v20169_v55 }
 0xa0f   :  { %9513 = vmatmul.mubr.msk.bf16.vlgmr.msra.gmra.mrb[40].mxu0 %vm6095_vm3, %v7110_v19  ;;  %9530 = vmatprep.subr.bf16.mxu1 %v12442_v43 }
 0xa10   :  { %9517 = vmatpush3.bf16.msra.mxu0 %v7203_v41  ;;  %9520 = vmatprep.mubr.msk.bf16.mxu0 %vm12444_vm6, %v12442_v43 }
 0xa11   :  { %9518 = vmatprep.subr.bf16.mxu0 %v12442_v43 }
 0xa14   :  { %9519 = vmatpush3.bf16.msra.mxu0 %v7209_v15 }
 0xa15   :  { %9288 = vmatprep.subr.bf16.mxu0 %v12331_v1 }
 0xa1b   :  { %9521 = vmatmul.mubr.msk.bf16.vlgmr.msra.gmra.mrb[40].mxu0 %vm6095_vm3, %v7176_v34 }
 0xa1c   :  { %9289 = vmatpush3.bf16.msra.mxu0 %v12332_v36 }
 0xa1d   :  { %9290 = vmatprep.subr.bf16.mxu0 %v12333_v50 }
 0xa20   :  { %9291 = vmatpush3.bf16.msra.mxu0 %v12334_v0 }
 0xa21   :  { %9292 = vmatprep.subr.bf16.mxu0 %v12335_v27 }
 0xa24   :  { %9293 = vmatpush3.bf16.msra.mxu0 %v12336_v23 }
 0xa25   :  { %9294 = vmatprep.subr.bf16.mxu0 %v12337_v13 }
 0xa28   :  { %9295 = vmatpush3.bf16.msra.mxu0 %v12338_v22 }
 0xa29   :  { %9296 = vmatprep.subr.bf16.mxu0 %v12339_v10 }
 0xa2c   :  { %9297 = vmatpush3.bf16.msra.mxu0 %v12340_v46 }
 0xa2d   :  { %9298 = vmatprep.subr.bf16.mxu0 %v12341_v40 }
 0xa2f   :  { %v12127_v52 = vpop.permute.xlu0 %12126 }
 0xa30   :  { %9299 = vmatpush3.bf16.msra.mxu0 %v12342_v38  ;;  %v12129_v25 = vunpack.i.h.bf16 %v12127_v52  ;;  %v12128_v57 = vunpack.i.l.bf16 %v12127_v52 }
 0xa31   :  { %9300 = vmatprep.subr.bf16.mxu0 %v12343_v5 }
 0xa32   :  { %v5101_v26 = vsel %vm196_vm1, %v12114_v45, %v12129_v25  ;;  %v5169_v18 = vmax.f32 %v4967_v21, %v12129_v25  ;;  %v5085_v35 = vsel %vm196_vm1, %v12109_v39, %v12128_v57  ;;  %v5168_v61 = vmax.f32 %v4950_v62, %v12128_v57  ;;  %v20182_v62 = vld [vmem:[%s20796_s8 + $0x18] sm:$0xff]   ;;  %v20190_v21 = vld [vmem:[%s20796_s8 + $0x20] sm:$0xff]   ;;  %v20202_v39 = vpop.permute.xlu1 %12121  ;;  %vm22220_vm1 = vmmov %vm22181_vm0 }
 0xa33   :  { %v20152_v6 = vmax.f32 %v4966_v3, %v5101_v26  ;;  %v20156_v8 = vmax.f32 %v4949_v4, %v5085_v35  ;;  %v12346_v3 = vld [vmem:[%s20793_s5 + $0x138] sm:$0xff]   ;;  %9531 = vmatpush3.bf16.msra.mxu1 %v20182_v62  ;;  %v12124_v15 = vunpack.i.h.bf16 %v20202_v39  ;;  %vm7386_vm0 = vcmask 1041408  }
 0xa34   :  { %9301 = vmatpush3.bf16.msra.mxu0 %v12344_v53  ;;  %9532 = vmatprep.subr.bf16.mxu1 %v12442_v43  ;;  %v12268_v45 = vld [vmem:[%s20796_s8 + $0x38] ss:$0 sps:$4 sm:$0xff]  }
 0xa35   :  { %9302 = vmatprep.subr.bf16.mxu0 %v12345_v11  ;;  %v12155_v28 = vpack.i.bf16 %v5169_v18, %v20152_v6  ;;  %v12150_v4 = vpack.i.bf16 %v5168_v61, %v20156_v8  ;;  %v20216_v41 = vsel %vm22220_vm1, %v12268_v45, 0 }
 0xa37   :  { %12156 = vrot.lane.b32.xlu0 %v12155_v28, %s12429_s27  ;;  %12151 = vrot.lane.b32.xlu1 %v12150_v4, %s12429_s27 }
 0xa38   :  { %9303 = vmatpush3.bf16.msra.mxu0 %v12346_v3  ;;  %9533 = vmatpush3.bf16.msra.mxu1 %v20190_v21 }
 0xa39   :  { %9560 = vmatprep.subr.bf16.mxu0 %v12442_v43  ;;  %9534 = vmatprep.subr.bf16.mxu1 %v12442_v43 }
 0xa3c   :  { %9535 = vmatpush3.bf16.msra.mxu1 %v20197_v44 }
 0xa3d   :  { %9536 = vmatprep.subr.bf16.mxu1 %v12442_v43 }
 0xa40   :  { %9537 = vmatpush3.bf16.msra.mxu1 %v20207_v37 }
 0xa41   :  { %9538 = vmatprep.subr.bf16.mxu1 %v12442_v43 }
 0xa44   :  { %9539 = vmatpush3.bf16.msra.mxu1 %v20216_v41 }
 0xa45   :  { %9544 = vmatprep.subr.bf16.mxu1 %v12442_v43 }
 0xa73   :  { %v12132_v2 = vpop.permute.xlu1 %12131 }
 0xa74   :  { %v12134_v20 = vunpack.i.h.bf16 %v12132_v2  ;;  %v12133_v19 = vunpack.i.l.bf16 %v12132_v2 }
 0xa75   :  { %v12137_v1 = vpop.permute.xlu0 %12136 }
 0xa76   :  { %v5282_v34 = vsel %vm822_vm11, %v12119_v51, %v12133_v19  ;;  %v5283_v36 = vsel %vm822_vm11, %v12133_v19, %v12134_v20  ;;  %v12139_v50 = vunpack.i.h.bf16 %v12137_v1  ;;  %v12138_v0 = vunpack.i.l.bf16 %v12137_v1  ;;  %v6078_v1 = vld [vmem:[%s20795_s7] sm:$0x1] }
 0xa77   :  { %v12142_v27 = vpop.permute.xlu1 %12141  ;;  %v5346_v46 = vmax.f32 %v19826_v30, %v5282_v34  ;;  %v5347_v38 = vmax.f32 %v20011_v32, %v5283_v36 }
 0xa78   :  { %v5298_v23 = vsel %vm822_vm11, %v12124_v15, %v12138_v0  ;;  %v5299_v13 = vsel %vm822_vm11, %v12138_v0, %v12139_v50  ;;  %v12144_v22 = vunpack.i.h.bf16 %v12142_v27  ;;  %v12143_v10 = vunpack.i.l.bf16 %v12142_v27 }
 0xa79   :  { %v5362_v40 = vmax.f32 %v19836_v24, %v5298_v23  ;;  %v12147_v52 = vpop.permute.xlu0 %12146  ;;  %v5363_v25 = vmax.f32 %v20027_v59, %v5299_v13  ;;  %v20269_v13 = vld [vmem:[%s20798_s10] sm:$0xff]  }
 0xa7a   :  { %v5284_v57 = vsel %vm822_vm11, %v12134_v20, %v12143_v10  ;;  %v5285_v5 = vsel %vm822_vm11, %v12143_v10, %v12144_v22  ;;  %v12149_v26 = vunpack.i.h.bf16 %v12147_v52  ;;  %v12148_v18 = vunpack.i.l.bf16 %v12147_v52  ;;  %v20292_v10 = vld [vmem:[%s20798_s10 + $0x18] sm:$0xff]  }
 0xa7b   :  { %v20235_v35 = vpack.c.bf16 %v5363_v25, %v5347_v38  ;;  %v20237_v61 = vpack.c.bf16 %v5362_v40, %v5346_v46  ;;  %v5348_v24 = vmax.f32 %v20015_v58, %v5284_v57  ;;  %v5349_v59 = vmax.f32 %v20045_v60, %v5285_v5  ;;  %v20299_v46 = vld [vmem:[%s20798_s10 + $0x20] sm:$0xff]   ;;  %v12274_v40 = vld [vmem:[%s20798_s10 + $0x28] ss:$0 sps:$4 sm:$0x33]  }
 0xa7c   :  { %v5300_v53 = vsel %vm822_vm11, %v12139_v50, %v12148_v18  ;;  %v5301_v30 = vsel %vm822_vm11, %v12148_v18, %v12149_v26  ;;  %v20307_v52 = vsel %vm7386_vm0, %v12274_v40, 0  ;;  %v12347_v38 = vld [vmem:[%s20793_s5 + $0x40] sm:$0xff]   ;;  %v12358_v40 = vld [vmem:[%s20793_s5 + $0x28] sm:$0xff]  }
 0xa7d   :  { %v5364_v32 = vmax.f32 %v20031_v56, %v5300_v53  ;;  %v5365_v11 = vmax.f32 %v20063_v49, %v5301_v30  ;;  %v12123_v30 = vunpack.i.l.bf16 %v20202_v39  ;;  %v12349_v39 = vld [vmem:[%s20793_s5 + $0x48] sm:$0xff]  }
 0xa7f   :  { %v7437_v28 = vpack.c.bf16 %v5365_v11, %v5349_v59  ;;  %v7436_v4 = vpack.c.bf16 %v5364_v32, %v5348_v24  ;;  %v12118_v24 = vunpack.i.l.bf16 %v20114_v42  ;;  %v7254_v32 = vld [vmem:[%s20797_s9] sm:$0x1]  ;;  %v5297_v59 = vsel %vm822_vm11, %v12123_v30, %v12124_v15  ;;  %v12353_v15 = vld [vmem:[%s20793_s5 + $0x58] sm:$0xff]  }
 0xa80   :  { %v12348_v42 = vld [vmem:[%s20793_s5] sm:$0xff]  }
 0xa81   :  { %7554 = vmatprep.mubr.bf16.mxu0 %v7437_v28  ;;  %v5281_v28 = vsel %vm822_vm11, %v12118_v24, %v12119_v51  ;;  %v12352_v51 = vld [vmem:[%s20793_s5 + $0x10] sm:$0xff]  }
 0xa82   :  { %7555 = vmatmul.mubr.bf16.vlgmr.msra.gmra.mrb[44].mxu0 %v7436_v4 }
 0xa83   :  { %9564 = vmatprep.mubr.msk.bf16.mxu0 %vm12444_vm6, %v12442_v43 }
 0xaa9   :  { %v20247_v3 = vpop.permute.xlu0 %12156  ;;  %v20249_v45 = vpop.permute.xlu1 %12151 }
 0xaaa   :  { %v12158_v2 = vunpack.i.l.bf16 %v20247_v3  ;;  %v12153_v58 = vunpack.i.l.bf16 %v20249_v45 }
 0xaac   :  { %v5302_v56 = vsel %vm822_vm11, %v12149_v26, %v12158_v2  ;;  %v5286_v60 = vsel %vm822_vm11, %v12144_v22, %v12153_v58  ;;  %v20285_v22 = vld [vmem:[%s20798_s10 + $0x10] sm:$0xff]  }
 0xaad   :  { %v5366_v49 = vmax.f32 %v20067_v31, %v5302_v56  ;;  %v5350_v20 = vmax.f32 %v20049_v47, %v5286_v60  ;;  %v20276_v47 = vld [vmem:[%s20798_s10 + $0x8] sm:$0xff]  }
 0xaaf   :  { %v20261_v19 = vpack.c.bf16 %v5366_v49, %v5350_v20  ;;  %v5361_v49 = vmax.f32 %v19832_v7, %v5297_v59  ;;  %v12350_v7 = vld [vmem:[%s20793_s5 + $0x8] sm:$0xff]   ;;  %v12368_v59 = vld [vmem:[%s20793_s5 + $0x90] sm:$0xff]  }
 0xaee   :  { %v7245_v34 = vpop.f32.mrb[40].mxu0 }
 0xaef   :  { %v9724_v36 = vadd.f32 %v7245_v34, %v6078_v1  ;;  %v9522_v50 = vpop.f32.mrb[41].mxu0  ;;  %v5345_v34 = vmax.f32 %v19822_v48, %v5281_v28  ;;  %v12351_v48 = vld [vmem:[%s20793_s5 + $0x50] sm:$0xff]   ;;  %v12371_v28 = vld [vmem:[%s20793_s5 + $0xe0] sm:$0xff]  }
 0xaf0   :  { %v7248_v0 = vpop.f32.mrb[42].mxu0 }
 0xaf1   :  { %v7252_v27 = vmax.f32 %v9724_v36, 0.0  ;;  %v9523_v23 = vpop.f32.mrb[43].mxu0  ;;  %v7433_v50 = vpack.c.bf16 %v5361_v49, %v5345_v34  ;;  %v12354_v0 = vld [vmem:[%s20793_s5 + $0x18] sm:$0xff]   ;;  %v12154_v49 = vunpack.i.h.bf16 %v20249_v45 }
 0xaf2   :  { %v12356_v23 = vld [vmem:[%s20793_s5 + $0x20] sm:$0xff]   ;;  %v12378_v45 = vld [vmem:[%s20793_s5 + $0xb8] sm:$0xff]  }
 0xaf3   :  { %v7253_v31 = vpack.c.bf16 %v7252_v27, %v7252_v27  ;;  %v12355_v27 = vld [vmem:[%s20793_s5 + $0x60] sm:$0xff]  }
 0xaf5   :  { %9541 = vmatmul.mubr.msk.bf16.vlgmr.msra.gmra.mrb[52].mxu1 %vm3254_vm12, %v7253_v31  ;;  %v12357_v31 = vld [vmem:[%s20793_s5 + $0x68] sm:$0xff]  }
 0xaf6   :  { %9545 = vmatpush3.bf16.msra.mxu1 %v20269_v13  ;;  %9556 = vmatprep.mubr.msk.bf16.mxu1 %vm12444_vm6, %v12442_v43 }
 0xaf7   :  { %9546 = vmatprep.subr.bf16.mxu1 %v12442_v43 }
 0xafa   :  { %9547 = vmatpush3.bf16.msra.mxu1 %v20276_v47 }
 0xafb   :  { %9548 = vmatprep.subr.bf16.mxu1 %v12442_v43 }
 0xafe   :  { %9549 = vmatpush3.bf16.msra.mxu1 %v20285_v22 }
 0xaff   :  { %9550 = vmatprep.subr.bf16.mxu1 %v12442_v43 }
 0xb02   :  { %9551 = vmatpush3.bf16.msra.mxu1 %v20292_v10 }
 0xb03   :  { %9552 = vmatprep.subr.bf16.mxu1 %v12442_v43 }
 0xb06   :  { %9553 = vmatpush3.bf16.msra.mxu1 %v20299_v46 }
 0xb07   :  { %9554 = vmatprep.subr.bf16.mxu1 %v12442_v43 }
 0xb0a   :  { %9555 = vmatpush3.bf16.msra.mxu1 %v20307_v52 }
 0xb0b   :  { %9244 = vmatprep.subr.bf16.mxu1 %v12347_v38  ;;  %v12359_v38 = vld [vmem:[%s20793_s5 + $0x70] sm:$0xff]  }
 0xb55   :  { %v9304_v25 = vpop.f32.mrb[44].mxu0 }
 0xb56   :  { %v9305_v57 = vpop.f32.mrb[45].mxu0 }
 0xb57   :  { %v20313_v5 = vadd.f32 %v9305_v57, %v9304_v25  ;;  %v9307_v26 = vpop.f32.mrb[46].mxu0  ;;  %v5296_v25 = vsel %vm822_vm11, %v12054_v33, %v12123_v30  ;;  %v5280_v57 = vsel %vm822_vm11, %v12049_v12, %v12118_v24  ;;  %v12363_v33 = vld [vmem:[%s20793_s5 + $0xc0] sm:$0xff]   ;;  %v12366_v30 = vld [vmem:[%s20793_s5 + $0x88] sm:$0xff]   ;;  %v12367_v24 = vld [vmem:[%s20793_s5 + $0xd0] sm:$0xff]  }
 0xb58   :  { %v9308_v18 = vpop.f32.mrb[47].mxu0  ;;  %v5344_v17 = vmax.f32 %v19303_v9, %v5280_v57  ;;  %v12365_v9 = vld [vmem:[%s20793_s5 + $0xc8] sm:$0xff]   ;;  %v12394_v57 = vld [vmem:[%s20793_s5 + $0x1b8] sm:$0xff]  }
 0xb59   :  { %v20315_v53 = vadd.f32 %v9308_v18, %v9307_v26  ;;  %v12360_v26 = vld [vmem:[%s20793_s5 + $0x30] sm:$0xff]   ;;  %v5360_v18 = vmax.f32 %v19320_v16, %v5296_v25  ;;  %v12364_v16 = vld [vmem:[%s20793_s5 + $0x80] sm:$0xff]   ;;  %v12393_v25 = vld [vmem:[%s20793_s5 + $0x1f8] sm:$0xff]  }
 0xb5b   :  { %v7432_v12 = vpack.c.bf16 %v5360_v18, %v5344_v17 }
 0xbc8   :  { %v7340_v11 = vpop.f32.mrb[52].mxu1 }
 0xbc9   :  { %v7341_v4 = vadd.f32 %v7340_v11, %v7254_v32  ;;  %v9542_v56 = vpop.f32.mrb[53].mxu1  ;;  %v12361_v32 = vld [vmem:[%s20793_s5 + $0x78] sm:$0xff]  }
 0xbca   :  { %v7343_v60 = vpop.f32.mrb[54].mxu1  ;;  %v12370_v11 = vld [vmem:[%s20793_s5 + $0x98] sm:$0xff]   ;;  %v12373_v56 = vld [vmem:[%s20793_s5 + $0xe8] sm:$0xff]  }
 0xbcb   :  { %v7346_v20 = vmax.f32 %v7341_v4, 0.0  ;;  %v9543_v1 = vpop.f32.mrb[55].mxu1  ;;  %v12372_v4 = vld [vmem:[%s20793_s5 + $0xa0] sm:$0xff]   ;;  %v12159_v60 = vunpack.i.h.bf16 %v20247_v3 }
 0xbcc   :  { %v12375_v1 = vld [vmem:[%s20793_s5 + $0xf0] sm:$0xff]  }
 0xbcd   :  { %v7347_v36 = vpack.c.bf16 %v7346_v20, %v7346_v20  ;;  %v12374_v20 = vld [vmem:[%s20793_s5 + $0xa8] sm:$0xff]   ;;  %v5303_v34 = vsel %vm822_vm11, %v12158_v2, %v12159_v60  ;;  %v12379_v2 = vld [vmem:[%s20793_s5 + $0x1c0] sm:$0xff]   ;;  %v12278_v60 = vld [vmem:[%s20794_s6 + $0x14] sm:$0x1f]  }
 0xbce   :  { %v5367_v3 = vmax.f32 %v20152_v6, %v5303_v34  ;;  %v12381_v6 = vld [vmem:[%s20793_s5 + $0x1c8] sm:$0xff]  }
 0xbcf   :  { %9557 = vmatmul.mubr.msk.bf16.vlgmr.msra.gmra.mrb[56].mxu1 %vm7382_vm2, %v7347_v36  ;;  %v5287_v36 = vsel %vm822_vm11, %v12153_v58, %v12154_v49  ;;  %vm7430_vm11 = vcmask 73728  }
 0xbd0   :  { %9245 = vmatpush3.bf16.msra.mxu1 %v12348_v42  ;;  %7472 = vmatprep.mubr.bf16.mxu1 %v7433_v50  ;;  %v12376_v50 = vld [vmem:[%s20793_s5 + $0xb0] sm:$0xff]   ;;  %v12377_v42 = vld [vmem:[%s20793_s5 + $0xf8] sm:$0xff]  }
 0xbd1   :  { %9246 = vmatprep.subr.bf16.mxu1 %v12349_v39  ;;  %v5351_v39 = vmax.f32 %v20156_v8, %v5287_v36  ;;  %v12382_v8 = vld [vmem:[%s20793_s5 + $0x188] sm:$0xff]  }
 0xbd3   :  { %v7439_v58 = vpack.c.bf16 %v5367_v3, %v5351_v39  ;;  %v7696_v39 = vshrl.u32 %v12278_v60, 16 }
 0xbd4   :  { %9247 = vmatpush3.bf16.msra.mxu1 %v12350_v7  ;;  %v12380_v7 = vld [vmem:[%s20793_s5 + $0x180] sm:$0xff]  }
 0xbd5   :  { %9248 = vmatprep.subr.bf16.mxu1 %v12351_v48  ;;  %v12384_v48 = vld [vmem:[%s20793_s5 + $0x190] sm:$0xff]  }
 0xbd8   :  { %9249 = vmatpush3.bf16.msra.mxu1 %v12352_v51  ;;  %v12385_v51 = vld [vmem:[%s20793_s5 + $0x1d8] sm:$0xff]  }
 0xbd9   :  { %9250 = vmatprep.subr.bf16.mxu1 %v12353_v15  ;;  %v12386_v15 = vld [vmem:[%s20793_s5 + $0x198] sm:$0xff]  }
 0xbdc   :  { %9251 = vmatpush3.bf16.msra.mxu1 %v12354_v0  ;;  %v12387_v0 = vld [vmem:[%s20793_s5 + $0x1e0] sm:$0xff]  }
 0xbdd   :  { %9252 = vmatprep.subr.bf16.mxu1 %v12355_v27  ;;  %v12388_v27 = vld [vmem:[%s20793_s5 + $0x1a0] sm:$0xff]  }
 0xbe0   :  { %9253 = vmatpush3.bf16.msra.mxu1 %v12356_v23  ;;  %v12389_v23 = vld [vmem:[%s20793_s5 + $0x1e8] sm:$0xff]  }
 0xbe1   :  { %9254 = vmatprep.subr.bf16.mxu1 %v12357_v31  ;;  %v12390_v31 = vld [vmem:[%s20793_s5 + $0x1a8] sm:$0xff]  }
 0xbe4   :  { %9255 = vmatpush3.bf16.msra.mxu1 %v12358_v40  ;;  %v12391_v40 = vld [vmem:[%s20793_s5 + $0x1f0] sm:$0xff]  }
 0xbe5   :  { %9256 = vmatprep.subr.bf16.mxu1 %v12359_v38  ;;  %v12392_v38 = vld [vmem:[%s20793_s5 + $0x1b0] sm:$0xff]  }
 0xbe8   :  { %9257 = vmatpush3.bf16.msra.mxu1 %v12360_v26 }
 0xbe9   :  { %9258 = vmatprep.subr.bf16.mxu1 %v12361_v32 }
 0xbec   :  { %9259 = vmatpush3.bf16.msra.mxu1 %v12362_v29 }
 0xbed   :  { %9266 = vmatprep.subr.bf16.mxu1 %v12363_v33 }
 0xbef   :  { %7473 = vmatmul.mubr.bf16.vlgmr.msra.gmra.mrb[60].mxu1 %v7432_v12 }
 0xbf0   :  { %9267 = vmatpush3.bf16.msra.mxu1 %v12364_v16  ;;  %7513 = vmatprep.mubr.bf16.mxu1 %v20235_v35  ;;  %v12369_v35 = vld [vmem:[%s20793_s5 + $0xd8] sm:$0xff]  }
 0xbf1   :  { %9268 = vmatprep.subr.bf16.mxu1 %v12365_v9 }
 0xbf4   :  { %9269 = vmatpush3.bf16.msra.mxu1 %v12366_v30 }
 0xbf5   :  { %9270 = vmatprep.subr.bf16.mxu1 %v12367_v24 }
 0xbf8   :  { %9271 = vmatpush3.bf16.msra.mxu1 %v12368_v59 }
 0xbf9   :  { %9272 = vmatprep.subr.bf16.mxu1 %v12369_v35 }
 0xbfc   :  { %9273 = vmatpush3.bf16.msra.mxu1 %v12370_v11 }
 0xbfd   :  { %9274 = vmatprep.subr.bf16.mxu1 %v12371_v28 }
 0xc00   :  { %9275 = vmatpush3.bf16.msra.mxu1 %v12372_v4 }
 0xc01   :  { %9276 = vmatprep.subr.bf16.mxu1 %v12373_v56  ;;  %v12277_v56 = vld [vmem:[%s20794_s6 + $0xc] sm:$0xff]  }
 0xc02   :  { %v7687_v49 = vshll.u32 %v12277_v56, 16 }
 0xc04   :  { %9277 = vmatpush3.bf16.msra.mxu1 %v12374_v20  ;;  %v7692_v20 = vshll.u32 %v12278_v60, 16  ;;  %v7689_v34 = vrot.slane %v7687_v49, 1 }
 0xc05   :  { %9278 = vmatprep.subr.bf16.mxu1 %v12375_v1  ;;  %v7685_v1 = vshrl.u32 %v12277_v56, 16 }
 0xc08   :  { %9279 = vmatpush3.bf16.msra.mxu1 %v12376_v50 }
 0xc09   :  { %9280 = vmatprep.subr.bf16.mxu1 %v12377_v42  ;;  %v7694_v42 = vrot.slane %v7692_v20, 1 }
 0xc0c   :  { %9281 = vmatpush3.bf16.msra.mxu1 %v12378_v45  ;;  %v7690_v45 = vor.u32 %v7689_v34, %v7685_v1 }
 0xc0d   :  { %9310 = vmatprep.subr.bf16.mxu1 %v12379_v2 }
 0xc0f   :  { %7514 = vmatmul.mubr.bf16.vlgmr.msra.gmra.mrb[64].mxu1 %v20237_v61  ;;  %v12383_v61 = vld [vmem:[%s20793_s5 + $0x1d0] sm:$0xff]  }
 0xc10   :  { %9311 = vmatpush3.bf16.msra.mxu1 %v12380_v7  ;;  %7595 = vmatprep.mubr.bf16.mxu1 %v7439_v58  ;;  %v7698_v7 = vor.u32 %v7696_v39, %v7694_v42  ;;  %v12287_v39 = vld [vmem:[%s20794_s6 + $0x48] sm:$0xf8]  }
 0xc11   :  { %9312 = vmatprep.subr.bf16.mxu1 %v12381_v6 }
 0xc14   :  { %9313 = vmatpush3.bf16.msra.mxu1 %v12382_v8 }
 0xc15   :  { %9314 = vmatprep.subr.bf16.mxu1 %v12383_v61  ;;  %v7695_v61 = vsel %vm6162_vm8, %v7690_v45, %v7694_v42 }
 0xc18   :  { %9315 = vmatpush3.bf16.msra.mxu1 %v12384_v48  ;;  %v7704_v48 = vand.u32 %v7698_v7, %v19680_v63 }
 0xc19   :  { %9316 = vmatprep.subr.bf16.mxu1 %v12385_v51  ;;  %v12279_v51 = vld [vmem:[%s20794_s6 + $0x18] sm:$0xfe]  }
 0xc1c   :  { %9317 = vmatpush3.bf16.msra.mxu1 %v12386_v15  ;;  %v12280_v15 = vld [vmem:[%s20794_s6 + $0x20] sm:$0x3f]  }
 0xc1d   :  { %9318 = vmatprep.subr.bf16.mxu1 %v12387_v0  ;;  %v7763_v0 = vrot.slane %v12279_v51, 1 }
 0xc20   :  { %9319 = vmatpush3.bf16.msra.mxu1 %v12388_v27  ;;  %v7764_v27 = vrot.slane %v12280_v15, 1 }
 0xc21   :  { %9320 = vmatprep.subr.bf16.mxu1 %v12389_v23  ;;  %v12281_v23 = vld [vmem:[%s20794_s6 + $0x24] sm:$0xfe]  }
 0xc24   :  { %9321 = vmatpush3.bf16.msra.mxu1 %v12390_v31  ;;  %v12282_v31 = vld [vmem:[%s20794_s6 + $0x2c] sm:$0x3f]  }
 0xc25   :  { %9322 = vmatprep.subr.bf16.mxu1 %v12391_v40  ;;  %v7765_v40 = vsel %vm6242_vm7, %v7763_v0, %v7764_v27 }
 0xc28   :  { %9323 = vmatpush3.bf16.msra.mxu1 %v12392_v38  ;;  %v7830_v38 = vshrl.u32 %v12281_v23, 16 }
 0xc29   :  { %9324 = vmatprep.subr.bf16.mxu1 %v12393_v25 }
 0xc2c   :  { %9325 = vmatpush3.bf16.msra.mxu1 %v12394_v57  ;;  %v7833_v57 = vshll.u32 %v12281_v23, 16 }
 0xc2d   :  { %9688 = vmatprep.subr.bf16.mxu1 %v12442_v43 }
 0xc2f   :  { %7596 = vmatmul.mubr.bf16.vlgmr.msra.gmra.mrb[68].mxu1 %v20261_v19 }
 0xc30   :  { %9689 = vmatpush3.bf16.msra.mxu1 %v20125_v14  ;;  %9704 = vmatprep.mubr.msk.bf16.mxu1 %vm12444_vm6, %v12442_v43  ;;  %v12275_v14 = vld [vmem:[%s20794_s6] sm:$0xff]  }
 0xc31   :  { %9690 = vmatprep.subr.bf16.mxu1 %v12442_v43  ;;  %9561 = vmatpush3.bf16.msra.mxu0 %v12275_v14  ;;  %v7838_v14 = vshrl.u32 %v12282_v31, 16 }
 0xc32   :  { %9562 = vmatprep.subr.bf16.mxu0 %v12442_v43 }
 0xc34   :  { %9691 = vmatpush3.bf16.msra.mxu1 %v20134_v54  ;;  %v12276_v54 = vld [vmem:[%s20794_s6 + $0x8] sm:$0x1f]  }
 0xc35   :  { %9692 = vmatprep.subr.bf16.mxu1 %v12442_v43 }
 0xc38   :  { %9693 = vmatpush3.bf16.msra.mxu1 %v20169_v55  ;;  %v7625_v55 = vand.u32 %v12276_v54, %v19680_v63  ;;  %v7841_v54 = vshll.u32 %v12282_v31, 16 }
 0xc39   :  { %9694 = vmatprep.subr.bf16.mxu1 %v12442_v43 }
 0xc3a   :  { %9563 = vmatpush3.bf16.msra.mxu0 %v7625_v55  ;;  %v7771_v55 = vand.u32 %v7764_v27, %v19680_v63 }
 0xc3b   :  { %9568 = vmatprep.subr.bf16.mxu0 %v12442_v43 }
 0xc3c   :  { %9695 = vmatpush3.bf16.msra.mxu1 %v20182_v62  ;;  %v7348_v62 = vld [vmem:[%s20799_s11] sm:$0x1] }
 0xc3d   :  { %9696 = vmatprep.subr.bf16.mxu1 %v12442_v43 }
 0xc40   :  { %9697 = vmatpush3.bf16.msra.mxu1 %v20190_v21 }
 0xc41   :  { %9698 = vmatprep.subr.bf16.mxu1 %v12442_v43 }
 0xc44   :  { %9699 = vmatpush3.bf16.msra.mxu1 %v20197_v44 }
 0xc45   :  { %9700 = vmatprep.subr.bf16.mxu1 %v12442_v43 }
 0xc48   :  { %9701 = vmatpush3.bf16.msra.mxu1 %v20207_v37 }
 0xc49   :  { %9702 = vmatprep.subr.bf16.mxu1 %v12442_v43 }
 0xc4c   :  { %9703 = vmatpush3.bf16.msra.mxu1 %v20216_v41 }
 0xc4d   :  { %9708 = vmatprep.subr.bf16.mxu1 %v12442_v43 }
 0xca2   :  { %v7424_v21 = vpop.f32.mrb[56].mxu1 }
 0xca3   :  { %v7425_v44 = vadd.f32 %v7424_v21, %v7348_v62  ;;  %v9558_v37 = vpop.f32.mrb[57].mxu1  ;;  %v7832_v62 = vrot.slane %v7830_v38, 1  ;;  %v7835_v21 = vrot.slane %v7833_v57, 2 }
 0xca4   :  { %v7427_v41 = vpop.f32.mrb[58].mxu1  ;;  %v7843_v37 = vrot.slane %v7841_v54, 2 }
 0xca5   :  { %7431 = vst.msk [vmem:[#allocation2] sm:$0x1] %vm7430_vm11, %v7425_v44  ;;  %v9559_v19 = vpop.f32.mrb[59].mxu1  ;;  %v7840_v44 = vrot.slane %v7838_v14, 1  ;;  %v7836_v41 = vor.u32 %v7835_v21, %v7832_v62  ;;  %v12293_v62 = vld [vmem:[%s20794_s6 + $0x70] sm:$0xff]  }
 0xca6   :  { %v12292_v21 = vld [vmem:[%s20794_s6 + $0x6c] sm:$0x1f]  }
 0xca7   :  { %v7844_v19 = vor.u32 %v7843_v37, %v7840_v44  ;;  %v12294_v44 = vld [vmem:[%s20794_s6 + $0x78] sm:$0x1f]  }
 0xcc2   :  { %v9260_v26 = vpop.f32.mrb[60].mxu1 }
 0xcc3   :  { %v9261_v18 = vpop.f32.mrb[61].mxu1 }
 0xcc4   :  { %v9262_v32 = vadd.f32 %v9261_v18, %v9260_v26  ;;  %v9263_v17 = vpop.f32.mrb[62].mxu1  ;;  %v7845_v18 = vsel %vm6309_vm4, %v7836_v41, %v7844_v19  ;;  %v8268_v41 = vshll.u32 %v12293_v62, 16 }
 0xcc5   :  { %v9264_v29 = vpop.f32.mrb[63].mxu1 }
 0xcc6   :  { %v9265_v12 = vadd.f32 %v9264_v29, %v9263_v17  ;;  %v12283_v17 = vld [vmem:[%s20794_s6 + $0x30] sm:$0xfc]   ;;  %v12284_v29 = vld [vmem:[%s20794_s6 + $0x38] sm:$0x7f]  }
 0xce2   :  { %v9282_v33 = vpop.f32.mrb[64].mxu1 }
 0xce3   :  { %v9283_v16 = vpop.f32.mrb[65].mxu1 }
 0xce4   :  { %v9284_v9 = vadd.f32 %v9283_v16, %v9282_v33  ;;  %v9285_v30 = vpop.f32.mrb[66].mxu1  ;;  %v7910_v33 = vrot.slane %v12284_v29, 2  ;;  %v12285_v16 = vld [vmem:[%s20794_s6 + $0x3c] sm:$0xfc]   ;;  %v8277_v29 = vshrl.u32 %v12294_v44, 16 }
 0xce5   :  { %v9286_v24 = vpop.f32.mrb[67].mxu1 }
 0xce6   :  { %v7516_v59 = vadd.f32 %v9284_v9, %v9262_v32  ;;  %v9287_v35 = vadd.f32 %v9286_v24, %v9285_v30  ;;  %v7851_v32 = vand.u32 %v7844_v19, %v19680_v63  ;;  %v12286_v9 = vld [vmem:[%s20794_s6 + $0x44] sm:$0x7f]   ;;  %v7976_v24 = vshrl.u32 %v12285_v16, 16 }
 0xce7   :  { %v8206_v19 = vand.u32 %v12292_v21, %v19680_v63 }
 0xce8   :  { %v7519_v11 = vadd.f32 %v9287_v35, %v9265_v12  ;;  %v7557_v28 = vadd.f32 %v20313_v5, %v7516_v59  ;;  %v7909_v12 = vrot.slane %v12283_v17, 2  ;;  %v7979_v35 = vshll.u32 %v12285_v16, 16 }
 0xce9   :  { %v7978_v56 = vrot.slane %v7976_v24, 2 }
 0xcea   :  { %v7560_v4 = vadd.f32 %v20315_v53, %v7519_v11  ;;  %v7911_v30 = vsel %vm6390_vm9, %v7909_v12, %v7910_v33  ;;  %v7984_v11 = vshrl.u32 %v12286_v9, 16  ;;  %v7981_v60 = vrot.slane %v7979_v35, 3  ;;  %v12297_v35 = vld [vmem:[%s20794_s6 + $0x88] sm:$0xfe]  }
 0xcec   :  { %v7986_v49 = vrot.slane %v7984_v11, 2  ;;  %v7982_v1 = vor.u32 %v7981_v60, %v7978_v56  ;;  %v12298_v11 = vld [vmem:[%s20794_s6 + $0x90] sm:$0x3f]   ;;  %v8414_v60 = vshll.u32 %v12297_v35, 16 }
 0xd02   :  { %v9326_v36 = vpop.f32.mrb[68].mxu1 }
 0xd03   :  { %v9327_v50 = vpop.f32.mrb[69].mxu1 }
 0xd04   :  { %v9328_v3 = vadd.f32 %v9327_v50, %v9326_v36  ;;  %v9329_v5 = vpop.f32.mrb[70].mxu1 }
 0xd05   :  { %v9330_v53 = vpop.f32.mrb[71].mxu1 }
 0xd06   :  { %v7598_v2 = vadd.f32 %v9328_v3, %v7557_v28  ;;  %v9331_v58 = vadd.f32 %v9330_v53, %v9329_v5  ;;  %v7987_v28 = vshll.u32 %v12286_v9, 16  ;;  %v12288_v3 = vld [vmem:[%s20794_s6 + $0x50] sm:$0xff]   ;;  %v8055_v5 = vrot.slane %v12287_v39, 3 }
 0xd07   :  { %v8056_v45 = vrot.slane %v12288_v3, 3  ;;  %v12289_v53 = vld [vmem:[%s20794_s6 + $0x54] sm:$0xf8]  }
 0xd08   :  { %v20533_v6 = vpack.c.bf16 %v7598_v2, %v7598_v2  ;;  %v20535_v8 = vadd.f32 %v9331_v58, %v7560_v4  ;;  %v7917_v4 = vand.u32 %v7910_v33, %v19680_v63  ;;  %v7989_v20 = vrot.slane %v7987_v28, 3  ;;  %v12290_v2 = vld [vmem:[%s20794_s6 + $0x5c] sm:$0xff]  }
 0xd09   :  { %v8057_v58 = vsel %vm6099_vm13, %v8055_v5, %v8056_v45  ;;  %v8122_v7 = vshrl.u32 %v12289_v53, 16  ;;  %v8130_v51 = vshrl.u32 %v12290_v2, 16  ;;  %v8133_v15 = vshll.u32 %v12290_v2, 16  ;;  %v12299_v2 = vld [vmem:[%s20794_s6 + $0x94] sm:$0xfc]  }
 0xd0a   :  { %9565 = vmatmul.mubr.msk.bf16.vlgmr.msra.gmra.mrb[48].mxu0 %vm6095_vm3, %v20533_v6  ;;  %v20559_v25 = vshrl.u32 %v20533_v6, 16  ;;  %v7752_v26 = vrot.slane %v20533_v6, 1  ;;  %v7990_v34 = vor.u32 %v7989_v20, %v7986_v49  ;;  %v7898_v36 = vrot.slane %v20533_v6, 2 }
 0xd0b   :  { %9569 = vmatpush3.bf16.msra.mxu0 %v7695_v61  ;;  %9572 = vmatprep.mubr.msk.bf16.mxu0 %vm12444_vm6, %v12442_v43  ;;  %v8063_v0 = vand.u32 %v8056_v45, %v19680_v63  ;;  %v8124_v27 = vrot.slane %v8122_v7, 3  ;;  %v8132_v31 = vrot.slane %v8130_v51, 3  ;;  %v8044_v14 = vrot.slane %v20533_v6, 3  ;;  %v12291_v6 = vld [vmem:[%s20794_s6 + $0x64] sm:$0xff]  }
 0xd0c   :  { %9570 = vmatprep.subr.bf16.mxu0 %v12442_v43  ;;  %v7818_v59 = vrot.slane %v20559_v25, 1  ;;  %v7991_v50 = vsel %vm6457_vm5, %v7982_v1, %v7990_v34  ;;  %v7997_v42 = vand.u32 %v7990_v34, %v19680_v63  ;;  %v7964_v61 = vrot.slane %v20559_v25, 2  ;;  %v12302_v51 = vld [vmem:[%s20794_s6 + $0xa8] sm:$0x7f]  }
 0xd0d   :  { %v8110_v37 = vrot.slane %v20559_v25, 3  ;;  %v20653_v33 = vpack.c.bf16 %v20535_v8, %v20535_v8  ;;  %v12296_v8 = vld [vmem:[%s20794_s6 + $0x84] sm:$0x3f]   ;;  %v8419_v49 = vshrl.u32 %v12298_v11, 16  ;;  %v8422_v20 = vshll.u32 %v12298_v11, 16 }
 0xd0e   :  { %v8490_v7 = vrot.slane %v12299_v2, 2 }
 0xd0f   :  { %9571 = vmatpush3.bf16.msra.mxu0 %v7704_v48  ;;  %v8125_v48 = vshll.u32 %v12289_v53, 16  ;;  %v20677_v56 = vshrl.u32 %v20653_v33, 16  ;;  %v8333_v5 = vrot.slane %v20653_v33, 1  ;;  %v8479_v21 = vrot.slane %v20653_v33, 2 }
 0xd10   :  { %9576 = vmatprep.subr.bf16.mxu0 %v12442_v43 }
 0xd11   :  { %v8127_v23 = vrot.slane %v8125_v48, 4  ;;  %v12301_v48 = vld [vmem:[%s20794_s6 + $0xa0] sm:$0xfc]  }
 0xd13   :  { %v8128_v38 = vor.u32 %v8127_v23, %v8124_v27  ;;  %v8557_v27 = vshrl.u32 %v12301_v48, 16  ;;  %v8560_v23 = vshll.u32 %v12301_v48, 16 }
 0xd16   :  { %9573 = vmatmul.mubr.msk.bf16.vlgmr.msra.gmra.mrb[48].mxu0 %vm6095_vm3, %v20559_v25 }
 0xd17   :  { %9577 = vmatpush3.bf16.msra.mxu0 %v7765_v40  ;;  %9580 = vmatprep.mubr.msk.bf16.mxu0 %vm12444_vm6, %v12442_v43  ;;  %v8135_v40 = vrot.slane %v8133_v15, 4  ;;  %v8399_v15 = vrot.slane %v20677_v56, 1 }
 0xd18   :  { %9578 = vmatprep.subr.bf16.mxu0 %v12442_v43 }
 0xd19   :  { %v8136_v57 = vor.u32 %v8135_v40, %v8132_v31  ;;  %v8565_v31 = vshrl.u32 %v12302_v51, 16  ;;  %v8568_v40 = vshll.u32 %v12302_v51, 16 }
 0xd1b   :  { %9579 = vmatpush3.bf16.msra.mxu0 %v7771_v55  ;;  %v8137_v54 = vsel %vm6605_vm15, %v8128_v38, %v8136_v57  ;;  %v8143_v55 = vand.u32 %v8136_v57, %v19680_v63  ;;  %v8559_v57 = vrot.slane %v8557_v27, 2 }
 0xd1c   :  { %9584 = vmatprep.subr.bf16.mxu0 %v12442_v43 }
 0xd22   :  { %9581 = vmatmul.mubr.msk.bf16.vlgmr.msra.gmra.mrb[48].mxu0 %vm6095_vm3, %v7752_v26  ;;  %v8273_v26 = vshll.u32 %v12294_v44, 16 }
 0xd23   :  { %9585 = vmatpush3.bf16.msra.mxu0 %v7845_v18  ;;  %9588 = vmatprep.mubr.msk.bf16.mxu0 %vm12444_vm6, %v12442_v43  ;;  %v8266_v18 = vshrl.u32 %v12293_v62, 16 }
 0xd24   :  { %9586 = vmatprep.subr.bf16.mxu0 %v12442_v43  ;;  %v8275_v17 = vrot.slane %v8273_v26, 1 }
 0xd26   :  { %v8279_v12 = vor.u32 %v8277_v29, %v8275_v17  ;;  %v8545_v29 = vrot.slane %v20677_v56, 2 }
 0xd27   :  { %9587 = vmatpush3.bf16.msra.mxu0 %v7851_v32  ;;  %v8270_v32 = vrot.slane %v8268_v41, 1  ;;  %v12303_v41 = vld [vmem:[%s20794_s6 + $0xac] sm:$0xf8]  }
 0xd28   :  { %9592 = vmatprep.subr.bf16.mxu0 %v12442_v43  ;;  %v8285_v9 = vand.u32 %v8279_v12, %v19680_v63  ;;  %v8636_v26 = vrot.slane %v12303_v41, 3 }
 0xd29   :  { %v8271_v25 = vor.u32 %v8270_v32, %v8266_v18  ;;  %v12305_v32 = vld [vmem:[%s20794_s6 + $0xb8] sm:$0xf8]  }
 0xd2a   :  { %v8703_v12 = vshrl.u32 %v12305_v32, 16 }
 0xd2b   :  { %v8276_v16 = vsel %vm6162_vm8, %v8271_v25, %v8275_v17  ;;  %v12306_v17 = vld [vmem:[%s20794_s6 + $0xc0] sm:$0xff]  }
 0xd2e   :  { %9589 = vmatmul.mubr.msk.bf16.vlgmr.msra.gmra.mrb[48].mxu0 %vm6095_vm3, %v7818_v59  ;;  %v8345_v59 = vrot.slane %v12296_v8, 1 }
 0xd2f   :  { %9593 = vmatpush3.bf16.msra.mxu0 %v7911_v30  ;;  %9596 = vmatprep.mubr.msk.bf16.mxu0 %vm12444_vm6, %v12442_v43  ;;  %v12295_v30 = vld [vmem:[%s20794_s6 + $0x7c] sm:$0xfe]  }
 0xd30   :  { %9594 = vmatprep.subr.bf16.mxu0 %v12442_v43  ;;  %v8344_v24 = vrot.slane %v12295_v30, 1  ;;  %v8352_v1 = vand.u32 %v8345_v59, %v19680_v63  ;;  %v8714_v30 = vshll.u32 %v12306_v17, 16 }
 0xd32   :  { %v8346_v28 = vsel %vm6242_vm7, %v8344_v24, %v8345_v59  ;;  %v8705_v24 = vrot.slane %v8703_v12, 3  ;;  %v8716_v11 = vrot.slane %v8714_v30, 4 }
 0xd33   :  { %9595 = vmatpush3.bf16.msra.mxu0 %v7917_v4  ;;  %v8411_v4 = vshrl.u32 %v12297_v35, 16 }
 0xd34   :  { %9600 = vmatprep.subr.bf16.mxu0 %v12442_v43 }
 0xd35   :  { %v8413_v34 = vrot.slane %v8411_v4, 1 }
 0xd3a   :  { %9597 = vmatmul.mubr.msk.bf16.vlgmr.msra.gmra.mrb[48].mxu0 %vm6095_vm3, %v7898_v36  ;;  %v8416_v36 = vrot.slane %v8414_v60, 2  ;;  %v8625_v60 = vrot.slane %v20653_v33, 3 }
 0xd3b   :  { %9601 = vmatpush3.bf16.msra.mxu0 %v7991_v50  ;;  %9604 = vmatprep.mubr.msk.bf16.mxu0 %vm12444_vm6, %v12442_v43  ;;  %v8421_v50 = vrot.slane %v8419_v49, 1 }
 0xd3c   :  { %9602 = vmatprep.subr.bf16.mxu0 %v12442_v43  ;;  %v8417_v39 = vor.u32 %v8416_v36, %v8413_v34 }
 0xd3f   :  { %9603 = vmatpush3.bf16.msra.mxu0 %v7997_v42  ;;  %v8424_v42 = vrot.slane %v8422_v20, 2 }
 0xd40   :  { %9608 = vmatprep.subr.bf16.mxu0 %v12442_v43 }
 0xd41   :  { %v8425_v3 = vor.u32 %v8424_v42, %v8421_v50 }
 0xd43   :  { %v8426_v45 = vsel %vm6309_vm4, %v8417_v39, %v8425_v3  ;;  %v8432_v53 = vand.u32 %v8425_v3, %v19680_v63 }
 0xd46   :  { %9605 = vmatmul.mubr.msk.bf16.vlgmr.msra.gmra.mrb[48].mxu0 %vm6095_vm3, %v7964_v61 }
 0xd47   :  { %9609 = vmatpush3.bf16.msra.mxu0 %v8057_v58  ;;  %9612 = vmatprep.mubr.msk.bf16.mxu0 %vm12444_vm6, %v12442_v43  ;;  %v12300_v58 = vld [vmem:[%s20794_s6 + $0x9c] sm:$0x7f]  }
 0xd48   :  { %9610 = vmatprep.subr.bf16.mxu0 %v12442_v43  ;;  %v8491_v61 = vrot.slane %v12300_v58, 2 }
 0xd4a   :  { %v8498_v38 = vand.u32 %v8491_v61, %v19680_v63 }
 0xd4b   :  { %9611 = vmatpush3.bf16.msra.mxu0 %v8063_v0  ;;  %v8492_v0 = vsel %vm6390_vm9, %v8490_v7, %v8491_v61 }
 0xd4c   :  { %9616 = vmatprep.subr.bf16.mxu0 %v12442_v43 }
 0xd52   :  { %9613 = vmatmul.mubr.msk.bf16.vlgmr.msra.gmra.mrb[48].mxu0 %vm6095_vm3, %v8044_v14  ;;  %v8562_v14 = vrot.slane %v8560_v23, 3 }
 0xd53   :  { %9617 = vmatpush3.bf16.msra.mxu0 %v8137_v54  ;;  %9620 = vmatprep.mubr.msk.bf16.mxu0 %vm12444_vm6, %v12442_v43  ;;  %v8567_v54 = vrot.slane %v8565_v31, 2 }
 0xd54   :  { %9618 = vmatprep.subr.bf16.mxu0 %v12442_v43  ;;  %v8563_v62 = vor.u32 %v8562_v14, %v8559_v57 }
 0xd57   :  { %9619 = vmatpush3.bf16.msra.mxu0 %v8143_v55  ;;  %v8570_v55 = vrot.slane %v8568_v40, 3 }
 0xd58   :  { %9624 = vmatprep.subr.bf16.mxu0 %v12442_v43 }
 0xd5e   :  { %9621 = vmatmul.mubr.msk.bf16.vlgmr.msra.gmra.mrb[48].mxu0 %vm6095_vm3, %v8110_v37 }
 0xd5f   :  { %9625 = vmatpush3.bf16.msra.mxu0 %v12291_v6  ;;  %9628 = vmatprep.mubr.msk.bf16.mxu0 %vm12444_vm6, %v12442_v43  ;;  %v8571_v6 = vor.u32 %v8570_v55, %v8567_v54 }
 0xd60   :  { %9626 = vmatprep.subr.bf16.mxu0 %v12442_v43 }
 0xd61   :  { %v8572_v44 = vsel %vm6457_vm5, %v8563_v62, %v8571_v6  ;;  %v8578_v37 = vand.u32 %v8571_v6, %v19680_v63 }
 0xd63   :  { %9627 = vmatpush3.bf16.msra.mxu0 %v8206_v19  ;;  %v12304_v19 = vld [vmem:[%s20794_s6 + $0xb4] sm:$0xff]  }
 0xd64   :  { %9632 = vmatprep.subr.bf16.mxu0 %v12442_v43  ;;  %v8637_v18 = vrot.slane %v12304_v19, 3 }
 0xd66   :  { %v8638_v25 = vsel %vm6099_vm13, %v8636_v26, %v8637_v18  ;;  %v8644_v8 = vand.u32 %v8637_v18, %v19680_v63 }
 0xd6a   :  { %9629 = vmatmul.mubr.msk.bf16.vlgmr.msra.gmra.mrb[48].mxu0 %vm6095_vm3, %v20653_v33  ;;  %v7604_v33 = vld [vmem:[%s20795_s7] sm:$0x1] }
 0xd6b   :  { %9633 = vmatpush3.bf16.msra.mxu0 %v8276_v16  ;;  %9636 = vmatprep.mubr.msk.bf16.mxu0 %vm12444_vm6, %v12442_v43  ;;  %v8706_v16 = vshll.u32 %v12305_v32, 16 }
 0xd6c   :  { %9634 = vmatprep.subr.bf16.mxu0 %v12442_v43 }
 0xd6d   :  { %v8708_v59 = vrot.slane %v8706_v16, 4 }
 0xd6f   :  { %9635 = vmatpush3.bf16.msra.mxu0 %v8285_v9  ;;  %v8711_v9 = vshrl.u32 %v12306_v17, 16 }
 0xd70   :  { %9640 = vmatprep.subr.bf16.mxu0 %v12442_v43 }
 0xd71   :  { %v8713_v35 = vrot.slane %v8711_v9, 3 }
 0xd73   :  { %v8717_v4 = vor.u32 %v8716_v11, %v8713_v35 }
 0xd75   :  { %v8724_v20 = vand.u32 %v8717_v4, %v19680_v63 }
 0xd76   :  { %9637 = vmatmul.mubr.msk.bf16.vlgmr.msra.gmra.mrb[48].mxu0 %vm6095_vm3, %v20677_v56 }
 0xd77   :  { %9641 = vmatpush3.bf16.msra.mxu0 %v8346_v28  ;;  %9644 = vmatprep.mubr.msk.bf16.mxu0 %vm12444_vm6, %v12442_v43  ;;  %v8709_v28 = vor.u32 %v8708_v59, %v8705_v24 }
 0xd78   :  { %9642 = vmatprep.subr.bf16.mxu0 %v12442_v43 }
 0xd79   :  { %v8718_v49 = vsel %vm6605_vm15, %v8709_v28, %v8717_v4 }
 0xd7b   :  { %9643 = vmatpush3.bf16.msra.mxu0 %v8352_v1  ;;  %v8691_v1 = vrot.slane %v20677_v56, 3 }
 0xd7c   :  { %9648 = vmatprep.subr.bf16.mxu0 %v12442_v43 }
 0xd82   :  { %9645 = vmatmul.mubr.msk.bf16.vlgmr.msra.gmra.mrb[48].mxu0 %vm6095_vm3, %v8333_v5 }
 0xd83   :  { %9649 = vmatpush3.bf16.msra.mxu0 %v8426_v45  ;;  %9652 = vmatprep.mubr.msk.bf16.mxu0 %vm12444_vm6, %v12442_v43 }
 0xd84   :  { %9650 = vmatprep.subr.bf16.mxu0 %v12442_v43 }
 0xd87   :  { %9651 = vmatpush3.bf16.msra.mxu0 %v8432_v53 }
 0xd88   :  { %9656 = vmatprep.subr.bf16.mxu0 %v12442_v43 }
 0xd8e   :  { %9653 = vmatmul.mubr.msk.bf16.vlgmr.msra.gmra.mrb[48].mxu0 %vm6095_vm3, %v8399_v15 }
 0xd8f   :  { %9657 = vmatpush3.bf16.msra.mxu0 %v8492_v0  ;;  %9660 = vmatprep.mubr.msk.bf16.mxu0 %vm12444_vm6, %v12442_v43 }
 0xd90   :  { %9658 = vmatprep.subr.bf16.mxu0 %v12442_v43 }
 0xd93   :  { %9659 = vmatpush3.bf16.msra.mxu0 %v8498_v38 }
 0xd94   :  { %9664 = vmatprep.subr.bf16.mxu0 %v12442_v43 }
 0xd9a   :  { %9661 = vmatmul.mubr.msk.bf16.vlgmr.msra.gmra.mrb[48].mxu0 %vm6095_vm3, %v8479_v21 }
 0xd9b   :  { %9665 = vmatpush3.bf16.msra.mxu0 %v8572_v44  ;;  %9668 = vmatprep.mubr.msk.bf16.mxu0 %vm12444_vm6, %v12442_v43 }
 0xd9c   :  { %9666 = vmatprep.subr.bf16.mxu0 %v12442_v43 }
 0xd9f   :  { %9667 = vmatpush3.bf16.msra.mxu0 %v8578_v37 }
 0xda0   :  { %9672 = vmatprep.subr.bf16.mxu0 %v12442_v43 }
 0xda6   :  { %9669 = vmatmul.mubr.msk.bf16.vlgmr.msra.gmra.mrb[48].mxu0 %vm6095_vm3, %v8545_v29 }
 0xda7   :  { %9673 = vmatpush3.bf16.msra.mxu0 %v8638_v25  ;;  %9676 = vmatprep.mubr.msk.bf16.mxu0 %vm12444_vm6, %v12442_v43 }
 0xda8   :  { %9674 = vmatprep.subr.bf16.mxu0 %v12442_v43 }
 0xdab   :  { %9675 = vmatpush3.bf16.msra.mxu0 %v8644_v8 }
 0xdac   :  { %9680 = vmatprep.subr.bf16.mxu0 %v12442_v43 }
 0xdb2   :  { %9677 = vmatmul.mubr.msk.bf16.vlgmr.msra.gmra.mrb[48].mxu0 %vm6095_vm3, %v8625_v60 }
 0xdb3   :  { %9681 = vmatpush3.bf16.msra.mxu0 %v8718_v49  ;;  %9684 = vmatprep.mubr.msk.bf16.mxu0 %vm12444_vm6, %v12442_v43 }
 0xdb4   :  { %9682 = vmatprep.subr.bf16.mxu0 %v12442_v43 }
 0xdb7   :  { %9683 = vmatpush3.bf16.msra.mxu0 %v8724_v20 }
 0xdbe   :  { %9685 = vmatmul.mubr.msk.bf16.vlgmr.msra.gmra.mrb[48].mxu0 %vm6095_vm3, %v8691_v1 }
 0xe91   :  { %v8760_v34 = vpop.f32.mrb[48].mxu0 }
 0xe92   :  { %v9725_v36 = vadd.f32 %v8760_v34, %v7604_v33  ;;  %v9686_v50 = vpop.f32.mrb[49].mxu0 }
 0xe93   :  { %v8763_v42 = vpop.f32.mrb[50].mxu0 }
 0xe94   :  { %v8767_v39 = vmax.f32 %v9725_v36, 0.0  ;;  %v9687_v63 = vpop.f32.mrb[51].mxu0 }
 0xe96   :  { %v8768_v3 = vpack.c.bf16 %v8767_v39, %v8767_v39 }
 0xe98   :  { %9705 = vmatmul.mubr.msk.bf16.vlgmr.msra.gmra.mrb[72].mxu1 %vm3254_vm12, %v8768_v3 }
 0xe99   :  { %9709 = vmatpush3.bf16.msra.mxu1 %v20269_v13  ;;  %9720 = vmatprep.mubr.msk.bf16.mxu1 %vm12444_vm6, %v12442_v43  ;;  %v8769_v13 = vld [vmem:[%s20797_s9] sm:$0x1]  ;;  %s12395_s9 = scalar_lea.vmem %s8867_s22, 32 }
 0xe9a   :  { %9710 = vmatprep.subr.bf16.mxu1 %v12442_v43  ;;  %p12396_p0 = scmp.ne.s32.totalorder %s8867_s22, %s12395_s9  ;;  %p12401_p2 = scmp.lt.s32.totalorder %s12395_s9, %s12395_s9 }
 0xe9c   :  { %p12402_p3 = por %p12401_p2, %p12400_p1 }
 0xe9d   :  { %9711 = vmatpush3.bf16.msra.mxu1 %v20276_v47 }
 0xe9e   :  { %9712 = vmatprep.subr.bf16.mxu1 %v12442_v43  ;;  %p12403_p4 = pnand %p12402_p3, %p12396_p0 }
 0xea1   :  { %9713 = vmatpush3.bf16.msra.mxu1 %v20285_v22 }
 0xea2   :  { %9714 = vmatprep.subr.bf16.mxu1 %v12442_v43 }
 0xea5   :  { %9715 = vmatpush3.bf16.msra.mxu1 %v20292_v10  ;;  %v8815_v10 = vld [vmem:[%s20799_s11] sm:$0x1] }
 0xea6   :  { %9716 = vmatprep.subr.bf16.mxu1 %v12442_v43 }
 0xea9   :  { %9717 = vmatpush3.bf16.msra.mxu1 %v20299_v46 }
 0xeaa   :  { %9718 = vmatprep.subr.bf16.mxu1 %v12442_v43 }
 0xead   :  { %9719 = vmatpush3.bf16.msra.mxu1 %v20307_v52 }
 0xf6b   :  { %v8807_v47 = vpop.f32.mrb[72].mxu1 }
 0xf6c   :  { %v8808_v56 = vadd.f32 %v8807_v47, %v8769_v13  ;;  %v9706_v5 = vpop.f32.mrb[73].mxu1 }
 0xf6d   :  { %v8810_v22 = vpop.f32.mrb[74].mxu1 }
 0xf6e   :  { %v8813_v45 = vmax.f32 %v8808_v56, 0.0  ;;  %v9707_v53 = vpop.f32.mrb[75].mxu1 }
 0xf70   :  { %v8814_v2 = vpack.c.bf16 %v8813_v45, %v8813_v45 }
 0xf72   :  { %9721 = vmatmul.mubr.msk.bf16.vlgmr.msra.gmra.mrb[76].mxu1 %vm7382_vm2, %v8814_v2 }
0x1045   :  { %v8853_v43 = vpop.f32.mrb[76].mxu1 }
0x1046   :  { %v8854_v46 = vadd.f32 %v8853_v43, %v8815_v10  ;;  %v9722_v52 = vpop.f32.mrb[77].mxu1 }
0x1047   :  { %v8856_v58 = vpop.f32.mrb[78].mxu1 }
0x1048   :  { %8859 = vst.msk [vmem:[#allocation2 + $0x1] sm:$0x1] %vm7430_vm11, %v8854_v46  ;;  %v9723_v7 = vpop.f32.mrb[79].mxu1 }
0x1049   :  { %12406 = shalt.err (!%p12403_p4)
}
0x104a   :  { %s12407_s11 = scalar_lea.hbm %s20800_s12, 32 }
0x104b   :  { %p12408_p5 = scmp.ne.s32.totalorder %s20800_s12, %s12407_s11  ;;  %p12411_p6 = scmp.lt.u32.totalorder %s12407_s11, %s20800_s12 }
0x104d   :  { %p12413_p7 = pnand %p12411_p6, %p12408_p5 }
0x104f   :  { %12416 = shalt.err (!%p12413_p7)
}
0x1050   :  { %8869 = dma.vmem_to_hbm [thread:$0]  %s8867_s22, 32, %s20800_s12, [#allocation3]  }
0x1051   :  { %12417 = dma.done.wait [#allocation3], 32  }
0x1052   :  { %12418 = vsyncadd [#allocation3], 4294967264 }
0x1053   :  { %8873 = vsyncpa [#allocation3], 1 }

</bundles_post_ra>
